<compile_context>
chip_gen: v6e
topology: v6e:2x2x1
jax: 0.10.0
libtpu: 0.0.40
codegen_flags: <defaults>
</compile_context>

<pallas_src>
import jax
import jax.numpy as jnp
from jax.experimental import pallas as pl
from jax.experimental.pallas import tpu as pltpu

KT = 3      # Conv1d kernel taps (nn.Conv1d(..., 3, ...) inside CauDilConv1D)
LP = 40     # per-sample lane-segment length (needs LP >= seq_len and LP >= 2*l_pool+15)


def _fused_kernel(x_ref, w1_ref, w2_ref, w3_ref, wa_ref, wc_ref, beff_ref,
                  wl2_ref, bl2_ref, sel_ref, o_ref):
    """Whole batch in one invocation.

    Lane layout of every activation: batch-major segments of LP positions, i.e. lane
    (b*LP + p) holds per-sample position p of sample b.  Dilated conv taps are static
    lane slices (valid per-sample positions never cross a segment boundary), each tap
    is one 2-D MXU matmul on stacked / block-diagonal weights.
    """
    w0 = x_ref.shape[1]
    w1, w2, w3 = w0 - 2, w0 - 6, w0 - 14        # widths after the d=1, d=2, d=4 stages
    wh = wa_ref.shape[2]
    pf = o_ref.shape[0]

    def stage(a, w_ref, d, w_out):
        acc = jnp.dot(w_ref[0], a[:, 0:w_out], preferred_element_type=jnp.float32)
        acc = acc + jnp.dot(w_ref[1], a[:, d:d + w_out],
                            preferred_element_type=jnp.float32)
        acc = acc + jnp.dot(w_ref[2], a[:, 2 * d:2 * d + w_out],
                            preferred_element_type=jnp.float32)
        return jnp.maximum(acc, 0.0)                       # conv + ReLU

    a1 = stage(x_ref[...], w1_ref, 1, w1)    # (3*OC,     W1): stage 1 of all branches
    a2 = stage(a1, w2_ref, 2, w2)            # (PF+4*OC,  W2): [b7 | mod10 | mod15]
    a3 = stage(a2, w3_ref, 4, w3)            # (2*PF,     W3): [c10 | c15]

    # MaxPool1d(2) = adjacent max; the even-position selection, the causal left-pad of
    # mod10/mod15, the 1x1 Conv1d, the channel-major Flatten and the first Linear are
    # all folded into the lane-tiled head weights wa/wc (built wrapper-side).
    b7 = a2[0:pf, :]
    a7m = jnp.maximum(b7[:, 0:wh], b7[:, 1:wh + 1])        # (PF,   WH)
    acm = jnp.maximum(a3[:, 0:wh], a3[:, 1:wh + 1])        # (2*PF, WH)

    u = ((wa_ref[...] * a7m[None, :, :]).sum(axis=1)
         + (wc_ref[...] * acm[None, :, :]).sum(axis=1))    # (2*PF_hidden, WH)

    # per-sample segment reduction as one matmul with a 0/1 selector matrix
    h1 = jnp.dot(u, sel_ref[...], preferred_element_type=jnp.float32) + beff_ref[...]
    # TODO(synk): nn.Dropout(p=0.5) is the identity at inference; train-mode RNG
    # masking is not implemented.
    h2 = jnp.dot(wl2_ref[...], h1, preferred_element_type=jnp.float32) + bl2_ref[...]

    m = jnp.max(h2, axis=0, keepdims=True)                 # softmax over classes
    e = jnp.exp(h2 - m)
    s = jnp.sum(e, axis=0, keepdims=True)
    o_ref[...] = (e / s).astype(o_ref.dtype)               # (PF, B)


def cnn_candle_forward(x, params):
    """x: (B, C_in, L=31) float32 -> (B, PF) softmax probabilities."""
    b, c_in, seq_len = x.shape
    pf = params["w1x1"].shape[0]          # pool_features
    oc = params["w7a"].shape[0]           # out_channels
    h1dim = params["wl1"].shape[0]        # 2 * pool_features
    l_inc = seq_len - 6                   # inception output length (25 for L=31)
    l_pool = l_inc // 2                   # MaxPool1d(2) output length (12)
    assert params["wl1"].shape[1] == pf * l_pool
    assert seq_len <= LP and LP >= 2 * l_pool + 15

    hp = jax.lax.Precision.HIGHEST
    f32 = jnp.float32

    w0 = b * LP
    wh = w0 - 15                          # width of the head (adjacent-max) arrays
    assert wh >= LP * (b - 1) + 2 * l_pool

    # x -> (C_in, B*LP): batch-major lane segments of LP positions, zero padded.
    xp = jnp.zeros((c_in, b, LP), f32)
    xp = xp.at[:, :, :seq_len].set(jnp.transpose(x, (1, 0, 2)).astype(f32))
    xp = xp.reshape(c_in, w0)

    def tap(w):   # (C_out, C_in, 3) -> (3, C_out, C_in)
        return jnp.transpose(w, (2, 0, 1)).astype(f32)

    w7a, w7b = tap(params["w7a"]), tap(params["w7b"])
    w10a, w10b, w10c = tap(params["w10a"]), tap(params["w10b"]), tap(params["w10c"])
    w15a, w15b, w15c = tap(params["w15a"]), tap(params["w15b"]), tap(params["w15c"])

    # Stacked / block-diagonal conv weights (branches share the lane-batched input).
    c1 = 3 * oc
    c2 = pf + 4 * oc
    w1s = jnp.concatenate([w7a, w10a, w15a], axis=1)            # (3, 3*OC, C_in)
    w2s = jnp.zeros((KT, c2, c1), f32)
    w2s = w2s.at[:, 0:pf, 0:oc].set(w7b)
    w2s = w2s.at[:, pf:pf + 2 * oc, oc:2 * oc].set(w10b)
    w2s = w2s.at[:, pf + 2 * oc:c2, 2 * oc:c1].set(w15b)
    w3s = jnp.zeros((KT, 2 * pf, c2), f32)
    w3s = w3s.at[:, 0:pf, pf:pf + 2 * oc].set(w10c)
    w3s = w3s.at[:, pf:2 * pf, pf + 2 * oc:c2].set(w15c)

    # Head: fold the 1x1 Conv1d into the first Linear (Weff), then tile it across the
    # lane axis so that the in-kernel multiply-reduce + selector matmul implements the
    # stride-2 pooled-position selection, causal pad, Flatten and Linear in one shot.
    w1x1 = params["w1x1"][:, :, 0].astype(f32)                  # (PF, 3*PF)
    b1x1 = params["b1x1"].astype(f32)                           # (PF,)
    wl1r = params["wl1"].astype(f32).reshape(h1dim, pf, l_pool)
    wfold = jnp.einsum("jct,cm->jmt", wl1r, w1x1, precision=hp)  # (H1, 3*PF, l_pool)
    beff = (params["bl1"].astype(f32)
            + jnp.dot(wl1r.sum(-1), b1x1, precision=hp))[:, None]   # (H1, 1)

    nz = 8 // 2   # causal_padding=8 -> first 4 pooled slots of mod10/mod15 are zero
    pat_a = jnp.zeros((h1dim, pf, LP), f32)
    pat_a = pat_a.at[:, :, 0:2 * l_pool:2].set(wfold[:, 0:pf, :])
    pat_c = jnp.zeros((h1dim, 2 * pf, LP), f32)
    pat_c = pat_c.at[:, :, 0:2 * (l_pool - nz):2].set(wfold[:, pf:3 * pf, nz:l_pool])
    wa = jnp.tile(pat_a, (1, 1, b))[:, :, :wh]                  # (H1, PF,   WH)
    wc = jnp.tile(pat_c, (1, 1, b))[:, :, :wh]                  # (H1, 2*PF, WH)

    wl2 = params["wl2"].astype(f32)                             # (PF, H1)
    bl2 = params["bl2"].astype(f32)[:, None]                    # (PF, 1)
    sel = (jnp.arange(wh)[:, None] // LP
           == jnp.arange(b)[None, :]).astype(f32)               # (WH, B), constant

    def full(a):
        nd = a.ndim
        return pl.BlockSpec(a.shape, lambda i, _nd=nd: (0,) * _nd)

    args = (xp, w1s, w2s, w3s, wa, wc, beff, wl2, bl2, sel)
    out = pl.pallas_call(
        _fused_kernel,
        out_shape=jax.ShapeDtypeStruct((pf, b), f32),
        grid=(1,),
        in_specs=[full(a) for a in args],
        out_specs=pl.BlockSpec((pf, b), lambda i: (0, 0)),
        compiler_params=pltpu.CompilerParams(dimension_semantics=("arbitrary",)),
    )(*args)

    return out.T    # (B, PF); 8x8 transpose in the wrapper keeps the kernel layout clean


def cnn_candle_reference(x, params):
    """Pure-JAX reference with the same semantics as the PyTorch module (inference)."""
    hp = jax.lax.Precision.HIGHEST

    def conv(a, w, d):
        return jax.lax.conv_general_dilated(
            a, w, window_strides=(1,), padding="VALID", rhs_dilation=(d,),
            dimension_numbers=("NCH", "OIH", "NCH"), precision=hp)

    relu = jax.nn.relu
    pad8 = lambda a: jnp.pad(a, ((0, 0), (0, 0), (8, 0)))

    mod7 = relu(conv(relu(conv(x, params["w7a"], 1)), params["w7b"], 2))
    mod10 = relu(conv(x, params["w10a"], 1))
    mod10 = relu(conv(mod10, params["w10b"], 2))
    mod10 = relu(pad8(conv(mod10, params["w10c"], 4)))
    mod15 = relu(conv(x, params["w15a"], 1))
    mod15 = relu(conv(mod15, params["w15b"], 2))
    mod15 = relu(pad8(conv(mod15, params["w15c"], 4)))

    z = jnp.concatenate([mod7, mod10, mod15], axis=1)               # (B, 3PF, 25)
    b, c3, l_inc = z.shape
    l_pool = l_inc // 2
    pooled = z[:, :, :2 * l_pool].reshape(b, c3, l_pool, 2).max(axis=-1)

    y = jnp.einsum("oc,bct->bot", params["w1x1"][:, :, 0], pooled,
                   precision=hp) + params["b1x1"][None, :, None]
    flat = y.reshape(b, -1)                                          # channel-major flatten
    h1 = jnp.dot(flat, params["wl1"].T, precision=hp) + params["bl1"]
    h2 = jnp.dot(h1, params["wl2"].T, precision=hp) + params["bl2"]
    return jax.nn.softmax(h2, axis=-1)


if __name__ == "__main__":
    key = jax.random.PRNGKey(0)
    ks = jax.random.split(key, 16)

    # L=31 is what Flatten -> Linear(pool_features*12, ...) implies.
    # TODO(synk): CNN_candle passes only (in_channels, pool_features) to
    # CNN(in, out, pool); we instantiate the intended model with out_channels == pool_features.
    B, C_IN, OC, PF, L = 8, 4, 8, 8, 31

    def nrm(k, shape, scale):
        return scale * jax.random.normal(k, shape, dtype=jnp.float32)

    params = dict(
        w7a=nrm(ks[0], (OC, C_IN, KT), 0.3),
        w7b=nrm(ks[1], (PF, OC, KT), 0.3),
        w10a=nrm(ks[2], (OC, C_IN, KT), 0.3),
        w10b=nrm(ks[3], (2 * OC, OC, KT), 0.3),
        w10c=nrm(ks[4], (PF, 2 * OC, KT), 0.3),
        w15a=nrm(ks[5], (OC, C_IN, KT), 0.3),
        w15b=nrm(ks[6], (2 * OC, OC, KT), 0.3),
        w15c=nrm(ks[7], (PF, 2 * OC, KT), 0.3),
        w1x1=nrm(ks[8], (PF, 3 * PF, 1), 0.3),
        b1x1=nrm(ks[9], (PF,), 0.1),
        wl1=nrm(ks[10], (2 * PF, PF * 12), 0.1),
        bl1=nrm(ks[11], (2 * PF,), 0.1),
        wl2=nrm(ks[12], (PF, 2 * PF), 0.3),
        bl2=nrm(ks[13], (PF,), 0.1),
    )
    x = jax.random.normal(ks[14], (B, C_IN, L), dtype=jnp.float32)

    out = jax.jit(cnn_candle_forward)(x, params)
    out = jax.block_until_ready(out)

    ref = cnn_candle_reference(x, params)
    assert out.shape == ref.shape == (B, PF)
    assert bool(jnp.all(jnp.isfinite(out)))
    assert jnp.allclose(out, ref, atol=2e-3, rtol=2e-3), \
        f"max abs diff = {float(jnp.max(jnp.abs(out - ref)))}"

    print("KERNEL_OK")
</pallas_src>

<mosaic_0001>
module attributes {stable_mosaic.version = 11 : i64} {
  func.func @_fused_kernel(%arg0: i32, %arg1: memref<4x320xf32, #tpu.memory_space<vmem>>, %arg2: memref<3x24x4xf32, #tpu.memory_space<vmem>>, %arg3: memref<3x40x24xf32, #tpu.memory_space<vmem>>, %arg4: memref<3x16x40xf32, #tpu.memory_space<vmem>>, %arg5: memref<16x8x305xf32, #tpu.memory_space<vmem>>, %arg6: memref<16x16x305xf32, #tpu.memory_space<vmem>>, %arg7: memref<16x1xf32, #tpu.memory_space<vmem>>, %arg8: memref<8x16xf32, #tpu.memory_space<vmem>>, %arg9: memref<8x1xf32, #tpu.memory_space<vmem>>, %arg10: memref<305x8xf32, #tpu.memory_space<vmem>>, %arg11: memref<8x8xf32, #tpu.memory_space<vmem>>) attributes {dimension_semantics = [#tpu.dimension_semantics<arbitrary>], iteration_bounds = array<i64: 1>, scalar_prefetch = 0 : i64, scratch_operands = 0 : i64, tpu.core_type = #tpu.core_type<tc>, window_params = [{pipeline_mode = #tpu.pipeline_mode<synchronous>, transform_indices = @transform_0, window_bounds = array<i64: 4, 320>}, {pipeline_mode = #tpu.pipeline_mode<synchronous>, transform_indices = @transform_1, window_bounds = array<i64: 3, 24, 4>}, {pipeline_mode = #tpu.pipeline_mode<synchronous>, transform_indices = @transform_2, window_bounds = array<i64: 3, 40, 24>}, {pipeline_mode = #tpu.pipeline_mode<synchronous>, transform_indices = @transform_3, window_bounds = array<i64: 3, 16, 40>}, {pipeline_mode = #tpu.pipeline_mode<synchronous>, transform_indices = @transform_4, window_bounds = array<i64: 16, 8, 305>}, {pipeline_mode = #tpu.pipeline_mode<synchronous>, transform_indices = @transform_5, window_bounds = array<i64: 16, 16, 305>}, {pipeline_mode = #tpu.pipeline_mode<synchronous>, transform_indices = @transform_6, window_bounds = array<i64: 16, 1>}, {pipeline_mode = #tpu.pipeline_mode<synchronous>, transform_indices = @transform_7, window_bounds = array<i64: 8, 16>}, {pipeline_mode = #tpu.pipeline_mode<synchronous>, transform_indices = @transform_8, window_bounds = array<i64: 8, 1>}, {pipeline_mode = #tpu.pipeline_mode<synchronous>, transform_indices = @transform_9, window_bounds = array<i64: 305, 8>}, {pipeline_mode = #tpu.pipeline_mode<synchronous>, transform_indices = @transform_10, window_bounds = array<i64: 8, 8>}]} {
    %c0 = arith.constant 0 : index
    %c0_0 = arith.constant 0 : index
    %0 = vector.load %arg1[%c0, %c0_0] : memref<4x320xf32, #tpu.memory_space<vmem>>, vector<4x320xf32>
    %c0_1 = arith.constant 0 : index
    %c0_2 = arith.constant 0 : index
    %c0_3 = arith.constant 0 : index
    %1 = vector.load %arg2[%c0_1, %c0_2, %c0_3] : memref<3x24x4xf32, #tpu.memory_space<vmem>>, vector<1x24x4xf32>
    %2 = vector.shape_cast %1 : vector<1x24x4xf32> to vector<24x4xf32>
    %3 = vector.extract_strided_slice %0 {offsets = [0, 0], sizes = [4, 318], strides = [1, 1]} : vector<4x320xf32> to vector<4x318xf32>
    %cst = arith.constant dense<0.000000e+00> : vector<24x318xf32>
    %4 = tpu.matmul %2, %3, %cst {dimension_numbers = #tpu.dot_dimension_numbers<[1], [0], [0], [1], [0, 0, 1, 1], [], []>} : vector<24x4xf32>, vector<4x318xf32>, vector<24x318xf32> -> vector<24x318xf32>
    %c1 = arith.constant 1 : index
    %c0_4 = arith.constant 0 : index
    %c0_5 = arith.constant 0 : index
    %5 = vector.load %arg2[%c1, %c0_4, %c0_5] : memref<3x24x4xf32, #tpu.memory_space<vmem>>, vector<1x24x4xf32>
    %6 = vector.shape_cast %5 : vector<1x24x4xf32> to vector<24x4xf32>
    %7 = vector.extract_strided_slice %0 {offsets = [0, 1], sizes = [4, 318], strides = [1, 1]} : vector<4x320xf32> to vector<4x318xf32>
    %cst_6 = arith.constant dense<0.000000e+00> : vector<24x318xf32>
    %8 = tpu.matmul %6, %7, %cst_6 {dimension_numbers = #tpu.dot_dimension_numbers<[1], [0], [0], [1], [0, 0, 1, 1], [], []>} : vector<24x4xf32>, vector<4x318xf32>, vector<24x318xf32> -> vector<24x318xf32>
    %9 = arith.addf %4, %8 : vector<24x318xf32>
    %c2 = arith.constant 2 : index
    %c0_7 = arith.constant 0 : index
    %c0_8 = arith.constant 0 : index
    %10 = vector.load %arg2[%c2, %c0_7, %c0_8] : memref<3x24x4xf32, #tpu.memory_space<vmem>>, vector<1x24x4xf32>
    %11 = vector.shape_cast %10 : vector<1x24x4xf32> to vector<24x4xf32>
    %12 = vector.extract_strided_slice %0 {offsets = [0, 2], sizes = [4, 318], strides = [1, 1]} : vector<4x320xf32> to vector<4x318xf32>
    %cst_9 = arith.constant dense<0.000000e+00> : vector<24x318xf32>
    %13 = tpu.matmul %11, %12, %cst_9 {dimension_numbers = #tpu.dot_dimension_numbers<[1], [0], [0], [1], [0, 0, 1, 1], [], []>} : vector<24x4xf32>, vector<4x318xf32>, vector<24x318xf32> -> vector<24x318xf32>
    %14 = arith.addf %9, %13 : vector<24x318xf32>
    %cst_10 = arith.constant 0.000000e+00 : f32
    %15 = vector.broadcast %cst_10 : f32 to vector<24x318xf32>
    %16 = arith.maximumf %14, %15 : vector<24x318xf32>
    %c0_11 = arith.constant 0 : index
    %c0_12 = arith.constant 0 : index
    %c0_13 = arith.constant 0 : index
    %17 = vector.load %arg3[%c0_11, %c0_12, %c0_13] : memref<3x40x24xf32, #tpu.memory_space<vmem>>, vector<1x40x24xf32>
    %18 = vector.shape_cast %17 : vector<1x40x24xf32> to vector<40x24xf32>
    %19 = vector.extract_strided_slice %16 {offsets = [0, 0], sizes = [24, 314], strides = [1, 1]} : vector<24x318xf32> to vector<24x314xf32>
    %cst_14 = arith.constant dense<0.000000e+00> : vector<40x314xf32>
    %20 = tpu.matmul %18, %19, %cst_14 {dimension_numbers = #tpu.dot_dimension_numbers<[1], [0], [0], [1], [0, 0, 1, 1], [], []>} : vector<40x24xf32>, vector<24x314xf32>, vector<40x314xf32> -> vector<40x314xf32>
    %c1_15 = arith.constant 1 : index
    %c0_16 = arith.constant 0 : index
    %c0_17 = arith.constant 0 : index
    %21 = vector.load %arg3[%c1_15, %c0_16, %c0_17] : memref<3x40x24xf32, #tpu.memory_space<vmem>>, vector<1x40x24xf32>
    %22 = vector.shape_cast %21 : vector<1x40x24xf32> to vector<40x24xf32>
    %23 = vector.extract_strided_slice %16 {offsets = [0, 2], sizes = [24, 314], strides = [1, 1]} : vector<24x318xf32> to vector<24x314xf32>
    %cst_18 = arith.constant dense<0.000000e+00> : vector<40x314xf32>
    %24 = tpu.matmul %22, %23, %cst_18 {dimension_numbers = #tpu.dot_dimension_numbers<[1], [0], [0], [1], [0, 0, 1, 1], [], []>} : vector<40x24xf32>, vector<24x314xf32>, vector<40x314xf32> -> vector<40x314xf32>
    %25 = arith.addf %20, %24 : vector<40x314xf32>
    %c2_19 = arith.constant 2 : index
    %c0_20 = arith.constant 0 : index
    %c0_21 = arith.constant 0 : index
    %26 = vector.load %arg3[%c2_19, %c0_20, %c0_21] : memref<3x40x24xf32, #tpu.memory_space<vmem>>, vector<1x40x24xf32>
    %27 = vector.shape_cast %26 : vector<1x40x24xf32> to vector<40x24xf32>
    %28 = vector.extract_strided_slice %16 {offsets = [0, 4], sizes = [24, 314], strides = [1, 1]} : vector<24x318xf32> to vector<24x314xf32>
    %cst_22 = arith.constant dense<0.000000e+00> : vector<40x314xf32>
    %29 = tpu.matmul %27, %28, %cst_22 {dimension_numbers = #tpu.dot_dimension_numbers<[1], [0], [0], [1], [0, 0, 1, 1], [], []>} : vector<40x24xf32>, vector<24x314xf32>, vector<40x314xf32> -> vector<40x314xf32>
    %30 = arith.addf %25, %29 : vector<40x314xf32>
    %cst_23 = arith.constant 0.000000e+00 : f32
    %31 = vector.broadcast %cst_23 : f32 to vector<40x314xf32>
    %32 = arith.maximumf %30, %31 : vector<40x314xf32>
    %c0_24 = arith.constant 0 : index
    %c0_25 = arith.constant 0 : index
    %c0_26 = arith.constant 0 : index
    %33 = vector.load %arg4[%c0_24, %c0_25, %c0_26] : memref<3x16x40xf32, #tpu.memory_space<vmem>>, vector<1x16x40xf32>
    %34 = vector.shape_cast %33 : vector<1x16x40xf32> to vector<16x40xf32>
    %35 = vector.extract_strided_slice %32 {offsets = [0, 0], sizes = [40, 306], strides = [1, 1]} : vector<40x314xf32> to vector<40x306xf32>
    %cst_27 = arith.constant dense<0.000000e+00> : vector<16x306xf32>
    %36 = tpu.matmul %34, %35, %cst_27 {dimension_numbers = #tpu.dot_dimension_numbers<[1], [0], [0], [1], [0, 0, 1, 1], [], []>} : vector<16x40xf32>, vector<40x306xf32>, vector<16x306xf32> -> vector<16x306xf32>
    %c1_28 = arith.constant 1 : index
    %c0_29 = arith.constant 0 : index
    %c0_30 = arith.constant 0 : index
    %37 = vector.load %arg4[%c1_28, %c0_29, %c0_30] : memref<3x16x40xf32, #tpu.memory_space<vmem>>, vector<1x16x40xf32>
    %38 = vector.shape_cast %37 : vector<1x16x40xf32> to vector<16x40xf32>
    %39 = vector.extract_strided_slice %32 {offsets = [0, 4], sizes = [40, 306], strides = [1, 1]} : vector<40x314xf32> to vector<40x306xf32>
    %cst_31 = arith.constant dense<0.000000e+00> : vector<16x306xf32>
    %40 = tpu.matmul %38, %39, %cst_31 {dimension_numbers = #tpu.dot_dimension_numbers<[1], [0], [0], [1], [0, 0, 1, 1], [], []>} : vector<16x40xf32>, vector<40x306xf32>, vector<16x306xf32> -> vector<16x306xf32>
    %41 = arith.addf %36, %40 : vector<16x306xf32>
    %c2_32 = arith.constant 2 : index
    %c0_33 = arith.constant 0 : index
    %c0_34 = arith.constant 0 : index
    %42 = vector.load %arg4[%c2_32, %c0_33, %c0_34] : memref<3x16x40xf32, #tpu.memory_space<vmem>>, vector<1x16x40xf32>
    %43 = vector.shape_cast %42 : vector<1x16x40xf32> to vector<16x40xf32>
    %44 = vector.extract_strided_slice %32 {offsets = [0, 8], sizes = [40, 306], strides = [1, 1]} : vector<40x314xf32> to vector<40x306xf32>
    %cst_35 = arith.constant dense<0.000000e+00> : vector<16x306xf32>
    %45 = tpu.matmul %43, %44, %cst_35 {dimension_numbers = #tpu.dot_dimension_numbers<[1], [0], [0], [1], [0, 0, 1, 1], [], []>} : vector<16x40xf32>, vector<40x306xf32>, vector<16x306xf32> -> vector<16x306xf32>
    %46 = arith.addf %41, %45 : vector<16x306xf32>
    %cst_36 = arith.constant 0.000000e+00 : f32
    %47 = vector.broadcast %cst_36 : f32 to vector<16x306xf32>
    %48 = arith.maximumf %46, %47 : vector<16x306xf32>
    %49 = vector.extract_strided_slice %32 {offsets = [0, 0], sizes = [8, 314], strides = [1, 1]} : vector<40x314xf32> to vector<8x314xf32>
    %50 = vector.extract_strided_slice %49 {offsets = [0, 0], sizes = [8, 305], strides = [1, 1]} : vector<8x314xf32> to vector<8x305xf32>
    %51 = vector.extract_strided_slice %49 {offsets = [0, 1], sizes = [8, 305], strides = [1, 1]} : vector<8x314xf32> to vector<8x305xf32>
    %52 = arith.maximumf %50, %51 : vector<8x305xf32>
    %53 = vector.extract_strided_slice %48 {offsets = [0, 0], sizes = [16, 305], strides = [1, 1]} : vector<16x306xf32> to vector<16x305xf32>
    %54 = vector.extract_strided_slice %48 {offsets = [0, 1], sizes = [16, 305], strides = [1, 1]} : vector<16x306xf32> to vector<16x305xf32>
    %55 = arith.maximumf %53, %54 : vector<16x305xf32>
    %c0_37 = arith.constant 0 : index
    %c0_38 = arith.constant 0 : index
    %c0_39 = arith.constant 0 : index
    %56 = vector.load %arg5[%c0_37, %c0_38, %c0_39] : memref<16x8x305xf32, #tpu.memory_space<vmem>>, vector<16x8x305xf32>
    %57 = vector.shape_cast %52 : vector<8x305xf32> to vector<1x8x305xf32>
    %58 = vector.broadcast %57 : vector<1x8x305xf32> to vector<16x8x305xf32>
    %59 = arith.mulf %56, %58 : vector<16x8x305xf32>
    %cst_40 = arith.constant dense<0.000000e+00> : vector<16x305xf32>
    %60 = vector.multi_reduction <add>, %59, %cst_40 [1] : vector<16x8x305xf32> to vector<16x305xf32>
    %c0_41 = arith.constant 0 : index
    %c0_42 = arith.constant 0 : index
    %c0_43 = arith.constant 0 : index
    %61 = vector.load %arg6[%c0_41, %c0_42, %c0_43] : memref<16x16x305xf32, #tpu.memory_space<vmem>>, vector<16x16x305xf32>
    %62 = vector.shape_cast %55 : vector<16x305xf32> to vector<1x16x305xf32>
    %63 = vector.broadcast %62 : vector<1x16x305xf32> to vector<16x16x305xf32>
    %64 = arith.mulf %61, %63 : vector<16x16x305xf32>
    %cst_44 = arith.constant dense<0.000000e+00> : vector<16x305xf32>
    %65 = vector.multi_reduction <add>, %64, %cst_44 [1] : vector<16x16x305xf32> to vector<16x305xf32>
    %66 = arith.addf %60, %65 : vector<16x305xf32>
    %c0_45 = arith.constant 0 : index
    %c0_46 = arith.constant 0 : index
    %67 = vector.load %arg10[%c0_45, %c0_46] : memref<305x8xf32, #tpu.memory_space<vmem>>, vector<305x8xf32>
    %cst_47 = arith.constant dense<0.000000e+00> : vector<16x8xf32>
    %68 = tpu.matmul %66, %67, %cst_47 {dimension_numbers = #tpu.dot_dimension_numbers<[1], [0], [0], [1], [0, 0, 1, 1], [], []>} : vector<16x305xf32>, vector<305x8xf32>, vector<16x8xf32> -> vector<16x8xf32>
    %c0_48 = arith.constant 0 : index
    %c0_49 = arith.constant 0 : index
    %69 = vector.load %arg7[%c0_48, %c0_49] : memref<16x1xf32, #tpu.memory_space<vmem>>, vector<16x1xf32>
    %70 = vector.broadcast %69 : vector<16x1xf32> to vector<16x8xf32>
    %71 = arith.addf %68, %70 : vector<16x8xf32>
    %c0_50 = arith.constant 0 : index
    %c0_51 = arith.constant 0 : index
    %72 = vector.load %arg8[%c0_50, %c0_51] : memref<8x16xf32, #tpu.memory_space<vmem>>, vector<8x16xf32>
    %cst_52 = arith.constant dense<0.000000e+00> : vector<8x8xf32>
    %73 = tpu.matmul %72, %71, %cst_52 {dimension_numbers = #tpu.dot_dimension_numbers<[1], [0], [0], [1], [0, 0, 1, 1], [], []>} : vector<8x16xf32>, vector<16x8xf32>, vector<8x8xf32> -> vector<8x8xf32>
    %c0_53 = arith.constant 0 : index
    %c0_54 = arith.constant 0 : index
    %74 = vector.load %arg9[%c0_53, %c0_54] : memref<8x1xf32, #tpu.memory_space<vmem>>, vector<8x1xf32>
    %75 = vector.broadcast %74 : vector<8x1xf32> to vector<8x8xf32>
    %76 = arith.addf %73, %75 : vector<8x8xf32>
    %cst_55 = arith.constant dense<0xFF800000> : vector<8xf32>
    %77 = vector.multi_reduction <maximumf>, %76, %cst_55 [0] : vector<8x8xf32> to vector<8xf32>
    %78 = vector.shape_cast %77 : vector<8xf32> to vector<1x8xf32>
    %79 = vector.broadcast %78 : vector<1x8xf32> to vector<8x8xf32>
    %80 = arith.subf %76, %79 : vector<8x8xf32>
    %81 = math.exp %80 : vector<8x8xf32>
    %cst_56 = arith.constant dense<0.000000e+00> : vector<8xf32>
    %82 = vector.multi_reduction <add>, %81, %cst_56 [0] : vector<8x8xf32> to vector<8xf32>
    %83 = vector.shape_cast %82 : vector<8xf32> to vector<1x8xf32>
    %84 = vector.broadcast %83 : vector<1x8xf32> to vector<8x8xf32>
    %85 = arith.divf %81, %84 : vector<8x8xf32>
    %c0_57 = arith.constant 0 : index
    %c0_58 = arith.constant 0 : index
    %86 = vector.load %arg11[%c0_57, %c0_58] : memref<8x8xf32, #tpu.memory_space<vmem>>, vector<8x8xf32>
    tpu.vector_store %arg11[%c0_57, %c0_58], %85 {strides = array<i32>} : memref<8x8xf32, #tpu.memory_space<vmem>>, vector<8x8xf32>,
    return
  }
  func.func @transform_0(%arg0: i32) -> (i32, i32) {
    %c0_i32 = arith.constant 0 : i32
    %c0_i32_0 = arith.constant 0 : i32
    %c0_i32_1 = arith.constant 0 : i32
    return %c0_i32, %c0_i32_0 : i32, i32
  }
  func.func @transform_1(%arg0: i32) -> (i32, i32, i32) {
    %c0_i32 = arith.constant 0 : i32
    %c0_i32_0 = arith.constant 0 : i32
    %c0_i32_1 = arith.constant 0 : i32
    %c0_i32_2 = arith.constant 0 : i32
    return %c0_i32, %c0_i32_0, %c0_i32_1 : i32, i32, i32
  }
  func.func @transform_2(%arg0: i32) -> (i32, i32, i32) {
    %c0_i32 = arith.constant 0 : i32
    %c0_i32_0 = arith.constant 0 : i32
    %c0_i32_1 = arith.constant 0 : i32
    %c0_i32_2 = arith.constant 0 : i32
    return %c0_i32, %c0_i32_0, %c0_i32_1 : i32, i32, i32
  }
  func.func @transform_3(%arg0: i32) -> (i32, i32, i32) {
    %c0_i32 = arith.constant 0 : i32
    %c0_i32_0 = arith.constant 0 : i32
    %c0_i32_1 = arith.constant 0 : i32
    %c0_i32_2 = arith.constant 0 : i32
    return %c0_i32, %c0_i32_0, %c0_i32_1 : i32, i32, i32
  }
  func.func @transform_4(%arg0: i32) -> (i32, i32, i32) {
    %c0_i32 = arith.constant 0 : i32
    %c0_i32_0 = arith.constant 0 : i32
    %c0_i32_1 = arith.constant 0 : i32
    %c0_i32_2 = arith.constant 0 : i32
    return %c0_i32, %c0_i32_0, %c0_i32_1 : i32, i32, i32
  }
  func.func @transform_5(%arg0: i32) -> (i32, i32, i32) {
    %c0_i32 = arith.constant 0 : i32
    %c0_i32_0 = arith.constant 0 : i32
    %c0_i32_1 = arith.constant 0 : i32
    %c0_i32_2 = arith.constant 0 : i32
    return %c0_i32, %c0_i32_0, %c0_i32_1 : i32, i32, i32
  }
  func.func @transform_6(%arg0: i32) -> (i32, i32) {
    %c0_i32 = arith.constant 0 : i32
    %c0_i32_0 = arith.constant 0 : i32
    %c0_i32_1 = arith.constant 0 : i32
    return %c0_i32, %c0_i32_0 : i32, i32
  }
  func.func @transform_7(%arg0: i32) -> (i32, i32) {
    %c0_i32 = arith.constant 0 : i32
    %c0_i32_0 = arith.constant 0 : i32
    %c0_i32_1 = arith.constant 0 : i32
    return %c0_i32, %c0_i32_0 : i32, i32
  }
  func.func @transform_8(%arg0: i32) -> (i32, i32) {
    %c0_i32 = arith.constant 0 : i32
    %c0_i32_0 = arith.constant 0 : i32
    %c0_i32_1 = arith.constant 0 : i32
    return %c0_i32, %c0_i32_0 : i32, i32
  }
  func.func @transform_9(%arg0: i32) -> (i32, i32) {
    %c0_i32 = arith.constant 0 : i32
    %c0_i32_0 = arith.constant 0 : i32
    %c0_i32_1 = arith.constant 0 : i32
    return %c0_i32, %c0_i32_0 : i32, i32
  }
  func.func @transform_10(%arg0: i32) -> (i32, i32) {
    %c0_i32 = arith.constant 0 : i32
    %c0_i32_0 = arith.constant 0 : i32
    %c0_i32_1 = arith.constant 0 : i32
    return %c0_i32, %c0_i32_0 : i32, i32
  }
}

</mosaic_0001>

<bundles_post_ra>
// kernel: tile.19
= control target key start
LH: loop header
LB: loop body
LE: loop exit
PB: predicated region body
PF: predicated region fallthrough
CT: control target
= control target key end

     0   :  { %vm4_vm0 = vcmask 1047556   ;;  %vm299_vm1 = vcmask 64512   ;;  %s4413_s22 = smov 120   ;;  %vm1002_vm2 = vcmask 130048   ;;  %s4414_s26 = smov 112   ;;  %vm6_vm3 = vcmask 326656   ;;  %s8238_s0 = inlined_call_operand.vmem [shape: f32[16,16,8,40], index: 0, kind: input, shape index: {}]   ;;  %s8239_s1 = inlined_call_operand.vmem [shape: f32[16,16,320], index: 1, kind: output, shape index: {}]  }
   0x1   :  { %v3556_v0 = vld [vmem:[%s8238_s0 + $0x243] ss:$8 sm:$0xf]   ;;  %vm303_vm4 = vcmask 261120   ;;  %vm306_vm5 = vcmask 1048512   ;;  %s4415_s23 = smov 80  }
   0x2   :  { %v3557_v1 = vld [vmem:[%s8238_s0 + $0x243] ss:$8 sm:$0xf0]   ;;  %vm1006_vm6 = vcmask 195584   ;;  %vm1009_vm7 = vcmask 1048448   ;;  %s4416_s8 = smov 72  }
   0x3   :  { %v335_v2 = vsel %vm4_vm0, %v3557_v1, %v3556_v0  ;;  %v3558_v3 = vld [vmem:[%s8238_s0 + $0x203] ss:$8 sm:$0xf]   ;;  %vm1702_vm8 = vcmask 982656   ;;  %s4417_s14 = smov 40   ;;  %vm2053_vm9 = vcmask 917056  }
   0x4   :  { %v3559_v4 = vld [vmem:[%s8238_s0 + $0x203] ss:$8 sm:$0xf0]   ;;  %s4418_s9 = smov 32   ;;  %vm2405_vm10 = vcmask 654656   ;;  %s4419_s5 = smov 24  }
   0x5   :  { %v341_v5 = vsel %vm4_vm0, %v3559_v4, %v3558_v3  ;;  %v3545_v6 = vld [vmem:[%s8238_s0 + $0x43] ss:$8 sm:$0xf]   ;;  %vm2756_vm11 = vcmask 589056   ;;  %vm3108_vm12 = vcmask 523456  }
   0x6   :  { %v3546_v7 = vld [vmem:[%s8238_s0 + $0x43] ss:$8 sm:$0xf0]   ;;  %v343_v8 = vsel %vm299_vm1, %v341_v5, %v335_v2 }
   0x7   :  { %v292_v9 = vsel %vm4_vm0, %v3546_v7, %v3545_v6  ;;  %v3547_v10 = vld [vmem:[%s8238_s0 + $0x3] ss:$8 sm:$0xf]   ;;  %344 = vrot.lane.b32.xlu1 %v343_v8, %s4413_s22 }
   0x8   :  { %v3548_v11 = vld [vmem:[%s8238_s0 + $0x3] ss:$8 sm:$0xf0]  }
   0x9   :  { %v298_v12 = vsel %vm4_vm0, %v3548_v11, %v3547_v10  ;;  %v3562_v13 = vld [vmem:[%s8238_s0 + $0x343] ss:$8 sm:$0xf]  }
   0xa   :  { %v3563_v14 = vld [vmem:[%s8238_s0 + $0x343] ss:$8 sm:$0xf0]   ;;  %v300_v15 = vsel %vm299_vm1, %v298_v12, %v292_v9 }
   0xb   :  { %v357_v16 = vsel %vm4_vm0, %v3563_v14, %v3562_v13  ;;  %v3564_v17 = vld [vmem:[%s8238_s0 + $0x303] ss:$8 sm:$0xf]   ;;  %301 = vrot.lane.b32.xlu0 %v300_v15, %s4413_s22 }
   0xc   :  { %v3565_v18 = vld [vmem:[%s8238_s0 + $0x303] ss:$8 sm:$0xf0]  }
   0xd   :  { %v363_v19 = vsel %vm4_vm0, %v3565_v18, %v3564_v17  ;;  %v3550_v20 = vld [vmem:[%s8238_s0 + $0x143] ss:$8 sm:$0xf]  }
   0xe   :  { %v3551_v21 = vld [vmem:[%s8238_s0 + $0x143] ss:$8 sm:$0xf0]   ;;  %v365_v22 = vsel %vm299_vm1, %v363_v19, %v357_v16 }
   0xf   :  { %v313_v23 = vsel %vm4_vm0, %v3551_v21, %v3550_v20  ;;  %v3552_v24 = vld [vmem:[%s8238_s0 + $0x103] ss:$8 sm:$0xf]   ;;  %366 = vrot.lane.b32.xlu1 %v365_v22, %s4413_s22 }
  0x10   :  { %v3553_v25 = vld [vmem:[%s8238_s0 + $0x103] ss:$8 sm:$0xf0]  }
  0x11   :  { %v319_v26 = vsel %vm4_vm0, %v3553_v25, %v3552_v24  ;;  %v3574_v27 = vld [vmem:[%s8238_s0 + $0x543] ss:$8 sm:$0xf]  }
  0x12   :  { %v3575_v28 = vld [vmem:[%s8238_s0 + $0x543] ss:$8 sm:$0xf0]   ;;  %v321_v29 = vsel %vm299_vm1, %v319_v26, %v313_v23 }
  0x13   :  { %v401_v30 = vsel %vm4_vm0, %v3575_v28, %v3574_v27  ;;  %v3576_v31 = vld [vmem:[%s8238_s0 + $0x503] ss:$8 sm:$0xf]   ;;  %322 = vrot.lane.b32.xlu0 %v321_v29, %s4413_s22 }
  0x14   :  { %v3577_v32 = vld [vmem:[%s8238_s0 + $0x503] ss:$8 sm:$0xf0]  }
  0x15   :  { %v407_v33 = vsel %vm4_vm0, %v3577_v32, %v3576_v31  ;;  %v3568_v34 = vld [vmem:[%s8238_s0 + $0x443] ss:$8 sm:$0xf]  }
  0x16   :  { %v3569_v35 = vld [vmem:[%s8238_s0 + $0x443] ss:$8 sm:$0xf0]   ;;  %v409_v36 = vsel %vm299_vm1, %v407_v33, %v401_v30 }
  0x17   :  { %v379_v37 = vsel %vm4_vm0, %v3569_v35, %v3568_v34  ;;  %v3570_v38 = vld [vmem:[%s8238_s0 + $0x403] ss:$8 sm:$0xf]   ;;  %410 = vrot.lane.b32.xlu1 %v409_v36, %s4413_s22 }
  0x18   :  { %v3571_v39 = vld [vmem:[%s8238_s0 + $0x403] ss:$8 sm:$0xf0]  }
  0x19   :  { %v385_v40 = vsel %vm4_vm0, %v3571_v39, %v3570_v38  ;;  %v3586_v41 = vld [vmem:[%s8238_s0 + $0x743] ss:$8 sm:$0xf]  }
  0x1a   :  { %v3587_v42 = vld [vmem:[%s8238_s0 + $0x743] ss:$8 sm:$0xf0]   ;;  %v387_v43 = vsel %vm299_vm1, %v385_v40, %v379_v37 }
  0x1b   :  { %v445_v44 = vsel %vm4_vm0, %v3587_v42, %v3586_v41  ;;  %v3588_v45 = vld [vmem:[%s8238_s0 + $0x703] ss:$8 sm:$0xf]   ;;  %388 = vrot.lane.b32.xlu0 %v387_v43, %s4413_s22 }
  0x1c   :  { %v3589_v46 = vld [vmem:[%s8238_s0 + $0x703] ss:$8 sm:$0xf0]  }
  0x1d   :  { %v451_v47 = vsel %vm4_vm0, %v3589_v46, %v3588_v45  ;;  %v3580_v48 = vld [vmem:[%s8238_s0 + $0x643] ss:$8 sm:$0xf]  }
  0x1e   :  { %v3581_v49 = vld [vmem:[%s8238_s0 + $0x643] ss:$8 sm:$0xf0]   ;;  %v453_v50 = vsel %vm299_vm1, %v451_v47, %v445_v44 }
  0x1f   :  { %v423_v51 = vsel %vm4_vm0, %v3581_v49, %v3580_v48  ;;  %v3582_v52 = vld [vmem:[%s8238_s0 + $0x603] ss:$8 sm:$0xf]   ;;  %454 = vrot.lane.b32.xlu1 %v453_v50, %s4413_s22 }
  0x20   :  { %v3583_v53 = vld [vmem:[%s8238_s0 + $0x603] ss:$8 sm:$0xf0]  }
  0x21   :  { %v429_v54 = vsel %vm4_vm0, %v3583_v53, %v3582_v52  ;;  %v3598_v55 = vld [vmem:[%s8238_s0 + $0x103] ss:$8 sm:$0xf]  }
  0x22   :  { %v3599_v56 = vld [vmem:[%s8238_s0 + $0x103] ss:$8 sm:$0xf0]   ;;  %v431_v57 = vsel %vm299_vm1, %v429_v54, %v423_v51 }
  0x23   :  { %v489_v58 = vsel %vm4_vm0, %v3599_v56, %v3598_v55  ;;  %v3600_v59 = vld [vmem:[%s8238_s0 + $0x1c3] ss:$8 sm:$0xf]   ;;  %432 = vrot.lane.b32.xlu0 %v431_v57, %s4413_s22 }
  0x24   :  { %v3601_v60 = vld [vmem:[%s8238_s0 + $0x1c3] ss:$8 sm:$0xf0]  }
  0x25   :  { %v495_v61 = vsel %vm4_vm0, %v3601_v60, %v3600_v59  ;;  %v3592_v62 = vld [vmem:[%s8238_s0 + $0x3] ss:$8 sm:$0xf]  }
  0x26   :  { %v3593_v63 = vld [vmem:[%s8238_s0 + $0x3] ss:$8 sm:$0xf0]   ;;  %v497_v0 = vsel %vm299_vm1, %v495_v61, %v489_v58 }
  0x27   :  { %v467_v1 = vsel %vm4_vm0, %v3593_v63, %v3592_v62  ;;  %v3594_v2 = vld [vmem:[%s8238_s0 + $0xc3] ss:$8 sm:$0xf]   ;;  %498 = vrot.lane.b32.xlu1 %v497_v0, %s4413_s22 }
  0x28   :  { %v3595_v3 = vld [vmem:[%s8238_s0 + $0xc3] ss:$8 sm:$0xf0]  }
  0x29   :  { %v473_v4 = vsel %vm4_vm0, %v3595_v3, %v3594_v2  ;;  %v3610_v5 = vld [vmem:[%s8238_s0 + $0x303] ss:$8 sm:$0xf]  }
  0x2a   :  { %v3611_v6 = vld [vmem:[%s8238_s0 + $0x303] ss:$8 sm:$0xf0]   ;;  %v475_v7 = vsel %vm299_vm1, %v473_v4, %v467_v1 }
  0x2b   :  { %v533_v8 = vsel %vm4_vm0, %v3611_v6, %v3610_v5  ;;  %v3612_v9 = vld [vmem:[%s8238_s0 + $0x3c3] ss:$8 sm:$0xf]   ;;  %476 = vrot.lane.b32.xlu0 %v475_v7, %s4413_s22 }
  0x2c   :  { %v3613_v10 = vld [vmem:[%s8238_s0 + $0x3c3] ss:$8 sm:$0xf0]  }
  0x2d   :  { %v539_v11 = vsel %vm4_vm0, %v3613_v10, %v3612_v9  ;;  %v3604_v12 = vld [vmem:[%s8238_s0 + $0x203] ss:$8 sm:$0xf]  }
  0x2e   :  { %v3605_v13 = vld [vmem:[%s8238_s0 + $0x203] ss:$8 sm:$0xf0]   ;;  %v541_v14 = vsel %vm299_vm1, %v539_v11, %v533_v8 }
  0x2f   :  { %v511_v15 = vsel %vm4_vm0, %v3605_v13, %v3604_v12  ;;  %v3606_v16 = vld [vmem:[%s8238_s0 + $0x2c3] ss:$8 sm:$0xf]   ;;  %542 = vrot.lane.b32.xlu1 %v541_v14, %s4413_s22 }
  0x30   :  { %v3607_v17 = vld [vmem:[%s8238_s0 + $0x2c3] ss:$8 sm:$0xf0]  }
  0x31   :  { %v517_v18 = vsel %vm4_vm0, %v3607_v17, %v3606_v16  ;;  %v3622_v19 = vld [vmem:[%s8238_s0 + $0x503] ss:$8 sm:$0xf]  }
  0x32   :  { %v3623_v20 = vld [vmem:[%s8238_s0 + $0x503] ss:$8 sm:$0xf0]   ;;  %v519_v21 = vsel %vm299_vm1, %v517_v18, %v511_v15 }
  0x33   :  { %v577_v22 = vsel %vm4_vm0, %v3623_v20, %v3622_v19  ;;  %v3624_v23 = vld [vmem:[%s8238_s0 + $0x5c3] ss:$8 sm:$0xf]   ;;  %520 = vrot.lane.b32.xlu0 %v519_v21, %s4413_s22 }
  0x34   :  { %v3625_v24 = vld [vmem:[%s8238_s0 + $0x5c3] ss:$8 sm:$0xf0]  }
  0x35   :  { %v583_v25 = vsel %vm4_vm0, %v3625_v24, %v3624_v23  ;;  %v3616_v26 = vld [vmem:[%s8238_s0 + $0x403] ss:$8 sm:$0xf]  }
  0x36   :  { %v3617_v27 = vld [vmem:[%s8238_s0 + $0x403] ss:$8 sm:$0xf0]   ;;  %v585_v28 = vsel %vm299_vm1, %v583_v25, %v577_v22 }
  0x37   :  { %v555_v29 = vsel %vm4_vm0, %v3617_v27, %v3616_v26  ;;  %v3618_v30 = vld [vmem:[%s8238_s0 + $0x4c3] ss:$8 sm:$0xf]   ;;  %586 = vrot.lane.b32.xlu1 %v585_v28, %s4413_s22 }
  0x38   :  { %v3619_v31 = vld [vmem:[%s8238_s0 + $0x4c3] ss:$8 sm:$0xf0]  }
  0x39   :  { %v561_v32 = vsel %vm4_vm0, %v3619_v31, %v3618_v30  ;;  %v3634_v33 = vld [vmem:[%s8238_s0 + $0x703] ss:$8 sm:$0xf]  }
  0x3a   :  { %v3635_v34 = vld [vmem:[%s8238_s0 + $0x703] ss:$8 sm:$0xf0]   ;;  %v563_v35 = vsel %vm299_vm1, %v561_v32, %v555_v29 }
  0x3b   :  { %v621_v36 = vsel %vm4_vm0, %v3635_v34, %v3634_v33  ;;  %v3636_v37 = vld [vmem:[%s8238_s0 + $0x7c3] ss:$8 sm:$0xf]   ;;  %564 = vrot.lane.b32.xlu0 %v563_v35, %s4413_s22 }
  0x3c   :  { %v3637_v38 = vld [vmem:[%s8238_s0 + $0x7c3] ss:$8 sm:$0xf0]  }
  0x3d   :  { %v627_v39 = vsel %vm4_vm0, %v3637_v38, %v3636_v37  ;;  %v3628_v40 = vld [vmem:[%s8238_s0 + $0x603] ss:$8 sm:$0xf]  }
  0x3e   :  { %v3629_v41 = vld [vmem:[%s8238_s0 + $0x603] ss:$8 sm:$0xf0]   ;;  %v629_v42 = vsel %vm299_vm1, %v627_v39, %v621_v36 }
  0x3f   :  { %v599_v43 = vsel %vm4_vm0, %v3629_v41, %v3628_v40  ;;  %v3630_v44 = vld [vmem:[%s8238_s0 + $0x6c3] ss:$8 sm:$0xf]   ;;  %630 = vrot.lane.b32.xlu1 %v629_v42, %s4413_s22 }
  0x40   :  { %v3631_v45 = vld [vmem:[%s8238_s0 + $0x6c3] ss:$8 sm:$0xf0]  }
  0x41   :  { %v605_v46 = vsel %vm4_vm0, %v3631_v45, %v3630_v44  ;;  %v3646_v47 = vld [vmem:[%s8238_s0 + $0x1c3] ss:$8 sm:$0xf]  }
  0x42   :  { %v3647_v48 = vld [vmem:[%s8238_s0 + $0x1c3] ss:$8 sm:$0xf0]   ;;  %v607_v49 = vsel %vm299_vm1, %v605_v46, %v599_v43 }
  0x43   :  { %v665_v50 = vsel %vm4_vm0, %v3647_v48, %v3646_v47  ;;  %v3648_v51 = vld [vmem:[%s8238_s0 + $0x183] ss:$8 sm:$0xf]   ;;  %608 = vrot.lane.b32.xlu0 %v607_v49, %s4413_s22 }
  0x44   :  { %v3649_v52 = vld [vmem:[%s8238_s0 + $0x183] ss:$8 sm:$0xf0]  }
  0x45   :  { %v671_v53 = vsel %vm4_vm0, %v3649_v52, %v3648_v51  ;;  %v3640_v54 = vld [vmem:[%s8238_s0 + $0xc3] ss:$8 sm:$0xf]  }
  0x46   :  { %v3641_v55 = vld [vmem:[%s8238_s0 + $0xc3] ss:$8 sm:$0xf0]   ;;  %v673_v56 = vsel %vm299_vm1, %v671_v53, %v665_v50 }
  0x47   :  { %v643_v57 = vsel %vm4_vm0, %v3641_v55, %v3640_v54  ;;  %v3642_v58 = vld [vmem:[%s8238_s0 + $0x83] ss:$8 sm:$0xf]   ;;  %674 = vrot.lane.b32.xlu1 %v673_v56, %s4413_s22 }
  0x48   :  { %v3643_v59 = vld [vmem:[%s8238_s0 + $0x83] ss:$8 sm:$0xf0]  }
  0x49   :  { %v649_v60 = vsel %vm4_vm0, %v3643_v59, %v3642_v58  ;;  %v3658_v61 = vld [vmem:[%s8238_s0 + $0x3c3] ss:$8 sm:$0xf]  }
  0x4a   :  { %v3659_v62 = vld [vmem:[%s8238_s0 + $0x3c3] ss:$8 sm:$0xf0]   ;;  %v651_v63 = vsel %vm299_vm1, %v649_v60, %v643_v57 }
  0x4b   :  { %v709_v0 = vsel %vm4_vm0, %v3659_v62, %v3658_v61  ;;  %v3660_v1 = vld [vmem:[%s8238_s0 + $0x383] ss:$8 sm:$0xf]   ;;  %652 = vrot.lane.b32.xlu0 %v651_v63, %s4413_s22 }
  0x4c   :  { %v3661_v2 = vld [vmem:[%s8238_s0 + $0x383] ss:$8 sm:$0xf0]  }
  0x4d   :  { %v715_v3 = vsel %vm4_vm0, %v3661_v2, %v3660_v1  ;;  %v3652_v4 = vld [vmem:[%s8238_s0 + $0x2c3] ss:$8 sm:$0xf]  }
  0x4e   :  { %v3653_v5 = vld [vmem:[%s8238_s0 + $0x2c3] ss:$8 sm:$0xf0]   ;;  %v717_v6 = vsel %vm299_vm1, %v715_v3, %v709_v0 }
  0x4f   :  { %v687_v7 = vsel %vm4_vm0, %v3653_v5, %v3652_v4  ;;  %v3654_v8 = vld [vmem:[%s8238_s0 + $0x283] ss:$8 sm:$0xf]   ;;  %718 = vrot.lane.b32.xlu1 %v717_v6, %s4413_s22 }
  0x50   :  { %v3655_v9 = vld [vmem:[%s8238_s0 + $0x283] ss:$8 sm:$0xf0]  }
  0x51   :  { %v693_v10 = vsel %vm4_vm0, %v3655_v9, %v3654_v8  ;;  %v3670_v11 = vld [vmem:[%s8238_s0 + $0x5c3] ss:$8 sm:$0xf]  }
  0x52   :  { %v3671_v12 = vld [vmem:[%s8238_s0 + $0x5c3] ss:$8 sm:$0xf0]   ;;  %v695_v13 = vsel %vm299_vm1, %v693_v10, %v687_v7 }
  0x53   :  { %v753_v14 = vsel %vm4_vm0, %v3671_v12, %v3670_v11  ;;  %v3672_v15 = vld [vmem:[%s8238_s0 + $0x583] ss:$8 sm:$0xf]   ;;  %696 = vrot.lane.b32.xlu0 %v695_v13, %s4413_s22 }
  0x54   :  { %v3673_v16 = vld [vmem:[%s8238_s0 + $0x583] ss:$8 sm:$0xf0]  }
  0x55   :  { %v759_v17 = vsel %vm4_vm0, %v3673_v16, %v3672_v15  ;;  %v3664_v18 = vld [vmem:[%s8238_s0 + $0x4c3] ss:$8 sm:$0xf]  }
  0x56   :  { %v3665_v19 = vld [vmem:[%s8238_s0 + $0x4c3] ss:$8 sm:$0xf0]   ;;  %v761_v20 = vsel %vm299_vm1, %v759_v17, %v753_v14 }
  0x57   :  { %v731_v21 = vsel %vm4_vm0, %v3665_v19, %v3664_v18  ;;  %v3666_v22 = vld [vmem:[%s8238_s0 + $0x483] ss:$8 sm:$0xf]   ;;  %762 = vrot.lane.b32.xlu1 %v761_v20, %s4413_s22 }
  0x58   :  { %v3667_v23 = vld [vmem:[%s8238_s0 + $0x483] ss:$8 sm:$0xf0]  }
  0x59   :  { %v737_v24 = vsel %vm4_vm0, %v3667_v23, %v3666_v22  ;;  %v3682_v25 = vld [vmem:[%s8238_s0 + $0x7c3] ss:$8 sm:$0xf]  }
  0x5a   :  { %v3683_v26 = vld [vmem:[%s8238_s0 + $0x7c3] ss:$8 sm:$0xf0]   ;;  %v739_v27 = vsel %vm299_vm1, %v737_v24, %v731_v21 }
  0x5b   :  { %v797_v28 = vsel %vm4_vm0, %v3683_v26, %v3682_v25  ;;  %v3684_v29 = vld [vmem:[%s8238_s0 + $0x783] ss:$8 sm:$0xf]   ;;  %740 = vrot.lane.b32.xlu0 %v739_v27, %s4413_s22 }
  0x5c   :  { %v3685_v30 = vld [vmem:[%s8238_s0 + $0x783] ss:$8 sm:$0xf0]  }
  0x5d   :  { %v803_v31 = vsel %vm4_vm0, %v3685_v30, %v3684_v29  ;;  %v3676_v32 = vld [vmem:[%s8238_s0 + $0x6c3] ss:$8 sm:$0xf]  }
  0x5e   :  { %v3677_v33 = vld [vmem:[%s8238_s0 + $0x6c3] ss:$8 sm:$0xf0]   ;;  %v805_v34 = vsel %vm299_vm1, %v803_v31, %v797_v28  ;;  %v3742_v31 = vld [vmem:[%s8238_s0 + $0x186] ss:$8 sm:$0xf]  }
  0x5f   :  { %v775_v35 = vsel %vm4_vm0, %v3677_v33, %v3676_v32  ;;  %v3678_v36 = vld [vmem:[%s8238_s0 + $0x683] ss:$8 sm:$0xf]   ;;  %806 = vrot.lane.b32.xlu1 %v805_v34, %s4413_s22  ;;  %v3743_v32 = vld [vmem:[%s8238_s0 + $0x186] ss:$8 sm:$0xf0]  }
  0x60   :  { %v3679_v37 = vld [vmem:[%s8238_s0 + $0x683] ss:$8 sm:$0xf0]   ;;  %v1017_v34 = vsel %vm4_vm0, %v3743_v32, %v3742_v31  ;;  %v3785_v31 = vld [vmem:[%s8238_s0 + $0x46] ss:$8 sm:$0xf0]  }
  0x61   :  { %v781_v38 = vsel %vm4_vm0, %v3679_v37, %v3678_v36  ;;  %v3694_v39 = vld [vmem:[%s8238_s0 + $0x183] ss:$8 sm:$0xf]   ;;  %v3745_v36 = vld [vmem:[%s8238_s0 + $0x146] ss:$8 sm:$0xf0]  }
  0x62   :  { %v3695_v40 = vld [vmem:[%s8238_s0 + $0x183] ss:$8 sm:$0xf0]   ;;  %v783_v41 = vsel %vm299_vm1, %v781_v38, %v775_v35  ;;  %v3744_v35 = vld [vmem:[%s8238_s0 + $0x146] ss:$8 sm:$0xf]  }
  0x63   :  { %v841_v42 = vsel %vm4_vm0, %v3695_v40, %v3694_v39  ;;  %v3696_v43 = vld [vmem:[%s8238_s0 + $0x143] ss:$8 sm:$0xf]   ;;  %784 = vrot.lane.b32.xlu0 %v783_v41, %s4413_s22  ;;  %v1023_v37 = vsel %vm4_vm0, %v3745_v36, %v3744_v35  ;;  %v3736_v38 = vld [vmem:[%s8238_s0 + $0x86] ss:$8 sm:$0xf]  }
  0x64   :  { %v3697_v44 = vld [vmem:[%s8238_s0 + $0x143] ss:$8 sm:$0xf0]   ;;  %v3737_v39 = vld [vmem:[%s8238_s0 + $0x86] ss:$8 sm:$0xf0]   ;;  %v1025_v40 = vsel %vm1002_vm2, %v1023_v37, %v1017_v34 }
  0x65   :  { %v847_v45 = vsel %vm4_vm0, %v3697_v44, %v3696_v43  ;;  %v3688_v46 = vld [vmem:[%s8238_s0 + $0x83] ss:$8 sm:$0xf]   ;;  %v995_v41 = vsel %vm4_vm0, %v3737_v39, %v3736_v38  ;;  %v3739_v43 = vld [vmem:[%s8238_s0 + $0x46] ss:$8 sm:$0xf0]  }
  0x66   :  { %v3689_v47 = vld [vmem:[%s8238_s0 + $0x83] ss:$8 sm:$0xf0]   ;;  %v849_v48 = vsel %vm299_vm1, %v847_v45, %v841_v42  ;;  %v3738_v42 = vld [vmem:[%s8238_s0 + $0x46] ss:$8 sm:$0xf]  }
  0x67   :  { %v819_v49 = vsel %vm4_vm0, %v3689_v47, %v3688_v46  ;;  %v3690_v50 = vld [vmem:[%s8238_s0 + $0x43] ss:$8 sm:$0xf]   ;;  %850 = vrot.lane.b32.xlu1 %v849_v48, %s4413_s22  ;;  %v1001_v44 = vsel %vm4_vm0, %v3739_v43, %v3738_v42  ;;  %v3754_v45 = vld [vmem:[%s8238_s0 + $0x386] ss:$8 sm:$0xf]  }
  0x68   :  { %v3691_v51 = vld [vmem:[%s8238_s0 + $0x43] ss:$8 sm:$0xf0]   ;;  %v3755_v46 = vld [vmem:[%s8238_s0 + $0x386] ss:$8 sm:$0xf0]   ;;  %v1003_v47 = vsel %vm1002_vm2, %v1001_v44, %v995_v41 }
  0x69   :  { %v825_v52 = vsel %vm4_vm0, %v3691_v51, %v3690_v50  ;;  %v3706_v53 = vld [vmem:[%s8238_s0 + $0x383] ss:$8 sm:$0xf]   ;;  %v1061_v48 = vsel %vm4_vm0, %v3755_v46, %v3754_v45  ;;  %v3757_v50 = vld [vmem:[%s8238_s0 + $0x346] ss:$8 sm:$0xf0]  }
  0x6a   :  { %v3707_v54 = vld [vmem:[%s8238_s0 + $0x383] ss:$8 sm:$0xf0]   ;;  %v827_v55 = vsel %vm299_vm1, %v825_v52, %v819_v49  ;;  %v3756_v49 = vld [vmem:[%s8238_s0 + $0x346] ss:$8 sm:$0xf]  }
  0x6b   :  { %v885_v56 = vsel %vm4_vm0, %v3707_v54, %v3706_v53  ;;  %v3708_v57 = vld [vmem:[%s8238_s0 + $0x343] ss:$8 sm:$0xf]   ;;  %828 = vrot.lane.b32.xlu0 %v827_v55, %s4413_s22  ;;  %v1067_v51 = vsel %vm4_vm0, %v3757_v50, %v3756_v49  ;;  %v3748_v52 = vld [vmem:[%s8238_s0 + $0x286] ss:$8 sm:$0xf]  }
  0x6c   :  { %v3709_v58 = vld [vmem:[%s8238_s0 + $0x343] ss:$8 sm:$0xf0]   ;;  %v3749_v53 = vld [vmem:[%s8238_s0 + $0x286] ss:$8 sm:$0xf0]   ;;  %v1069_v54 = vsel %vm1002_vm2, %v1067_v51, %v1061_v48 }
  0x6d   :  { %v891_v59 = vsel %vm4_vm0, %v3709_v58, %v3708_v57  ;;  %v3700_v60 = vld [vmem:[%s8238_s0 + $0x283] ss:$8 sm:$0xf]   ;;  %v1039_v55 = vsel %vm4_vm0, %v3749_v53, %v3748_v52  ;;  %v3751_v57 = vld [vmem:[%s8238_s0 + $0x246] ss:$8 sm:$0xf0]  }
  0x6e   :  { %v3701_v61 = vld [vmem:[%s8238_s0 + $0x283] ss:$8 sm:$0xf0]   ;;  %v893_v62 = vsel %vm299_vm1, %v891_v59, %v885_v56  ;;  %v3750_v56 = vld [vmem:[%s8238_s0 + $0x246] ss:$8 sm:$0xf]  }
  0x6f   :  { %v863_v63 = vsel %vm4_vm0, %v3701_v61, %v3700_v60  ;;  %v3702_v0 = vld [vmem:[%s8238_s0 + $0x243] ss:$8 sm:$0xf]   ;;  %894 = vrot.lane.b32.xlu1 %v893_v62, %s4413_s22  ;;  %v1045_v58 = vsel %vm4_vm0, %v3751_v57, %v3750_v56  ;;  %v3766_v59 = vld [vmem:[%s8238_s0 + $0x586] ss:$8 sm:$0xf]  }
  0x70   :  { %v3703_v1 = vld [vmem:[%s8238_s0 + $0x243] ss:$8 sm:$0xf0]   ;;  %v3767_v60 = vld [vmem:[%s8238_s0 + $0x586] ss:$8 sm:$0xf0]   ;;  %v1047_v61 = vsel %vm1002_vm2, %v1045_v58, %v1039_v55 }
  0x71   :  { %v869_v2 = vsel %vm4_vm0, %v3703_v1, %v3702_v0  ;;  %v3718_v3 = vld [vmem:[%s8238_s0 + $0x583] ss:$8 sm:$0xf]   ;;  %v1105_v62 = vsel %vm4_vm0, %v3767_v60, %v3766_v59  ;;  %v3769_v0 = vld [vmem:[%s8238_s0 + $0x546] ss:$8 sm:$0xf0]  }
  0x72   :  { %v3719_v4 = vld [vmem:[%s8238_s0 + $0x583] ss:$8 sm:$0xf0]   ;;  %v871_v5 = vsel %vm299_vm1, %v869_v2, %v863_v63  ;;  %v3768_v63 = vld [vmem:[%s8238_s0 + $0x546] ss:$8 sm:$0xf]  }
  0x73   :  { %v929_v6 = vsel %vm4_vm0, %v3719_v4, %v3718_v3  ;;  %v3720_v7 = vld [vmem:[%s8238_s0 + $0x543] ss:$8 sm:$0xf]   ;;  %872 = vrot.lane.b32.xlu0 %v871_v5, %s4413_s22  ;;  %v1111_v1 = vsel %vm4_vm0, %v3769_v0, %v3768_v63  ;;  %v3760_v2 = vld [vmem:[%s8238_s0 + $0x486] ss:$8 sm:$0xf]  }
  0x74   :  { %v3721_v8 = vld [vmem:[%s8238_s0 + $0x543] ss:$8 sm:$0xf0]   ;;  %v3761_v3 = vld [vmem:[%s8238_s0 + $0x486] ss:$8 sm:$0xf0]   ;;  %v1113_v4 = vsel %vm1002_vm2, %v1111_v1, %v1105_v62 }
  0x75   :  { %v935_v9 = vsel %vm4_vm0, %v3721_v8, %v3720_v7  ;;  %v3712_v10 = vld [vmem:[%s8238_s0 + $0x483] ss:$8 sm:$0xf]   ;;  %v1083_v5 = vsel %vm4_vm0, %v3761_v3, %v3760_v2  ;;  %v3763_v7 = vld [vmem:[%s8238_s0 + $0x446] ss:$8 sm:$0xf0]  }
  0x76   :  { %v3713_v11 = vld [vmem:[%s8238_s0 + $0x483] ss:$8 sm:$0xf0]   ;;  %v937_v12 = vsel %vm299_vm1, %v935_v9, %v929_v6  ;;  %v3762_v6 = vld [vmem:[%s8238_s0 + $0x446] ss:$8 sm:$0xf]  }
  0x77   :  { %v907_v13 = vsel %vm4_vm0, %v3713_v11, %v3712_v10  ;;  %v3714_v14 = vld [vmem:[%s8238_s0 + $0x443] ss:$8 sm:$0xf]   ;;  %938 = vrot.lane.b32.xlu1 %v937_v12, %s4413_s22  ;;  %v1089_v8 = vsel %vm4_vm0, %v3763_v7, %v3762_v6  ;;  %v3778_v9 = vld [vmem:[%s8238_s0 + $0x786] ss:$8 sm:$0xf]  }
  0x78   :  { %v3715_v15 = vld [vmem:[%s8238_s0 + $0x443] ss:$8 sm:$0xf0]   ;;  %v3779_v10 = vld [vmem:[%s8238_s0 + $0x786] ss:$8 sm:$0xf0]   ;;  %v1091_v11 = vsel %vm1002_vm2, %v1089_v8, %v1083_v5 }
  0x79   :  { %v913_v16 = vsel %vm4_vm0, %v3715_v15, %v3714_v14  ;;  %v3730_v17 = vld [vmem:[%s8238_s0 + $0x783] ss:$8 sm:$0xf]   ;;  %v1149_v12 = vsel %vm4_vm0, %v3779_v10, %v3778_v9  ;;  %v3781_v14 = vld [vmem:[%s8238_s0 + $0x746] ss:$8 sm:$0xf0]  }
  0x7a   :  { %v3731_v18 = vld [vmem:[%s8238_s0 + $0x783] ss:$8 sm:$0xf0]   ;;  %v915_v19 = vsel %vm299_vm1, %v913_v16, %v907_v13  ;;  %v3780_v13 = vld [vmem:[%s8238_s0 + $0x746] ss:$8 sm:$0xf]  }
  0x7b   :  { %v973_v20 = vsel %vm4_vm0, %v3731_v18, %v3730_v17  ;;  %v3732_v21 = vld [vmem:[%s8238_s0 + $0x743] ss:$8 sm:$0xf]   ;;  %916 = vrot.lane.b32.xlu0 %v915_v19, %s4413_s22  ;;  %v1155_v15 = vsel %vm4_vm0, %v3781_v14, %v3780_v13  ;;  %v3772_v16 = vld [vmem:[%s8238_s0 + $0x686] ss:$8 sm:$0xf]  }
  0x7c   :  { %v3733_v22 = vld [vmem:[%s8238_s0 + $0x743] ss:$8 sm:$0xf0]   ;;  %v3773_v17 = vld [vmem:[%s8238_s0 + $0x686] ss:$8 sm:$0xf0]   ;;  %v1157_v18 = vsel %vm1002_vm2, %v1155_v15, %v1149_v12 }
  0x7d   :  { %v979_v23 = vsel %vm4_vm0, %v3733_v22, %v3732_v21  ;;  %v3724_v24 = vld [vmem:[%s8238_s0 + $0x683] ss:$8 sm:$0xf]   ;;  %v1127_v19 = vsel %vm4_vm0, %v3773_v17, %v3772_v16  ;;  %v3775_v21 = vld [vmem:[%s8238_s0 + $0x646] ss:$8 sm:$0xf0]  }
  0x7e   :  { %v3725_v25 = vld [vmem:[%s8238_s0 + $0x683] ss:$8 sm:$0xf0]   ;;  %v981_v26 = vsel %vm299_vm1, %v979_v23, %v973_v20  ;;  %v3774_v20 = vld [vmem:[%s8238_s0 + $0x646] ss:$8 sm:$0xf]  }
  0x7f   :  { %v951_v27 = vsel %vm4_vm0, %v3725_v25, %v3724_v24  ;;  %v3726_v28 = vld [vmem:[%s8238_s0 + $0x643] ss:$8 sm:$0xf]   ;;  %982 = vrot.lane.b32.xlu1 %v981_v26, %s4413_s22  ;;  %v1133_v22 = vsel %vm4_vm0, %v3775_v21, %v3774_v20  ;;  %v3790_v23 = vld [vmem:[%s8238_s0 + $0x146] ss:$8 sm:$0xf]  }
  0x80   :  { %v3727_v29 = vld [vmem:[%s8238_s0 + $0x643] ss:$8 sm:$0xf0]   ;;  %v3791_v24 = vld [vmem:[%s8238_s0 + $0x146] ss:$8 sm:$0xf0]   ;;  %v1135_v25 = vsel %vm1002_vm2, %v1133_v22, %v1127_v19 }
  0x81   :  { %v957_v30 = vsel %vm4_vm0, %v3727_v29, %v3726_v28  ;;  %v1193_v26 = vsel %vm4_vm0, %v3791_v24, %v3790_v23  ;;  %v3793_v28 = vld [vmem:[%s8238_s0 + $0x106] ss:$8 sm:$0xf0]  }
  0x82   :  { %v959_v33 = vsel %vm299_vm1, %v957_v30, %v951_v27  ;;  %v3792_v27 = vld [vmem:[%s8238_s0 + $0x106] ss:$8 sm:$0xf]  }
  0x83   :  { %960 = vrot.lane.b32.xlu0 %v959_v33, %s4413_s22  ;;  %1026 = vrot.lane.b32.xlu1 %v1025_v40, %s4414_s26  ;;  %v1199_v29 = vsel %vm4_vm0, %v3793_v28, %v3792_v27  ;;  %v3784_v30 = vld [vmem:[%s8238_s0 + $0x46] ss:$8 sm:$0xf]  }
  0x84   :  { %v1201_v32 = vsel %vm1002_vm2, %v1199_v29, %v1193_v26  ;;  %v1171_v33 = vsel %vm4_vm0, %v3785_v31, %v3784_v30  ;;  %v3786_v34 = vld [vmem:[%s8238_s0 + $0x6] ss:$8 sm:$0xf]  }
  0x85   :  { %v3787_v35 = vld [vmem:[%s8238_s0 + $0x6] ss:$8 sm:$0xf0]  }
  0x86   :  { %v1177_v36 = vsel %vm4_vm0, %v3787_v35, %v3786_v34  ;;  %v3802_v37 = vld [vmem:[%s8238_s0 + $0x346] ss:$8 sm:$0xf]  }
  0x87   :  { %1004 = vrot.lane.b32.xlu0 %v1003_v47, %s4414_s26  ;;  %1070 = vrot.lane.b32.xlu1 %v1069_v54, %s4414_s26  ;;  %v3803_v38 = vld [vmem:[%s8238_s0 + $0x346] ss:$8 sm:$0xf0]   ;;  %v1179_v39 = vsel %vm1002_vm2, %v1177_v36, %v1171_v33 }
  0x88   :  { %v1237_v40 = vsel %vm4_vm0, %v3803_v38, %v3802_v37  ;;  %v3804_v41 = vld [vmem:[%s8238_s0 + $0x306] ss:$8 sm:$0xf]  }
  0x89   :  { %v3805_v42 = vld [vmem:[%s8238_s0 + $0x306] ss:$8 sm:$0xf0]  }
  0x8a   :  { %v1243_v43 = vsel %vm4_vm0, %v3805_v42, %v3804_v41  ;;  %v3796_v44 = vld [vmem:[%s8238_s0 + $0x246] ss:$8 sm:$0xf]  }
  0x8b   :  { %1048 = vrot.lane.b32.xlu0 %v1047_v61, %s4414_s26  ;;  %1114 = vrot.lane.b32.xlu1 %v1113_v4, %s4414_s26  ;;  %v3797_v45 = vld [vmem:[%s8238_s0 + $0x246] ss:$8 sm:$0xf0]   ;;  %v1245_v46 = vsel %vm1002_vm2, %v1243_v43, %v1237_v40 }
  0x8c   :  { %v1215_v47 = vsel %vm4_vm0, %v3797_v45, %v3796_v44  ;;  %v3798_v48 = vld [vmem:[%s8238_s0 + $0x206] ss:$8 sm:$0xf]  }
  0x8d   :  { %v3799_v49 = vld [vmem:[%s8238_s0 + $0x206] ss:$8 sm:$0xf0]  }
  0x8e   :  { %v1221_v50 = vsel %vm4_vm0, %v3799_v49, %v3798_v48  ;;  %v3814_v51 = vld [vmem:[%s8238_s0 + $0x546] ss:$8 sm:$0xf]  }
  0x8f   :  { %1092 = vrot.lane.b32.xlu0 %v1091_v11, %s4414_s26  ;;  %1158 = vrot.lane.b32.xlu1 %v1157_v18, %s4414_s26  ;;  %v3815_v52 = vld [vmem:[%s8238_s0 + $0x546] ss:$8 sm:$0xf0]   ;;  %v1223_v53 = vsel %vm1002_vm2, %v1221_v50, %v1215_v47 }
  0x90   :  { %v1281_v54 = vsel %vm4_vm0, %v3815_v52, %v3814_v51  ;;  %v3816_v55 = vld [vmem:[%s8238_s0 + $0x506] ss:$8 sm:$0xf]  }
  0x91   :  { %v3817_v56 = vld [vmem:[%s8238_s0 + $0x506] ss:$8 sm:$0xf0]  }
  0x92   :  { %v1287_v57 = vsel %vm4_vm0, %v3817_v56, %v3816_v55  ;;  %v3808_v58 = vld [vmem:[%s8238_s0 + $0x446] ss:$8 sm:$0xf]  }
  0x93   :  { %1136 = vrot.lane.b32.xlu0 %v1135_v25, %s4414_s26  ;;  %1202 = vrot.lane.b32.xlu1 %v1201_v32, %s4414_s26  ;;  %v3809_v59 = vld [vmem:[%s8238_s0 + $0x446] ss:$8 sm:$0xf0]   ;;  %v1289_v60 = vsel %vm1002_vm2, %v1287_v57, %v1281_v54 }
  0x94   :  { %v1259_v61 = vsel %vm4_vm0, %v3809_v59, %v3808_v58  ;;  %v3810_v62 = vld [vmem:[%s8238_s0 + $0x406] ss:$8 sm:$0xf]  }
  0x95   :  { %v3811_v63 = vld [vmem:[%s8238_s0 + $0x406] ss:$8 sm:$0xf0]  }
  0x96   :  { %v1265_v0 = vsel %vm4_vm0, %v3811_v63, %v3810_v62  ;;  %v3826_v1 = vld [vmem:[%s8238_s0 + $0x746] ss:$8 sm:$0xf]  }
  0x97   :  { %1180 = vrot.lane.b32.xlu0 %v1179_v39, %s4414_s26  ;;  %1246 = vrot.lane.b32.xlu1 %v1245_v46, %s4414_s26  ;;  %v3827_v2 = vld [vmem:[%s8238_s0 + $0x746] ss:$8 sm:$0xf0]   ;;  %v1267_v3 = vsel %vm1002_vm2, %v1265_v0, %v1259_v61 }
  0x98   :  { %v1325_v4 = vsel %vm4_vm0, %v3827_v2, %v3826_v1  ;;  %v3828_v5 = vld [vmem:[%s8238_s0 + $0x706] ss:$8 sm:$0xf]  }
  0x99   :  { %v3829_v6 = vld [vmem:[%s8238_s0 + $0x706] ss:$8 sm:$0xf0]  }
  0x9a   :  { %v1331_v7 = vsel %vm4_vm0, %v3829_v6, %v3828_v5  ;;  %v3820_v8 = vld [vmem:[%s8238_s0 + $0x646] ss:$8 sm:$0xf]  }
  0x9b   :  { %1224 = vrot.lane.b32.xlu0 %v1223_v53, %s4414_s26  ;;  %1290 = vrot.lane.b32.xlu1 %v1289_v60, %s4414_s26  ;;  %v3821_v9 = vld [vmem:[%s8238_s0 + $0x646] ss:$8 sm:$0xf0]   ;;  %v1333_v10 = vsel %vm1002_vm2, %v1331_v7, %v1325_v4 }
  0x9c   :  { %v1303_v11 = vsel %vm4_vm0, %v3821_v9, %v3820_v8  ;;  %v3822_v12 = vld [vmem:[%s8238_s0 + $0x606] ss:$8 sm:$0xf]  }
  0x9d   :  { %v3823_v13 = vld [vmem:[%s8238_s0 + $0x606] ss:$8 sm:$0xf0]  }
  0x9e   :  { %v1309_v14 = vsel %vm4_vm0, %v3823_v13, %v3822_v12  ;;  %v3838_v15 = vld [vmem:[%s8238_s0 + $0x106] ss:$8 sm:$0xf]  }
  0x9f   :  { %1268 = vrot.lane.b32.xlu0 %v1267_v3, %s4414_s26  ;;  %1334 = vrot.lane.b32.xlu1 %v1333_v10, %s4414_s26  ;;  %v3839_v16 = vld [vmem:[%s8238_s0 + $0x106] ss:$8 sm:$0xf0]   ;;  %v1311_v17 = vsel %vm1002_vm2, %v1309_v14, %v1303_v11 }
  0xa0   :  { %v1369_v18 = vsel %vm4_vm0, %v3839_v16, %v3838_v15  ;;  %v3840_v19 = vld [vmem:[%s8238_s0 + $0x1c6] ss:$8 sm:$0xf]  }
  0xa1   :  { %v3841_v20 = vld [vmem:[%s8238_s0 + $0x1c6] ss:$8 sm:$0xf0]  }
  0xa2   :  { %v1375_v21 = vsel %vm4_vm0, %v3841_v20, %v3840_v19  ;;  %v3832_v22 = vld [vmem:[%s8238_s0 + $0x6] ss:$8 sm:$0xf]  }
  0xa3   :  { %1312 = vrot.lane.b32.xlu0 %v1311_v17, %s4414_s26  ;;  %v3833_v23 = vld [vmem:[%s8238_s0 + $0x6] ss:$8 sm:$0xf0]   ;;  %v1377_v24 = vsel %vm1002_vm2, %v1375_v21, %v1369_v18  ;;  %v3473_v21 = vld [vmem:[%s8238_s0 + $0x200] ss:$8 sm:$0xf]  }
  0xa4   :  { %v1347_v25 = vsel %vm4_vm0, %v3833_v23, %v3832_v22  ;;  %v3834_v26 = vld [vmem:[%s8238_s0 + $0xc6] ss:$8 sm:$0xf]   ;;  %1378 = vrot.lane.b32.xlu1 %v1377_v24, %s4414_s26  ;;  %v3474_v23 = vld [vmem:[%s8238_s0 + $0x200] ss:$8 sm:$0xf0]  }
  0xa5   :  { %v3835_v27 = vld [vmem:[%s8238_s0 + $0xc6] ss:$8 sm:$0xf0]   ;;  %v2_v24 = vld [vmem:[%s8238_s0] ss:$8 sm:$0xf]  }
  0xa6   :  { %v1353_v28 = vsel %vm4_vm0, %v3835_v27, %v3834_v26  ;;  %v3850_v29 = vld [vmem:[%s8238_s0 + $0x306] ss:$8 sm:$0xf]   ;;  %v76_v26 = vsel %vm4_vm0, %v3474_v23, %v3473_v21  ;;  %v3_v27 = vld [vmem:[%s8238_s0] ss:$8 sm:$0xf0]  }
  0xa7   :  { %v3851_v30 = vld [vmem:[%s8238_s0 + $0x306] ss:$8 sm:$0xf0]   ;;  %v1355_v31 = vsel %vm1002_vm2, %v1353_v28, %v1347_v25  ;;  %v345_v25 = vpop.permute.xlu1 %344   ;;  %3475 = vst.msk [vmem:[%s8239_s1 + $0xc0] sm:$0xff] %vm6_vm3, %v76_v26  }
  0xa8   :  { %v1413_v32 = vsel %vm4_vm0, %v3851_v30, %v3850_v29  ;;  %v3852_v33 = vld [vmem:[%s8238_s0 + $0x3c6] ss:$8 sm:$0xf]   ;;  %1356 = vrot.lane.b32.xlu0 %v1355_v31, %s4414_s26  ;;  %3560 = vst.msk [vmem:[%s8239_s1 + $0xe0] sm:$0xff] %vm303_vm4, %v345_v25   ;;  %v5_v29 = vsel %vm4_vm0, %v3_v27, %v2_v24 }
  0xa9   :  { %v3853_v34 = vld [vmem:[%s8238_s0 + $0x3c6] ss:$8 sm:$0xf0]   ;;  %3561 = vst.msk [vmem:[%s8239_s1 + $0xc0] sm:$0xff] %vm306_vm5, %v345_v25  }
  0xaa   :  { %v1419_v35 = vsel %vm4_vm0, %v3853_v34, %v3852_v33  ;;  %v3844_v36 = vld [vmem:[%s8238_s0 + $0x206] ss:$8 sm:$0xf]   ;;  %7 = vst.msk [vmem:[%s8239_s1] sm:$0xff] %vm6_vm3, %v5_v29  }
  0xab   :  { %v3845_v37 = vld [vmem:[%s8238_s0 + $0x206] ss:$8 sm:$0xf0]   ;;  %v1421_v38 = vsel %vm1002_vm2, %v1419_v35, %v1413_v32  ;;  %v302_v32 = vpop.permute.xlu0 %301   ;;  %v3533_v24 = vld [vmem:[%s8238_s0 + $0x700] ss:$8 sm:$0xf]  }
  0xac   :  { %v1391_v39 = vsel %vm4_vm0, %v3845_v37, %v3844_v36  ;;  %v3846_v40 = vld [vmem:[%s8238_s0 + $0x2c6] ss:$8 sm:$0xf]   ;;  %1422 = vrot.lane.b32.xlu1 %v1421_v38, %s4414_s26  ;;  %3549 = vst.msk [vmem:[%s8239_s1 + $0x20] sm:$0xff] %vm303_vm4, %v302_v32  }
  0xad   :  { %v3847_v41 = vld [vmem:[%s8238_s0 + $0x2c6] ss:$8 sm:$0xf0]   ;;  %307 = vst.msk [vmem:[%s8239_s1] sm:$0xff] %vm306_vm5, %v302_v32  }
  0xae   :  { %v1397_v42 = vsel %vm4_vm0, %v3847_v41, %v3846_v40  ;;  %v3862_v43 = vld [vmem:[%s8238_s0 + $0x506] ss:$8 sm:$0xf]   ;;  %v3534_v27 = vld [vmem:[%s8238_s0 + $0x700] ss:$8 sm:$0xf0]  }
  0xaf   :  { %v3863_v44 = vld [vmem:[%s8238_s0 + $0x506] ss:$8 sm:$0xf0]   ;;  %v1399_v45 = vsel %vm1002_vm2, %v1397_v42, %v1391_v39  ;;  %v367_v42 = vpop.permute.xlu1 %366   ;;  %v3930_v32 = vld [vmem:[%s8238_s0 + $0x102] ss:$8 sm:$0xf]  }
  0xb0   :  { %v1457_v46 = vsel %vm4_vm0, %v3863_v44, %v3862_v43  ;;  %v3864_v47 = vld [vmem:[%s8238_s0 + $0x5c6] ss:$8 sm:$0xf]   ;;  %1400 = vrot.lane.b32.xlu0 %v1399_v45, %s4414_s26  ;;  %v3485_v43 = vld [vmem:[%s8238_s0 + $0x300] ss:$8 sm:$0xf]  }
  0xb1   :  { %v3865_v48 = vld [vmem:[%s8238_s0 + $0x5c6] ss:$8 sm:$0xf0]   ;;  %v3486_v45 = vld [vmem:[%s8238_s0 + $0x300] ss:$8 sm:$0xf0]  }
  0xb2   :  { %v1463_v49 = vsel %vm4_vm0, %v3865_v48, %v3864_v47  ;;  %v3856_v50 = vld [vmem:[%s8238_s0 + $0x406] ss:$8 sm:$0xf]   ;;  %3566 = vst.msk [vmem:[%s8239_s1 + $0x140] sm:$0xff] %vm303_vm4, %v367_v42   ;;  %v112_v48 = vsel %vm4_vm0, %v3486_v45, %v3485_v43 }
  0xb3   :  { %v3857_v51 = vld [vmem:[%s8238_s0 + $0x406] ss:$8 sm:$0xf0]   ;;  %v1465_v52 = vsel %vm1002_vm2, %v1463_v49, %v1457_v46  ;;  %v3461_v46 = vld [vmem:[%s8238_s0 + $0x100] ss:$8 sm:$0xf]   ;;  %v323_v49 = vpop.permute.xlu0 %322  }
  0xb4   :  { %v1435_v53 = vsel %vm4_vm0, %v3857_v51, %v3856_v50  ;;  %v3858_v54 = vld [vmem:[%s8238_s0 + $0x4c6] ss:$8 sm:$0xf]   ;;  %1466 = vrot.lane.b32.xlu1 %v1465_v52, %s4414_s26  ;;  %v3462_v50 = vld [vmem:[%s8238_s0 + $0x100] ss:$8 sm:$0xf0]  }
  0xb5   :  { %v3859_v55 = vld [vmem:[%s8238_s0 + $0x4c6] ss:$8 sm:$0xf0]   ;;  %3487 = vst.msk [vmem:[%s8239_s1 + $0x120] sm:$0xff] %vm6_vm3, %v112_v48   ;;  %v40_v52 = vsel %vm4_vm0, %v3462_v50, %v3461_v46 }
  0xb6   :  { %v1441_v56 = vsel %vm4_vm0, %v3859_v55, %v3858_v54  ;;  %v3874_v57 = vld [vmem:[%s8238_s0 + $0x706] ss:$8 sm:$0xf]   ;;  %3554 = vst.msk [vmem:[%s8239_s1 + $0x80] sm:$0xff] %vm303_vm4, %v323_v49  }
  0xb7   :  { %v3875_v58 = vld [vmem:[%s8238_s0 + $0x706] ss:$8 sm:$0xf0]   ;;  %v1443_v59 = vsel %vm1002_vm2, %v1441_v56, %v1435_v53  ;;  %3567 = vst.msk [vmem:[%s8239_s1 + $0x120] sm:$0xff] %vm306_vm5, %v367_v42  }
  0xb8   :  { %v1501_v60 = vsel %vm4_vm0, %v3875_v58, %v3874_v57  ;;  %v3876_v61 = vld [vmem:[%s8238_s0 + $0x7c6] ss:$8 sm:$0xf]   ;;  %1444 = vrot.lane.b32.xlu0 %v1443_v59, %s4414_s26  ;;  %3463 = vst.msk [vmem:[%s8239_s1 + $0x60] sm:$0xff] %vm6_vm3, %v40_v52   ;;  %v411_v58 = vpop.permute.xlu1 %410  }
  0xb9   :  { %v3877_v62 = vld [vmem:[%s8238_s0 + $0x7c6] ss:$8 sm:$0xf0]   ;;  %3555 = vst.msk [vmem:[%s8239_s1 + $0x60] sm:$0xff] %vm306_vm5, %v323_v49  }
  0xba   :  { %v1507_v63 = vsel %vm4_vm0, %v3877_v62, %v3876_v61  ;;  %v3868_v0 = vld [vmem:[%s8238_s0 + $0x606] ss:$8 sm:$0xf]   ;;  %3578 = vst.msk [vmem:[%s8239_s1 + $0x200] sm:$0xff] %vm303_vm4, %v411_v58  }
  0xbb   :  { %v3869_v1 = vld [vmem:[%s8238_s0 + $0x606] ss:$8 sm:$0xf0]   ;;  %v1509_v2 = vsel %vm1002_vm2, %v1507_v63, %v1501_v60  ;;  %v3471_v42 = vld [vmem:[%s8238_s0 + $0x1c0] ss:$8 sm:$0xf0]  }
  0xbc   :  { %v1479_v3 = vsel %vm4_vm0, %v3869_v1, %v3868_v0  ;;  %v3870_v4 = vld [vmem:[%s8238_s0 + $0x6c6] ss:$8 sm:$0xf]   ;;  %1510 = vrot.lane.b32.xlu1 %v1509_v2, %s4414_s26  ;;  %v3509_v1 = vld [vmem:[%s8238_s0 + $0x500] ss:$8 sm:$0xf]   ;;  %v389_v2 = vpop.permute.xlu0 %388  }
  0xbd   :  { %v3871_v5 = vld [vmem:[%s8238_s0 + $0x6c6] ss:$8 sm:$0xf0]   ;;  %3572 = vst.msk [vmem:[%s8239_s1 + $0x1a0] sm:$0xff] %vm303_vm4, %v389_v2  }
  0xbe   :  { %v1485_v6 = vsel %vm4_vm0, %v3871_v5, %v3870_v4  ;;  %v3886_v7 = vld [vmem:[%s8238_s0 + $0x1c6] ss:$8 sm:$0xf]   ;;  %v3510_v4 = vld [vmem:[%s8238_s0 + $0x500] ss:$8 sm:$0xf0]  }
  0xbf   :  { %v3887_v8 = vld [vmem:[%s8238_s0 + $0x1c6] ss:$8 sm:$0xf0]   ;;  %v1487_v9 = vsel %vm1002_vm2, %v1485_v6, %v1479_v3  ;;  %v3497_v5 = vld [vmem:[%s8238_s0 + $0x400] ss:$8 sm:$0xf]  }
  0xc0   :  { %v1545_v10 = vsel %vm4_vm0, %v3887_v8, %v3886_v7  ;;  %v3888_v11 = vld [vmem:[%s8238_s0 + $0x186] ss:$8 sm:$0xf]   ;;  %1488 = vrot.lane.b32.xlu0 %v1487_v9, %s4414_s26  ;;  %v184_v7 = vsel %vm4_vm0, %v3510_v4, %v3509_v1  ;;  %v3498_v8 = vld [vmem:[%s8238_s0 + $0x400] ss:$8 sm:$0xf0]  }
  0xc1   :  { %v3889_v12 = vld [vmem:[%s8238_s0 + $0x186] ss:$8 sm:$0xf0]   ;;  %3511 = vst.msk [vmem:[%s8239_s1 + $0x1e0] sm:$0xff] %vm6_vm3, %v184_v7  }
  0xc2   :  { %v1551_v13 = vsel %vm4_vm0, %v3889_v12, %v3888_v11  ;;  %v3880_v14 = vld [vmem:[%s8238_s0 + $0xc6] ss:$8 sm:$0xf]   ;;  %v148_v11 = vsel %vm4_vm0, %v3498_v8, %v3497_v5  ;;  %3579 = vst.msk [vmem:[%s8239_s1 + $0x1e0] sm:$0xff] %vm306_vm5, %v411_v58  }
  0xc3   :  { %v3881_v15 = vld [vmem:[%s8238_s0 + $0xc6] ss:$8 sm:$0xf0]   ;;  %v1553_v16 = vsel %vm1002_vm2, %v1551_v13, %v1545_v10  ;;  %v455_v10 = vpop.permute.xlu1 %454   ;;  %3499 = vst.msk [vmem:[%s8239_s1 + $0x180] sm:$0xff] %vm6_vm3, %v148_v11  }
  0xc4   :  { %v1523_v17 = vsel %vm4_vm0, %v3881_v15, %v3880_v14  ;;  %v3882_v18 = vld [vmem:[%s8238_s0 + $0x86] ss:$8 sm:$0xf]   ;;  %1554 = vrot.lane.b32.xlu1 %v1553_v16, %s4414_s26  ;;  %3590 = vst.msk [vmem:[%s8239_s1 + $0x2c0] sm:$0xff] %vm303_vm4, %v455_v10  }
  0xc5   :  { %v3883_v19 = vld [vmem:[%s8238_s0 + $0x86] ss:$8 sm:$0xf0]   ;;  %3573 = vst.msk [vmem:[%s8239_s1 + $0x180] sm:$0xff] %vm306_vm5, %v389_v2  }
  0xc6   :  { %v1529_v20 = vsel %vm4_vm0, %v3883_v19, %v3882_v18  ;;  %v3898_v28 = vld [vmem:[%s8238_s0 + $0x3c6] ss:$8 sm:$0xf]   ;;  %v3458_v43 = vld [vmem:[%s8238_s0 + $0xc0] ss:$8 sm:$0xf]  }
  0xc7   :  { %v1531_v22 = vsel %vm1002_vm2, %v1529_v20, %v1523_v17  ;;  %v3899_v30 = vld [vmem:[%s8238_s0 + $0x3c6] ss:$8 sm:$0xf0]   ;;  %v433_v17 = vpop.permute.xlu0 %432   ;;  %v499_v25 = vpop.permute.xlu1 %498   ;;  %v3459_v45 = vld [vmem:[%s8238_s0 + $0xc0] ss:$8 sm:$0xf0]  }
  0xc8   :  { %1532 = vrot.lane.b32.xlu0 %v1531_v22, %s4414_s26  ;;  %v3900_v31 = vld [vmem:[%s8238_s0 + $0x386] ss:$8 sm:$0xf]   ;;  %v1589_v33 = vsel %vm4_vm0, %v3899_v30, %v3898_v28  ;;  %3584 = vst.msk [vmem:[%s8239_s1 + $0x260] sm:$0xff] %vm303_vm4, %v433_v17   ;;  %3602 = vst.msk [vmem:[%s8239_s1 + $0x68] sm:$0xff] %vm303_vm4, %v499_v25   ;;  %v256_v30 = vsel %vm4_vm0, %v3534_v27, %v3533_v24  ;;  %v31_v48 = vsel %vm4_vm0, %v3459_v45, %v3458_v43 }
  0xc9   :  { %v3901_v34 = vld [vmem:[%s8238_s0 + $0x386] ss:$8 sm:$0xf0]   ;;  %v3521_v28 = vld [vmem:[%s8238_s0 + $0x600] ss:$8 sm:$0xf]  }
  0xca   :  { %v3892_v35 = vld [vmem:[%s8238_s0 + $0x2c6] ss:$8 sm:$0xf]   ;;  %v1595_v36 = vsel %vm4_vm0, %v3901_v34, %v3900_v31  ;;  %v3522_v31 = vld [vmem:[%s8238_s0 + $0x600] ss:$8 sm:$0xf0]  }
  0xcb   :  { %v3893_v37 = vld [vmem:[%s8238_s0 + $0x2c6] ss:$8 sm:$0xf0]   ;;  %v1597_v39 = vsel %vm1002_vm2, %v1595_v36, %v1589_v33  ;;  %v477_v33 = vpop.permute.xlu0 %476   ;;  %3535 = vst.msk [vmem:[%s8239_s1 + $0x2a0] sm:$0xff] %vm6_vm3, %v256_v30   ;;  %v220_v34 = vsel %vm4_vm0, %v3522_v31, %v3521_v28  ;;  %3460 = vst.msk [vmem:[%s8239_s1 + $0x48] sm:$0xff] %vm6_vm3, %v31_v48  }
  0xcc   :  { %v3894_v38 = vld [vmem:[%s8238_s0 + $0x286] ss:$8 sm:$0xf]   ;;  %v1567_v40 = vsel %vm4_vm0, %v3893_v37, %v3892_v35  ;;  %1598 = vrot.lane.b32.xlu1 %v1597_v39, %s4414_s26  ;;  %v3931_v35 = vld [vmem:[%s8238_s0 + $0x102] ss:$8 sm:$0xf0]  }
  0xcd   :  { %v3895_v41 = vld [vmem:[%s8238_s0 + $0x286] ss:$8 sm:$0xf0]   ;;  %v3928_v36 = vld [vmem:[%s8238_s0 + $0x2] ss:$8 sm:$0xf]   ;;  %v1709_v37 = vsel %vm4_vm0, %v3931_v35, %v3930_v32 }
  0xce   :  { %v1573_v44 = vsel %vm4_vm0, %v3895_v41, %v3894_v38  ;;  %v3910_v51 = vld [vmem:[%s8238_s0 + $0x5c6] ss:$8 sm:$0xf]   ;;  %3596 = vst.msk [vmem:[%s8239_s1 + $0x8] sm:$0xff] %vm303_vm4, %v477_v33  }
  0xcf   :  { %v1575_v47 = vsel %vm1002_vm2, %v1573_v44, %v1567_v40  ;;  %v3911_v53 = vld [vmem:[%s8238_s0 + $0x5c6] ss:$8 sm:$0xf0]   ;;  %3591 = vst.msk [vmem:[%s8239_s1 + $0x2a0] sm:$0xff] %vm306_vm5, %v455_v10   ;;  %v543_v40 = vpop.permute.xlu1 %542   ;;  %3597 = vst.msk [vmem:[%s8239_s1 + $0x48] sm:$0xff] %vm306_vm5, %v477_v33  }
  0xd0   :  { %1576 = vrot.lane.b32.xlu0 %v1575_v47, %s4414_s26  ;;  %v3912_v54 = vld [vmem:[%s8238_s0 + $0x586] ss:$8 sm:$0xf]   ;;  %v1633_v55 = vsel %vm4_vm0, %v3911_v53, %v3910_v51  ;;  %3523 = vst.msk [vmem:[%s8239_s1 + $0x240] sm:$0xff] %vm6_vm3, %v220_v34   ;;  %v521_v47 = vpop.permute.xlu0 %520  }
  0xd1   :  { %v3913_v56 = vld [vmem:[%s8238_s0 + $0x586] ss:$8 sm:$0xf0]   ;;  %v3929_v38 = vld [vmem:[%s8238_s0 + $0x2] ss:$8 sm:$0xf0]  }
  0xd2   :  { %v3904_v57 = vld [vmem:[%s8238_s0 + $0x4c6] ss:$8 sm:$0xf]   ;;  %v1639_v59 = vsel %vm4_vm0, %v3913_v56, %v3912_v54  ;;  %v3470_v39 = vld [vmem:[%s8238_s0 + $0x1c0] ss:$8 sm:$0xf]   ;;  %v1699_v41 = vsel %vm4_vm0, %v3929_v38, %v3928_v36 }
  0xd3   :  { %v3905_v60 = vld [vmem:[%s8238_s0 + $0x4c6] ss:$8 sm:$0xf0]   ;;  %v1641_v62 = vsel %vm1002_vm2, %v1639_v59, %v1633_v55  ;;  %3585 = vst.msk [vmem:[%s8239_s1 + $0x240] sm:$0xff] %vm306_vm5, %v433_v17   ;;  %v67_v44 = vsel %vm4_vm0, %v3471_v42, %v3470_v39  ;;  %v587_v54 = vpop.permute.xlu1 %586  }
  0xd4   :  { %v3906_v61 = vld [vmem:[%s8238_s0 + $0x486] ss:$8 sm:$0xf]   ;;  %v1611_v63 = vsel %vm4_vm0, %v3905_v60, %v3904_v57  ;;  %1642 = vrot.lane.b32.xlu1 %v1641_v62, %s4414_s26  ;;  %3614 = vst.msk [vmem:[%s8239_s1 + $0x128] sm:$0xff] %vm303_vm4, %v543_v40   ;;  %3608 = vst.msk [vmem:[%s8239_s1 + $0xc8] sm:$0xff] %vm303_vm4, %v521_v47  }
  0xd5   :  { %v3907_v0 = vld [vmem:[%s8238_s0 + $0x486] ss:$8 sm:$0xf0]   ;;  %v3936_v46 = vld [vmem:[%s8238_s0 + $0x302] ss:$8 sm:$0xf]  }
  0xd6   :  { %v1617_v3 = vsel %vm4_vm0, %v3907_v0, %v3906_v61  ;;  %v3922_v9 = vld [vmem:[%s8238_s0 + $0x7c6] ss:$8 sm:$0xf]   ;;  %3472 = vst.msk [vmem:[%s8239_s1 + $0xa8] sm:$0xff] %vm6_vm3, %v67_v44   ;;  %v565_v61 = vpop.permute.xlu0 %564  }
  0xd7   :  { %v1619_v6 = vsel %vm1002_vm2, %v1617_v3, %v1611_v63  ;;  %v3923_v12 = vld [vmem:[%s8238_s0 + $0x7c6] ss:$8 sm:$0xf0]   ;;  %v3937_v49 = vld [vmem:[%s8238_s0 + $0x302] ss:$8 sm:$0xf0]   ;;  %v631_v4 = vpop.permute.xlu1 %630  }
  0xd8   :  { %1620 = vrot.lane.b32.xlu0 %v1619_v6, %s4414_s26  ;;  %v3924_v13 = vld [vmem:[%s8238_s0 + $0x786] ss:$8 sm:$0xf]   ;;  %v1677_v14 = vsel %vm4_vm0, %v3923_v12, %v3922_v9  ;;  %v3933_v50 = vld [vmem:[%s8238_s0 + $0x202] ss:$8 sm:$0xf]   ;;  %v1731_v51 = vsel %vm4_vm0, %v3937_v49, %v3936_v46 }
  0xd9   :  { %v3925_v15 = vld [vmem:[%s8238_s0 + $0x786] ss:$8 sm:$0xf0]   ;;  %3603 = vst.msk [vmem:[%s8239_s1 + $0xa8] sm:$0xff] %vm306_vm5, %v499_v25  }
  0xda   :  { %v3916_v16 = vld [vmem:[%s8238_s0 + $0x6c6] ss:$8 sm:$0xf]   ;;  %v1683_v18 = vsel %vm4_vm0, %v3925_v15, %v3924_v13  ;;  %v3934_v52 = vld [vmem:[%s8238_s0 + $0x202] ss:$8 sm:$0xf0]   ;;  %v609_v11 = vpop.permute.xlu0 %608  }
  0xdb   :  { %v3917_v19 = vld [vmem:[%s8238_s0 + $0x6c6] ss:$8 sm:$0xf0]   ;;  %v1685_v21 = vsel %vm1002_vm2, %v1683_v18, %v1677_v14  ;;  %v3494_v53 = vld [vmem:[%s8238_s0 + $0x3c0] ss:$8 sm:$0xf]   ;;  %v1720_v55 = vsel %vm4_vm0, %v3934_v52, %v3933_v50  ;;  %v675_v18 = vpop.permute.xlu1 %674  }
  0xdc   :  { %v3918_v20 = vld [vmem:[%s8238_s0 + $0x686] ss:$8 sm:$0xf]   ;;  %v1655_v22 = vsel %vm4_vm0, %v3917_v19, %v3916_v16  ;;  %1686 = vrot.lane.b32.xlu1 %v1685_v21, %s4414_s26  ;;  %v3495_v56 = vld [vmem:[%s8238_s0 + $0x3c0] ss:$8 sm:$0xf0]  }
  0xdd   :  { %v3919_v23 = vld [vmem:[%s8238_s0 + $0x686] ss:$8 sm:$0xf0]   ;;  %v3482_v57 = vld [vmem:[%s8238_s0 + $0x2c0] ss:$8 sm:$0xf]   ;;  %v139_v58 = vsel %vm4_vm0, %v3495_v56, %v3494_v53 }
  0xde   :  { %v1661_v26 = vsel %vm4_vm0, %v3919_v23, %v3918_v20  ;;  %3626 = vst.msk [vmem:[%s8239_s1 + $0x1e8] sm:$0xff] %vm303_vm4, %v587_v54   ;;  %v3483_v59 = vld [vmem:[%s8238_s0 + $0x2c0] ss:$8 sm:$0xf0]   ;;  %3620 = vst.msk [vmem:[%s8239_s1 + $0x188] sm:$0xff] %vm303_vm4, %v565_v61   ;;  %v653_v25 = vpop.permute.xlu0 %652  }
  0xdf   :  { %v1663_v29 = vsel %vm1002_vm2, %v1661_v26, %v1655_v22  ;;  %v3942_v60 = vld [vmem:[%s8238_s0 + $0x502] ss:$8 sm:$0xf]   ;;  %3496 = vst.msk [vmem:[%s8239_s1 + $0x168] sm:$0xff] %vm6_vm3, %v139_v58   ;;  %v103_v62 = vsel %vm4_vm0, %v3483_v59, %v3482_v57  ;;  %v719_v32 = vpop.permute.xlu1 %718  }
  0xe0   :  { %1664 = vrot.lane.b32.xlu0 %v1663_v29, %s4414_s26  ;;  %1710 = vrot.lane.b32.xlu1 %v1709_v37, %s4415_s23  ;;  %v3943_v63 = vld [vmem:[%s8238_s0 + $0x502] ss:$8 sm:$0xf0]   ;;  %3615 = vst.msk [vmem:[%s8239_s1 + $0x168] sm:$0xff] %vm306_vm5, %v543_v40  }
  0xe1   :  { %v3939_v0 = vld [vmem:[%s8238_s0 + $0x402] ss:$8 sm:$0xf]   ;;  %3484 = vst.msk [vmem:[%s8239_s1 + $0x108] sm:$0xff] %vm6_vm3, %v103_v62   ;;  %v1753_v1 = vsel %vm4_vm0, %v3943_v63, %v3942_v60 }
  0xe2   :  { %v3940_v2 = vld [vmem:[%s8238_s0 + $0x402] ss:$8 sm:$0xf0]   ;;  %v3518_v3 = vld [vmem:[%s8238_s0 + $0x5c0] ss:$8 sm:$0xf]   ;;  %v697_v39 = vpop.permute.xlu0 %696  }
  0xe3   :  { %3609 = vst.msk [vmem:[%s8239_s1 + $0x108] sm:$0xff] %vm306_vm5, %v521_v47   ;;  %v1742_v5 = vsel %vm4_vm0, %v3940_v2, %v3939_v0  ;;  %v3519_v6 = vld [vmem:[%s8238_s0 + $0x5c0] ss:$8 sm:$0xf0]   ;;  %v763_v46 = vpop.permute.xlu1 %762  }
  0xe4   :  { %1700 = vrot.lane.b32.xlu0 %v1699_v41, %s4415_s23  ;;  %1732 = vrot.lane.b32.xlu1 %v1731_v51, %s4415_s23  ;;  %v3506_v7 = vld [vmem:[%s8238_s0 + $0x4c0] ss:$8 sm:$0xf]   ;;  %3638 = vst.msk [vmem:[%s8239_s1 + $0x2a8] sm:$0xff] %vm303_vm4, %v631_v4   ;;  %v211_v8 = vsel %vm4_vm0, %v3519_v6, %v3518_v3 }
  0xe5   :  { %v3507_v9 = vld [vmem:[%s8238_s0 + $0x4c0] ss:$8 sm:$0xf0]   ;;  %v3948_v10 = vld [vmem:[%s8238_s0 + $0x702] ss:$8 sm:$0xf]  }
  0xe6   :  { %3520 = vst.msk [vmem:[%s8239_s1 + $0x228] sm:$0xff] %vm6_vm3, %v211_v8   ;;  %v175_v12 = vsel %vm4_vm0, %v3507_v9, %v3506_v7  ;;  %v3949_v13 = vld [vmem:[%s8238_s0 + $0x702] ss:$8 sm:$0xf0]   ;;  %v741_v53 = vpop.permute.xlu0 %740  }
  0xe7   :  { %v3945_v14 = vld [vmem:[%s8238_s0 + $0x602] ss:$8 sm:$0xf]   ;;  %3632 = vst.msk [vmem:[%s8239_s1 + $0x248] sm:$0xff] %vm303_vm4, %v609_v11   ;;  %v1775_v15 = vsel %vm4_vm0, %v3949_v13, %v3948_v10  ;;  %3650 = vst.msk [vmem:[%s8239_s1 + $0xb0] sm:$0xff] %vm303_vm4, %v675_v18   ;;  %v807_v60 = vpop.permute.xlu1 %806  }
  0xe8   :  { %1721 = vrot.lane.b32.xlu0 %v1720_v55, %s4415_s23  ;;  %1754 = vrot.lane.b32.xlu1 %v1753_v1, %s4415_s23  ;;  %3627 = vst.msk [vmem:[%s8239_s1 + $0x228] sm:$0xff] %vm306_vm5, %v587_v54   ;;  %v3946_v16 = vld [vmem:[%s8238_s0 + $0x602] ss:$8 sm:$0xf0]  }
  0xe9   :  { %3508 = vst.msk [vmem:[%s8239_s1 + $0x1c8] sm:$0xff] %vm6_vm3, %v175_v12   ;;  %v3542_v17 = vld [vmem:[%s8238_s0 + $0x7c0] ss:$8 sm:$0xf]   ;;  %v1764_v19 = vsel %vm4_vm0, %v3946_v16, %v3945_v14 }
  0xea   :  { %3621 = vst.msk [vmem:[%s8239_s1 + $0x1c8] sm:$0xff] %vm306_vm5, %v565_v61   ;;  %v3543_v20 = vld [vmem:[%s8238_s0 + $0x7c0] ss:$8 sm:$0xf0]   ;;  %v785_v3 = vpop.permute.xlu0 %784  }
  0xeb   :  { %v3530_v21 = vld [vmem:[%s8238_s0 + $0x6c0] ss:$8 sm:$0xf]   ;;  %v283_v22 = vsel %vm4_vm0, %v3543_v20, %v3542_v17  ;;  %v3954_v24 = vld [vmem:[%s8238_s0 + $0x1c2] ss:$8 sm:$0xf]   ;;  %v851_v10 = vpop.permute.xlu1 %850  }
  0xec   :  { %1743 = vrot.lane.b32.xlu0 %v1742_v5, %s4415_s23  ;;  %1776 = vrot.lane.b32.xlu1 %v1775_v15, %s4415_s23  ;;  %v3531_v23 = vld [vmem:[%s8238_s0 + $0x6c0] ss:$8 sm:$0xf0]   ;;  %3544 = vst.msk [vmem:[%s8239_s1 + $0x2e8] sm:$0xff] %vm6_vm3, %v283_v22  }
  0xed   :  { %v247_v26 = vsel %vm4_vm0, %v3531_v23, %v3530_v21  ;;  %v3955_v27 = vld [vmem:[%s8238_s0 + $0x1c2] ss:$8 sm:$0xf0]   ;;  %3644 = vst.msk [vmem:[%s8239_s1 + $0x50] sm:$0xff] %vm303_vm4, %v653_v25   ;;  %3662 = vst.msk [vmem:[%s8239_s1 + $0x170] sm:$0xff] %vm303_vm4, %v719_v32  }
  0xee   :  { %v3951_v28 = vld [vmem:[%s8238_s0 + $0xc2] ss:$8 sm:$0xf]   ;;  %3639 = vst.msk [vmem:[%s8239_s1 + $0x2e8] sm:$0xff] %vm306_vm5, %v631_v4   ;;  %v1797_v29 = vsel %vm4_vm0, %v3955_v27, %v3954_v24  ;;  %v829_v17 = vpop.permute.xlu0 %828  }
  0xef   :  { %3532 = vst.msk [vmem:[%s8239_s1 + $0x288] sm:$0xff] %vm6_vm3, %v247_v26   ;;  %v3952_v30 = vld [vmem:[%s8238_s0 + $0xc2] ss:$8 sm:$0xf0]   ;;  %v895_v24 = vpop.permute.xlu1 %894  }
  0xf0   :  { %1765 = vrot.lane.b32.xlu0 %v1764_v19, %s4415_s23  ;;  %v3467_v31 = vld [vmem:[%s8238_s0 + $0x180] ss:$8 sm:$0xf]   ;;  %3633 = vst.msk [vmem:[%s8239_s1 + $0x288] sm:$0xff] %vm306_vm5, %v609_v11   ;;  %1798 = vrot.lane.b32.xlu1 %v1797_v29, %s4415_s23  ;;  %v1786_v33 = vsel %vm4_vm0, %v3952_v30, %v3951_v28 }
  0xf1   :  { %v3468_v34 = vld [vmem:[%s8238_s0 + $0x180] ss:$8 sm:$0xf0]   ;;  %v3960_v38 = vld [vmem:[%s8238_s0 + $0x3c2] ss:$8 sm:$0xf]  }
  0xf2   :  { %v3455_v35 = vld [vmem:[%s8238_s0 + $0x80] ss:$8 sm:$0xf]   ;;  %v58_v36 = vsel %vm4_vm0, %v3468_v34, %v3467_v31  ;;  %v3961_v41 = vld [vmem:[%s8238_s0 + $0x3c2] ss:$8 sm:$0xf0]   ;;  %v873_v31 = vpop.permute.xlu0 %872  }
  0xf3   :  { %v3456_v37 = vld [vmem:[%s8238_s0 + $0x80] ss:$8 sm:$0xf0]   ;;  %3469 = vst.msk [vmem:[%s8239_s1 + $0x90] sm:$0xff] %vm6_vm3, %v58_v36   ;;  %v1819_v43 = vsel %vm4_vm0, %v3961_v41, %v3960_v38  ;;  %v939_v38 = vpop.permute.xlu1 %938  }
  0xf4   :  { %1787 = vrot.lane.b32.xlu0 %v1786_v33, %s4415_s23  ;;  %v22_v40 = vsel %vm4_vm0, %v3456_v37, %v3455_v35  ;;  %v3957_v42 = vld [vmem:[%s8238_s0 + $0x2c2] ss:$8 sm:$0xf]   ;;  %3656 = vst.msk [vmem:[%s8239_s1 + $0x110] sm:$0xff] %vm303_vm4, %v697_v39   ;;  %1820 = vrot.lane.b32.xlu1 %v1819_v43, %s4415_s23 }
  0xf5   :  { %3651 = vst.msk [vmem:[%s8239_s1 + $0x90] sm:$0xff] %vm306_vm5, %v675_v18   ;;  %v3958_v44 = vld [vmem:[%s8238_s0 + $0x2c2] ss:$8 sm:$0xf0]  }
  0xf6   :  { %3457 = vst.msk [vmem:[%s8239_s1 + $0x30] sm:$0xff] %vm6_vm3, %v22_v40   ;;  %v3491_v45 = vld [vmem:[%s8238_s0 + $0x380] ss:$8 sm:$0xf]   ;;  %v1808_v47 = vsel %vm4_vm0, %v3958_v44, %v3957_v42 }
  0xf7   :  { %3645 = vst.msk [vmem:[%s8239_s1 + $0x30] sm:$0xff] %vm306_vm5, %v653_v25   ;;  %v3492_v48 = vld [vmem:[%s8238_s0 + $0x380] ss:$8 sm:$0xf0]  }
  0xf8   :  { %v3479_v49 = vld [vmem:[%s8238_s0 + $0x280] ss:$8 sm:$0xf]   ;;  %3674 = vst.msk [vmem:[%s8239_s1 + $0x230] sm:$0xff] %vm303_vm4, %v763_v46   ;;  %v130_v50 = vsel %vm4_vm0, %v3492_v48, %v3491_v45  ;;  %1809 = vrot.lane.b32.xlu0 %v1808_v47, %s4415_s23  ;;  %3668 = vst.msk [vmem:[%s8239_s1 + $0x1d0] sm:$0xff] %vm303_vm4, %v741_v53   ;;  %v917_v45 = vpop.permute.xlu0 %916  }
  0xf9   :  { %v3480_v51 = vld [vmem:[%s8238_s0 + $0x280] ss:$8 sm:$0xf0]   ;;  %v3966_v52 = vld [vmem:[%s8238_s0 + $0x5c2] ss:$8 sm:$0xf]  }
  0xfa   :  { %3493 = vst.msk [vmem:[%s8239_s1 + $0x150] sm:$0xff] %vm6_vm3, %v130_v50   ;;  %v94_v54 = vsel %vm4_vm0, %v3480_v51, %v3479_v49  ;;  %v3967_v55 = vld [vmem:[%s8238_s0 + $0x5c2] ss:$8 sm:$0xf0]  }
  0xfb   :  { %v3963_v56 = vld [vmem:[%s8238_s0 + $0x4c2] ss:$8 sm:$0xf]   ;;  %3663 = vst.msk [vmem:[%s8239_s1 + $0x150] sm:$0xff] %vm306_vm5, %v719_v32   ;;  %v1841_v57 = vsel %vm4_vm0, %v3967_v55, %v3966_v52  ;;  %v983_v52 = vpop.permute.xlu1 %982  }
  0xfc   :  { %3481 = vst.msk [vmem:[%s8239_s1 + $0xf0] sm:$0xff] %vm6_vm3, %v94_v54   ;;  %v3964_v58 = vld [vmem:[%s8238_s0 + $0x4c2] ss:$8 sm:$0xf0]   ;;  %1842 = vrot.lane.b32.xlu1 %v1841_v57, %s4415_s23 }
  0xfd   :  { %v3515_v59 = vld [vmem:[%s8238_s0 + $0x580] ss:$8 sm:$0xf]   ;;  %3657 = vst.msk [vmem:[%s8239_s1 + $0xf0] sm:$0xff] %vm306_vm5, %v697_v39   ;;  %v1830_v61 = vsel %vm4_vm0, %v3964_v58, %v3963_v56 }
  0xfe   :  { %v3516_v62 = vld [vmem:[%s8238_s0 + $0x580] ss:$8 sm:$0xf0]   ;;  %3686 = vst.msk [vmem:[%s8239_s1 + $0x2f0] sm:$0xff] %vm303_vm4, %v807_v60   ;;  %1831 = vrot.lane.b32.xlu0 %v1830_v61, %s4415_s23  ;;  %3680 = vst.msk [vmem:[%s8239_s1 + $0x290] sm:$0xff] %vm303_vm4, %v785_v3  }
  0xff   :  { %v3503_v63 = vld [vmem:[%s8238_s0 + $0x480] ss:$8 sm:$0xf]   ;;  %v202_v0 = vsel %vm4_vm0, %v3516_v62, %v3515_v59  ;;  %v3972_v2 = vld [vmem:[%s8238_s0 + $0x7c2] ss:$8 sm:$0xf]   ;;  %v961_v59 = vpop.permute.xlu0 %960  }
 0x100   :  { %v3504_v1 = vld [vmem:[%s8238_s0 + $0x480] ss:$8 sm:$0xf0]   ;;  %3517 = vst.msk [vmem:[%s8239_s1 + $0x210] sm:$0xff] %vm6_vm3, %v202_v0  }
 0x101   :  { %v166_v4 = vsel %vm4_vm0, %v3504_v1, %v3503_v63  ;;  %v3973_v5 = vld [vmem:[%s8238_s0 + $0x7c2] ss:$8 sm:$0xf0]   ;;  %3675 = vst.msk [vmem:[%s8239_s1 + $0x210] sm:$0xff] %vm306_vm5, %v763_v46  }
 0x102   :  { %v3969_v6 = vld [vmem:[%s8238_s0 + $0x6c2] ss:$8 sm:$0xf]   ;;  %3505 = vst.msk [vmem:[%s8239_s1 + $0x1b0] sm:$0xff] %vm6_vm3, %v166_v4   ;;  %v1863_v7 = vsel %vm4_vm0, %v3973_v5, %v3972_v2  ;;  %v1027_v2 = vpop.permute.xlu1 %1026  }
 0x103   :  { %v3970_v8 = vld [vmem:[%s8238_s0 + $0x6c2] ss:$8 sm:$0xf0]   ;;  %v3539_v9 = vld [vmem:[%s8238_s0 + $0x780] ss:$8 sm:$0xf]   ;;  %1864 = vrot.lane.b32.xlu1 %v1863_v7, %s4415_s23 }
 0x104   :  { %3669 = vst.msk [vmem:[%s8239_s1 + $0x1b0] sm:$0xff] %vm306_vm5, %v741_v53   ;;  %v1852_v11 = vsel %vm4_vm0, %v3970_v8, %v3969_v6  ;;  %v3540_v12 = vld [vmem:[%s8238_s0 + $0x780] ss:$8 sm:$0xf0]  }
 0x105   :  { %v3527_v13 = vld [vmem:[%s8238_s0 + $0x680] ss:$8 sm:$0xf]   ;;  %3698 = vst.msk [vmem:[%s8239_s1 + $0x98] sm:$0xff] %vm303_vm4, %v851_v10   ;;  %v274_v14 = vsel %vm4_vm0, %v3540_v12, %v3539_v9  ;;  %1853 = vrot.lane.b32.xlu0 %v1852_v11, %s4415_s23  ;;  %3692 = vst.msk [vmem:[%s8239_s1 + $0x38] sm:$0xff] %vm303_vm4, %v829_v17   ;;  %v1005_v9 = vpop.permute.xlu0 %1004  }
 0x106   :  { %v3528_v15 = vld [vmem:[%s8238_s0 + $0x680] ss:$8 sm:$0xf0]   ;;  %v3978_v16 = vld [vmem:[%s8238_s0 + $0x182] ss:$8 sm:$0xf]  }
 0x107   :  { %3541 = vst.msk [vmem:[%s8239_s1 + $0x2d0] sm:$0xff] %vm6_vm3, %v274_v14   ;;  %v238_v18 = vsel %vm4_vm0, %v3528_v15, %v3527_v13  ;;  %v3979_v19 = vld [vmem:[%s8238_s0 + $0x182] ss:$8 sm:$0xf0]   ;;  %v1071_v15 = vpop.permute.xlu1 %1070  }
 0x108   :  { %v3975_v20 = vld [vmem:[%s8238_s0 + $0x82] ss:$8 sm:$0xf]   ;;  %3687 = vst.msk [vmem:[%s8239_s1 + $0x2d0] sm:$0xff] %vm306_vm5, %v807_v60   ;;  %v1885_v21 = vsel %vm4_vm0, %v3979_v19, %v3978_v16 }
 0x109   :  { %3529 = vst.msk [vmem:[%s8239_s1 + $0x270] sm:$0xff] %vm6_vm3, %v238_v18   ;;  %v3976_v22 = vld [vmem:[%s8238_s0 + $0x82] ss:$8 sm:$0xf0]   ;;  %1886 = vrot.lane.b32.xlu1 %v1885_v21, %s4415_s23 }
 0x10a   :  { %v3464_v23 = vld [vmem:[%s8238_s0 + $0x140] ss:$8 sm:$0xf]   ;;  %3681 = vst.msk [vmem:[%s8239_s1 + $0x270] sm:$0xff] %vm306_vm5, %v785_v3   ;;  %v1874_v25 = vsel %vm4_vm0, %v3976_v22, %v3975_v20  ;;  %v1049_v22 = vpop.permute.xlu0 %1048  }
 0x10b   :  { %v3465_v26 = vld [vmem:[%s8238_s0 + $0x140] ss:$8 sm:$0xf0]   ;;  %3710 = vst.msk [vmem:[%s8239_s1 + $0x158] sm:$0xff] %vm303_vm4, %v895_v24   ;;  %1875 = vrot.lane.b32.xlu0 %v1874_v25, %s4415_s23  ;;  %3704 = vst.msk [vmem:[%s8239_s1 + $0xf8] sm:$0xff] %vm303_vm4, %v873_v31  }
 0x10c   :  { %v3452_v27 = vld [vmem:[%s8238_s0 + $0x40] ss:$8 sm:$0xf]   ;;  %v49_v28 = vsel %vm4_vm0, %v3465_v26, %v3464_v23  ;;  %v3984_v30 = vld [vmem:[%s8238_s0 + $0x382] ss:$8 sm:$0xf]   ;;  %v1115_v26 = vpop.permute.xlu1 %1114  }
 0x10d   :  { %v3453_v29 = vld [vmem:[%s8238_s0 + $0x40] ss:$8 sm:$0xf0]   ;;  %3466 = vst.msk [vmem:[%s8239_s1 + $0x78] sm:$0xff] %vm6_vm3, %v49_v28  }
 0x10e   :  { %v13_v32 = vsel %vm4_vm0, %v3453_v29, %v3452_v27  ;;  %v3985_v33 = vld [vmem:[%s8238_s0 + $0x382] ss:$8 sm:$0xf0]   ;;  %3699 = vst.msk [vmem:[%s8239_s1 + $0x78] sm:$0xff] %vm306_vm5, %v851_v10  }
 0x10f   :  { %v3981_v34 = vld [vmem:[%s8238_s0 + $0x282] ss:$8 sm:$0xf]   ;;  %3454 = vst.msk [vmem:[%s8239_s1 + $0x18] sm:$0xff] %vm6_vm3, %v13_v32   ;;  %v1907_v35 = vsel %vm4_vm0, %v3985_v33, %v3984_v30  ;;  %v1093_v30 = vpop.permute.xlu0 %1092  }
 0x110   :  { %v3982_v36 = vld [vmem:[%s8238_s0 + $0x282] ss:$8 sm:$0xf0]   ;;  %v3488_v37 = vld [vmem:[%s8238_s0 + $0x340] ss:$8 sm:$0xf]   ;;  %1908 = vrot.lane.b32.xlu1 %v1907_v35, %s4415_s23 }
 0x111   :  { %3693 = vst.msk [vmem:[%s8239_s1 + $0x18] sm:$0xff] %vm306_vm5, %v829_v17   ;;  %v1896_v39 = vsel %vm4_vm0, %v3982_v36, %v3981_v34  ;;  %v3489_v40 = vld [vmem:[%s8238_s0 + $0x340] ss:$8 sm:$0xf0]   ;;  %v1159_v34 = vpop.permute.xlu1 %1158  }
 0x112   :  { %v3476_v41 = vld [vmem:[%s8238_s0 + $0x240] ss:$8 sm:$0xf]   ;;  %3722 = vst.msk [vmem:[%s8239_s1 + $0x218] sm:$0xff] %vm303_vm4, %v939_v38   ;;  %v121_v42 = vsel %vm4_vm0, %v3489_v40, %v3488_v37  ;;  %1897 = vrot.lane.b32.xlu0 %v1896_v39, %s4415_s23  ;;  %3716 = vst.msk [vmem:[%s8239_s1 + $0x1b8] sm:$0xff] %vm303_vm4, %v917_v45  }
 0x113   :  { %v3477_v43 = vld [vmem:[%s8238_s0 + $0x240] ss:$8 sm:$0xf0]   ;;  %v3990_v44 = vld [vmem:[%s8238_s0 + $0x582] ss:$8 sm:$0xf]  }
 0x114   :  { %3490 = vst.msk [vmem:[%s8239_s1 + $0x138] sm:$0xff] %vm6_vm3, %v121_v42   ;;  %v85_v46 = vsel %vm4_vm0, %v3477_v43, %v3476_v41  ;;  %v3991_v47 = vld [vmem:[%s8238_s0 + $0x582] ss:$8 sm:$0xf0]  }
 0x115   :  { %v3987_v48 = vld [vmem:[%s8238_s0 + $0x482] ss:$8 sm:$0xf]   ;;  %3711 = vst.msk [vmem:[%s8239_s1 + $0x138] sm:$0xff] %vm306_vm5, %v895_v24   ;;  %v1929_v49 = vsel %vm4_vm0, %v3991_v47, %v3990_v44  ;;  %v1203_v42 = vpop.permute.xlu1 %1202  }
 0x116   :  { %3478 = vst.msk [vmem:[%s8239_s1 + $0xd8] sm:$0xff] %vm6_vm3, %v85_v46   ;;  %v3988_v50 = vld [vmem:[%s8238_s0 + $0x482] ss:$8 sm:$0xf0]   ;;  %1930 = vrot.lane.b32.xlu1 %v1929_v49, %s4415_s23 }
 0x117   :  { %v3512_v51 = vld [vmem:[%s8238_s0 + $0x540] ss:$8 sm:$0xf]   ;;  %3705 = vst.msk [vmem:[%s8239_s1 + $0xd8] sm:$0xff] %vm306_vm5, %v873_v31   ;;  %v1918_v53 = vsel %vm4_vm0, %v3988_v50, %v3987_v48 }
 0x118   :  { %v3513_v54 = vld [vmem:[%s8238_s0 + $0x540] ss:$8 sm:$0xf0]   ;;  %3734 = vst.msk [vmem:[%s8239_s1 + $0x2d8] sm:$0xff] %vm303_vm4, %v983_v52   ;;  %1919 = vrot.lane.b32.xlu0 %v1918_v53, %s4415_s23  ;;  %3728 = vst.msk [vmem:[%s8239_s1 + $0x278] sm:$0xff] %vm303_vm4, %v961_v59  }
 0x119   :  { %v3500_v55 = vld [vmem:[%s8238_s0 + $0x440] ss:$8 sm:$0xf]   ;;  %v193_v56 = vsel %vm4_vm0, %v3513_v54, %v3512_v51  ;;  %v3996_v58 = vld [vmem:[%s8238_s0 + $0x782] ss:$8 sm:$0xf]   ;;  %v1247_v50 = vpop.permute.xlu1 %1246  }
 0x11a   :  { %v3501_v57 = vld [vmem:[%s8238_s0 + $0x440] ss:$8 sm:$0xf0]   ;;  %3514 = vst.msk [vmem:[%s8239_s1 + $0x1f8] sm:$0xff] %vm6_vm3, %v193_v56  }
 0x11b   :  { %v157_v60 = vsel %vm4_vm0, %v3501_v57, %v3500_v55  ;;  %v3997_v61 = vld [vmem:[%s8238_s0 + $0x782] ss:$8 sm:$0xf0]   ;;  %3723 = vst.msk [vmem:[%s8239_s1 + $0x1f8] sm:$0xff] %vm306_vm5, %v939_v38   ;;  %v1137_v38 = vpop.permute.xlu0 %1136  }
 0x11c   :  { %v3993_v62 = vld [vmem:[%s8238_s0 + $0x682] ss:$8 sm:$0xf]   ;;  %3502 = vst.msk [vmem:[%s8239_s1 + $0x198] sm:$0xff] %vm6_vm3, %v157_v60   ;;  %v1951_v63 = vsel %vm4_vm0, %v3997_v61, %v3996_v58 }
 0x11d   :  { %v3994_v0 = vld [vmem:[%s8238_s0 + $0x682] ss:$8 sm:$0xf0]   ;;  %v3536_v1 = vld [vmem:[%s8238_s0 + $0x740] ss:$8 sm:$0xf]   ;;  %1952 = vrot.lane.b32.xlu1 %v1951_v63, %s4415_s23  ;;  %v1291_v58 = vpop.permute.xlu1 %1290  }
 0x11e   :  { %3717 = vst.msk [vmem:[%s8239_s1 + $0x198] sm:$0xff] %vm306_vm5, %v917_v45   ;;  %v1940_v3 = vsel %vm4_vm0, %v3994_v0, %v3993_v62  ;;  %v3537_v4 = vld [vmem:[%s8238_s0 + $0x740] ss:$8 sm:$0xf0]  }
 0x11f   :  { %v3524_v5 = vld [vmem:[%s8238_s0 + $0x640] ss:$8 sm:$0xf]   ;;  %v265_v6 = vsel %vm4_vm0, %v3537_v4, %v3536_v1  ;;  %v4002_v8 = vld [vmem:[%s8238_s0 + $0x142] ss:$8 sm:$0xf]   ;;  %1941 = vrot.lane.b32.xlu0 %v1940_v3, %s4415_s23  ;;  %v1181_v46 = vpop.permute.xlu0 %1180  }
 0x120   :  { %v3525_v7 = vld [vmem:[%s8238_s0 + $0x640] ss:$8 sm:$0xf0]   ;;  %3538 = vst.msk [vmem:[%s8239_s1 + $0x2b8] sm:$0xff] %vm6_vm3, %v265_v6  }
 0x121   :  { %v229_v10 = vsel %vm4_vm0, %v3525_v7, %v3524_v5  ;;  %v4003_v11 = vld [vmem:[%s8238_s0 + $0x142] ss:$8 sm:$0xf0]   ;;  %3735 = vst.msk [vmem:[%s8239_s1 + $0x2b8] sm:$0xff] %vm306_vm5, %v983_v52  }
 0x122   :  { %v3999_v12 = vld [vmem:[%s8238_s0 + $0x42] ss:$8 sm:$0xf]   ;;  %3526 = vst.msk [vmem:[%s8239_s1 + $0x258] sm:$0xff] %vm6_vm3, %v229_v10   ;;  %v1973_v13 = vsel %vm4_vm0, %v4003_v11, %v4002_v8 }
 0x123   :  { %v4000_v14 = vld [vmem:[%s8238_s0 + $0x42] ss:$8 sm:$0xf0]   ;;  %3729 = vst.msk [vmem:[%s8239_s1 + $0x258] sm:$0xff] %vm306_vm5, %v961_v59   ;;  %1974 = vrot.lane.b32.xlu1 %v1973_v13, %s4415_s23  ;;  %v1225_v54 = vpop.permute.xlu0 %1224  }
 0x124   :  { %v1962_v16 = vsel %vm4_vm0, %v4000_v14, %v3999_v12  ;;  %3746 = vst.msk [vmem:[%s8239_s1 + $0xa0] sm:$0xff] %vm1006_vm6, %v1027_v2   ;;  %3740 = vst.msk [vmem:[%s8239_s1 + $0x40] sm:$0xff] %vm1006_vm6, %v1005_v9   ;;  %v4008_v17 = vld [vmem:[%s8238_s0 + $0x342] ss:$8 sm:$0xf]  }
 0x125   :  { %3747 = vst.msk [vmem:[%s8239_s1 + $0x80] sm:$0xff] %vm1009_vm7, %v1027_v2   ;;  %3741 = vst.msk [vmem:[%s8239_s1 + $0x20] sm:$0xff] %vm1009_vm7, %v1005_v9   ;;  %v4009_v18 = vld [vmem:[%s8238_s0 + $0x342] ss:$8 sm:$0xf0]   ;;  %1963 = vrot.lane.b32.xlu0 %v1962_v16, %s4415_s23  ;;  %v1335_v2 = vpop.permute.xlu1 %1334  }
 0x126   :  { %3758 = vst.msk [vmem:[%s8239_s1 + $0x160] sm:$0xff] %vm1006_vm6, %v1071_v15   ;;  %v1995_v19 = vsel %vm4_vm0, %v4009_v18, %v4008_v17  ;;  %v4005_v20 = vld [vmem:[%s8238_s0 + $0x242] ss:$8 sm:$0xf]   ;;  %3752 = vst.msk [vmem:[%s8239_s1 + $0x100] sm:$0xff] %vm1006_vm6, %v1049_v22  }
 0x127   :  { %3759 = vst.msk [vmem:[%s8239_s1 + $0x140] sm:$0xff] %vm1009_vm7, %v1071_v15   ;;  %v4006_v21 = vld [vmem:[%s8238_s0 + $0x242] ss:$8 sm:$0xf0]   ;;  %3753 = vst.msk [vmem:[%s8239_s1 + $0xe0] sm:$0xff] %vm1009_vm7, %v1049_v22   ;;  %1996 = vrot.lane.b32.xlu1 %v1995_v19, %s4415_s23  ;;  %v1269_v62 = vpop.permute.xlu0 %1268  }
 0x128   :  { %v4014_v23 = vld [vmem:[%s8238_s0 + $0x542] ss:$8 sm:$0xf]   ;;  %v1984_v25 = vsel %vm4_vm0, %v4006_v21, %v4005_v20  ;;  %3770 = vst.msk [vmem:[%s8239_s1 + $0x220] sm:$0xff] %vm1006_vm6, %v1115_v26   ;;  %3764 = vst.msk [vmem:[%s8239_s1 + $0x1c0] sm:$0xff] %vm1006_vm6, %v1093_v30  }
 0x129   :  { %v4015_v24 = vld [vmem:[%s8238_s0 + $0x542] ss:$8 sm:$0xf0]   ;;  %3771 = vst.msk [vmem:[%s8239_s1 + $0x200] sm:$0xff] %vm1009_vm7, %v1115_v26   ;;  %1985 = vrot.lane.b32.xlu0 %v1984_v25, %s4415_s23  ;;  %3765 = vst.msk [vmem:[%s8239_s1 + $0x1a0] sm:$0xff] %vm1009_vm7, %v1093_v30   ;;  %v1379_v10 = vpop.permute.xlu1 %1378  }
 0x12a   :  { %v4011_v27 = vld [vmem:[%s8238_s0 + $0x442] ss:$8 sm:$0xf]   ;;  %v2017_v29 = vsel %vm4_vm0, %v4015_v24, %v4014_v23  ;;  %3782 = vst.msk [vmem:[%s8239_s1 + $0x2e0] sm:$0xff] %vm1006_vm6, %v1159_v34   ;;  %3776 = vst.msk [vmem:[%s8239_s1 + $0x280] sm:$0xff] %vm1006_vm6, %v1137_v38  }
 0x12b   :  { %v4012_v28 = vld [vmem:[%s8238_s0 + $0x442] ss:$8 sm:$0xf0]   ;;  %2018 = vrot.lane.b32.xlu1 %v2017_v29, %s4415_s23  ;;  %3783 = vst.msk [vmem:[%s8239_s1 + $0x2c0] sm:$0xff] %vm1009_vm7, %v1159_v34   ;;  %3777 = vst.msk [vmem:[%s8239_s1 + $0x260] sm:$0xff] %vm1009_vm7, %v1137_v38   ;;  %v1313_v6 = vpop.permute.xlu0 %1312  }
 0x12c   :  { %v4020_v31 = vld [vmem:[%s8238_s0 + $0x742] ss:$8 sm:$0xf]   ;;  %v2006_v33 = vsel %vm4_vm0, %v4012_v28, %v4011_v27  ;;  %v4026_v39 = vld [vmem:[%s8238_s0 + $0x145] ss:$8 sm:$0xf]  }
 0x12d   :  { %v4021_v32 = vld [vmem:[%s8238_s0 + $0x742] ss:$8 sm:$0xf0]   ;;  %2007 = vrot.lane.b32.xlu0 %v2006_v33, %s4415_s23  ;;  %v4027_v40 = vld [vmem:[%s8238_s0 + $0x145] ss:$8 sm:$0xf0]   ;;  %v1423_v18 = vpop.permute.xlu1 %1422  }
 0x12e   :  { %v4017_v35 = vld [vmem:[%s8238_s0 + $0x642] ss:$8 sm:$0xf]   ;;  %v2039_v37 = vsel %vm4_vm0, %v4021_v32, %v4020_v31  ;;  %v4023_v43 = vld [vmem:[%s8238_s0 + $0x45] ss:$8 sm:$0xf]   ;;  %v2061_v45 = vsel %vm4_vm0, %v4027_v40, %v4026_v39 }
 0x12f   :  { %v4018_v36 = vld [vmem:[%s8238_s0 + $0x642] ss:$8 sm:$0xf0]   ;;  %2040 = vrot.lane.b32.xlu1 %v2039_v37, %s4415_s23  ;;  %v4024_v44 = vld [vmem:[%s8238_s0 + $0x45] ss:$8 sm:$0xf0]   ;;  %v1357_v14 = vpop.permute.xlu0 %1356  }
 0x130   :  { %v2028_v41 = vsel %vm4_vm0, %v4018_v36, %v4017_v35  ;;  %3794 = vst.msk [vmem:[%s8239_s1 + $0x88] sm:$0xff] %vm1006_vm6, %v1203_v42   ;;  %3788 = vst.msk [vmem:[%s8239_s1 + $0x28] sm:$0xff] %vm1006_vm6, %v1181_v46   ;;  %v4032_v47 = vld [vmem:[%s8238_s0 + $0x345] ss:$8 sm:$0xf]   ;;  %v2050_v49 = vsel %vm4_vm0, %v4024_v44, %v4023_v43 }
 0x131   :  { %3795 = vst.msk [vmem:[%s8239_s1 + $0x68] sm:$0xff] %vm1009_vm7, %v1203_v42   ;;  %2029 = vrot.lane.b32.xlu0 %v2028_v41, %s4415_s23  ;;  %3789 = vst.msk [vmem:[%s8239_s1 + $0x8] sm:$0xff] %vm1009_vm7, %v1181_v46   ;;  %v4033_v48 = vld [vmem:[%s8238_s0 + $0x345] ss:$8 sm:$0xf0]   ;;  %v1467_v26 = vpop.permute.xlu1 %1466  }
 0x132   :  { %v4029_v51 = vld [vmem:[%s8238_s0 + $0x245] ss:$8 sm:$0xf]   ;;  %3806 = vst.msk [vmem:[%s8239_s1 + $0x148] sm:$0xff] %vm1006_vm6, %v1247_v50   ;;  %v2083_v53 = vsel %vm4_vm0, %v4033_v48, %v4032_v47  ;;  %3800 = vst.msk [vmem:[%s8239_s1 + $0xe8] sm:$0xff] %vm1006_vm6, %v1225_v54  }
 0x133   :  { %2062 = vrot.lane.b32.xlu1 %v2061_v45, %s4416_s8  ;;  %v4030_v52 = vld [vmem:[%s8238_s0 + $0x245] ss:$8 sm:$0xf0]   ;;  %3807 = vst.msk [vmem:[%s8239_s1 + $0x128] sm:$0xff] %vm1009_vm7, %v1247_v50   ;;  %3801 = vst.msk [vmem:[%s8239_s1 + $0xc8] sm:$0xff] %vm1009_vm7, %v1225_v54   ;;  %v1401_v22 = vpop.permute.xlu0 %1400  }
 0x134   :  { %v4038_v55 = vld [vmem:[%s8238_s0 + $0x545] ss:$8 sm:$0xf]   ;;  %v2072_v57 = vsel %vm4_vm0, %v4030_v52, %v4029_v51  ;;  %3818 = vst.msk [vmem:[%s8239_s1 + $0x208] sm:$0xff] %vm1006_vm6, %v1291_v58   ;;  %3812 = vst.msk [vmem:[%s8239_s1 + $0x1a8] sm:$0xff] %vm1006_vm6, %v1269_v62  }
 0x135   :  { %2051 = vrot.lane.b32.xlu0 %v2050_v49, %s4416_s8  ;;  %v4039_v56 = vld [vmem:[%s8238_s0 + $0x545] ss:$8 sm:$0xf0]   ;;  %3819 = vst.msk [vmem:[%s8239_s1 + $0x1e8] sm:$0xff] %vm1009_vm7, %v1291_v58   ;;  %3813 = vst.msk [vmem:[%s8239_s1 + $0x188] sm:$0xff] %vm1009_vm7, %v1269_v62   ;;  %v1511_v34 = vpop.permute.xlu1 %1510  }
 0x136   :  { %v4035_v59 = vld [vmem:[%s8238_s0 + $0x445] ss:$8 sm:$0xf]   ;;  %v2105_v61 = vsel %vm4_vm0, %v4039_v56, %v4038_v55  ;;  %3830 = vst.msk [vmem:[%s8239_s1 + $0x2c8] sm:$0xff] %vm1006_vm6, %v1335_v2   ;;  %3824 = vst.msk [vmem:[%s8239_s1 + $0x268] sm:$0xff] %vm1006_vm6, %v1313_v6  }
 0x137   :  { %2084 = vrot.lane.b32.xlu1 %v2083_v53, %s4416_s8  ;;  %v4036_v60 = vld [vmem:[%s8238_s0 + $0x445] ss:$8 sm:$0xf0]   ;;  %3831 = vst.msk [vmem:[%s8239_s1 + $0x2a8] sm:$0xff] %vm1009_vm7, %v1335_v2   ;;  %3825 = vst.msk [vmem:[%s8239_s1 + $0x248] sm:$0xff] %vm1009_vm7, %v1313_v6   ;;  %v1445_v30 = vpop.permute.xlu0 %1444  }
 0x138   :  { %v4044_v63 = vld [vmem:[%s8238_s0 + $0x745] ss:$8 sm:$0xf]   ;;  %v2094_v1 = vsel %vm4_vm0, %v4036_v60, %v4035_v59  ;;  %3842 = vst.msk [vmem:[%s8239_s1 + $0x70] sm:$0xff] %vm1006_vm6, %v1379_v10   ;;  %3836 = vst.msk [vmem:[%s8239_s1 + $0x10] sm:$0xff] %vm1006_vm6, %v1357_v14  }
 0x139   :  { %2073 = vrot.lane.b32.xlu0 %v2072_v57, %s4416_s8  ;;  %v4045_v0 = vld [vmem:[%s8238_s0 + $0x745] ss:$8 sm:$0xf0]   ;;  %3843 = vst.msk [vmem:[%s8239_s1 + $0xb0] sm:$0xff] %vm1009_vm7, %v1379_v10   ;;  %3837 = vst.msk [vmem:[%s8239_s1 + $0x50] sm:$0xff] %vm1009_vm7, %v1357_v14   ;;  %v1555_v42 = vpop.permute.xlu1 %1554  }
 0x13a   :  { %v4041_v3 = vld [vmem:[%s8238_s0 + $0x645] ss:$8 sm:$0xf]   ;;  %v2127_v5 = vsel %vm4_vm0, %v4045_v0, %v4044_v63  ;;  %3854 = vst.msk [vmem:[%s8239_s1 + $0x130] sm:$0xff] %vm1006_vm6, %v1423_v18   ;;  %3848 = vst.msk [vmem:[%s8239_s1 + $0xd0] sm:$0xff] %vm1006_vm6, %v1401_v22  }
 0x13b   :  { %2106 = vrot.lane.b32.xlu1 %v2105_v61, %s4416_s8  ;;  %v4042_v4 = vld [vmem:[%s8238_s0 + $0x645] ss:$8 sm:$0xf0]   ;;  %3855 = vst.msk [vmem:[%s8239_s1 + $0x170] sm:$0xff] %vm1009_vm7, %v1423_v18   ;;  %3849 = vst.msk [vmem:[%s8239_s1 + $0x110] sm:$0xff] %vm1009_vm7, %v1401_v22   ;;  %v1489_v38 = vpop.permute.xlu0 %1488  }
 0x13c   :  { %v4050_v7 = vld [vmem:[%s8238_s0 + $0x105] ss:$8 sm:$0xf]   ;;  %v2116_v9 = vsel %vm4_vm0, %v4042_v4, %v4041_v3  ;;  %3866 = vst.msk [vmem:[%s8239_s1 + $0x1f0] sm:$0xff] %vm1006_vm6, %v1467_v26   ;;  %3860 = vst.msk [vmem:[%s8239_s1 + $0x190] sm:$0xff] %vm1006_vm6, %v1445_v30  }
 0x13d   :  { %2095 = vrot.lane.b32.xlu0 %v2094_v1, %s4416_s8  ;;  %v4051_v8 = vld [vmem:[%s8238_s0 + $0x105] ss:$8 sm:$0xf0]   ;;  %3867 = vst.msk [vmem:[%s8239_s1 + $0x230] sm:$0xff] %vm1009_vm7, %v1467_v26   ;;  %3861 = vst.msk [vmem:[%s8239_s1 + $0x1d0] sm:$0xff] %vm1009_vm7, %v1445_v30  }
 0x13e   :  { %v4047_v11 = vld [vmem:[%s8238_s0 + $0x5] ss:$8 sm:$0xf]   ;;  %v2149_v13 = vsel %vm4_vm0, %v4051_v8, %v4050_v7  ;;  %3878 = vst.msk [vmem:[%s8239_s1 + $0x2b0] sm:$0xff] %vm1006_vm6, %v1511_v34   ;;  %3872 = vst.msk [vmem:[%s8239_s1 + $0x250] sm:$0xff] %vm1006_vm6, %v1489_v38   ;;  %v1599_v53 = vpop.permute.xlu1 %1598  }
 0x13f   :  { %2128 = vrot.lane.b32.xlu1 %v2127_v5, %s4416_s8  ;;  %v4048_v12 = vld [vmem:[%s8238_s0 + $0x5] ss:$8 sm:$0xf0]   ;;  %3879 = vst.msk [vmem:[%s8239_s1 + $0x2f0] sm:$0xff] %vm1009_vm7, %v1511_v34   ;;  %3873 = vst.msk [vmem:[%s8239_s1 + $0x290] sm:$0xff] %vm1009_vm7, %v1489_v38   ;;  %v1533_v46 = vpop.permute.xlu0 %1532  }
 0x140   :  { %v4056_v15 = vld [vmem:[%s8238_s0 + $0x305] ss:$8 sm:$0xf]   ;;  %v2138_v17 = vsel %vm4_vm0, %v4048_v12, %v4047_v11  ;;  %3890 = vst.msk [vmem:[%s8239_s1 + $0xb8] sm:$0xff] %vm1006_vm6, %v1555_v42   ;;  %3884 = vst.msk [vmem:[%s8239_s1 + $0x58] sm:$0xff] %vm1006_vm6, %v1533_v46  }
 0x141   :  { %2117 = vrot.lane.b32.xlu0 %v2116_v9, %s4416_s8  ;;  %v4057_v16 = vld [vmem:[%s8238_s0 + $0x305] ss:$8 sm:$0xf0]   ;;  %3891 = vst.msk [vmem:[%s8239_s1 + $0x98] sm:$0xff] %vm1009_vm7, %v1555_v42   ;;  %3885 = vst.msk [vmem:[%s8239_s1 + $0x38] sm:$0xff] %vm1009_vm7, %v1533_v46  }
 0x142   :  { %v4053_v19 = vld [vmem:[%s8238_s0 + $0x205] ss:$8 sm:$0xf]   ;;  %v2171_v21 = vsel %vm4_vm0, %v4057_v16, %v4056_v15  ;;  %3902 = vst.msk [vmem:[%s8239_s1 + $0x178] sm:$0xff] %vm1006_vm6, %v1599_v53  }
 0x143   :  { %2150 = vrot.lane.b32.xlu1 %v2149_v13, %s4416_s8  ;;  %v4054_v20 = vld [vmem:[%s8238_s0 + $0x205] ss:$8 sm:$0xf0]   ;;  %3903 = vst.msk [vmem:[%s8239_s1 + $0x158] sm:$0xff] %vm1009_vm7, %v1599_v53   ;;  %v1577_v57 = vpop.permute.xlu0 %1576  }
 0x144   :  { %v4062_v23 = vld [vmem:[%s8238_s0 + $0x505] ss:$8 sm:$0xf]   ;;  %v2160_v25 = vsel %vm4_vm0, %v4054_v20, %v4053_v19  ;;  %3896 = vst.msk [vmem:[%s8239_s1 + $0x118] sm:$0xff] %vm1006_vm6, %v1577_v57  }
 0x145   :  { %2139 = vrot.lane.b32.xlu0 %v2138_v17, %s4416_s8  ;;  %v4063_v24 = vld [vmem:[%s8238_s0 + $0x505] ss:$8 sm:$0xf0]   ;;  %3897 = vst.msk [vmem:[%s8239_s1 + $0xf8] sm:$0xff] %vm1009_vm7, %v1577_v57  }
 0x146   :  { %v4059_v27 = vld [vmem:[%s8238_s0 + $0x405] ss:$8 sm:$0xf]   ;;  %v2193_v29 = vsel %vm4_vm0, %v4063_v24, %v4062_v23  ;;  %v1643_v0 = vpop.permute.xlu1 %1642   ;;  %v4134_v53 = vld [vmem:[%s8238_s0 + $0x501] ss:$8 sm:$0xf0]  }
 0x147   :  { %2172 = vrot.lane.b32.xlu1 %v2171_v21, %s4416_s8  ;;  %v4060_v28 = vld [vmem:[%s8238_s0 + $0x405] ss:$8 sm:$0xf0]   ;;  %3914 = vst.msk [vmem:[%s8239_s1 + $0x238] sm:$0xff] %vm1006_vm6, %v1643_v0  }
 0x148   :  { %v4068_v31 = vld [vmem:[%s8238_s0 + $0x705] ss:$8 sm:$0xf]   ;;  %v2182_v33 = vsel %vm4_vm0, %v4060_v28, %v4059_v27  ;;  %3915 = vst.msk [vmem:[%s8239_s1 + $0x218] sm:$0xff] %vm1009_vm7, %v1643_v0  }
 0x149   :  { %2161 = vrot.lane.b32.xlu0 %v2160_v25, %s4416_s8  ;;  %v4069_v32 = vld [vmem:[%s8238_s0 + $0x705] ss:$8 sm:$0xf0]   ;;  %v4131_v57 = vld [vmem:[%s8238_s0 + $0x401] ss:$8 sm:$0xf0]  }
 0x14a   :  { %v4065_v35 = vld [vmem:[%s8238_s0 + $0x605] ss:$8 sm:$0xf]   ;;  %v2215_v37 = vsel %vm4_vm0, %v4069_v32, %v4068_v31  ;;  %v1621_v4 = vpop.permute.xlu0 %1620   ;;  %v4136_v0 = vld [vmem:[%s8238_s0 + $0x601] ss:$8 sm:$0xf]  }
 0x14b   :  { %2194 = vrot.lane.b32.xlu1 %v2193_v29, %s4416_s8  ;;  %v4066_v36 = vld [vmem:[%s8238_s0 + $0x605] ss:$8 sm:$0xf0]   ;;  %3908 = vst.msk [vmem:[%s8239_s1 + $0x1d8] sm:$0xff] %vm1006_vm6, %v1621_v4  }
 0x14c   :  { %v4074_v39 = vld [vmem:[%s8238_s0 + $0x1c5] ss:$8 sm:$0xf]   ;;  %v2204_v41 = vsel %vm4_vm0, %v4066_v36, %v4065_v35  ;;  %3909 = vst.msk [vmem:[%s8239_s1 + $0x1b8] sm:$0xff] %vm1009_vm7, %v1621_v4  }
 0x14d   :  { %2183 = vrot.lane.b32.xlu0 %v2182_v33, %s4416_s8  ;;  %v4075_v40 = vld [vmem:[%s8238_s0 + $0x1c5] ss:$8 sm:$0xf0]   ;;  %v4121_v36 = vld [vmem:[%s8238_s0 + $0x101] ss:$8 sm:$0xf]  }
 0x14e   :  { %v4071_v43 = vld [vmem:[%s8238_s0 + $0xc5] ss:$8 sm:$0xf]   ;;  %v2237_v45 = vsel %vm4_vm0, %v4075_v40, %v4074_v39  ;;  %v1687_v11 = vpop.permute.xlu1 %1686   ;;  %v4119_v40 = vld [vmem:[%s8238_s0 + $0x1] ss:$8 sm:$0xf]  }
 0x14f   :  { %2216 = vrot.lane.b32.xlu1 %v2215_v37, %s4416_s8  ;;  %v4072_v44 = vld [vmem:[%s8238_s0 + $0xc5] ss:$8 sm:$0xf0]   ;;  %3926 = vst.msk [vmem:[%s8239_s1 + $0x2f8] sm:$0xff] %vm1006_vm6, %v1687_v11  }
 0x150   :  { %v4080_v47 = vld [vmem:[%s8238_s0 + $0x3c5] ss:$8 sm:$0xf]   ;;  %v2226_v49 = vsel %vm4_vm0, %v4072_v44, %v4071_v43  ;;  %3927 = vst.msk [vmem:[%s8239_s1 + $0x2d8] sm:$0xff] %vm1009_vm7, %v1687_v11  }
 0x151   :  { %2205 = vrot.lane.b32.xlu0 %v2204_v41, %s4416_s8  ;;  %v4081_v48 = vld [vmem:[%s8238_s0 + $0x3c5] ss:$8 sm:$0xf0]   ;;  %v4122_v37 = vld [vmem:[%s8238_s0 + $0x101] ss:$8 sm:$0xf0]  }
 0x152   :  { %v4077_v50 = vld [vmem:[%s8238_s0 + $0x2c5] ss:$8 sm:$0xf]   ;;  %v2259_v52 = vsel %vm4_vm0, %v4081_v48, %v4080_v47  ;;  %v1665_v15 = vpop.permute.xlu0 %1664   ;;  %v1711_v19 = vpop.permute.xlu1 %1710   ;;  %v4120_v41 = vld [vmem:[%s8238_s0 + $0x1] ss:$8 sm:$0xf0]   ;;  %v2412_v42 = vsel %vm4_vm0, %v4122_v37, %v4121_v36 }
 0x153   :  { %2238 = vrot.lane.b32.xlu1 %v2237_v45, %s4416_s8  ;;  %v4078_v51 = vld [vmem:[%s8238_s0 + $0x2c5] ss:$8 sm:$0xf0]   ;;  %3920 = vst.msk [vmem:[%s8239_s1 + $0x298] sm:$0xff] %vm1006_vm6, %v1665_v15   ;;  %v2402_v46 = vsel %vm4_vm0, %v4120_v41, %v4119_v40 }
 0x154   :  { %v4086_v54 = vld [vmem:[%s8238_s0 + $0x5c5] ss:$8 sm:$0xf]   ;;  %v2248_v56 = vsel %vm4_vm0, %v4078_v51, %v4077_v50  ;;  %3921 = vst.msk [vmem:[%s8239_s1 + $0x278] sm:$0xff] %vm1009_vm7, %v1665_v15  }
 0x155   :  { %2227 = vrot.lane.b32.xlu0 %v2226_v49, %s4416_s8  ;;  %v4087_v55 = vld [vmem:[%s8238_s0 + $0x5c5] ss:$8 sm:$0xf0]   ;;  %3932 = vst.msk [vmem:[%s8239_s1 + $0x60] sm:$0xff] %vm1702_vm8, %v1711_v19  }
 0x156   :  { %v4083_v58 = vld [vmem:[%s8238_s0 + $0x4c5] ss:$8 sm:$0xf]   ;;  %v2281_v60 = vsel %vm4_vm0, %v4087_v55, %v4086_v54  ;;  %v1701_v23 = vpop.permute.xlu0 %1700   ;;  %v1733_v27 = vpop.permute.xlu1 %1732   ;;  %v4127_v44 = vld [vmem:[%s8238_s0 + $0x301] ss:$8 sm:$0xf]  }
 0x157   :  { %2260 = vrot.lane.b32.xlu1 %v2259_v52, %s4416_s8  ;;  %v4084_v59 = vld [vmem:[%s8238_s0 + $0x4c5] ss:$8 sm:$0xf0]   ;;  %1703 = vst.msk [vmem:[%s8239_s1] sm:$0xff] %vm1702_vm8, %v1701_v23   ;;  %3938 = vst.msk [vmem:[%s8239_s1 + $0x120] sm:$0xff] %vm1702_vm8, %v1733_v27  }
 0x158   :  { %v4092_v61 = vld [vmem:[%s8238_s0 + $0x7c5] ss:$8 sm:$0xf]   ;;  %v2270_v63 = vsel %vm4_vm0, %v4084_v59, %v4083_v58  ;;  %v4128_v45 = vld [vmem:[%s8238_s0 + $0x301] ss:$8 sm:$0xf0]  }
 0x159   :  { %2249 = vrot.lane.b32.xlu0 %v2248_v56, %s4416_s8  ;;  %v4093_v62 = vld [vmem:[%s8238_s0 + $0x7c5] ss:$8 sm:$0xf0]   ;;  %v4124_v48 = vld [vmem:[%s8238_s0 + $0x201] ss:$8 sm:$0xf]   ;;  %v2434_v50 = vsel %vm4_vm0, %v4128_v45, %v4127_v44 }
 0x15a   :  { %v4089_v1 = vld [vmem:[%s8238_s0 + $0x6c5] ss:$8 sm:$0xf]   ;;  %v2303_v3 = vsel %vm4_vm0, %v4093_v62, %v4092_v61  ;;  %v1722_v31 = vpop.permute.xlu0 %1721   ;;  %v1755_v35 = vpop.permute.xlu1 %1754   ;;  %v4125_v49 = vld [vmem:[%s8238_s0 + $0x201] ss:$8 sm:$0xf0]  }
 0x15b   :  { %2282 = vrot.lane.b32.xlu1 %v2281_v60, %s4416_s8  ;;  %v4090_v2 = vld [vmem:[%s8238_s0 + $0x6c5] ss:$8 sm:$0xf0]   ;;  %3935 = vst.msk [vmem:[%s8239_s1 + $0xc0] sm:$0xff] %vm1702_vm8, %v1722_v31   ;;  %3944 = vst.msk [vmem:[%s8239_s1 + $0x1e0] sm:$0xff] %vm1702_vm8, %v1755_v35   ;;  %v2423_v54 = vsel %vm4_vm0, %v4125_v49, %v4124_v48 }
 0x15c   :  { %v4098_v5 = vld [vmem:[%s8238_s0 + $0x185] ss:$8 sm:$0xf]   ;;  %v2292_v7 = vsel %vm4_vm0, %v4090_v2, %v4089_v1  ;;  %v4133_v52 = vld [vmem:[%s8238_s0 + $0x501] ss:$8 sm:$0xf]  }
 0x15d   :  { %2271 = vrot.lane.b32.xlu0 %v2270_v63, %s4416_s8  ;;  %v4099_v6 = vld [vmem:[%s8238_s0 + $0x185] ss:$8 sm:$0xf0]   ;;  %v4130_v56 = vld [vmem:[%s8238_s0 + $0x401] ss:$8 sm:$0xf]   ;;  %v2456_v58 = vsel %vm4_vm0, %v4134_v53, %v4133_v52 }
 0x15e   :  { %v4095_v8 = vld [vmem:[%s8238_s0 + $0x85] ss:$8 sm:$0xf]   ;;  %v2325_v10 = vsel %vm4_vm0, %v4099_v6, %v4098_v5  ;;  %v1744_v39 = vpop.permute.xlu0 %1743   ;;  %v1777_v43 = vpop.permute.xlu1 %1776   ;;  %v4139_v60 = vld [vmem:[%s8238_s0 + $0x701] ss:$8 sm:$0xf]   ;;  %v2445_v62 = vsel %vm4_vm0, %v4131_v57, %v4130_v56 }
 0x15f   :  { %2304 = vrot.lane.b32.xlu1 %v2303_v3, %s4416_s8  ;;  %v4096_v9 = vld [vmem:[%s8238_s0 + $0x85] ss:$8 sm:$0xf0]   ;;  %3941 = vst.msk [vmem:[%s8239_s1 + $0x180] sm:$0xff] %vm1702_vm8, %v1744_v39   ;;  %3950 = vst.msk [vmem:[%s8239_s1 + $0x2a0] sm:$0xff] %vm1702_vm8, %v1777_v43  }
 0x160   :  { %v4104_v12 = vld [vmem:[%s8238_s0 + $0x385] ss:$8 sm:$0xf]   ;;  %v2314_v14 = vsel %vm4_vm0, %v4096_v9, %v4095_v8  ;;  %v4140_v61 = vld [vmem:[%s8238_s0 + $0x701] ss:$8 sm:$0xf0]  }
 0x161   :  { %2293 = vrot.lane.b32.xlu0 %v2292_v7, %s4416_s8  ;;  %v4105_v13 = vld [vmem:[%s8238_s0 + $0x385] ss:$8 sm:$0xf0]   ;;  %v4137_v1 = vld [vmem:[%s8238_s0 + $0x601] ss:$8 sm:$0xf0]   ;;  %v2478_v2 = vsel %vm4_vm0, %v4140_v61, %v4139_v60 }
 0x162   :  { %v4101_v16 = vld [vmem:[%s8238_s0 + $0x285] ss:$8 sm:$0xf]   ;;  %v2347_v18 = vsel %vm4_vm0, %v4105_v13, %v4104_v12  ;;  %v1766_v47 = vpop.permute.xlu0 %1765   ;;  %v1799_v51 = vpop.permute.xlu1 %1798   ;;  %v4145_v4 = vld [vmem:[%s8238_s0 + $0x1c1] ss:$8 sm:$0xf]   ;;  %v2467_v6 = vsel %vm4_vm0, %v4137_v1, %v4136_v0 }
 0x163   :  { %2326 = vrot.lane.b32.xlu1 %v2325_v10, %s4416_s8  ;;  %v4102_v17 = vld [vmem:[%s8238_s0 + $0x285] ss:$8 sm:$0xf0]   ;;  %3947 = vst.msk [vmem:[%s8239_s1 + $0x240] sm:$0xff] %vm1702_vm8, %v1766_v47   ;;  %3956 = vst.msk [vmem:[%s8239_s1 + $0xa8] sm:$0xff] %vm1702_vm8, %v1799_v51  }
 0x164   :  { %v4110_v20 = vld [vmem:[%s8238_s0 + $0x585] ss:$8 sm:$0xf]   ;;  %v2336_v22 = vsel %vm4_vm0, %v4102_v17, %v4101_v16  ;;  %v4146_v5 = vld [vmem:[%s8238_s0 + $0x1c1] ss:$8 sm:$0xf0]  }
 0x165   :  { %2315 = vrot.lane.b32.xlu0 %v2314_v14, %s4416_s8  ;;  %v4111_v21 = vld [vmem:[%s8238_s0 + $0x585] ss:$8 sm:$0xf0]   ;;  %v4142_v8 = vld [vmem:[%s8238_s0 + $0xc1] ss:$8 sm:$0xf]   ;;  %v2500_v10 = vsel %vm4_vm0, %v4146_v5, %v4145_v4 }
 0x166   :  { %v4107_v24 = vld [vmem:[%s8238_s0 + $0x485] ss:$8 sm:$0xf]   ;;  %v2369_v26 = vsel %vm4_vm0, %v4111_v21, %v4110_v20  ;;  %v1788_v55 = vpop.permute.xlu0 %1787   ;;  %v1821_v59 = vpop.permute.xlu1 %1820   ;;  %v4143_v9 = vld [vmem:[%s8238_s0 + $0xc1] ss:$8 sm:$0xf0]  }
 0x167   :  { %2348 = vrot.lane.b32.xlu1 %v2347_v18, %s4416_s8  ;;  %v4108_v25 = vld [vmem:[%s8238_s0 + $0x485] ss:$8 sm:$0xf0]   ;;  %3953 = vst.msk [vmem:[%s8239_s1 + $0x48] sm:$0xff] %vm1702_vm8, %v1788_v55   ;;  %3962 = vst.msk [vmem:[%s8239_s1 + $0x168] sm:$0xff] %vm1702_vm8, %v1821_v59   ;;  %v2489_v14 = vsel %vm4_vm0, %v4143_v9, %v4142_v8 }
 0x168   :  { %v4116_v28 = vld [vmem:[%s8238_s0 + $0x785] ss:$8 sm:$0xf]   ;;  %v2358_v30 = vsel %vm4_vm0, %v4108_v25, %v4107_v24  ;;  %v4151_v12 = vld [vmem:[%s8238_s0 + $0x3c1] ss:$8 sm:$0xf]  }
 0x169   :  { %2337 = vrot.lane.b32.xlu0 %v2336_v22, %s4416_s8  ;;  %v4117_v29 = vld [vmem:[%s8238_s0 + $0x785] ss:$8 sm:$0xf0]   ;;  %v4152_v13 = vld [vmem:[%s8238_s0 + $0x3c1] ss:$8 sm:$0xf0]  }
 0x16a   :  { %v4113_v32 = vld [vmem:[%s8238_s0 + $0x685] ss:$8 sm:$0xf]   ;;  %v2391_v34 = vsel %vm4_vm0, %v4117_v29, %v4116_v28  ;;  %v1810_v63 = vpop.permute.xlu0 %1809   ;;  %v4148_v16 = vld [vmem:[%s8238_s0 + $0x2c1] ss:$8 sm:$0xf]   ;;  %v2522_v18 = vsel %vm4_vm0, %v4152_v13, %v4151_v12 }
 0x16b   :  { %2370 = vrot.lane.b32.xlu1 %v2369_v26, %s4416_s8  ;;  %v4114_v33 = vld [vmem:[%s8238_s0 + $0x685] ss:$8 sm:$0xf0]   ;;  %3959 = vst.msk [vmem:[%s8239_s1 + $0x108] sm:$0xff] %vm1702_vm8, %v1810_v63  }
 0x16c   :  { %v2380_v38 = vsel %vm4_vm0, %v4114_v33, %v4113_v32  ;;  %v4149_v17 = vld [vmem:[%s8238_s0 + $0x2c1] ss:$8 sm:$0xf0]  }
 0x16d   :  { %2359 = vrot.lane.b32.xlu0 %v2358_v30, %s4416_s8  ;;  %v4157_v20 = vld [vmem:[%s8238_s0 + $0x5c1] ss:$8 sm:$0xf]   ;;  %v2511_v22 = vsel %vm4_vm0, %v4149_v17, %v4148_v16 }
 0x16e   :  { %v1843_v3 = vpop.permute.xlu1 %1842   ;;  %v4158_v21 = vld [vmem:[%s8238_s0 + $0x5c1] ss:$8 sm:$0xf0]  }
 0x16f   :  { %2392 = vrot.lane.b32.xlu1 %v2391_v34, %s4416_s8  ;;  %3968 = vst.msk [vmem:[%s8239_s1 + $0x228] sm:$0xff] %vm1702_vm8, %v1843_v3   ;;  %v4154_v24 = vld [vmem:[%s8238_s0 + $0x4c1] ss:$8 sm:$0xf]   ;;  %v2544_v26 = vsel %vm4_vm0, %v4158_v21, %v4157_v20 }
 0x170   :  { %v1832_v7 = vpop.permute.xlu0 %1831   ;;  %v4155_v25 = vld [vmem:[%s8238_s0 + $0x4c1] ss:$8 sm:$0xf0]  }
 0x171   :  { %2381 = vrot.lane.b32.xlu0 %v2380_v38, %s4416_s8  ;;  %3965 = vst.msk [vmem:[%s8239_s1 + $0x1c8] sm:$0xff] %vm1702_vm8, %v1832_v7   ;;  %v4163_v28 = vld [vmem:[%s8238_s0 + $0x7c1] ss:$8 sm:$0xf]   ;;  %v2533_v30 = vsel %vm4_vm0, %v4155_v25, %v4154_v24 }
 0x172   :  { %v4164_v29 = vld [vmem:[%s8238_s0 + $0x7c1] ss:$8 sm:$0xf0]  }
 0x173   :  { %2413 = vrot.lane.b32.xlu1 %v2412_v42, %s4417_s14  ;;  %v4160_v32 = vld [vmem:[%s8238_s0 + $0x6c1] ss:$8 sm:$0xf]   ;;  %v2566_v34 = vsel %vm4_vm0, %v4164_v29, %v4163_v28 }
 0x174   :  { %v4161_v33 = vld [vmem:[%s8238_s0 + $0x6c1] ss:$8 sm:$0xf0]  }
 0x175   :  { %2403 = vrot.lane.b32.xlu0 %v2402_v46, %s4417_s14  ;;  %v1865_v11 = vpop.permute.xlu1 %1864   ;;  %v4169_v36 = vld [vmem:[%s8238_s0 + $0x181] ss:$8 sm:$0xf]   ;;  %v2555_v38 = vsel %vm4_vm0, %v4161_v33, %v4160_v32 }
 0x176   :  { %3974 = vst.msk [vmem:[%s8239_s1 + $0x2e8] sm:$0xff] %vm1702_vm8, %v1865_v11   ;;  %v4170_v37 = vld [vmem:[%s8238_s0 + $0x181] ss:$8 sm:$0xf0]  }
 0x177   :  { %2435 = vrot.lane.b32.xlu1 %v2434_v50, %s4417_s14  ;;  %v1854_v15 = vpop.permute.xlu0 %1853   ;;  %v4166_v40 = vld [vmem:[%s8238_s0 + $0x81] ss:$8 sm:$0xf]   ;;  %v2588_v42 = vsel %vm4_vm0, %v4170_v37, %v4169_v36  ;;  %v4217_v36 = vld [vmem:[%s8238_s0 + $0x144] ss:$8 sm:$0xf]  }
 0x178   :  { %3971 = vst.msk [vmem:[%s8239_s1 + $0x288] sm:$0xff] %vm1702_vm8, %v1854_v15   ;;  %v4167_v41 = vld [vmem:[%s8238_s0 + $0x81] ss:$8 sm:$0xf0]  }
 0x179   :  { %2424 = vrot.lane.b32.xlu0 %v2423_v54, %s4417_s14  ;;  %v4175_v44 = vld [vmem:[%s8238_s0 + $0x381] ss:$8 sm:$0xf]   ;;  %v2577_v46 = vsel %vm4_vm0, %v4167_v41, %v4166_v40  ;;  %v4218_v37 = vld [vmem:[%s8238_s0 + $0x144] ss:$8 sm:$0xf0]  }
 0x17a   :  { %v4176_v45 = vld [vmem:[%s8238_s0 + $0x381] ss:$8 sm:$0xf0]   ;;  %v4214_v40 = vld [vmem:[%s8238_s0 + $0x44] ss:$8 sm:$0xf]  }
 0x17b   :  { %2457 = vrot.lane.b32.xlu1 %v2456_v58, %s4417_s14  ;;  %v1887_v19 = vpop.permute.xlu1 %1886   ;;  %v4172_v48 = vld [vmem:[%s8238_s0 + $0x281] ss:$8 sm:$0xf]   ;;  %v2610_v50 = vsel %vm4_vm0, %v4176_v45, %v4175_v44  ;;  %v4215_v41 = vld [vmem:[%s8238_s0 + $0x44] ss:$8 sm:$0xf0]  }
 0x17c   :  { %3980 = vst.msk [vmem:[%s8239_s1 + $0x90] sm:$0xff] %vm1702_vm8, %v1887_v19   ;;  %v4173_v49 = vld [vmem:[%s8238_s0 + $0x281] ss:$8 sm:$0xf0]  }
 0x17d   :  { %2446 = vrot.lane.b32.xlu0 %v2445_v62, %s4417_s14  ;;  %v1876_v23 = vpop.permute.xlu0 %1875   ;;  %v4181_v52 = vld [vmem:[%s8238_s0 + $0x581] ss:$8 sm:$0xf]   ;;  %v2599_v54 = vsel %vm4_vm0, %v4173_v49, %v4172_v48  ;;  %v4223_v44 = vld [vmem:[%s8238_s0 + $0x344] ss:$8 sm:$0xf]  }
 0x17e   :  { %3977 = vst.msk [vmem:[%s8239_s1 + $0x30] sm:$0xff] %vm1702_vm8, %v1876_v23   ;;  %v4182_v53 = vld [vmem:[%s8238_s0 + $0x581] ss:$8 sm:$0xf0]  }
 0x17f   :  { %2479 = vrot.lane.b32.xlu1 %v2478_v2, %s4417_s14  ;;  %v4178_v56 = vld [vmem:[%s8238_s0 + $0x481] ss:$8 sm:$0xf]   ;;  %v2632_v58 = vsel %vm4_vm0, %v4182_v53, %v4181_v52  ;;  %v4224_v45 = vld [vmem:[%s8238_s0 + $0x344] ss:$8 sm:$0xf0]  }
 0x180   :  { %v4179_v57 = vld [vmem:[%s8238_s0 + $0x481] ss:$8 sm:$0xf0]   ;;  %v4220_v48 = vld [vmem:[%s8238_s0 + $0x244] ss:$8 sm:$0xf]  }
 0x181   :  { %2468 = vrot.lane.b32.xlu0 %v2467_v6, %s4417_s14  ;;  %v4187_v60 = vld [vmem:[%s8238_s0 + $0x781] ss:$8 sm:$0xf]   ;;  %v2621_v62 = vsel %vm4_vm0, %v4179_v57, %v4178_v56  ;;  %v4221_v49 = vld [vmem:[%s8238_s0 + $0x244] ss:$8 sm:$0xf0]  }
 0x182   :  { %v1909_v27 = vpop.permute.xlu1 %1908   ;;  %v4188_v61 = vld [vmem:[%s8238_s0 + $0x781] ss:$8 sm:$0xf0]   ;;  %v4229_v52 = vld [vmem:[%s8238_s0 + $0x544] ss:$8 sm:$0xf]  }
 0x183   :  { %2501 = vrot.lane.b32.xlu1 %v2500_v10, %s4417_s14  ;;  %3986 = vst.msk [vmem:[%s8239_s1 + $0x150] sm:$0xff] %vm1702_vm8, %v1909_v27   ;;  %v4184_v0 = vld [vmem:[%s8238_s0 + $0x681] ss:$8 sm:$0xf]   ;;  %v2654_v2 = vsel %vm4_vm0, %v4188_v61, %v4187_v60 }
 0x184   :  { %v1898_v31 = vpop.permute.xlu0 %1897   ;;  %v4185_v1 = vld [vmem:[%s8238_s0 + $0x681] ss:$8 sm:$0xf0]   ;;  %v4230_v53 = vld [vmem:[%s8238_s0 + $0x544] ss:$8 sm:$0xf0]  }
 0x185   :  { %2490 = vrot.lane.b32.xlu0 %v2489_v14, %s4417_s14  ;;  %3983 = vst.msk [vmem:[%s8239_s1 + $0xf0] sm:$0xff] %vm1702_vm8, %v1898_v31   ;;  %v4193_v4 = vld [vmem:[%s8238_s0 + $0x141] ss:$8 sm:$0xf]   ;;  %v2643_v6 = vsel %vm4_vm0, %v4185_v1, %v4184_v0 }
 0x186   :  { %v4194_v5 = vld [vmem:[%s8238_s0 + $0x141] ss:$8 sm:$0xf0]   ;;  %v4226_v56 = vld [vmem:[%s8238_s0 + $0x444] ss:$8 sm:$0xf]  }
 0x187   :  { %2523 = vrot.lane.b32.xlu1 %v2522_v18, %s4417_s14  ;;  %v4190_v8 = vld [vmem:[%s8238_s0 + $0x41] ss:$8 sm:$0xf]   ;;  %v2676_v10 = vsel %vm4_vm0, %v4194_v5, %v4193_v4  ;;  %v4227_v57 = vld [vmem:[%s8238_s0 + $0x444] ss:$8 sm:$0xf0]  }
 0x188   :  { %v1931_v35 = vpop.permute.xlu1 %1930   ;;  %v4191_v9 = vld [vmem:[%s8238_s0 + $0x41] ss:$8 sm:$0xf0]   ;;  %v4235_v60 = vld [vmem:[%s8238_s0 + $0x744] ss:$8 sm:$0xf]  }
 0x189   :  { %2512 = vrot.lane.b32.xlu0 %v2511_v22, %s4417_s14  ;;  %3992 = vst.msk [vmem:[%s8239_s1 + $0x210] sm:$0xff] %vm1702_vm8, %v1931_v35   ;;  %v4199_v12 = vld [vmem:[%s8238_s0 + $0x341] ss:$8 sm:$0xf]   ;;  %v2665_v14 = vsel %vm4_vm0, %v4191_v9, %v4190_v8 }
 0x18a   :  { %v1920_v39 = vpop.permute.xlu0 %1919   ;;  %v4200_v13 = vld [vmem:[%s8238_s0 + $0x341] ss:$8 sm:$0xf0]   ;;  %v4236_v61 = vld [vmem:[%s8238_s0 + $0x744] ss:$8 sm:$0xf0]  }
 0x18b   :  { %2545 = vrot.lane.b32.xlu1 %v2544_v26, %s4417_s14  ;;  %3989 = vst.msk [vmem:[%s8239_s1 + $0x1b0] sm:$0xff] %vm1702_vm8, %v1920_v39   ;;  %v4196_v16 = vld [vmem:[%s8238_s0 + $0x241] ss:$8 sm:$0xf]   ;;  %v2698_v18 = vsel %vm4_vm0, %v4200_v13, %v4199_v12 }
 0x18c   :  { %v4197_v17 = vld [vmem:[%s8238_s0 + $0x241] ss:$8 sm:$0xf0]   ;;  %v4232_v0 = vld [vmem:[%s8238_s0 + $0x644] ss:$8 sm:$0xf]  }
 0x18d   :  { %2534 = vrot.lane.b32.xlu0 %v2533_v30, %s4417_s14  ;;  %v4205_v20 = vld [vmem:[%s8238_s0 + $0x541] ss:$8 sm:$0xf]   ;;  %v2687_v22 = vsel %vm4_vm0, %v4197_v17, %v4196_v16  ;;  %v4233_v1 = vld [vmem:[%s8238_s0 + $0x644] ss:$8 sm:$0xf0]  }
 0x18e   :  { %v4206_v21 = vld [vmem:[%s8238_s0 + $0x541] ss:$8 sm:$0xf0]   ;;  %v4241_v4 = vld [vmem:[%s8238_s0 + $0x104] ss:$8 sm:$0xf]  }
 0x18f   :  { %2567 = vrot.lane.b32.xlu1 %v2566_v34, %s4417_s14  ;;  %v1953_v43 = vpop.permute.xlu1 %1952   ;;  %v4202_v24 = vld [vmem:[%s8238_s0 + $0x441] ss:$8 sm:$0xf]   ;;  %v2720_v26 = vsel %vm4_vm0, %v4206_v21, %v4205_v20  ;;  %v4242_v5 = vld [vmem:[%s8238_s0 + $0x104] ss:$8 sm:$0xf0]  }
 0x190   :  { %3998 = vst.msk [vmem:[%s8239_s1 + $0x2d0] sm:$0xff] %vm1702_vm8, %v1953_v43   ;;  %v4203_v25 = vld [vmem:[%s8238_s0 + $0x441] ss:$8 sm:$0xf0]  }
 0x191   :  { %2556 = vrot.lane.b32.xlu0 %v2555_v38, %s4417_s14  ;;  %v1942_v47 = vpop.permute.xlu0 %1941   ;;  %v4211_v28 = vld [vmem:[%s8238_s0 + $0x741] ss:$8 sm:$0xf]   ;;  %v2709_v30 = vsel %vm4_vm0, %v4203_v25, %v4202_v24  ;;  %v4238_v8 = vld [vmem:[%s8238_s0 + $0x4] ss:$8 sm:$0xf]  }
 0x192   :  { %3995 = vst.msk [vmem:[%s8239_s1 + $0x270] sm:$0xff] %vm1702_vm8, %v1942_v47   ;;  %v4212_v29 = vld [vmem:[%s8238_s0 + $0x741] ss:$8 sm:$0xf0]  }
 0x193   :  { %2589 = vrot.lane.b32.xlu1 %v2588_v42, %s4417_s14  ;;  %v4208_v32 = vld [vmem:[%s8238_s0 + $0x641] ss:$8 sm:$0xf]   ;;  %v2742_v34 = vsel %vm4_vm0, %v4212_v29, %v4211_v28  ;;  %v2764_v42 = vsel %vm4_vm0, %v4218_v37, %v4217_v36  ;;  %v4239_v9 = vld [vmem:[%s8238_s0 + $0x4] ss:$8 sm:$0xf0]  }
 0x194   :  { %v4209_v33 = vld [vmem:[%s8238_s0 + $0x641] ss:$8 sm:$0xf0]   ;;  %v4247_v12 = vld [vmem:[%s8238_s0 + $0x304] ss:$8 sm:$0xf]  }
 0x195   :  { %2578 = vrot.lane.b32.xlu0 %v2577_v46, %s4417_s14  ;;  %v1975_v51 = vpop.permute.xlu1 %1974   ;;  %v2731_v38 = vsel %vm4_vm0, %v4209_v33, %v4208_v32  ;;  %v2753_v46 = vsel %vm4_vm0, %v4215_v41, %v4214_v40  ;;  %v4248_v13 = vld [vmem:[%s8238_s0 + $0x304] ss:$8 sm:$0xf0]  }
 0x196   :  { %4004 = vst.msk [vmem:[%s8239_s1 + $0x78] sm:$0xff] %vm1702_vm8, %v1975_v51   ;;  %v4244_v16 = vld [vmem:[%s8238_s0 + $0x204] ss:$8 sm:$0xf]  }
 0x197   :  { %v1964_v55 = vpop.permute.xlu0 %1963   ;;  %2611 = vrot.lane.b32.xlu1 %v2610_v50, %s4417_s14  ;;  %v2786_v50 = vsel %vm4_vm0, %v4224_v45, %v4223_v44  ;;  %v4245_v17 = vld [vmem:[%s8238_s0 + $0x204] ss:$8 sm:$0xf0]  }
 0x198   :  { %4001 = vst.msk [vmem:[%s8239_s1 + $0x18] sm:$0xff] %vm1702_vm8, %v1964_v55   ;;  %v4253_v20 = vld [vmem:[%s8238_s0 + $0x504] ss:$8 sm:$0xf]  }
 0x199   :  { %2600 = vrot.lane.b32.xlu0 %v2599_v54, %s4417_s14  ;;  %v1997_v59 = vpop.permute.xlu1 %1996   ;;  %v2775_v54 = vsel %vm4_vm0, %v4221_v49, %v4220_v48  ;;  %v4254_v21 = vld [vmem:[%s8238_s0 + $0x504] ss:$8 sm:$0xf0]  }
 0x19a   :  { %4010 = vst.msk [vmem:[%s8239_s1 + $0x138] sm:$0xff] %vm1702_vm8, %v1997_v59   ;;  %v4250_v24 = vld [vmem:[%s8238_s0 + $0x404] ss:$8 sm:$0xf]  }
 0x19b   :  { %v1986_v63 = vpop.permute.xlu0 %1985   ;;  %2633 = vrot.lane.b32.xlu1 %v2632_v58, %s4417_s14  ;;  %v2808_v58 = vsel %vm4_vm0, %v4230_v53, %v4229_v52  ;;  %v4251_v25 = vld [vmem:[%s8238_s0 + $0x404] ss:$8 sm:$0xf0]  }
 0x19c   :  { %4007 = vst.msk [vmem:[%s8239_s1 + $0xd8] sm:$0xff] %vm1702_vm8, %v1986_v63   ;;  %v4259_v28 = vld [vmem:[%s8238_s0 + $0x704] ss:$8 sm:$0xf]  }
 0x19d   :  { %2622 = vrot.lane.b32.xlu0 %v2621_v62, %s4417_s14  ;;  %v2019_v3 = vpop.permute.xlu1 %2018   ;;  %v2797_v62 = vsel %vm4_vm0, %v4227_v57, %v4226_v56  ;;  %v4260_v29 = vld [vmem:[%s8238_s0 + $0x704] ss:$8 sm:$0xf0]  }
 0x19e   :  { %4016 = vst.msk [vmem:[%s8239_s1 + $0x1f8] sm:$0xff] %vm1702_vm8, %v2019_v3   ;;  %v4256_v32 = vld [vmem:[%s8238_s0 + $0x604] ss:$8 sm:$0xf]  }
 0x19f   :  { %v2008_v7 = vpop.permute.xlu0 %2007   ;;  %2655 = vrot.lane.b32.xlu1 %v2654_v2, %s4417_s14  ;;  %v2830_v2 = vsel %vm4_vm0, %v4236_v61, %v4235_v60  ;;  %v4257_v33 = vld [vmem:[%s8238_s0 + $0x604] ss:$8 sm:$0xf0]  }
 0x1a0   :  { %4013 = vst.msk [vmem:[%s8239_s1 + $0x198] sm:$0xff] %vm1702_vm8, %v2008_v7   ;;  %v4265_v36 = vld [vmem:[%s8238_s0 + $0x1c4] ss:$8 sm:$0xf]  }
 0x1a1   :  { %2644 = vrot.lane.b32.xlu0 %v2643_v6, %s4417_s14  ;;  %v2041_v11 = vpop.permute.xlu1 %2040   ;;  %v2819_v6 = vsel %vm4_vm0, %v4233_v1, %v4232_v0  ;;  %v4266_v37 = vld [vmem:[%s8238_s0 + $0x1c4] ss:$8 sm:$0xf0]  }
 0x1a2   :  { %4022 = vst.msk [vmem:[%s8239_s1 + $0x2b8] sm:$0xff] %vm1702_vm8, %v2041_v11   ;;  %v4262_v40 = vld [vmem:[%s8238_s0 + $0xc4] ss:$8 sm:$0xf]  }
 0x1a3   :  { %v2030_v15 = vpop.permute.xlu0 %2029   ;;  %2677 = vrot.lane.b32.xlu1 %v2676_v10, %s4417_s14  ;;  %v2852_v10 = vsel %vm4_vm0, %v4242_v5, %v4241_v4  ;;  %v4263_v41 = vld [vmem:[%s8238_s0 + $0xc4] ss:$8 sm:$0xf0]  }
 0x1a4   :  { %4019 = vst.msk [vmem:[%s8239_s1 + $0x258] sm:$0xff] %vm1702_vm8, %v2030_v15   ;;  %v4271_v44 = vld [vmem:[%s8238_s0 + $0x3c4] ss:$8 sm:$0xf]  }
 0x1a5   :  { %2666 = vrot.lane.b32.xlu0 %v2665_v14, %s4417_s14  ;;  %v2063_v19 = vpop.permute.xlu1 %2062   ;;  %v2841_v14 = vsel %vm4_vm0, %v4239_v9, %v4238_v8  ;;  %v4272_v45 = vld [vmem:[%s8238_s0 + $0x3c4] ss:$8 sm:$0xf0]  }
 0x1a6   :  { %4028 = vst.msk [vmem:[%s8239_s1 + $0x80] sm:$0xff] %vm2053_vm9, %v2063_v19   ;;  %v4268_v48 = vld [vmem:[%s8238_s0 + $0x2c4] ss:$8 sm:$0xf]  }
 0x1a7   :  { %v2052_v23 = vpop.permute.xlu0 %2051   ;;  %2699 = vrot.lane.b32.xlu1 %v2698_v18, %s4417_s14  ;;  %v2874_v18 = vsel %vm4_vm0, %v4248_v13, %v4247_v12  ;;  %v4269_v49 = vld [vmem:[%s8238_s0 + $0x2c4] ss:$8 sm:$0xf0]  }
 0x1a8   :  { %4025 = vst.msk [vmem:[%s8239_s1 + $0x20] sm:$0xff] %vm2053_vm9, %v2052_v23   ;;  %v4277_v52 = vld [vmem:[%s8238_s0 + $0x5c4] ss:$8 sm:$0xf]  }
 0x1a9   :  { %2688 = vrot.lane.b32.xlu0 %v2687_v22, %s4417_s14  ;;  %v2085_v27 = vpop.permute.xlu1 %2084   ;;  %v2863_v22 = vsel %vm4_vm0, %v4245_v17, %v4244_v16  ;;  %v4278_v53 = vld [vmem:[%s8238_s0 + $0x5c4] ss:$8 sm:$0xf0]  }
 0x1aa   :  { %4034 = vst.msk [vmem:[%s8239_s1 + $0x140] sm:$0xff] %vm2053_vm9, %v2085_v27   ;;  %v4274_v56 = vld [vmem:[%s8238_s0 + $0x4c4] ss:$8 sm:$0xf]  }
 0x1ab   :  { %v2074_v31 = vpop.permute.xlu0 %2073   ;;  %2721 = vrot.lane.b32.xlu1 %v2720_v26, %s4417_s14  ;;  %v2896_v26 = vsel %vm4_vm0, %v4254_v21, %v4253_v20  ;;  %v4275_v57 = vld [vmem:[%s8238_s0 + $0x4c4] ss:$8 sm:$0xf0]  }
 0x1ac   :  { %4031 = vst.msk [vmem:[%s8239_s1 + $0xe0] sm:$0xff] %vm2053_vm9, %v2074_v31   ;;  %v4283_v60 = vld [vmem:[%s8238_s0 + $0x7c4] ss:$8 sm:$0xf]  }
 0x1ad   :  { %2710 = vrot.lane.b32.xlu0 %v2709_v30, %s4417_s14  ;;  %v2107_v35 = vpop.permute.xlu1 %2106   ;;  %v2885_v30 = vsel %vm4_vm0, %v4251_v25, %v4250_v24  ;;  %v4284_v61 = vld [vmem:[%s8238_s0 + $0x7c4] ss:$8 sm:$0xf0]  }
 0x1ae   :  { %4040 = vst.msk [vmem:[%s8239_s1 + $0x200] sm:$0xff] %vm2053_vm9, %v2107_v35   ;;  %v4280_v0 = vld [vmem:[%s8238_s0 + $0x6c4] ss:$8 sm:$0xf]  }
 0x1af   :  { %v2096_v39 = vpop.permute.xlu0 %2095   ;;  %2743 = vrot.lane.b32.xlu1 %v2742_v34, %s4417_s14  ;;  %v2918_v34 = vsel %vm4_vm0, %v4260_v29, %v4259_v28  ;;  %v4281_v1 = vld [vmem:[%s8238_s0 + $0x6c4] ss:$8 sm:$0xf0]  }
 0x1b0   :  { %4037 = vst.msk [vmem:[%s8239_s1 + $0x1a0] sm:$0xff] %vm2053_vm9, %v2096_v39   ;;  %v4289_v4 = vld [vmem:[%s8238_s0 + $0x184] ss:$8 sm:$0xf]  }
 0x1b1   :  { %2732 = vrot.lane.b32.xlu0 %v2731_v38, %s4417_s14  ;;  %v2129_v43 = vpop.permute.xlu1 %2128   ;;  %v2907_v38 = vsel %vm4_vm0, %v4257_v33, %v4256_v32  ;;  %v4290_v5 = vld [vmem:[%s8238_s0 + $0x184] ss:$8 sm:$0xf0]  }
 0x1b2   :  { %4046 = vst.msk [vmem:[%s8239_s1 + $0x2c0] sm:$0xff] %vm2053_vm9, %v2129_v43   ;;  %v4286_v8 = vld [vmem:[%s8238_s0 + $0x84] ss:$8 sm:$0xf]  }
 0x1b3   :  { %v2118_v47 = vpop.permute.xlu0 %2117   ;;  %2765 = vrot.lane.b32.xlu1 %v2764_v42, %s4418_s9  ;;  %v2940_v42 = vsel %vm4_vm0, %v4266_v37, %v4265_v36  ;;  %v4287_v9 = vld [vmem:[%s8238_s0 + $0x84] ss:$8 sm:$0xf0]   ;;  %v4313_v36 = vld [vmem:[%s8238_s0 + $0x187] ss:$8 sm:$0xf]  }
 0x1b4   :  { %4043 = vst.msk [vmem:[%s8239_s1 + $0x260] sm:$0xff] %vm2053_vm9, %v2118_v47   ;;  %v4295_v12 = vld [vmem:[%s8238_s0 + $0x384] ss:$8 sm:$0xf]  }
 0x1b5   :  { %2754 = vrot.lane.b32.xlu0 %v2753_v46, %s4418_s9  ;;  %v2151_v51 = vpop.permute.xlu1 %2150   ;;  %v2929_v46 = vsel %vm4_vm0, %v4263_v41, %v4262_v40  ;;  %v4296_v13 = vld [vmem:[%s8238_s0 + $0x384] ss:$8 sm:$0xf0]   ;;  %v4314_v37 = vld [vmem:[%s8238_s0 + $0x187] ss:$8 sm:$0xf0]  }
 0x1b6   :  { %4052 = vst.msk [vmem:[%s8239_s1 + $0x68] sm:$0xff] %vm2053_vm9, %v2151_v51   ;;  %v4292_v16 = vld [vmem:[%s8238_s0 + $0x284] ss:$8 sm:$0xf]  }
 0x1b7   :  { %v2140_v55 = vpop.permute.xlu0 %2139   ;;  %2787 = vrot.lane.b32.xlu1 %v2786_v50, %s4418_s9  ;;  %v2962_v50 = vsel %vm4_vm0, %v4272_v45, %v4271_v44  ;;  %v4293_v17 = vld [vmem:[%s8238_s0 + $0x284] ss:$8 sm:$0xf0]   ;;  %v4310_v40 = vld [vmem:[%s8238_s0 + $0x87] ss:$8 sm:$0xf]  }
 0x1b8   :  { %4049 = vst.msk [vmem:[%s8239_s1 + $0x8] sm:$0xff] %vm2053_vm9, %v2140_v55   ;;  %v4301_v20 = vld [vmem:[%s8238_s0 + $0x584] ss:$8 sm:$0xf]  }
 0x1b9   :  { %2776 = vrot.lane.b32.xlu0 %v2775_v54, %s4418_s9  ;;  %v2173_v59 = vpop.permute.xlu1 %2172   ;;  %v2951_v54 = vsel %vm4_vm0, %v4269_v49, %v4268_v48  ;;  %v4302_v21 = vld [vmem:[%s8238_s0 + $0x584] ss:$8 sm:$0xf0]   ;;  %v4311_v41 = vld [vmem:[%s8238_s0 + $0x87] ss:$8 sm:$0xf0]  }
 0x1ba   :  { %4058 = vst.msk [vmem:[%s8239_s1 + $0x128] sm:$0xff] %vm2053_vm9, %v2173_v59   ;;  %v4298_v24 = vld [vmem:[%s8238_s0 + $0x484] ss:$8 sm:$0xf]  }
 0x1bb   :  { %v2162_v63 = vpop.permute.xlu0 %2161   ;;  %2809 = vrot.lane.b32.xlu1 %v2808_v58, %s4418_s9  ;;  %v2984_v58 = vsel %vm4_vm0, %v4278_v53, %v4277_v52  ;;  %v4299_v25 = vld [vmem:[%s8238_s0 + $0x484] ss:$8 sm:$0xf0]   ;;  %v4319_v44 = vld [vmem:[%s8238_s0 + $0x387] ss:$8 sm:$0xf]  }
 0x1bc   :  { %4055 = vst.msk [vmem:[%s8239_s1 + $0xc8] sm:$0xff] %vm2053_vm9, %v2162_v63   ;;  %v4307_v28 = vld [vmem:[%s8238_s0 + $0x784] ss:$8 sm:$0xf]  }
 0x1bd   :  { %2798 = vrot.lane.b32.xlu0 %v2797_v62, %s4418_s9  ;;  %v2195_v3 = vpop.permute.xlu1 %2194   ;;  %v2973_v62 = vsel %vm4_vm0, %v4275_v57, %v4274_v56  ;;  %v4308_v29 = vld [vmem:[%s8238_s0 + $0x784] ss:$8 sm:$0xf0]   ;;  %v4320_v45 = vld [vmem:[%s8238_s0 + $0x387] ss:$8 sm:$0xf0]  }
 0x1be   :  { %4064 = vst.msk [vmem:[%s8239_s1 + $0x1e8] sm:$0xff] %vm2053_vm9, %v2195_v3   ;;  %v4304_v32 = vld [vmem:[%s8238_s0 + $0x684] ss:$8 sm:$0xf]  }
 0x1bf   :  { %v2184_v7 = vpop.permute.xlu0 %2183   ;;  %2831 = vrot.lane.b32.xlu1 %v2830_v2, %s4418_s9  ;;  %v3006_v2 = vsel %vm4_vm0, %v4284_v61, %v4283_v60  ;;  %v4305_v33 = vld [vmem:[%s8238_s0 + $0x684] ss:$8 sm:$0xf0]   ;;  %v4316_v48 = vld [vmem:[%s8238_s0 + $0x287] ss:$8 sm:$0xf]  }
 0x1c0   :  { %4061 = vst.msk [vmem:[%s8239_s1 + $0x188] sm:$0xff] %vm2053_vm9, %v2184_v7   ;;  %v4317_v49 = vld [vmem:[%s8238_s0 + $0x287] ss:$8 sm:$0xf0]  }
 0x1c1   :  { %2820 = vrot.lane.b32.xlu0 %v2819_v6, %s4418_s9  ;;  %v2217_v11 = vpop.permute.xlu1 %2216   ;;  %v2995_v6 = vsel %vm4_vm0, %v4281_v1, %v4280_v0  ;;  %v4325_v52 = vld [vmem:[%s8238_s0 + $0x587] ss:$8 sm:$0xf]  }
 0x1c2   :  { %4070 = vst.msk [vmem:[%s8239_s1 + $0x2a8] sm:$0xff] %vm2053_vm9, %v2217_v11   ;;  %v4326_v53 = vld [vmem:[%s8238_s0 + $0x587] ss:$8 sm:$0xf0]  }
 0x1c3   :  { %v2206_v15 = vpop.permute.xlu0 %2205   ;;  %2853 = vrot.lane.b32.xlu1 %v2852_v10, %s4418_s9  ;;  %v3028_v10 = vsel %vm4_vm0, %v4290_v5, %v4289_v4  ;;  %v4322_v56 = vld [vmem:[%s8238_s0 + $0x487] ss:$8 sm:$0xf]  }
 0x1c4   :  { %4067 = vst.msk [vmem:[%s8239_s1 + $0x248] sm:$0xff] %vm2053_vm9, %v2206_v15   ;;  %v4323_v57 = vld [vmem:[%s8238_s0 + $0x487] ss:$8 sm:$0xf0]  }
 0x1c5   :  { %2842 = vrot.lane.b32.xlu0 %v2841_v14, %s4418_s9  ;;  %v2239_v19 = vpop.permute.xlu1 %2238   ;;  %v3017_v14 = vsel %vm4_vm0, %v4287_v9, %v4286_v8  ;;  %v4331_v60 = vld [vmem:[%s8238_s0 + $0x787] ss:$8 sm:$0xf]  }
 0x1c6   :  { %4076 = vst.msk [vmem:[%s8239_s1 + $0xb0] sm:$0xff] %vm2053_vm9, %v2239_v19   ;;  %v4332_v61 = vld [vmem:[%s8238_s0 + $0x787] ss:$8 sm:$0xf0]  }
 0x1c7   :  { %v2228_v23 = vpop.permute.xlu0 %2227   ;;  %2875 = vrot.lane.b32.xlu1 %v2874_v18, %s4418_s9  ;;  %v3050_v18 = vsel %vm4_vm0, %v4296_v13, %v4295_v12  ;;  %v4328_v0 = vld [vmem:[%s8238_s0 + $0x687] ss:$8 sm:$0xf]  }
 0x1c8   :  { %4073 = vst.msk [vmem:[%s8239_s1 + $0x50] sm:$0xff] %vm2053_vm9, %v2228_v23   ;;  %v4329_v1 = vld [vmem:[%s8238_s0 + $0x687] ss:$8 sm:$0xf0]  }
 0x1c9   :  { %2864 = vrot.lane.b32.xlu0 %v2863_v22, %s4418_s9  ;;  %v2261_v27 = vpop.permute.xlu1 %2260   ;;  %v3039_v22 = vsel %vm4_vm0, %v4293_v17, %v4292_v16  ;;  %v4337_v4 = vld [vmem:[%s8238_s0 + $0x147] ss:$8 sm:$0xf]  }
 0x1ca   :  { %4082 = vst.msk [vmem:[%s8239_s1 + $0x170] sm:$0xff] %vm2053_vm9, %v2261_v27   ;;  %v4338_v5 = vld [vmem:[%s8238_s0 + $0x147] ss:$8 sm:$0xf0]  }
 0x1cb   :  { %v2250_v31 = vpop.permute.xlu0 %2249   ;;  %2897 = vrot.lane.b32.xlu1 %v2896_v26, %s4418_s9  ;;  %v3072_v26 = vsel %vm4_vm0, %v4302_v21, %v4301_v20  ;;  %v4334_v8 = vld [vmem:[%s8238_s0 + $0x47] ss:$8 sm:$0xf]  }
 0x1cc   :  { %4079 = vst.msk [vmem:[%s8239_s1 + $0x110] sm:$0xff] %vm2053_vm9, %v2250_v31   ;;  %v4335_v9 = vld [vmem:[%s8238_s0 + $0x47] ss:$8 sm:$0xf0]  }
 0x1cd   :  { %2886 = vrot.lane.b32.xlu0 %v2885_v30, %s4418_s9  ;;  %v2283_v35 = vpop.permute.xlu1 %2282   ;;  %v3061_v30 = vsel %vm4_vm0, %v4299_v25, %v4298_v24  ;;  %v4343_v12 = vld [vmem:[%s8238_s0 + $0x347] ss:$8 sm:$0xf]  }
 0x1ce   :  { %4088 = vst.msk [vmem:[%s8239_s1 + $0x230] sm:$0xff] %vm2053_vm9, %v2283_v35   ;;  %v4344_v13 = vld [vmem:[%s8238_s0 + $0x347] ss:$8 sm:$0xf0]  }
 0x1cf   :  { %v2272_v39 = vpop.permute.xlu0 %2271   ;;  %2919 = vrot.lane.b32.xlu1 %v2918_v34, %s4418_s9  ;;  %v3094_v34 = vsel %vm4_vm0, %v4308_v29, %v4307_v28  ;;  %v4340_v16 = vld [vmem:[%s8238_s0 + $0x247] ss:$8 sm:$0xf]  }
 0x1d0   :  { %4085 = vst.msk [vmem:[%s8239_s1 + $0x1d0] sm:$0xff] %vm2053_vm9, %v2272_v39   ;;  %v4341_v17 = vld [vmem:[%s8238_s0 + $0x247] ss:$8 sm:$0xf0]  }
 0x1d1   :  { %2908 = vrot.lane.b32.xlu0 %v2907_v38, %s4418_s9  ;;  %v2305_v43 = vpop.permute.xlu1 %2304   ;;  %v3083_v38 = vsel %vm4_vm0, %v4305_v33, %v4304_v32  ;;  %v4349_v20 = vld [vmem:[%s8238_s0 + $0x547] ss:$8 sm:$0xf]  }
 0x1d2   :  { %4094 = vst.msk [vmem:[%s8239_s1 + $0x2f0] sm:$0xff] %vm2053_vm9, %v2305_v43   ;;  %v4350_v21 = vld [vmem:[%s8238_s0 + $0x547] ss:$8 sm:$0xf0]  }
 0x1d3   :  { %v2294_v47 = vpop.permute.xlu0 %2293   ;;  %2941 = vrot.lane.b32.xlu1 %v2940_v42, %s4418_s9  ;;  %v3116_v42 = vsel %vm4_vm0, %v4314_v37, %v4313_v36  ;;  %v4346_v24 = vld [vmem:[%s8238_s0 + $0x447] ss:$8 sm:$0xf]  }
 0x1d4   :  { %4091 = vst.msk [vmem:[%s8239_s1 + $0x290] sm:$0xff] %vm2053_vm9, %v2294_v47   ;;  %v4347_v25 = vld [vmem:[%s8238_s0 + $0x447] ss:$8 sm:$0xf0]  }
 0x1d5   :  { %2930 = vrot.lane.b32.xlu0 %v2929_v46, %s4418_s9  ;;  %v2327_v51 = vpop.permute.xlu1 %2326   ;;  %v3105_v46 = vsel %vm4_vm0, %v4311_v41, %v4310_v40  ;;  %v4355_v28 = vld [vmem:[%s8238_s0 + $0x747] ss:$8 sm:$0xf]  }
 0x1d6   :  { %4100 = vst.msk [vmem:[%s8239_s1 + $0x98] sm:$0xff] %vm2053_vm9, %v2327_v51   ;;  %v4356_v29 = vld [vmem:[%s8238_s0 + $0x747] ss:$8 sm:$0xf0]  }
 0x1d7   :  { %v2316_v55 = vpop.permute.xlu0 %2315   ;;  %2963 = vrot.lane.b32.xlu1 %v2962_v50, %s4418_s9  ;;  %v3138_v50 = vsel %vm4_vm0, %v4320_v45, %v4319_v44  ;;  %v4352_v32 = vld [vmem:[%s8238_s0 + $0x647] ss:$8 sm:$0xf]  }
 0x1d8   :  { %4097 = vst.msk [vmem:[%s8239_s1 + $0x38] sm:$0xff] %vm2053_vm9, %v2316_v55   ;;  %v4353_v33 = vld [vmem:[%s8238_s0 + $0x647] ss:$8 sm:$0xf0]  }
 0x1d9   :  { %2952 = vrot.lane.b32.xlu0 %v2951_v54, %s4418_s9  ;;  %v2349_v59 = vpop.permute.xlu1 %2348   ;;  %v3127_v54 = vsel %vm4_vm0, %v4317_v49, %v4316_v48  ;;  %v4361_v36 = vld [vmem:[%s8238_s0 + $0x107] ss:$8 sm:$0xf]  }
 0x1da   :  { %4106 = vst.msk [vmem:[%s8239_s1 + $0x158] sm:$0xff] %vm2053_vm9, %v2349_v59   ;;  %v4362_v37 = vld [vmem:[%s8238_s0 + $0x107] ss:$8 sm:$0xf0]  }
 0x1db   :  { %v2338_v63 = vpop.permute.xlu0 %2337   ;;  %2985 = vrot.lane.b32.xlu1 %v2984_v58, %s4418_s9  ;;  %v3160_v58 = vsel %vm4_vm0, %v4326_v53, %v4325_v52  ;;  %v4358_v40 = vld [vmem:[%s8238_s0 + $0x7] ss:$8 sm:$0xf]  }
 0x1dc   :  { %4103 = vst.msk [vmem:[%s8239_s1 + $0xf8] sm:$0xff] %vm2053_vm9, %v2338_v63   ;;  %v4359_v41 = vld [vmem:[%s8238_s0 + $0x7] ss:$8 sm:$0xf0]  }
 0x1dd   :  { %2974 = vrot.lane.b32.xlu0 %v2973_v62, %s4418_s9  ;;  %v2371_v3 = vpop.permute.xlu1 %2370   ;;  %v3149_v62 = vsel %vm4_vm0, %v4323_v57, %v4322_v56  ;;  %v4367_v44 = vld [vmem:[%s8238_s0 + $0x307] ss:$8 sm:$0xf]  }
 0x1de   :  { %4112 = vst.msk [vmem:[%s8239_s1 + $0x218] sm:$0xff] %vm2053_vm9, %v2371_v3   ;;  %v4368_v45 = vld [vmem:[%s8238_s0 + $0x307] ss:$8 sm:$0xf0]  }
 0x1df   :  { %v2360_v7 = vpop.permute.xlu0 %2359   ;;  %3007 = vrot.lane.b32.xlu1 %v3006_v2, %s4418_s9  ;;  %v3182_v2 = vsel %vm4_vm0, %v4332_v61, %v4331_v60  ;;  %v4364_v48 = vld [vmem:[%s8238_s0 + $0x207] ss:$8 sm:$0xf]  }
 0x1e0   :  { %4109 = vst.msk [vmem:[%s8239_s1 + $0x1b8] sm:$0xff] %vm2053_vm9, %v2360_v7   ;;  %v4365_v49 = vld [vmem:[%s8238_s0 + $0x207] ss:$8 sm:$0xf0]  }
 0x1e1   :  { %2996 = vrot.lane.b32.xlu0 %v2995_v6, %s4418_s9  ;;  %v2393_v11 = vpop.permute.xlu1 %2392   ;;  %v3171_v6 = vsel %vm4_vm0, %v4329_v1, %v4328_v0  ;;  %v4373_v52 = vld [vmem:[%s8238_s0 + $0x507] ss:$8 sm:$0xf]  }
 0x1e2   :  { %4118 = vst.msk [vmem:[%s8239_s1 + $0x2d8] sm:$0xff] %vm2053_vm9, %v2393_v11   ;;  %v4374_v53 = vld [vmem:[%s8238_s0 + $0x507] ss:$8 sm:$0xf0]  }
 0x1e3   :  { %v2382_v15 = vpop.permute.xlu0 %2381   ;;  %3029 = vrot.lane.b32.xlu1 %v3028_v10, %s4418_s9  ;;  %v3204_v10 = vsel %vm4_vm0, %v4338_v5, %v4337_v4  ;;  %v4370_v56 = vld [vmem:[%s8238_s0 + $0x407] ss:$8 sm:$0xf]  }
 0x1e4   :  { %4115 = vst.msk [vmem:[%s8239_s1 + $0x278] sm:$0xff] %vm2053_vm9, %v2382_v15   ;;  %v4371_v57 = vld [vmem:[%s8238_s0 + $0x407] ss:$8 sm:$0xf0]  }
 0x1e5   :  { %3018 = vrot.lane.b32.xlu0 %v3017_v14, %s4418_s9  ;;  %v2414_v19 = vpop.permute.xlu1 %2413   ;;  %v3193_v14 = vsel %vm4_vm0, %v4335_v9, %v4334_v8  ;;  %v4379_v60 = vld [vmem:[%s8238_s0 + $0x707] ss:$8 sm:$0xf]  }
 0x1e6   :  { %4123 = vst.msk [vmem:[%s8239_s1 + $0x60] sm:$0xff] %vm2405_vm10, %v2414_v19   ;;  %v4380_v61 = vld [vmem:[%s8238_s0 + $0x707] ss:$8 sm:$0xf0]  }
 0x1e7   :  { %v2404_v23 = vpop.permute.xlu0 %2403   ;;  %3051 = vrot.lane.b32.xlu1 %v3050_v18, %s4418_s9  ;;  %v3226_v18 = vsel %vm4_vm0, %v4344_v13, %v4343_v12  ;;  %v4376_v0 = vld [vmem:[%s8238_s0 + $0x607] ss:$8 sm:$0xf]  }
 0x1e8   :  { %2406 = vst.msk [vmem:[%s8239_s1] sm:$0xff] %vm2405_vm10, %v2404_v23   ;;  %v4377_v1 = vld [vmem:[%s8238_s0 + $0x607] ss:$8 sm:$0xf0]  }
 0x1e9   :  { %3040 = vrot.lane.b32.xlu0 %v3039_v22, %s4418_s9  ;;  %v2436_v27 = vpop.permute.xlu1 %2435   ;;  %v3215_v22 = vsel %vm4_vm0, %v4341_v17, %v4340_v16  ;;  %v4385_v4 = vld [vmem:[%s8238_s0 + $0x1c7] ss:$8 sm:$0xf]  }
 0x1ea   :  { %4129 = vst.msk [vmem:[%s8239_s1 + $0x120] sm:$0xff] %vm2405_vm10, %v2436_v27   ;;  %v4386_v5 = vld [vmem:[%s8238_s0 + $0x1c7] ss:$8 sm:$0xf0]  }
 0x1eb   :  { %v2425_v31 = vpop.permute.xlu0 %2424   ;;  %3073 = vrot.lane.b32.xlu1 %v3072_v26, %s4418_s9  ;;  %v3248_v26 = vsel %vm4_vm0, %v4350_v21, %v4349_v20  ;;  %v4382_v8 = vld [vmem:[%s8238_s0 + $0xc7] ss:$8 sm:$0xf]  }
 0x1ec   :  { %4126 = vst.msk [vmem:[%s8239_s1 + $0xc0] sm:$0xff] %vm2405_vm10, %v2425_v31   ;;  %v4383_v9 = vld [vmem:[%s8238_s0 + $0xc7] ss:$8 sm:$0xf0]  }
 0x1ed   :  { %3062 = vrot.lane.b32.xlu0 %v3061_v30, %s4418_s9  ;;  %v2458_v35 = vpop.permute.xlu1 %2457   ;;  %v3237_v30 = vsel %vm4_vm0, %v4347_v25, %v4346_v24  ;;  %v4391_v12 = vld [vmem:[%s8238_s0 + $0x3c7] ss:$8 sm:$0xf]  }
 0x1ee   :  { %4135 = vst.msk [vmem:[%s8239_s1 + $0x1e0] sm:$0xff] %vm2405_vm10, %v2458_v35   ;;  %v4392_v13 = vld [vmem:[%s8238_s0 + $0x3c7] ss:$8 sm:$0xf0]  }
 0x1ef   :  { %v2447_v39 = vpop.permute.xlu0 %2446   ;;  %3095 = vrot.lane.b32.xlu1 %v3094_v34, %s4418_s9  ;;  %v3270_v34 = vsel %vm4_vm0, %v4356_v29, %v4355_v28  ;;  %v4388_v16 = vld [vmem:[%s8238_s0 + $0x2c7] ss:$8 sm:$0xf]  }
 0x1f0   :  { %4132 = vst.msk [vmem:[%s8239_s1 + $0x180] sm:$0xff] %vm2405_vm10, %v2447_v39   ;;  %v4389_v17 = vld [vmem:[%s8238_s0 + $0x2c7] ss:$8 sm:$0xf0]  }
 0x1f1   :  { %3084 = vrot.lane.b32.xlu0 %v3083_v38, %s4418_s9  ;;  %v2480_v43 = vpop.permute.xlu1 %2479   ;;  %v3259_v38 = vsel %vm4_vm0, %v4353_v33, %v4352_v32  ;;  %v4397_v20 = vld [vmem:[%s8238_s0 + $0x5c7] ss:$8 sm:$0xf]  }
 0x1f2   :  { %4141 = vst.msk [vmem:[%s8239_s1 + $0x2a0] sm:$0xff] %vm2405_vm10, %v2480_v43   ;;  %v4398_v21 = vld [vmem:[%s8238_s0 + $0x5c7] ss:$8 sm:$0xf0]  }
 0x1f3   :  { %v2469_v47 = vpop.permute.xlu0 %2468   ;;  %3117 = vrot.lane.b32.xlu1 %v3116_v42, %s4419_s5  ;;  %v3292_v42 = vsel %vm4_vm0, %v4362_v37, %v4361_v36  ;;  %v4394_v24 = vld [vmem:[%s8238_s0 + $0x4c7] ss:$8 sm:$0xf]  }
 0x1f4   :  { %4138 = vst.msk [vmem:[%s8239_s1 + $0x240] sm:$0xff] %vm2405_vm10, %v2469_v47   ;;  %v4395_v25 = vld [vmem:[%s8238_s0 + $0x4c7] ss:$8 sm:$0xf0]  }
 0x1f5   :  { %3106 = vrot.lane.b32.xlu0 %v3105_v46, %s4419_s5  ;;  %v2502_v51 = vpop.permute.xlu1 %2501   ;;  %v3281_v46 = vsel %vm4_vm0, %v4359_v41, %v4358_v40  ;;  %v4403_v28 = vld [vmem:[%s8238_s0 + $0x7c7] ss:$8 sm:$0xf]  }
 0x1f6   :  { %4147 = vst.msk [vmem:[%s8239_s1 + $0xa8] sm:$0xff] %vm2405_vm10, %v2502_v51   ;;  %v4404_v29 = vld [vmem:[%s8238_s0 + $0x7c7] ss:$8 sm:$0xf0]  }
 0x1f7   :  { %v2491_v55 = vpop.permute.xlu0 %2490   ;;  %3139 = vrot.lane.b32.xlu1 %v3138_v50, %s4419_s5  ;;  %v3314_v50 = vsel %vm4_vm0, %v4368_v45, %v4367_v44  ;;  %v4400_v32 = vld [vmem:[%s8238_s0 + $0x6c7] ss:$8 sm:$0xf]  }
 0x1f8   :  { %4144 = vst.msk [vmem:[%s8239_s1 + $0x48] sm:$0xff] %vm2405_vm10, %v2491_v55   ;;  %v4401_v33 = vld [vmem:[%s8238_s0 + $0x6c7] ss:$8 sm:$0xf0]  }
 0x1f9   :  { %3128 = vrot.lane.b32.xlu0 %v3127_v54, %s4419_s5  ;;  %v2524_v59 = vpop.permute.xlu1 %2523   ;;  %v3303_v54 = vsel %vm4_vm0, %v4365_v49, %v4364_v48  ;;  %v3435_v36 = vsel %vm4_vm0, %v4401_v33, %v4400_v32 }
 0x1fa   :  { %4153 = vst.msk [vmem:[%s8239_s1 + $0x168] sm:$0xff] %vm2405_vm10, %v2524_v59  }
 0x1fb   :  { %v2513_v63 = vpop.permute.xlu0 %2512   ;;  %3161 = vrot.lane.b32.xlu1 %v3160_v58, %s4419_s5  ;;  %v3336_v58 = vsel %vm4_vm0, %v4374_v53, %v4373_v52 }
 0x1fc   :  { %4150 = vst.msk [vmem:[%s8239_s1 + $0x108] sm:$0xff] %vm2405_vm10, %v2513_v63  }
 0x1fd   :  { %3150 = vrot.lane.b32.xlu0 %v3149_v62, %s4419_s5  ;;  %v2546_v3 = vpop.permute.xlu1 %2545   ;;  %v3325_v62 = vsel %vm4_vm0, %v4371_v57, %v4370_v56 }
 0x1fe   :  { %4159 = vst.msk [vmem:[%s8239_s1 + $0x228] sm:$0xff] %vm2405_vm10, %v2546_v3  }
 0x1ff   :  { %v2535_v7 = vpop.permute.xlu0 %2534   ;;  %3183 = vrot.lane.b32.xlu1 %v3182_v2, %s4419_s5  ;;  %v3358_v2 = vsel %vm4_vm0, %v4380_v61, %v4379_v60 }
 0x200   :  { %4156 = vst.msk [vmem:[%s8239_s1 + $0x1c8] sm:$0xff] %vm2405_vm10, %v2535_v7  }
 0x201   :  { %3172 = vrot.lane.b32.xlu0 %v3171_v6, %s4419_s5  ;;  %v2568_v11 = vpop.permute.xlu1 %2567   ;;  %v3347_v6 = vsel %vm4_vm0, %v4377_v1, %v4376_v0 }
 0x202   :  { %4165 = vst.msk [vmem:[%s8239_s1 + $0x2e8] sm:$0xff] %vm2405_vm10, %v2568_v11  }
 0x203   :  { %v2557_v15 = vpop.permute.xlu0 %2556   ;;  %3205 = vrot.lane.b32.xlu1 %v3204_v10, %s4419_s5  ;;  %v3380_v10 = vsel %vm4_vm0, %v4386_v5, %v4385_v4 }
 0x204   :  { %4162 = vst.msk [vmem:[%s8239_s1 + $0x288] sm:$0xff] %vm2405_vm10, %v2557_v15  }
 0x205   :  { %3194 = vrot.lane.b32.xlu0 %v3193_v14, %s4419_s5  ;;  %v2590_v19 = vpop.permute.xlu1 %2589   ;;  %v3369_v14 = vsel %vm4_vm0, %v4383_v9, %v4382_v8 }
 0x206   :  { %4171 = vst.msk [vmem:[%s8239_s1 + $0x90] sm:$0xff] %vm2405_vm10, %v2590_v19  }
 0x207   :  { %v2579_v23 = vpop.permute.xlu0 %2578   ;;  %3227 = vrot.lane.b32.xlu1 %v3226_v18, %s4419_s5  ;;  %v3402_v18 = vsel %vm4_vm0, %v4392_v13, %v4391_v12 }
 0x208   :  { %4168 = vst.msk [vmem:[%s8239_s1 + $0x30] sm:$0xff] %vm2405_vm10, %v2579_v23  }
 0x209   :  { %3216 = vrot.lane.b32.xlu0 %v3215_v22, %s4419_s5  ;;  %v2612_v27 = vpop.permute.xlu1 %2611   ;;  %v3391_v22 = vsel %vm4_vm0, %v4389_v17, %v4388_v16 }
 0x20a   :  { %4177 = vst.msk [vmem:[%s8239_s1 + $0x150] sm:$0xff] %vm2405_vm10, %v2612_v27  }
 0x20b   :  { %v2601_v31 = vpop.permute.xlu0 %2600   ;;  %3249 = vrot.lane.b32.xlu1 %v3248_v26, %s4419_s5  ;;  %v3424_v26 = vsel %vm4_vm0, %v4398_v21, %v4397_v20 }
 0x20c   :  { %4174 = vst.msk [vmem:[%s8239_s1 + $0xf0] sm:$0xff] %vm2405_vm10, %v2601_v31  }
 0x20d   :  { %3238 = vrot.lane.b32.xlu0 %v3237_v30, %s4419_s5  ;;  %v2634_v35 = vpop.permute.xlu1 %2633   ;;  %v3413_v30 = vsel %vm4_vm0, %v4395_v25, %v4394_v24 }
 0x20e   :  { %4183 = vst.msk [vmem:[%s8239_s1 + $0x210] sm:$0xff] %vm2405_vm10, %v2634_v35  }
 0x20f   :  { %v2623_v39 = vpop.permute.xlu0 %2622   ;;  %3271 = vrot.lane.b32.xlu1 %v3270_v34, %s4419_s5  ;;  %v3446_v34 = vsel %vm4_vm0, %v4404_v29, %v4403_v28 }
 0x210   :  { %4180 = vst.msk [vmem:[%s8239_s1 + $0x1b0] sm:$0xff] %vm2405_vm10, %v2623_v39  }
 0x211   :  { %3260 = vrot.lane.b32.xlu0 %v3259_v38, %s4419_s5  ;;  %v2656_v43 = vpop.permute.xlu1 %2655  }
 0x212   :  { %4189 = vst.msk [vmem:[%s8239_s1 + $0x2d0] sm:$0xff] %vm2405_vm10, %v2656_v43  }
 0x213   :  { %v2645_v47 = vpop.permute.xlu0 %2644   ;;  %3293 = vrot.lane.b32.xlu1 %v3292_v42, %s4419_s5 }
 0x214   :  { %4186 = vst.msk [vmem:[%s8239_s1 + $0x270] sm:$0xff] %vm2405_vm10, %v2645_v47  }
 0x215   :  { %3282 = vrot.lane.b32.xlu0 %v3281_v46, %s4419_s5  ;;  %v2678_v51 = vpop.permute.xlu1 %2677  }
 0x216   :  { %4195 = vst.msk [vmem:[%s8239_s1 + $0x78] sm:$0xff] %vm2405_vm10, %v2678_v51  }
 0x217   :  { %v2667_v55 = vpop.permute.xlu0 %2666   ;;  %3315 = vrot.lane.b32.xlu1 %v3314_v50, %s4419_s5 }
 0x218   :  { %4192 = vst.msk [vmem:[%s8239_s1 + $0x18] sm:$0xff] %vm2405_vm10, %v2667_v55  }
 0x219   :  { %3304 = vrot.lane.b32.xlu0 %v3303_v54, %s4419_s5  ;;  %v2700_v59 = vpop.permute.xlu1 %2699  }
 0x21a   :  { %4201 = vst.msk [vmem:[%s8239_s1 + $0x138] sm:$0xff] %vm2405_vm10, %v2700_v59  }
 0x21b   :  { %v2689_v63 = vpop.permute.xlu0 %2688   ;;  %3337 = vrot.lane.b32.xlu1 %v3336_v58, %s4419_s5 }
 0x21c   :  { %4198 = vst.msk [vmem:[%s8239_s1 + $0xd8] sm:$0xff] %vm2405_vm10, %v2689_v63  }
 0x21d   :  { %3326 = vrot.lane.b32.xlu0 %v3325_v62, %s4419_s5  ;;  %v2722_v3 = vpop.permute.xlu1 %2721  }
 0x21e   :  { %4207 = vst.msk [vmem:[%s8239_s1 + $0x1f8] sm:$0xff] %vm2405_vm10, %v2722_v3  }
 0x21f   :  { %v2711_v7 = vpop.permute.xlu0 %2710   ;;  %3359 = vrot.lane.b32.xlu1 %v3358_v2, %s4419_s5 }
 0x220   :  { %4204 = vst.msk [vmem:[%s8239_s1 + $0x198] sm:$0xff] %vm2405_vm10, %v2711_v7  }
 0x221   :  { %3348 = vrot.lane.b32.xlu0 %v3347_v6, %s4419_s5  ;;  %v2744_v11 = vpop.permute.xlu1 %2743  }
 0x222   :  { %4213 = vst.msk [vmem:[%s8239_s1 + $0x2b8] sm:$0xff] %vm2405_vm10, %v2744_v11  }
 0x223   :  { %v2733_v15 = vpop.permute.xlu0 %2732   ;;  %3381 = vrot.lane.b32.xlu1 %v3380_v10, %s4419_s5 }
 0x224   :  { %4210 = vst.msk [vmem:[%s8239_s1 + $0x258] sm:$0xff] %vm2405_vm10, %v2733_v15  }
 0x225   :  { %3370 = vrot.lane.b32.xlu0 %v3369_v14, %s4419_s5  ;;  %v2766_v19 = vpop.permute.xlu1 %2765  }
 0x226   :  { %4219 = vst.msk [vmem:[%s8239_s1 + $0x80] sm:$0xff] %vm2756_vm11, %v2766_v19  }
 0x227   :  { %v2755_v23 = vpop.permute.xlu0 %2754   ;;  %3403 = vrot.lane.b32.xlu1 %v3402_v18, %s4419_s5 }
 0x228   :  { %4216 = vst.msk [vmem:[%s8239_s1 + $0x20] sm:$0xff] %vm2756_vm11, %v2755_v23  }
 0x229   :  { %3392 = vrot.lane.b32.xlu0 %v3391_v22, %s4419_s5  ;;  %v2788_v27 = vpop.permute.xlu1 %2787  }
 0x22a   :  { %4225 = vst.msk [vmem:[%s8239_s1 + $0x140] sm:$0xff] %vm2756_vm11, %v2788_v27  }
 0x22b   :  { %v2777_v31 = vpop.permute.xlu0 %2776   ;;  %3425 = vrot.lane.b32.xlu1 %v3424_v26, %s4419_s5 }
 0x22c   :  { %4222 = vst.msk [vmem:[%s8239_s1 + $0xe0] sm:$0xff] %vm2756_vm11, %v2777_v31  }
 0x22d   :  { %3414 = vrot.lane.b32.xlu0 %v3413_v30, %s4419_s5  ;;  %v2810_v35 = vpop.permute.xlu1 %2809  }
 0x22e   :  { %4231 = vst.msk [vmem:[%s8239_s1 + $0x200] sm:$0xff] %vm2756_vm11, %v2810_v35  }
 0x22f   :  { %v2799_v37 = vpop.permute.xlu0 %2798   ;;  %3447 = vrot.lane.b32.xlu1 %v3446_v34, %s4419_s5 }
 0x230   :  { %4228 = vst.msk [vmem:[%s8239_s1 + $0x1a0] sm:$0xff] %vm2756_vm11, %v2799_v37  }
 0x231   :  { %3436 = vrot.lane.b32.xlu0 %v3435_v36, %s4419_s5  ;;  %v2832_v38 = vpop.permute.xlu1 %2831  }
 0x232   :  { %4237 = vst.msk [vmem:[%s8239_s1 + $0x2c0] sm:$0xff] %vm2756_vm11, %v2832_v38  }
 0x233   :  { %v2821_v39 = vpop.permute.xlu0 %2820  }
 0x234   :  { %4234 = vst.msk [vmem:[%s8239_s1 + $0x260] sm:$0xff] %vm2756_vm11, %v2821_v39  }
 0x235   :  { %v2854_v40 = vpop.permute.xlu1 %2853  }
 0x236   :  { %4243 = vst.msk [vmem:[%s8239_s1 + $0x68] sm:$0xff] %vm2756_vm11, %v2854_v40  }
 0x237   :  { %v2843_v41 = vpop.permute.xlu0 %2842  }
 0x238   :  { %4240 = vst.msk [vmem:[%s8239_s1 + $0x8] sm:$0xff] %vm2756_vm11, %v2843_v41  }
 0x239   :  { %v2876_v42 = vpop.permute.xlu1 %2875  }
 0x23a   :  { %4249 = vst.msk [vmem:[%s8239_s1 + $0x128] sm:$0xff] %vm2756_vm11, %v2876_v42  }
 0x23b   :  { %v2865_v43 = vpop.permute.xlu0 %2864  }
 0x23c   :  { %4246 = vst.msk [vmem:[%s8239_s1 + $0xc8] sm:$0xff] %vm2756_vm11, %v2865_v43  }
 0x23d   :  { %v2898_v44 = vpop.permute.xlu1 %2897  }
 0x23e   :  { %4255 = vst.msk [vmem:[%s8239_s1 + $0x1e8] sm:$0xff] %vm2756_vm11, %v2898_v44  }
 0x23f   :  { %v2887_v45 = vpop.permute.xlu0 %2886  }
 0x240   :  { %4252 = vst.msk [vmem:[%s8239_s1 + $0x188] sm:$0xff] %vm2756_vm11, %v2887_v45  }
 0x241   :  { %v2920_v46 = vpop.permute.xlu1 %2919  }
 0x242   :  { %4261 = vst.msk [vmem:[%s8239_s1 + $0x2a8] sm:$0xff] %vm2756_vm11, %v2920_v46  }
 0x243   :  { %v2909_v47 = vpop.permute.xlu0 %2908  }
 0x244   :  { %4258 = vst.msk [vmem:[%s8239_s1 + $0x248] sm:$0xff] %vm2756_vm11, %v2909_v47  }
 0x245   :  { %v2942_v48 = vpop.permute.xlu1 %2941  }
 0x246   :  { %4267 = vst.msk [vmem:[%s8239_s1 + $0xb0] sm:$0xff] %vm2756_vm11, %v2942_v48  }
 0x247   :  { %v2931_v49 = vpop.permute.xlu0 %2930  }
 0x248   :  { %4264 = vst.msk [vmem:[%s8239_s1 + $0x50] sm:$0xff] %vm2756_vm11, %v2931_v49  }
 0x249   :  { %v2964_v50 = vpop.permute.xlu1 %2963  }
 0x24a   :  { %4273 = vst.msk [vmem:[%s8239_s1 + $0x170] sm:$0xff] %vm2756_vm11, %v2964_v50  }
 0x24b   :  { %v2953_v51 = vpop.permute.xlu0 %2952  }
 0x24c   :  { %4270 = vst.msk [vmem:[%s8239_s1 + $0x110] sm:$0xff] %vm2756_vm11, %v2953_v51  }
 0x24d   :  { %v2986_v52 = vpop.permute.xlu1 %2985  }
 0x24e   :  { %4279 = vst.msk [vmem:[%s8239_s1 + $0x230] sm:$0xff] %vm2756_vm11, %v2986_v52  }
 0x24f   :  { %v2975_v53 = vpop.permute.xlu0 %2974  }
 0x250   :  { %4276 = vst.msk [vmem:[%s8239_s1 + $0x1d0] sm:$0xff] %vm2756_vm11, %v2975_v53  }
 0x251   :  { %v3008_v54 = vpop.permute.xlu1 %3007  }
 0x252   :  { %4285 = vst.msk [vmem:[%s8239_s1 + $0x2f0] sm:$0xff] %vm2756_vm11, %v3008_v54  }
 0x253   :  { %v2997_v55 = vpop.permute.xlu0 %2996  }
 0x254   :  { %4282 = vst.msk [vmem:[%s8239_s1 + $0x290] sm:$0xff] %vm2756_vm11, %v2997_v55  }
 0x255   :  { %v3030_v56 = vpop.permute.xlu1 %3029  }
 0x256   :  { %4291 = vst.msk [vmem:[%s8239_s1 + $0x98] sm:$0xff] %vm2756_vm11, %v3030_v56  }
 0x257   :  { %v3019_v57 = vpop.permute.xlu0 %3018  }
 0x258   :  { %4288 = vst.msk [vmem:[%s8239_s1 + $0x38] sm:$0xff] %vm2756_vm11, %v3019_v57  }
 0x259   :  { %v3052_v58 = vpop.permute.xlu1 %3051  }
 0x25a   :  { %4297 = vst.msk [vmem:[%s8239_s1 + $0x158] sm:$0xff] %vm2756_vm11, %v3052_v58  }
 0x25b   :  { %v3041_v59 = vpop.permute.xlu0 %3040  }
 0x25c   :  { %4294 = vst.msk [vmem:[%s8239_s1 + $0xf8] sm:$0xff] %vm2756_vm11, %v3041_v59  }
 0x25d   :  { %v3074_v60 = vpop.permute.xlu1 %3073  }
 0x25e   :  { %4303 = vst.msk [vmem:[%s8239_s1 + $0x218] sm:$0xff] %vm2756_vm11, %v3074_v60  }
 0x25f   :  { %v3063_v61 = vpop.permute.xlu0 %3062  }
 0x260   :  { %4300 = vst.msk [vmem:[%s8239_s1 + $0x1b8] sm:$0xff] %vm2756_vm11, %v3063_v61  }
 0x261   :  { %v3096_v62 = vpop.permute.xlu1 %3095  }
 0x262   :  { %4309 = vst.msk [vmem:[%s8239_s1 + $0x2d8] sm:$0xff] %vm2756_vm11, %v3096_v62  }
 0x263   :  { %v3085_v63 = vpop.permute.xlu0 %3084  }
 0x264   :  { %4306 = vst.msk [vmem:[%s8239_s1 + $0x278] sm:$0xff] %vm2756_vm11, %v3085_v63  }
 0x265   :  { %v3118_v0 = vpop.permute.xlu1 %3117  }
 0x266   :  { %4315 = vst.msk [vmem:[%s8239_s1 + $0xa0] sm:$0xff] %vm3108_vm12, %v3118_v0  }
 0x267   :  { %v3107_v1 = vpop.permute.xlu0 %3106  }
 0x268   :  { %4312 = vst.msk [vmem:[%s8239_s1 + $0x40] sm:$0xff] %vm3108_vm12, %v3107_v1  }
 0x269   :  { %v3140_v2 = vpop.permute.xlu1 %3139  }
 0x26a   :  { %4321 = vst.msk [vmem:[%s8239_s1 + $0x160] sm:$0xff] %vm3108_vm12, %v3140_v2  }
 0x26b   :  { %v3129_v3 = vpop.permute.xlu0 %3128  }
 0x26c   :  { %4318 = vst.msk [vmem:[%s8239_s1 + $0x100] sm:$0xff] %vm3108_vm12, %v3129_v3  }
 0x26d   :  { %v3162_v4 = vpop.permute.xlu1 %3161  }
 0x26e   :  { %4327 = vst.msk [vmem:[%s8239_s1 + $0x220] sm:$0xff] %vm3108_vm12, %v3162_v4  }
 0x26f   :  { %v3151_v5 = vpop.permute.xlu0 %3150  }
 0x270   :  { %4324 = vst.msk [vmem:[%s8239_s1 + $0x1c0] sm:$0xff] %vm3108_vm12, %v3151_v5  }
 0x271   :  { %v3184_v6 = vpop.permute.xlu1 %3183  }
 0x272   :  { %4333 = vst.msk [vmem:[%s8239_s1 + $0x2e0] sm:$0xff] %vm3108_vm12, %v3184_v6  }
 0x273   :  { %v3173_v7 = vpop.permute.xlu0 %3172  }
 0x274   :  { %4330 = vst.msk [vmem:[%s8239_s1 + $0x280] sm:$0xff] %vm3108_vm12, %v3173_v7  }
 0x275   :  { %v3206_v8 = vpop.permute.xlu1 %3205  }
 0x276   :  { %4339 = vst.msk [vmem:[%s8239_s1 + $0x88] sm:$0xff] %vm3108_vm12, %v3206_v8  }
 0x277   :  { %v3195_v9 = vpop.permute.xlu0 %3194  }
 0x278   :  { %4336 = vst.msk [vmem:[%s8239_s1 + $0x28] sm:$0xff] %vm3108_vm12, %v3195_v9  }
 0x279   :  { %v3228_v10 = vpop.permute.xlu1 %3227  }
 0x27a   :  { %4345 = vst.msk [vmem:[%s8239_s1 + $0x148] sm:$0xff] %vm3108_vm12, %v3228_v10  }
 0x27b   :  { %v3217_v11 = vpop.permute.xlu0 %3216  }
 0x27c   :  { %4342 = vst.msk [vmem:[%s8239_s1 + $0xe8] sm:$0xff] %vm3108_vm12, %v3217_v11  }
 0x27d   :  { %v3250_v12 = vpop.permute.xlu1 %3249  }
 0x27e   :  { %4351 = vst.msk [vmem:[%s8239_s1 + $0x208] sm:$0xff] %vm3108_vm12, %v3250_v12  }
 0x27f   :  { %v3239_v13 = vpop.permute.xlu0 %3238  }
 0x280   :  { %4348 = vst.msk [vmem:[%s8239_s1 + $0x1a8] sm:$0xff] %vm3108_vm12, %v3239_v13  }
 0x281   :  { %v3272_v14 = vpop.permute.xlu1 %3271  }
 0x282   :  { %4357 = vst.msk [vmem:[%s8239_s1 + $0x2c8] sm:$0xff] %vm3108_vm12, %v3272_v14  }
 0x283   :  { %v3261_v15 = vpop.permute.xlu0 %3260  }
 0x284   :  { %4354 = vst.msk [vmem:[%s8239_s1 + $0x268] sm:$0xff] %vm3108_vm12, %v3261_v15  }
 0x285   :  { %v3294_v16 = vpop.permute.xlu1 %3293  }
 0x286   :  { %4363 = vst.msk [vmem:[%s8239_s1 + $0x70] sm:$0xff] %vm3108_vm12, %v3294_v16  }
 0x287   :  { %v3283_v17 = vpop.permute.xlu0 %3282  }
 0x288   :  { %4360 = vst.msk [vmem:[%s8239_s1 + $0x10] sm:$0xff] %vm3108_vm12, %v3283_v17  }
 0x289   :  { %v3316_v18 = vpop.permute.xlu1 %3315  }
 0x28a   :  { %4369 = vst.msk [vmem:[%s8239_s1 + $0x130] sm:$0xff] %vm3108_vm12, %v3316_v18  }
 0x28b   :  { %v3305_v19 = vpop.permute.xlu0 %3304  }
 0x28c   :  { %4366 = vst.msk [vmem:[%s8239_s1 + $0xd0] sm:$0xff] %vm3108_vm12, %v3305_v19  }
 0x28d   :  { %v3338_v20 = vpop.permute.xlu1 %3337  }
 0x28e   :  { %4375 = vst.msk [vmem:[%s8239_s1 + $0x1f0] sm:$0xff] %vm3108_vm12, %v3338_v20  }
 0x28f   :  { %v3327_v21 = vpop.permute.xlu0 %3326  }
 0x290   :  { %4372 = vst.msk [vmem:[%s8239_s1 + $0x190] sm:$0xff] %vm3108_vm12, %v3327_v21  }
 0x291   :  { %v3360_v22 = vpop.permute.xlu1 %3359  }
 0x292   :  { %4381 = vst.msk [vmem:[%s8239_s1 + $0x2b0] sm:$0xff] %vm3108_vm12, %v3360_v22  }
 0x293   :  { %v3349_v23 = vpop.permute.xlu0 %3348  }
 0x294   :  { %4378 = vst.msk [vmem:[%s8239_s1 + $0x250] sm:$0xff] %vm3108_vm12, %v3349_v23  }
 0x295   :  { %v3382_v24 = vpop.permute.xlu1 %3381  }
 0x296   :  { %4387 = vst.msk [vmem:[%s8239_s1 + $0xb8] sm:$0xff] %vm3108_vm12, %v3382_v24  }
 0x297   :  { %v3371_v25 = vpop.permute.xlu0 %3370  }
 0x298   :  { %4384 = vst.msk [vmem:[%s8239_s1 + $0x58] sm:$0xff] %vm3108_vm12, %v3371_v25  }
 0x299   :  { %v3404_v26 = vpop.permute.xlu1 %3403  }
 0x29a   :  { %4393 = vst.msk [vmem:[%s8239_s1 + $0x178] sm:$0xff] %vm3108_vm12, %v3404_v26  }
 0x29b   :  { %v3393_v27 = vpop.permute.xlu0 %3392  }
 0x29c   :  { %4390 = vst.msk [vmem:[%s8239_s1 + $0x118] sm:$0xff] %vm3108_vm12, %v3393_v27  }
 0x29d   :  { %v3426_v28 = vpop.permute.xlu1 %3425  }
 0x29e   :  { %4399 = vst.msk [vmem:[%s8239_s1 + $0x238] sm:$0xff] %vm3108_vm12, %v3426_v28  }
 0x29f   :  { %v3415_v29 = vpop.permute.xlu0 %3414  }
 0x2a0   :  { %4396 = vst.msk [vmem:[%s8239_s1 + $0x1d8] sm:$0xff] %vm3108_vm12, %v3415_v29  }
 0x2a1   :  { %v3448_v30 = vpop.permute.xlu1 %3447  }
 0x2a2   :  { %4405 = vst.msk [vmem:[%s8239_s1 + $0x2f8] sm:$0xff] %vm3108_vm12, %v3448_v30  }
 0x2a3   :  { %v3437_v31 = vpop.permute.xlu0 %3436  }
 0x2a4   :  { %4402 = vst.msk [vmem:[%s8239_s1 + $0x298] sm:$0xff] %vm3108_vm12, %v3437_v31  }

// kernel: tile.14
= control target key start
LH: loop header
LB: loop body
LE: loop exit
PB: predicated region body
PF: predicated region fallthrough
CT: control target
= control target key end

     0   :  { %vm4_vm0 = vcmask 1047556   ;;  %vm155_vm1 = vcmask 64512   ;;  %s2205_s22 = smov 120   ;;  %vm506_vm2 = vcmask 130048   ;;  %s2206_s9 = smov 112   ;;  %vm6_vm3 = vcmask 326656   ;;  %s4126_s0 = inlined_call_operand.vmem [shape: f32[16,8,8,40], index: 0, kind: input, shape index: {}]   ;;  %s4127_s1 = inlined_call_operand.vmem [shape: f32[16,8,320], index: 1, kind: output, shape index: {}]  }
   0x1   :  { %v1780_v0 = vld [vmem:[%s4126_s0 + $0x243] ss:$8 sm:$0xf]   ;;  %s2207_s21 = smov 80   ;;  %s2208_s4 = smov 72   ;;  %vm159_vm4 = vcmask 261120  }
   0x2   :  { %v1781_v1 = vld [vmem:[%s4126_s0 + $0x243] ss:$8 sm:$0xf0]   ;;  %vm162_vm5 = vcmask 1048512   ;;  %s2209_s20 = smov 40   ;;  %vm510_vm6 = vcmask 195584  }
   0x3   :  { %v191_v2 = vsel %vm4_vm0, %v1781_v1, %v1780_v0  ;;  %v1782_v3 = vld [vmem:[%s4126_s0 + $0x203] ss:$8 sm:$0xf]   ;;  %vm513_vm7 = vcmask 1048448   ;;  %s2210_s8 = smov 32   ;;  %vm854_vm8 = vcmask 982656  }
   0x4   :  { %v1783_v4 = vld [vmem:[%s4126_s0 + $0x203] ss:$8 sm:$0xf0]   ;;  %s2211_s11 = smov 24   ;;  %vm1029_vm9 = vcmask 917056   ;;  %vm1205_vm10 = vcmask 654656  }
   0x5   :  { %v197_v5 = vsel %vm4_vm0, %v1783_v4, %v1782_v3  ;;  %v1769_v6 = vld [vmem:[%s4126_s0 + $0x43] ss:$8 sm:$0xf]   ;;  %vm1380_vm11 = vcmask 589056   ;;  %vm1556_vm12 = vcmask 523456  }
   0x6   :  { %v1770_v7 = vld [vmem:[%s4126_s0 + $0x43] ss:$8 sm:$0xf0]   ;;  %v199_v8 = vsel %vm155_vm1, %v197_v5, %v191_v2 }
   0x7   :  { %v148_v9 = vsel %vm4_vm0, %v1770_v7, %v1769_v6  ;;  %v1771_v10 = vld [vmem:[%s4126_s0 + $0x3] ss:$8 sm:$0xf]   ;;  %200 = vrot.lane.b32.xlu1 %v199_v8, %s2205_s22 }
   0x8   :  { %v1772_v11 = vld [vmem:[%s4126_s0 + $0x3] ss:$8 sm:$0xf0]  }
   0x9   :  { %v154_v12 = vsel %vm4_vm0, %v1772_v11, %v1771_v10  ;;  %v1786_v13 = vld [vmem:[%s4126_s0 + $0x343] ss:$8 sm:$0xf]  }
   0xa   :  { %v1787_v14 = vld [vmem:[%s4126_s0 + $0x343] ss:$8 sm:$0xf0]   ;;  %v156_v15 = vsel %vm155_vm1, %v154_v12, %v148_v9 }
   0xb   :  { %v213_v16 = vsel %vm4_vm0, %v1787_v14, %v1786_v13  ;;  %v1788_v17 = vld [vmem:[%s4126_s0 + $0x303] ss:$8 sm:$0xf]   ;;  %157 = vrot.lane.b32.xlu0 %v156_v15, %s2205_s22 }
   0xc   :  { %v1789_v18 = vld [vmem:[%s4126_s0 + $0x303] ss:$8 sm:$0xf0]  }
   0xd   :  { %v219_v19 = vsel %vm4_vm0, %v1789_v18, %v1788_v17  ;;  %v1774_v20 = vld [vmem:[%s4126_s0 + $0x143] ss:$8 sm:$0xf]  }
   0xe   :  { %v1775_v21 = vld [vmem:[%s4126_s0 + $0x143] ss:$8 sm:$0xf0]   ;;  %v221_v22 = vsel %vm155_vm1, %v219_v19, %v213_v16 }
   0xf   :  { %v169_v23 = vsel %vm4_vm0, %v1775_v21, %v1774_v20  ;;  %v1776_v24 = vld [vmem:[%s4126_s0 + $0x103] ss:$8 sm:$0xf]   ;;  %222 = vrot.lane.b32.xlu1 %v221_v22, %s2205_s22 }
  0x10   :  { %v1777_v25 = vld [vmem:[%s4126_s0 + $0x103] ss:$8 sm:$0xf0]  }
  0x11   :  { %v175_v26 = vsel %vm4_vm0, %v1777_v25, %v1776_v24  ;;  %v1798_v27 = vld [vmem:[%s4126_s0 + $0x103] ss:$8 sm:$0xf]  }
  0x12   :  { %v1799_v28 = vld [vmem:[%s4126_s0 + $0x103] ss:$8 sm:$0xf0]   ;;  %v177_v29 = vsel %vm155_vm1, %v175_v26, %v169_v23 }
  0x13   :  { %v257_v30 = vsel %vm4_vm0, %v1799_v28, %v1798_v27  ;;  %v1800_v31 = vld [vmem:[%s4126_s0 + $0x1c3] ss:$8 sm:$0xf]   ;;  %178 = vrot.lane.b32.xlu0 %v177_v29, %s2205_s22 }
  0x14   :  { %v1801_v32 = vld [vmem:[%s4126_s0 + $0x1c3] ss:$8 sm:$0xf0]  }
  0x15   :  { %v263_v33 = vsel %vm4_vm0, %v1801_v32, %v1800_v31  ;;  %v1792_v34 = vld [vmem:[%s4126_s0 + $0x3] ss:$8 sm:$0xf]  }
  0x16   :  { %v1793_v35 = vld [vmem:[%s4126_s0 + $0x3] ss:$8 sm:$0xf0]   ;;  %v265_v36 = vsel %vm155_vm1, %v263_v33, %v257_v30 }
  0x17   :  { %v235_v37 = vsel %vm4_vm0, %v1793_v35, %v1792_v34  ;;  %v1794_v38 = vld [vmem:[%s4126_s0 + $0xc3] ss:$8 sm:$0xf]   ;;  %266 = vrot.lane.b32.xlu1 %v265_v36, %s2205_s22 }
  0x18   :  { %v1795_v39 = vld [vmem:[%s4126_s0 + $0xc3] ss:$8 sm:$0xf0]  }
  0x19   :  { %v241_v40 = vsel %vm4_vm0, %v1795_v39, %v1794_v38  ;;  %v1810_v41 = vld [vmem:[%s4126_s0 + $0x303] ss:$8 sm:$0xf]  }
  0x1a   :  { %v1811_v42 = vld [vmem:[%s4126_s0 + $0x303] ss:$8 sm:$0xf0]   ;;  %v243_v43 = vsel %vm155_vm1, %v241_v40, %v235_v37 }
  0x1b   :  { %v301_v44 = vsel %vm4_vm0, %v1811_v42, %v1810_v41  ;;  %v1812_v45 = vld [vmem:[%s4126_s0 + $0x3c3] ss:$8 sm:$0xf]   ;;  %244 = vrot.lane.b32.xlu0 %v243_v43, %s2205_s22 }
  0x1c   :  { %v1813_v46 = vld [vmem:[%s4126_s0 + $0x3c3] ss:$8 sm:$0xf0]  }
  0x1d   :  { %v307_v47 = vsel %vm4_vm0, %v1813_v46, %v1812_v45  ;;  %v1804_v48 = vld [vmem:[%s4126_s0 + $0x203] ss:$8 sm:$0xf]  }
  0x1e   :  { %v1805_v49 = vld [vmem:[%s4126_s0 + $0x203] ss:$8 sm:$0xf0]   ;;  %v309_v50 = vsel %vm155_vm1, %v307_v47, %v301_v44  ;;  %v1870_v47 = vld [vmem:[%s4126_s0 + $0x186] ss:$8 sm:$0xf]  }
  0x1f   :  { %v279_v51 = vsel %vm4_vm0, %v1805_v49, %v1804_v48  ;;  %v1806_v52 = vld [vmem:[%s4126_s0 + $0x2c3] ss:$8 sm:$0xf]   ;;  %310 = vrot.lane.b32.xlu1 %v309_v50, %s2205_s22  ;;  %v1871_v48 = vld [vmem:[%s4126_s0 + $0x186] ss:$8 sm:$0xf0]  }
  0x20   :  { %v1807_v53 = vld [vmem:[%s4126_s0 + $0x2c3] ss:$8 sm:$0xf0]   ;;  %v521_v50 = vsel %vm4_vm0, %v1871_v48, %v1870_v47  ;;  %v1913_v47 = vld [vmem:[%s4126_s0 + $0x6] ss:$8 sm:$0xf0]  }
  0x21   :  { %v285_v54 = vsel %vm4_vm0, %v1807_v53, %v1806_v52  ;;  %v1822_v55 = vld [vmem:[%s4126_s0 + $0x1c3] ss:$8 sm:$0xf]   ;;  %v1873_v52 = vld [vmem:[%s4126_s0 + $0x146] ss:$8 sm:$0xf0]  }
  0x22   :  { %v1823_v56 = vld [vmem:[%s4126_s0 + $0x1c3] ss:$8 sm:$0xf0]   ;;  %v287_v57 = vsel %vm155_vm1, %v285_v54, %v279_v51  ;;  %v1872_v51 = vld [vmem:[%s4126_s0 + $0x146] ss:$8 sm:$0xf]  }
  0x23   :  { %v345_v58 = vsel %vm4_vm0, %v1823_v56, %v1822_v55  ;;  %v1824_v59 = vld [vmem:[%s4126_s0 + $0x183] ss:$8 sm:$0xf]   ;;  %288 = vrot.lane.b32.xlu0 %v287_v57, %s2205_s22  ;;  %v527_v53 = vsel %vm4_vm0, %v1873_v52, %v1872_v51  ;;  %v1864_v54 = vld [vmem:[%s4126_s0 + $0x86] ss:$8 sm:$0xf]  }
  0x24   :  { %v1825_v60 = vld [vmem:[%s4126_s0 + $0x183] ss:$8 sm:$0xf0]   ;;  %v1865_v55 = vld [vmem:[%s4126_s0 + $0x86] ss:$8 sm:$0xf0]   ;;  %v529_v56 = vsel %vm506_vm2, %v527_v53, %v521_v50 }
  0x25   :  { %v351_v61 = vsel %vm4_vm0, %v1825_v60, %v1824_v59  ;;  %v1816_v62 = vld [vmem:[%s4126_s0 + $0xc3] ss:$8 sm:$0xf]   ;;  %v499_v57 = vsel %vm4_vm0, %v1865_v55, %v1864_v54  ;;  %v1867_v59 = vld [vmem:[%s4126_s0 + $0x46] ss:$8 sm:$0xf0]  }
  0x26   :  { %v1817_v63 = vld [vmem:[%s4126_s0 + $0xc3] ss:$8 sm:$0xf0]   ;;  %v353_v0 = vsel %vm155_vm1, %v351_v61, %v345_v58  ;;  %v1866_v58 = vld [vmem:[%s4126_s0 + $0x46] ss:$8 sm:$0xf]  }
  0x27   :  { %v323_v1 = vsel %vm4_vm0, %v1817_v63, %v1816_v62  ;;  %v1818_v2 = vld [vmem:[%s4126_s0 + $0x83] ss:$8 sm:$0xf]   ;;  %354 = vrot.lane.b32.xlu1 %v353_v0, %s2205_s22  ;;  %v505_v60 = vsel %vm4_vm0, %v1867_v59, %v1866_v58  ;;  %v1882_v61 = vld [vmem:[%s4126_s0 + $0x386] ss:$8 sm:$0xf]  }
  0x28   :  { %v1819_v3 = vld [vmem:[%s4126_s0 + $0x83] ss:$8 sm:$0xf0]   ;;  %v1883_v62 = vld [vmem:[%s4126_s0 + $0x386] ss:$8 sm:$0xf0]   ;;  %v507_v63 = vsel %vm506_vm2, %v505_v60, %v499_v57 }
  0x29   :  { %v329_v4 = vsel %vm4_vm0, %v1819_v3, %v1818_v2  ;;  %v1834_v5 = vld [vmem:[%s4126_s0 + $0x3c3] ss:$8 sm:$0xf]   ;;  %v565_v0 = vsel %vm4_vm0, %v1883_v62, %v1882_v61  ;;  %v1885_v2 = vld [vmem:[%s4126_s0 + $0x346] ss:$8 sm:$0xf0]  }
  0x2a   :  { %v1835_v6 = vld [vmem:[%s4126_s0 + $0x3c3] ss:$8 sm:$0xf0]   ;;  %v331_v7 = vsel %vm155_vm1, %v329_v4, %v323_v1  ;;  %v1884_v1 = vld [vmem:[%s4126_s0 + $0x346] ss:$8 sm:$0xf]  }
  0x2b   :  { %v389_v8 = vsel %vm4_vm0, %v1835_v6, %v1834_v5  ;;  %v1836_v9 = vld [vmem:[%s4126_s0 + $0x383] ss:$8 sm:$0xf]   ;;  %332 = vrot.lane.b32.xlu0 %v331_v7, %s2205_s22  ;;  %v571_v3 = vsel %vm4_vm0, %v1885_v2, %v1884_v1  ;;  %v1876_v4 = vld [vmem:[%s4126_s0 + $0x286] ss:$8 sm:$0xf]  }
  0x2c   :  { %v1837_v10 = vld [vmem:[%s4126_s0 + $0x383] ss:$8 sm:$0xf0]   ;;  %v1877_v5 = vld [vmem:[%s4126_s0 + $0x286] ss:$8 sm:$0xf0]   ;;  %v573_v6 = vsel %vm506_vm2, %v571_v3, %v565_v0 }
  0x2d   :  { %v395_v11 = vsel %vm4_vm0, %v1837_v10, %v1836_v9  ;;  %v1828_v12 = vld [vmem:[%s4126_s0 + $0x2c3] ss:$8 sm:$0xf]   ;;  %v543_v7 = vsel %vm4_vm0, %v1877_v5, %v1876_v4  ;;  %v1879_v9 = vld [vmem:[%s4126_s0 + $0x246] ss:$8 sm:$0xf0]  }
  0x2e   :  { %v1829_v13 = vld [vmem:[%s4126_s0 + $0x2c3] ss:$8 sm:$0xf0]   ;;  %v397_v14 = vsel %vm155_vm1, %v395_v11, %v389_v8  ;;  %v1878_v8 = vld [vmem:[%s4126_s0 + $0x246] ss:$8 sm:$0xf]  }
  0x2f   :  { %v367_v15 = vsel %vm4_vm0, %v1829_v13, %v1828_v12  ;;  %v1830_v16 = vld [vmem:[%s4126_s0 + $0x283] ss:$8 sm:$0xf]   ;;  %398 = vrot.lane.b32.xlu1 %v397_v14, %s2205_s22  ;;  %v549_v10 = vsel %vm4_vm0, %v1879_v9, %v1878_v8  ;;  %v1894_v11 = vld [vmem:[%s4126_s0 + $0x146] ss:$8 sm:$0xf]  }
  0x30   :  { %v1831_v17 = vld [vmem:[%s4126_s0 + $0x283] ss:$8 sm:$0xf0]   ;;  %v1895_v12 = vld [vmem:[%s4126_s0 + $0x146] ss:$8 sm:$0xf0]   ;;  %v551_v13 = vsel %vm506_vm2, %v549_v10, %v543_v7 }
  0x31   :  { %v373_v18 = vsel %vm4_vm0, %v1831_v17, %v1830_v16  ;;  %v1846_v19 = vld [vmem:[%s4126_s0 + $0x183] ss:$8 sm:$0xf]   ;;  %v609_v14 = vsel %vm4_vm0, %v1895_v12, %v1894_v11  ;;  %v1897_v16 = vld [vmem:[%s4126_s0 + $0x106] ss:$8 sm:$0xf0]  }
  0x32   :  { %v1847_v20 = vld [vmem:[%s4126_s0 + $0x183] ss:$8 sm:$0xf0]   ;;  %v375_v21 = vsel %vm155_vm1, %v373_v18, %v367_v15  ;;  %v1896_v15 = vld [vmem:[%s4126_s0 + $0x106] ss:$8 sm:$0xf]  }
  0x33   :  { %v433_v22 = vsel %vm4_vm0, %v1847_v20, %v1846_v19  ;;  %v1848_v23 = vld [vmem:[%s4126_s0 + $0x143] ss:$8 sm:$0xf]   ;;  %376 = vrot.lane.b32.xlu0 %v375_v21, %s2205_s22  ;;  %v615_v17 = vsel %vm4_vm0, %v1897_v16, %v1896_v15  ;;  %v1888_v18 = vld [vmem:[%s4126_s0 + $0x46] ss:$8 sm:$0xf]  }
  0x34   :  { %v1849_v24 = vld [vmem:[%s4126_s0 + $0x143] ss:$8 sm:$0xf0]   ;;  %v1889_v19 = vld [vmem:[%s4126_s0 + $0x46] ss:$8 sm:$0xf0]   ;;  %v617_v20 = vsel %vm506_vm2, %v615_v17, %v609_v14 }
  0x35   :  { %v439_v25 = vsel %vm4_vm0, %v1849_v24, %v1848_v23  ;;  %v1840_v26 = vld [vmem:[%s4126_s0 + $0x83] ss:$8 sm:$0xf]   ;;  %v587_v21 = vsel %vm4_vm0, %v1889_v19, %v1888_v18  ;;  %v1891_v23 = vld [vmem:[%s4126_s0 + $0x6] ss:$8 sm:$0xf0]  }
  0x36   :  { %v1841_v27 = vld [vmem:[%s4126_s0 + $0x83] ss:$8 sm:$0xf0]   ;;  %v441_v28 = vsel %vm155_vm1, %v439_v25, %v433_v22  ;;  %v1890_v22 = vld [vmem:[%s4126_s0 + $0x6] ss:$8 sm:$0xf]  }
  0x37   :  { %v411_v29 = vsel %vm4_vm0, %v1841_v27, %v1840_v26  ;;  %v1842_v30 = vld [vmem:[%s4126_s0 + $0x43] ss:$8 sm:$0xf]   ;;  %442 = vrot.lane.b32.xlu1 %v441_v28, %s2205_s22  ;;  %v593_v24 = vsel %vm4_vm0, %v1891_v23, %v1890_v22  ;;  %v1906_v25 = vld [vmem:[%s4126_s0 + $0x346] ss:$8 sm:$0xf]  }
  0x38   :  { %v1843_v31 = vld [vmem:[%s4126_s0 + $0x43] ss:$8 sm:$0xf0]   ;;  %v1907_v26 = vld [vmem:[%s4126_s0 + $0x346] ss:$8 sm:$0xf0]   ;;  %v595_v27 = vsel %vm506_vm2, %v593_v24, %v587_v21 }
  0x39   :  { %v417_v32 = vsel %vm4_vm0, %v1843_v31, %v1842_v30  ;;  %v1858_v33 = vld [vmem:[%s4126_s0 + $0x383] ss:$8 sm:$0xf]   ;;  %v653_v28 = vsel %vm4_vm0, %v1907_v26, %v1906_v25  ;;  %v1909_v30 = vld [vmem:[%s4126_s0 + $0x306] ss:$8 sm:$0xf0]  }
  0x3a   :  { %v1859_v34 = vld [vmem:[%s4126_s0 + $0x383] ss:$8 sm:$0xf0]   ;;  %v419_v35 = vsel %vm155_vm1, %v417_v32, %v411_v29  ;;  %v1908_v29 = vld [vmem:[%s4126_s0 + $0x306] ss:$8 sm:$0xf]  }
  0x3b   :  { %v477_v36 = vsel %vm4_vm0, %v1859_v34, %v1858_v33  ;;  %v1860_v37 = vld [vmem:[%s4126_s0 + $0x343] ss:$8 sm:$0xf]   ;;  %420 = vrot.lane.b32.xlu0 %v419_v35, %s2205_s22  ;;  %v659_v31 = vsel %vm4_vm0, %v1909_v30, %v1908_v29  ;;  %v1900_v32 = vld [vmem:[%s4126_s0 + $0x246] ss:$8 sm:$0xf]  }
  0x3c   :  { %v1861_v38 = vld [vmem:[%s4126_s0 + $0x343] ss:$8 sm:$0xf0]   ;;  %v1901_v33 = vld [vmem:[%s4126_s0 + $0x246] ss:$8 sm:$0xf0]   ;;  %v661_v34 = vsel %vm506_vm2, %v659_v31, %v653_v28 }
  0x3d   :  { %v483_v39 = vsel %vm4_vm0, %v1861_v38, %v1860_v37  ;;  %v1852_v40 = vld [vmem:[%s4126_s0 + $0x283] ss:$8 sm:$0xf]   ;;  %v631_v35 = vsel %vm4_vm0, %v1901_v33, %v1900_v32  ;;  %v1903_v37 = vld [vmem:[%s4126_s0 + $0x206] ss:$8 sm:$0xf0]  }
  0x3e   :  { %v1853_v41 = vld [vmem:[%s4126_s0 + $0x283] ss:$8 sm:$0xf0]   ;;  %v485_v42 = vsel %vm155_vm1, %v483_v39, %v477_v36  ;;  %v1902_v36 = vld [vmem:[%s4126_s0 + $0x206] ss:$8 sm:$0xf]  }
  0x3f   :  { %v455_v43 = vsel %vm4_vm0, %v1853_v41, %v1852_v40  ;;  %v1854_v44 = vld [vmem:[%s4126_s0 + $0x243] ss:$8 sm:$0xf]   ;;  %486 = vrot.lane.b32.xlu1 %v485_v42, %s2205_s22  ;;  %v637_v38 = vsel %vm4_vm0, %v1903_v37, %v1902_v36  ;;  %v1918_v39 = vld [vmem:[%s4126_s0 + $0x106] ss:$8 sm:$0xf]  }
  0x40   :  { %v1855_v45 = vld [vmem:[%s4126_s0 + $0x243] ss:$8 sm:$0xf0]   ;;  %v1919_v40 = vld [vmem:[%s4126_s0 + $0x106] ss:$8 sm:$0xf0]   ;;  %v639_v41 = vsel %vm506_vm2, %v637_v38, %v631_v35 }
  0x41   :  { %v461_v46 = vsel %vm4_vm0, %v1855_v45, %v1854_v44  ;;  %v697_v42 = vsel %vm4_vm0, %v1919_v40, %v1918_v39  ;;  %v1921_v44 = vld [vmem:[%s4126_s0 + $0x1c6] ss:$8 sm:$0xf0]   ;;  %v1962_v31 = vld [vmem:[%s4126_s0 + $0x102] ss:$8 sm:$0xf]  }
  0x42   :  { %v463_v49 = vsel %vm155_vm1, %v461_v46, %v455_v43  ;;  %v1920_v43 = vld [vmem:[%s4126_s0 + $0x1c6] ss:$8 sm:$0xf]   ;;  %v1963_v33 = vld [vmem:[%s4126_s0 + $0x102] ss:$8 sm:$0xf0]  }
  0x43   :  { %464 = vrot.lane.b32.xlu0 %v463_v49, %s2205_s22  ;;  %530 = vrot.lane.b32.xlu1 %v529_v56, %s2206_s9  ;;  %v703_v45 = vsel %vm4_vm0, %v1921_v44, %v1920_v43  ;;  %v1912_v46 = vld [vmem:[%s4126_s0 + $0x6] ss:$8 sm:$0xf]   ;;  %v861_v35 = vsel %vm4_vm0, %v1963_v33, %v1962_v31  ;;  %v1961_v36 = vld [vmem:[%s4126_s0 + $0x2] ss:$8 sm:$0xf0]  }
  0x44   :  { %v705_v48 = vsel %vm506_vm2, %v703_v45, %v697_v42  ;;  %v675_v49 = vsel %vm4_vm0, %v1913_v47, %v1912_v46  ;;  %v1914_v50 = vld [vmem:[%s4126_s0 + $0xc6] ss:$8 sm:$0xf]   ;;  %v1968_v37 = vld [vmem:[%s4126_s0 + $0x302] ss:$8 sm:$0xf]  }
  0x45   :  { %v1915_v51 = vld [vmem:[%s4126_s0 + $0xc6] ss:$8 sm:$0xf0]   ;;  %v1969_v39 = vld [vmem:[%s4126_s0 + $0x302] ss:$8 sm:$0xf0]  }
  0x46   :  { %v681_v52 = vsel %vm4_vm0, %v1915_v51, %v1914_v50  ;;  %v1930_v53 = vld [vmem:[%s4126_s0 + $0x306] ss:$8 sm:$0xf]   ;;  %v1965_v40 = vld [vmem:[%s4126_s0 + $0x202] ss:$8 sm:$0xf]   ;;  %v883_v42 = vsel %vm4_vm0, %v1969_v39, %v1968_v37 }
  0x47   :  { %508 = vrot.lane.b32.xlu0 %v507_v63, %s2206_s9  ;;  %574 = vrot.lane.b32.xlu1 %v573_v6, %s2206_s9  ;;  %v1931_v54 = vld [vmem:[%s4126_s0 + $0x306] ss:$8 sm:$0xf0]   ;;  %v683_v55 = vsel %vm506_vm2, %v681_v52, %v675_v49  ;;  %v1974_v43 = vld [vmem:[%s4126_s0 + $0x1c2] ss:$8 sm:$0xf]  }
  0x48   :  { %v741_v56 = vsel %vm4_vm0, %v1931_v54, %v1930_v53  ;;  %v1932_v57 = vld [vmem:[%s4126_s0 + $0x3c6] ss:$8 sm:$0xf]   ;;  %v1975_v44 = vld [vmem:[%s4126_s0 + $0x1c2] ss:$8 sm:$0xf0]  }
  0x49   :  { %v1933_v58 = vld [vmem:[%s4126_s0 + $0x3c6] ss:$8 sm:$0xf0]   ;;  %v1971_v46 = vld [vmem:[%s4126_s0 + $0xc2] ss:$8 sm:$0xf]  }
  0x4a   :  { %v747_v59 = vsel %vm4_vm0, %v1933_v58, %v1932_v57  ;;  %v1924_v60 = vld [vmem:[%s4126_s0 + $0x206] ss:$8 sm:$0xf]   ;;  %v1972_v47 = vld [vmem:[%s4126_s0 + $0xc2] ss:$8 sm:$0xf0]  }
  0x4b   :  { %552 = vrot.lane.b32.xlu0 %v551_v13, %s2206_s9  ;;  %618 = vrot.lane.b32.xlu1 %v617_v20, %s2206_s9  ;;  %v1925_v61 = vld [vmem:[%s4126_s0 + $0x206] ss:$8 sm:$0xf0]   ;;  %v749_v62 = vsel %vm506_vm2, %v747_v59, %v741_v56  ;;  %v1980_v49 = vld [vmem:[%s4126_s0 + $0x3c2] ss:$8 sm:$0xf]   ;;  %v894_v51 = vsel %vm4_vm0, %v1972_v47, %v1971_v46 }
  0x4c   :  { %v719_v63 = vsel %vm4_vm0, %v1925_v61, %v1924_v60  ;;  %v1926_v0 = vld [vmem:[%s4126_s0 + $0x2c6] ss:$8 sm:$0xf]   ;;  %v1981_v50 = vld [vmem:[%s4126_s0 + $0x3c2] ss:$8 sm:$0xf0]  }
  0x4d   :  { %v1927_v1 = vld [vmem:[%s4126_s0 + $0x2c6] ss:$8 sm:$0xf0]   ;;  %v1977_v52 = vld [vmem:[%s4126_s0 + $0x2c2] ss:$8 sm:$0xf]   ;;  %v927_v54 = vsel %vm4_vm0, %v1981_v50, %v1980_v49 }
  0x4e   :  { %v725_v2 = vsel %vm4_vm0, %v1927_v1, %v1926_v0  ;;  %v1942_v3 = vld [vmem:[%s4126_s0 + $0x1c6] ss:$8 sm:$0xf]   ;;  %v1978_v53 = vld [vmem:[%s4126_s0 + $0x2c2] ss:$8 sm:$0xf0]  }
  0x4f   :  { %596 = vrot.lane.b32.xlu0 %v595_v27, %s2206_s9  ;;  %662 = vrot.lane.b32.xlu1 %v661_v34, %s2206_s9  ;;  %v1943_v4 = vld [vmem:[%s4126_s0 + $0x1c6] ss:$8 sm:$0xf0]   ;;  %v727_v5 = vsel %vm506_vm2, %v725_v2, %v719_v63  ;;  %v1960_v34 = vld [vmem:[%s4126_s0 + $0x2] ss:$8 sm:$0xf]   ;;  %v916_v57 = vsel %vm4_vm0, %v1978_v53, %v1977_v52 }
  0x50   :  { %v785_v6 = vsel %vm4_vm0, %v1943_v4, %v1942_v3  ;;  %v1944_v7 = vld [vmem:[%s4126_s0 + $0x186] ss:$8 sm:$0xf]   ;;  %v851_v38 = vsel %vm4_vm0, %v1961_v36, %v1960_v34  ;;  %v1987_v56 = vld [vmem:[%s4126_s0 + $0x182] ss:$8 sm:$0xf0]  }
  0x51   :  { %v1945_v8 = vld [vmem:[%s4126_s0 + $0x186] ss:$8 sm:$0xf0]   ;;  %v1983_v58 = vld [vmem:[%s4126_s0 + $0x82] ss:$8 sm:$0xf]  }
  0x52   :  { %v791_v9 = vsel %vm4_vm0, %v1945_v8, %v1944_v7  ;;  %v1936_v10 = vld [vmem:[%s4126_s0 + $0xc6] ss:$8 sm:$0xf]   ;;  %v1984_v59 = vld [vmem:[%s4126_s0 + $0x82] ss:$8 sm:$0xf0]  }
  0x53   :  { %640 = vrot.lane.b32.xlu0 %v639_v41, %s2206_s9  ;;  %706 = vrot.lane.b32.xlu1 %v705_v48, %s2206_s9  ;;  %v1937_v11 = vld [vmem:[%s4126_s0 + $0xc6] ss:$8 sm:$0xf0]   ;;  %v793_v12 = vsel %vm506_vm2, %v791_v9, %v785_v6  ;;  %v1966_v41 = vld [vmem:[%s4126_s0 + $0x202] ss:$8 sm:$0xf0]   ;;  %v905_v48 = vsel %vm4_vm0, %v1975_v44, %v1974_v43  ;;  %v938_v63 = vsel %vm4_vm0, %v1984_v59, %v1983_v58 }
  0x54   :  { %v763_v13 = vsel %vm4_vm0, %v1937_v11, %v1936_v10  ;;  %v1938_v14 = vld [vmem:[%s4126_s0 + $0x86] ss:$8 sm:$0xf]   ;;  %v872_v45 = vsel %vm4_vm0, %v1966_v41, %v1965_v40  ;;  %v1992_v61 = vld [vmem:[%s4126_s0 + $0x382] ss:$8 sm:$0xf]  }
  0x55   :  { %v1939_v15 = vld [vmem:[%s4126_s0 + $0x86] ss:$8 sm:$0xf0]   ;;  %v1989_v0 = vld [vmem:[%s4126_s0 + $0x282] ss:$8 sm:$0xf]  }
  0x56   :  { %v769_v16 = vsel %vm4_vm0, %v1939_v15, %v1938_v14  ;;  %v1954_v17 = vld [vmem:[%s4126_s0 + $0x3c6] ss:$8 sm:$0xf]   ;;  %v1990_v1 = vld [vmem:[%s4126_s0 + $0x282] ss:$8 sm:$0xf0]  }
  0x57   :  { %684 = vrot.lane.b32.xlu0 %v683_v55, %s2206_s9  ;;  %750 = vrot.lane.b32.xlu1 %v749_v62, %s2206_s9  ;;  %v1955_v18 = vld [vmem:[%s4126_s0 + $0x3c6] ss:$8 sm:$0xf0]   ;;  %v771_v19 = vsel %vm506_vm2, %v769_v16, %v763_v13  ;;  %v1986_v55 = vld [vmem:[%s4126_s0 + $0x182] ss:$8 sm:$0xf]  }
  0x58   :  { %v829_v20 = vsel %vm4_vm0, %v1955_v18, %v1954_v17  ;;  %v1956_v21 = vld [vmem:[%s4126_s0 + $0x386] ss:$8 sm:$0xf]   ;;  %v949_v60 = vsel %vm4_vm0, %v1987_v56, %v1986_v55  ;;  %v1993_v62 = vld [vmem:[%s4126_s0 + $0x382] ss:$8 sm:$0xf0]  }
  0x59   :  { %v1957_v22 = vld [vmem:[%s4126_s0 + $0x386] ss:$8 sm:$0xf0]   ;;  %v971_v2 = vsel %vm4_vm0, %v1993_v62, %v1992_v61  ;;  %v1998_v3 = vld [vmem:[%s4126_s0 + $0x142] ss:$8 sm:$0xf]  }
  0x5a   :  { %v835_v23 = vsel %vm4_vm0, %v1957_v22, %v1956_v21  ;;  %v1948_v24 = vld [vmem:[%s4126_s0 + $0x2c6] ss:$8 sm:$0xf]   ;;  %v1999_v4 = vld [vmem:[%s4126_s0 + $0x142] ss:$8 sm:$0xf0]  }
  0x5b   :  { %728 = vrot.lane.b32.xlu0 %v727_v5, %s2206_s9  ;;  %794 = vrot.lane.b32.xlu1 %v793_v12, %s2206_s9  ;;  %v1949_v25 = vld [vmem:[%s4126_s0 + $0x2c6] ss:$8 sm:$0xf0]   ;;  %v837_v26 = vsel %vm506_vm2, %v835_v23, %v829_v20  ;;  %v960_v5 = vsel %vm4_vm0, %v1990_v1, %v1989_v0  ;;  %v1995_v6 = vld [vmem:[%s4126_s0 + $0x42] ss:$8 sm:$0xf]   ;;  %v993_v8 = vsel %vm4_vm0, %v1999_v4, %v1998_v3 }
  0x5c   :  { %v807_v27 = vsel %vm4_vm0, %v1949_v25, %v1948_v24  ;;  %v1950_v28 = vld [vmem:[%s4126_s0 + $0x286] ss:$8 sm:$0xf]   ;;  %v1996_v7 = vld [vmem:[%s4126_s0 + $0x42] ss:$8 sm:$0xf0]  }
  0x5d   :  { %v1951_v29 = vld [vmem:[%s4126_s0 + $0x286] ss:$8 sm:$0xf0]   ;;  %v2004_v9 = vld [vmem:[%s4126_s0 + $0x342] ss:$8 sm:$0xf]   ;;  %v982_v13 = vsel %vm4_vm0, %v1996_v7, %v1995_v6 }
  0x5e   :  { %v813_v30 = vsel %vm4_vm0, %v1951_v29, %v1950_v28  ;;  %v2005_v10 = vld [vmem:[%s4126_s0 + $0x342] ss:$8 sm:$0xf0]   ;;  %v1745_v14 = vld [vmem:[%s4126_s0 + $0x200] ss:$8 sm:$0xf]  }
  0x5f   :  { %772 = vrot.lane.b32.xlu0 %v771_v19, %s2206_s9  ;;  %838 = vrot.lane.b32.xlu1 %v837_v26, %s2206_s9  ;;  %v815_v32 = vsel %vm506_vm2, %v813_v30, %v807_v27  ;;  %v2001_v11 = vld [vmem:[%s4126_s0 + $0x242] ss:$8 sm:$0xf]   ;;  %v1746_v15 = vld [vmem:[%s4126_s0 + $0x200] ss:$8 sm:$0xf0]   ;;  %v1015_v19 = vsel %vm4_vm0, %v2005_v10, %v2004_v9 }
  0x60   :  { %v2002_v12 = vld [vmem:[%s4126_s0 + $0x242] ss:$8 sm:$0xf0]   ;;  %v76_v16 = vsel %vm4_vm0, %v1746_v15, %v1745_v14  ;;  %v2_v17 = vld [vmem:[%s4126_s0] ss:$8 sm:$0xf]  }
  0x61   :  { %v3_v18 = vld [vmem:[%s4126_s0] ss:$8 sm:$0xf0]   ;;  %v2010_v20 = vld [vmem:[%s4126_s0 + $0x145] ss:$8 sm:$0xf]   ;;  %v1004_v25 = vsel %vm4_vm0, %v2002_v12, %v2001_v11 }
  0x62   :  { %v2011_v21 = vld [vmem:[%s4126_s0 + $0x145] ss:$8 sm:$0xf0]   ;;  %1747 = vst.msk [vmem:[%s4127_s1 + $0xc0] sm:$0xff] %vm6_vm3, %v76_v16   ;;  %v5_v22 = vsel %vm4_vm0, %v3_v18, %v2_v17 }
  0x63   :  { %816 = vrot.lane.b32.xlu0 %v815_v32, %s2206_s9  ;;  %862 = vrot.lane.b32.xlu1 %v861_v35, %s2207_s21  ;;  %v2007_v23 = vld [vmem:[%s4126_s0 + $0x45] ss:$8 sm:$0xf]   ;;  %7 = vst.msk [vmem:[%s4127_s1] sm:$0xff] %vm6_vm3, %v5_v22   ;;  %v1037_v31 = vsel %vm4_vm0, %v2011_v21, %v2010_v20 }
  0x64   :  { %v2008_v24 = vld [vmem:[%s4126_s0 + $0x45] ss:$8 sm:$0xf0]   ;;  %v1757_v26 = vld [vmem:[%s4126_s0 + $0x300] ss:$8 sm:$0xf]  }
  0x65   :  { %v1758_v27 = vld [vmem:[%s4126_s0 + $0x300] ss:$8 sm:$0xf0]   ;;  %v2016_v32 = vld [vmem:[%s4126_s0 + $0x345] ss:$8 sm:$0xf]   ;;  %v1026_v37 = vsel %vm4_vm0, %v2008_v24, %v2007_v23 }
  0x66   :  { %v112_v28 = vsel %vm4_vm0, %v1758_v27, %v1757_v26  ;;  %v1733_v29 = vld [vmem:[%s4126_s0 + $0x100] ss:$8 sm:$0xf]   ;;  %v2017_v33 = vld [vmem:[%s4126_s0 + $0x345] ss:$8 sm:$0xf0]  }
  0x67   :  { %852 = vrot.lane.b32.xlu0 %v851_v38, %s2207_s21  ;;  %884 = vrot.lane.b32.xlu1 %v883_v42, %s2207_s21  ;;  %v1734_v30 = vld [vmem:[%s4126_s0 + $0x100] ss:$8 sm:$0xf0]   ;;  %1759 = vst.msk [vmem:[%s4127_s1 + $0x120] sm:$0xff] %vm6_vm3, %v112_v28   ;;  %v1059_v43 = vsel %vm4_vm0, %v2017_v33, %v2016_v32 }
  0x68   :  { %v40_v34 = vsel %vm4_vm0, %v1734_v30, %v1733_v29  ;;  %v2013_v35 = vld [vmem:[%s4126_s0 + $0x245] ss:$8 sm:$0xf]   ;;  %v1742_v38 = vld [vmem:[%s4126_s0 + $0x1c0] ss:$8 sm:$0xf]  }
  0x69   :  { %v2014_v36 = vld [vmem:[%s4126_s0 + $0x245] ss:$8 sm:$0xf0]   ;;  %1735 = vst.msk [vmem:[%s4127_s1 + $0x60] sm:$0xff] %vm6_vm3, %v40_v34  }
  0x6a   :  { %v1743_v39 = vld [vmem:[%s4126_s0 + $0x1c0] ss:$8 sm:$0xf0]   ;;  %v2022_v44 = vld [vmem:[%s4126_s0 + $0x105] ss:$8 sm:$0xf]   ;;  %v1048_v49 = vsel %vm4_vm0, %v2014_v36, %v2013_v35 }
  0x6b   :  { %873 = vrot.lane.b32.xlu0 %v872_v45, %s2207_s21  ;;  %906 = vrot.lane.b32.xlu1 %v905_v48, %s2207_s21  ;;  %v67_v40 = vsel %vm4_vm0, %v1743_v39, %v1742_v38  ;;  %v1730_v41 = vld [vmem:[%s4126_s0 + $0xc0] ss:$8 sm:$0xf]   ;;  %v2023_v45 = vld [vmem:[%s4126_s0 + $0x105] ss:$8 sm:$0xf0]  }
  0x6c   :  { %v1731_v42 = vld [vmem:[%s4126_s0 + $0xc0] ss:$8 sm:$0xf0]   ;;  %1744 = vst.msk [vmem:[%s4127_s1 + $0xa8] sm:$0xff] %vm6_vm3, %v67_v40   ;;  %v1081_v55 = vsel %vm4_vm0, %v2023_v45, %v2022_v44 }
  0x6d   :  { %v31_v46 = vsel %vm4_vm0, %v1731_v42, %v1730_v41  ;;  %v2019_v47 = vld [vmem:[%s4126_s0 + $0x5] ss:$8 sm:$0xf]   ;;  %v1766_v50 = vld [vmem:[%s4126_s0 + $0x3c0] ss:$8 sm:$0xf]  }
  0x6e   :  { %v2020_v48 = vld [vmem:[%s4126_s0 + $0x5] ss:$8 sm:$0xf0]   ;;  %1732 = vst.msk [vmem:[%s4127_s1 + $0x48] sm:$0xff] %vm6_vm3, %v31_v46  }
  0x6f   :  { %895 = vrot.lane.b32.xlu0 %v894_v51, %s2207_s21  ;;  %928 = vrot.lane.b32.xlu1 %v927_v54, %s2207_s21  ;;  %v1767_v51 = vld [vmem:[%s4126_s0 + $0x3c0] ss:$8 sm:$0xf0]   ;;  %v2028_v56 = vld [vmem:[%s4126_s0 + $0x305] ss:$8 sm:$0xf]   ;;  %v1070_v61 = vsel %vm4_vm0, %v2020_v48, %v2019_v47 }
  0x70   :  { %v139_v52 = vsel %vm4_vm0, %v1767_v51, %v1766_v50  ;;  %v1754_v53 = vld [vmem:[%s4126_s0 + $0x2c0] ss:$8 sm:$0xf]   ;;  %v2025_v59 = vld [vmem:[%s4126_s0 + $0x205] ss:$8 sm:$0xf]  }
  0x71   :  { %v1755_v54 = vld [vmem:[%s4126_s0 + $0x2c0] ss:$8 sm:$0xf0]   ;;  %1768 = vst.msk [vmem:[%s4127_s1 + $0x168] sm:$0xff] %vm6_vm3, %v139_v52  }
  0x72   :  { %v103_v58 = vsel %vm4_vm0, %v1755_v54, %v1754_v53  ;;  %v1739_v62 = vld [vmem:[%s4126_s0 + $0x180] ss:$8 sm:$0xf]   ;;  %v2034_v4 = vld [vmem:[%s4126_s0 + $0x1c5] ss:$8 sm:$0xf]  }
  0x73   :  { %917 = vrot.lane.b32.xlu0 %v916_v57, %s2207_s21  ;;  %950 = vrot.lane.b32.xlu1 %v949_v60, %s2207_s21  ;;  %v2029_v57 = vld [vmem:[%s4126_s0 + $0x305] ss:$8 sm:$0xf0]   ;;  %1756 = vst.msk [vmem:[%s4127_s1 + $0x108] sm:$0xff] %vm6_vm3, %v103_v58  }
  0x74   :  { %v2026_v60 = vld [vmem:[%s4126_s0 + $0x205] ss:$8 sm:$0xf0]   ;;  %v1727_v1 = vld [vmem:[%s4126_s0 + $0x80] ss:$8 sm:$0xf]   ;;  %v1103_v3 = vsel %vm4_vm0, %v2029_v57, %v2028_v56 }
  0x75   :  { %v2031_v7 = vld [vmem:[%s4126_s0 + $0xc5] ss:$8 sm:$0xf]   ;;  %v1092_v9 = vsel %vm4_vm0, %v2026_v60, %v2025_v59  ;;  %v1763_v10 = vld [vmem:[%s4126_s0 + $0x380] ss:$8 sm:$0xf]  }
  0x76   :  { %v1764_v11 = vld [vmem:[%s4126_s0 + $0x380] ss:$8 sm:$0xf0]   ;;  %v2040_v16 = vld [vmem:[%s4126_s0 + $0x3c5] ss:$8 sm:$0xf]  }
  0x77   :  { %939 = vrot.lane.b32.xlu0 %v938_v63, %s2207_s21  ;;  %972 = vrot.lane.b32.xlu1 %v971_v2, %s2207_s21  ;;  %v1740_v63 = vld [vmem:[%s4126_s0 + $0x180] ss:$8 sm:$0xf0]   ;;  %v130_v12 = vsel %vm4_vm0, %v1764_v11, %v1763_v10  ;;  %v2041_v17 = vld [vmem:[%s4126_s0 + $0x3c5] ss:$8 sm:$0xf0]  }
  0x78   :  { %v58_v0 = vsel %vm4_vm0, %v1740_v63, %v1739_v62  ;;  %v1728_v2 = vld [vmem:[%s4126_s0 + $0x80] ss:$8 sm:$0xf0]   ;;  %1765 = vst.msk [vmem:[%s4127_s1 + $0x150] sm:$0xff] %vm6_vm3, %v130_v12   ;;  %v1147_v27 = vsel %vm4_vm0, %v2041_v17, %v2040_v16 }
  0x79   :  { %1741 = vst.msk [vmem:[%s4127_s1 + $0x90] sm:$0xff] %vm6_vm3, %v58_v0   ;;  %v22_v6 = vsel %vm4_vm0, %v1728_v2, %v1727_v1  ;;  %v1752_v14 = vld [vmem:[%s4126_s0 + $0x280] ss:$8 sm:$0xf0]  }
  0x7a   :  { %1729 = vst.msk [vmem:[%s4127_s1 + $0x30] sm:$0xff] %vm6_vm3, %v22_v6   ;;  %v2038_v20 = vld [vmem:[%s4126_s0 + $0x2c5] ss:$8 sm:$0xf0]  }
  0x7b   :  { %961 = vrot.lane.b32.xlu0 %v960_v5, %s2207_s21  ;;  %994 = vrot.lane.b32.xlu1 %v993_v8, %s2207_s21  ;;  %v2035_v5 = vld [vmem:[%s4126_s0 + $0x1c5] ss:$8 sm:$0xf0]   ;;  %v1736_v22 = vld [vmem:[%s4126_s0 + $0x140] ss:$8 sm:$0xf]  }
  0x7c   :  { %v2032_v8 = vld [vmem:[%s4126_s0 + $0xc5] ss:$8 sm:$0xf0]   ;;  %v1125_v15 = vsel %vm4_vm0, %v2035_v5, %v2034_v4  ;;  %v1737_v23 = vld [vmem:[%s4126_s0 + $0x140] ss:$8 sm:$0xf0]  }
  0x7d   :  { %v1114_v21 = vsel %vm4_vm0, %v2032_v8, %v2031_v7  ;;  %v49_v24 = vsel %vm4_vm0, %v1737_v23, %v1736_v22  ;;  %v1725_v26 = vld [vmem:[%s4126_s0 + $0x40] ss:$8 sm:$0xf0]   ;;  %v2046_v28 = vld [vmem:[%s4126_s0 + $0x185] ss:$8 sm:$0xf]  }
  0x7e   :  { %v2047_v29 = vld [vmem:[%s4126_s0 + $0x185] ss:$8 sm:$0xf0]   ;;  %1738 = vst.msk [vmem:[%s4127_s1 + $0x78] sm:$0xff] %vm6_vm3, %v49_v24  }
  0x7f   :  { %983 = vrot.lane.b32.xlu0 %v982_v13, %s2207_s21  ;;  %1016 = vrot.lane.b32.xlu1 %v1015_v19, %s2207_s21  ;;  %v1751_v13 = vld [vmem:[%s4126_s0 + $0x280] ss:$8 sm:$0xf]   ;;  %v2037_v19 = vld [vmem:[%s4126_s0 + $0x2c5] ss:$8 sm:$0xf]   ;;  %v1169_v41 = vsel %vm4_vm0, %v2047_v29, %v2046_v28 }
  0x80   :  { %v94_v18 = vsel %vm4_vm0, %v1752_v14, %v1751_v13  ;;  %v2043_v32 = vld [vmem:[%s4126_s0 + $0x85] ss:$8 sm:$0xf]   ;;  %v1136_v34 = vsel %vm4_vm0, %v2038_v20, %v2037_v19  ;;  %v1760_v35 = vld [vmem:[%s4126_s0 + $0x340] ss:$8 sm:$0xf]  }
  0x81   :  { %1753 = vst.msk [vmem:[%s4127_s1 + $0xf0] sm:$0xff] %vm6_vm3, %v94_v18   ;;  %v2044_v33 = vld [vmem:[%s4126_s0 + $0x85] ss:$8 sm:$0xf0]  }
  0x82   :  { %v1761_v36 = vld [vmem:[%s4126_s0 + $0x340] ss:$8 sm:$0xf0]   ;;  %v2052_v44 = vld [vmem:[%s4126_s0 + $0x385] ss:$8 sm:$0xf]   ;;  %v1158_v46 = vsel %vm4_vm0, %v2044_v33, %v2043_v32 }
  0x83   :  { %1005 = vrot.lane.b32.xlu0 %v1004_v25, %s2207_s21  ;;  %1038 = vrot.lane.b32.xlu1 %v1037_v31, %s2208_s4  ;;  %v1724_v25 = vld [vmem:[%s4126_s0 + $0x40] ss:$8 sm:$0xf]   ;;  %v201_v31 = vpop.permute.xlu1 %200   ;;  %v121_v38 = vsel %vm4_vm0, %v1761_v36, %v1760_v35  ;;  %v2053_v45 = vld [vmem:[%s4126_s0 + $0x385] ss:$8 sm:$0xf0]  }
  0x84   :  { %v13_v30 = vsel %vm4_vm0, %v1725_v26, %v1724_v25  ;;  %1784 = vst.msk [vmem:[%s4127_s1 + $0xe0] sm:$0xff] %vm159_vm4, %v201_v31   ;;  %v1748_v39 = vld [vmem:[%s4126_s0 + $0x240] ss:$8 sm:$0xf]   ;;  %v1191_v50 = vsel %vm4_vm0, %v2053_v45, %v2052_v44 }
  0x85   :  { %1726 = vst.msk [vmem:[%s4127_s1 + $0x18] sm:$0xff] %vm6_vm3, %v13_v30   ;;  %v1749_v40 = vld [vmem:[%s4126_s0 + $0x240] ss:$8 sm:$0xf0]   ;;  %1762 = vst.msk [vmem:[%s4127_s1 + $0x138] sm:$0xff] %vm6_vm3, %v121_v38  }
  0x86   :  { %1785 = vst.msk [vmem:[%s4127_s1 + $0xc0] sm:$0xff] %vm162_vm5, %v201_v31   ;;  %v85_v42 = vsel %vm4_vm0, %v1749_v40, %v1748_v39  ;;  %v2049_v48 = vld [vmem:[%s4126_s0 + $0x285] ss:$8 sm:$0xf]  }
  0x87   :  { %1027 = vrot.lane.b32.xlu0 %v1026_v37, %s2208_s4  ;;  %1060 = vrot.lane.b32.xlu1 %v1059_v43, %s2208_s4  ;;  %v158_v37 = vpop.permute.xlu0 %157   ;;  %v223_v43 = vpop.permute.xlu1 %222   ;;  %1750 = vst.msk [vmem:[%s4127_s1 + $0xd8] sm:$0xff] %vm6_vm3, %v85_v42   ;;  %v2057_v52 = vld [vmem:[%s4126_s0 + $0x101] ss:$8 sm:$0xf]  }
  0x88   :  { %1773 = vst.msk [vmem:[%s4127_s1 + $0x20] sm:$0xff] %vm159_vm4, %v158_v37   ;;  %1790 = vst.msk [vmem:[%s4127_s1 + $0x140] sm:$0xff] %vm159_vm4, %v223_v43   ;;  %v2058_v53 = vld [vmem:[%s4126_s0 + $0x101] ss:$8 sm:$0xf0]  }
  0x89   :  { %163 = vst.msk [vmem:[%s4127_s1] sm:$0xff] %vm162_vm5, %v158_v37   ;;  %1791 = vst.msk [vmem:[%s4127_s1 + $0x120] sm:$0xff] %vm162_vm5, %v223_v43   ;;  %v2055_v56 = vld [vmem:[%s4126_s0 + $0x1] ss:$8 sm:$0xf]   ;;  %v1212_v58 = vsel %vm4_vm0, %v2058_v53, %v2057_v52 }
  0x8a   :  { %v2056_v57 = vld [vmem:[%s4126_s0 + $0x1] ss:$8 sm:$0xf0]   ;;  %v2105_v52 = vld [vmem:[%s4126_s0 + $0x144] ss:$8 sm:$0xf]  }
  0x8b   :  { %1049 = vrot.lane.b32.xlu0 %v1048_v49, %s2208_s4  ;;  %1082 = vrot.lane.b32.xlu1 %v1081_v55, %s2208_s4  ;;  %v179_v47 = vpop.permute.xlu0 %178   ;;  %v2050_v49 = vld [vmem:[%s4126_s0 + $0x285] ss:$8 sm:$0xf0]   ;;  %v267_v51 = vpop.permute.xlu1 %266   ;;  %v2063_v60 = vld [vmem:[%s4126_s0 + $0x301] ss:$8 sm:$0xf]   ;;  %v1202_v62 = vsel %vm4_vm0, %v2056_v57, %v2055_v56 }
  0x8c   :  { %1778 = vst.msk [vmem:[%s4127_s1 + $0x80] sm:$0xff] %vm159_vm4, %v179_v47   ;;  %1802 = vst.msk [vmem:[%s4127_s1 + $0x68] sm:$0xff] %vm159_vm4, %v267_v51   ;;  %v1180_v54 = vsel %vm4_vm0, %v2050_v49, %v2049_v48  ;;  %v2060_v0 = vld [vmem:[%s4126_s0 + $0x201] ss:$8 sm:$0xf]  }
  0x8d   :  { %1779 = vst.msk [vmem:[%s4127_s1 + $0x60] sm:$0xff] %vm162_vm5, %v179_v47   ;;  %1803 = vst.msk [vmem:[%s4127_s1 + $0xa8] sm:$0xff] %vm162_vm5, %v267_v51   ;;  %v2061_v1 = vld [vmem:[%s4126_s0 + $0x201] ss:$8 sm:$0xf0]  }
  0x8e   :  { %v2069_v4 = vld [vmem:[%s4126_s0 + $0x1c1] ss:$8 sm:$0xf]   ;;  %v1223_v6 = vsel %vm4_vm0, %v2061_v1, %v2060_v0  ;;  %v2106_v53 = vld [vmem:[%s4126_s0 + $0x144] ss:$8 sm:$0xf0]  }
  0x8f   :  { %1071 = vrot.lane.b32.xlu0 %v1070_v61, %s2208_s4  ;;  %1104 = vrot.lane.b32.xlu1 %v1103_v3, %s2208_s4  ;;  %v245_v55 = vpop.permute.xlu0 %244   ;;  %v2064_v61 = vld [vmem:[%s4126_s0 + $0x301] ss:$8 sm:$0xf0]   ;;  %v2102_v56 = vld [vmem:[%s4126_s0 + $0x44] ss:$8 sm:$0xf]  }
  0x90   :  { %1796 = vst.msk [vmem:[%s4127_s1 + $0x8] sm:$0xff] %vm159_vm4, %v245_v55   ;;  %v1234_v2 = vsel %vm4_vm0, %v2064_v61, %v2063_v60  ;;  %v2070_v5 = vld [vmem:[%s4126_s0 + $0x1c1] ss:$8 sm:$0xf0]  }
  0x91   :  { %1797 = vst.msk [vmem:[%s4127_s1 + $0x48] sm:$0xff] %vm162_vm5, %v245_v55   ;;  %v311_v59 = vpop.permute.xlu1 %310   ;;  %v2066_v8 = vld [vmem:[%s4126_s0 + $0xc1] ss:$8 sm:$0xf]   ;;  %v1256_v10 = vsel %vm4_vm0, %v2070_v5, %v2069_v4 }
  0x92   :  { %1814 = vst.msk [vmem:[%s4127_s1 + $0x128] sm:$0xff] %vm159_vm4, %v311_v59   ;;  %v2075_v12 = vld [vmem:[%s4126_s0 + $0x3c1] ss:$8 sm:$0xf]  }
  0x93   :  { %1093 = vrot.lane.b32.xlu0 %v1092_v9, %s2208_s4  ;;  %1126 = vrot.lane.b32.xlu1 %v1125_v15, %s2208_s4  ;;  %1815 = vst.msk [vmem:[%s4127_s1 + $0x168] sm:$0xff] %vm162_vm5, %v311_v59   ;;  %v2067_v9 = vld [vmem:[%s4126_s0 + $0xc1] ss:$8 sm:$0xf0]  }
  0x94   :  { %v2076_v13 = vld [vmem:[%s4126_s0 + $0x3c1] ss:$8 sm:$0xf0]   ;;  %v1245_v14 = vsel %vm4_vm0, %v2067_v9, %v2066_v8  ;;  %v2103_v57 = vld [vmem:[%s4126_s0 + $0x44] ss:$8 sm:$0xf0]  }
  0x95   :  { %v289_v63 = vpop.permute.xlu0 %288   ;;  %v2072_v16 = vld [vmem:[%s4126_s0 + $0x2c1] ss:$8 sm:$0xf]   ;;  %v1278_v18 = vsel %vm4_vm0, %v2076_v13, %v2075_v12  ;;  %v2111_v60 = vld [vmem:[%s4126_s0 + $0x344] ss:$8 sm:$0xf]  }
  0x96   :  { %1808 = vst.msk [vmem:[%s4127_s1 + $0xc8] sm:$0xff] %vm159_vm4, %v289_v63   ;;  %v2073_v17 = vld [vmem:[%s4126_s0 + $0x2c1] ss:$8 sm:$0xf0]  }
  0x97   :  { %1115 = vrot.lane.b32.xlu0 %v1114_v21, %s2208_s4  ;;  %1148 = vrot.lane.b32.xlu1 %v1147_v27, %s2208_s4  ;;  %1809 = vst.msk [vmem:[%s4127_s1 + $0x108] sm:$0xff] %vm162_vm5, %v289_v63   ;;  %v2081_v20 = vld [vmem:[%s4126_s0 + $0x181] ss:$8 sm:$0xf]   ;;  %v1267_v22 = vsel %vm4_vm0, %v2073_v17, %v2072_v16 }
  0x98   :  { %v2082_v21 = vld [vmem:[%s4126_s0 + $0x181] ss:$8 sm:$0xf0]   ;;  %v2112_v61 = vld [vmem:[%s4126_s0 + $0x344] ss:$8 sm:$0xf0]  }
  0x99   :  { %v355_v3 = vpop.permute.xlu1 %354   ;;  %v2078_v24 = vld [vmem:[%s4126_s0 + $0x81] ss:$8 sm:$0xf]   ;;  %v1300_v26 = vsel %vm4_vm0, %v2082_v21, %v2081_v20  ;;  %v2108_v0 = vld [vmem:[%s4126_s0 + $0x244] ss:$8 sm:$0xf]  }
  0x9a   :  { %1826 = vst.msk [vmem:[%s4127_s1 + $0xb0] sm:$0xff] %vm159_vm4, %v355_v3   ;;  %v2079_v25 = vld [vmem:[%s4126_s0 + $0x81] ss:$8 sm:$0xf0]  }
  0x9b   :  { %1137 = vrot.lane.b32.xlu0 %v1136_v34, %s2208_s4  ;;  %1170 = vrot.lane.b32.xlu1 %v1169_v41, %s2208_s4  ;;  %1827 = vst.msk [vmem:[%s4127_s1 + $0x90] sm:$0xff] %vm162_vm5, %v355_v3   ;;  %v2087_v28 = vld [vmem:[%s4126_s0 + $0x381] ss:$8 sm:$0xf]   ;;  %v1289_v30 = vsel %vm4_vm0, %v2079_v25, %v2078_v24 }
  0x9c   :  { %v2088_v29 = vld [vmem:[%s4126_s0 + $0x381] ss:$8 sm:$0xf0]   ;;  %v2109_v1 = vld [vmem:[%s4126_s0 + $0x244] ss:$8 sm:$0xf0]  }
  0x9d   :  { %v333_v7 = vpop.permute.xlu0 %332   ;;  %v2084_v32 = vld [vmem:[%s4126_s0 + $0x281] ss:$8 sm:$0xf]   ;;  %v1322_v34 = vsel %vm4_vm0, %v2088_v29, %v2087_v28  ;;  %v2117_v4 = vld [vmem:[%s4126_s0 + $0x104] ss:$8 sm:$0xf]  }
  0x9e   :  { %1820 = vst.msk [vmem:[%s4127_s1 + $0x50] sm:$0xff] %vm159_vm4, %v333_v7   ;;  %v2085_v33 = vld [vmem:[%s4126_s0 + $0x281] ss:$8 sm:$0xf0]  }
  0x9f   :  { %1159 = vrot.lane.b32.xlu0 %v1158_v46, %s2208_s4  ;;  %1192 = vrot.lane.b32.xlu1 %v1191_v50, %s2208_s4  ;;  %1821 = vst.msk [vmem:[%s4127_s1 + $0x30] sm:$0xff] %vm162_vm5, %v333_v7   ;;  %v2093_v36 = vld [vmem:[%s4126_s0 + $0x141] ss:$8 sm:$0xf]   ;;  %v1311_v38 = vsel %vm4_vm0, %v2085_v33, %v2084_v32 }
  0xa0   :  { %v2094_v37 = vld [vmem:[%s4126_s0 + $0x141] ss:$8 sm:$0xf0]   ;;  %v2118_v5 = vld [vmem:[%s4126_s0 + $0x104] ss:$8 sm:$0xf0]  }
  0xa1   :  { %v399_v11 = vpop.permute.xlu1 %398   ;;  %v2090_v40 = vld [vmem:[%s4126_s0 + $0x41] ss:$8 sm:$0xf]   ;;  %v1344_v42 = vsel %vm4_vm0, %v2094_v37, %v2093_v36  ;;  %v2114_v8 = vld [vmem:[%s4126_s0 + $0x4] ss:$8 sm:$0xf]  }
  0xa2   :  { %1838 = vst.msk [vmem:[%s4127_s1 + $0x170] sm:$0xff] %vm159_vm4, %v399_v11   ;;  %v2091_v41 = vld [vmem:[%s4126_s0 + $0x41] ss:$8 sm:$0xf0]  }
  0xa3   :  { %1181 = vrot.lane.b32.xlu0 %v1180_v54, %s2208_s4  ;;  %1213 = vrot.lane.b32.xlu1 %v1212_v58, %s2209_s20  ;;  %1839 = vst.msk [vmem:[%s4127_s1 + $0x150] sm:$0xff] %vm162_vm5, %v399_v11   ;;  %v2099_v44 = vld [vmem:[%s4126_s0 + $0x341] ss:$8 sm:$0xf]   ;;  %v1333_v46 = vsel %vm4_vm0, %v2091_v41, %v2090_v40  ;;  %v1388_v58 = vsel %vm4_vm0, %v2106_v53, %v2105_v52 }
  0xa4   :  { %v2100_v45 = vld [vmem:[%s4126_s0 + $0x341] ss:$8 sm:$0xf0]   ;;  %v2115_v9 = vld [vmem:[%s4126_s0 + $0x4] ss:$8 sm:$0xf0]  }
  0xa5   :  { %v377_v15 = vpop.permute.xlu0 %376   ;;  %v2096_v48 = vld [vmem:[%s4126_s0 + $0x241] ss:$8 sm:$0xf]   ;;  %v1366_v50 = vsel %vm4_vm0, %v2100_v45, %v2099_v44  ;;  %v2123_v12 = vld [vmem:[%s4126_s0 + $0x304] ss:$8 sm:$0xf]  }
  0xa6   :  { %1832 = vst.msk [vmem:[%s4127_s1 + $0x110] sm:$0xff] %vm159_vm4, %v377_v15   ;;  %v2097_v49 = vld [vmem:[%s4126_s0 + $0x241] ss:$8 sm:$0xf0]  }
  0xa7   :  { %1203 = vrot.lane.b32.xlu0 %v1202_v62, %s2209_s20  ;;  %1235 = vrot.lane.b32.xlu1 %v1234_v2, %s2209_s20  ;;  %1833 = vst.msk [vmem:[%s4127_s1 + $0xf0] sm:$0xff] %vm162_vm5, %v377_v15   ;;  %v1355_v54 = vsel %vm4_vm0, %v2097_v49, %v2096_v48  ;;  %v1377_v62 = vsel %vm4_vm0, %v2103_v57, %v2102_v56  ;;  %v2124_v13 = vld [vmem:[%s4126_s0 + $0x304] ss:$8 sm:$0xf0]  }
  0xa8   :  { %v1410_v2 = vsel %vm4_vm0, %v2112_v61, %v2111_v60  ;;  %v2120_v16 = vld [vmem:[%s4126_s0 + $0x204] ss:$8 sm:$0xf]   ;;  %v2153_v52 = vld [vmem:[%s4126_s0 + $0x187] ss:$8 sm:$0xf]  }
  0xa9   :  { %v443_v19 = vpop.permute.xlu1 %442   ;;  %v2121_v17 = vld [vmem:[%s4126_s0 + $0x204] ss:$8 sm:$0xf0]   ;;  %v2154_v53 = vld [vmem:[%s4126_s0 + $0x187] ss:$8 sm:$0xf0]  }
  0xaa   :  { %1850 = vst.msk [vmem:[%s4127_s1 + $0x98] sm:$0xff] %vm159_vm4, %v443_v19   ;;  %v2129_v20 = vld [vmem:[%s4126_s0 + $0x1c4] ss:$8 sm:$0xf]  }
  0xab   :  { %1224 = vrot.lane.b32.xlu0 %v1223_v6, %s2209_s20  ;;  %1257 = vrot.lane.b32.xlu1 %v1256_v10, %s2209_s20  ;;  %1851 = vst.msk [vmem:[%s4127_s1 + $0x78] sm:$0xff] %vm162_vm5, %v443_v19   ;;  %v1399_v6 = vsel %vm4_vm0, %v2109_v1, %v2108_v0  ;;  %v1432_v10 = vsel %vm4_vm0, %v2118_v5, %v2117_v4  ;;  %v2130_v21 = vld [vmem:[%s4126_s0 + $0x1c4] ss:$8 sm:$0xf0]  }
  0xac   :  { %v2126_v24 = vld [vmem:[%s4126_s0 + $0xc4] ss:$8 sm:$0xf]   ;;  %v2150_v56 = vld [vmem:[%s4126_s0 + $0x87] ss:$8 sm:$0xf]  }
  0xad   :  { %v421_v23 = vpop.permute.xlu0 %420   ;;  %v2127_v25 = vld [vmem:[%s4126_s0 + $0xc4] ss:$8 sm:$0xf0]   ;;  %v2151_v57 = vld [vmem:[%s4126_s0 + $0x87] ss:$8 sm:$0xf0]  }
  0xae   :  { %1844 = vst.msk [vmem:[%s4127_s1 + $0x38] sm:$0xff] %vm159_vm4, %v421_v23   ;;  %v2135_v28 = vld [vmem:[%s4126_s0 + $0x3c4] ss:$8 sm:$0xf]  }
  0xaf   :  { %1246 = vrot.lane.b32.xlu0 %v1245_v14, %s2209_s20  ;;  %1279 = vrot.lane.b32.xlu1 %v1278_v18, %s2209_s20  ;;  %1845 = vst.msk [vmem:[%s4127_s1 + $0x18] sm:$0xff] %vm162_vm5, %v421_v23   ;;  %v1421_v14 = vsel %vm4_vm0, %v2115_v9, %v2114_v8  ;;  %v1454_v18 = vsel %vm4_vm0, %v2124_v13, %v2123_v12  ;;  %v2136_v29 = vld [vmem:[%s4126_s0 + $0x3c4] ss:$8 sm:$0xf0]  }
  0xb0   :  { %v2132_v32 = vld [vmem:[%s4126_s0 + $0x2c4] ss:$8 sm:$0xf]   ;;  %v2159_v60 = vld [vmem:[%s4126_s0 + $0x387] ss:$8 sm:$0xf]  }
  0xb1   :  { %v487_v27 = vpop.permute.xlu1 %486   ;;  %v2133_v33 = vld [vmem:[%s4126_s0 + $0x2c4] ss:$8 sm:$0xf0]   ;;  %v2160_v61 = vld [vmem:[%s4126_s0 + $0x387] ss:$8 sm:$0xf0]  }
  0xb2   :  { %1862 = vst.msk [vmem:[%s4127_s1 + $0x158] sm:$0xff] %vm159_vm4, %v487_v27   ;;  %v2141_v36 = vld [vmem:[%s4126_s0 + $0x184] ss:$8 sm:$0xf]  }
  0xb3   :  { %1268 = vrot.lane.b32.xlu0 %v1267_v22, %s2209_s20  ;;  %1863 = vst.msk [vmem:[%s4127_s1 + $0x138] sm:$0xff] %vm162_vm5, %v487_v27   ;;  %1301 = vrot.lane.b32.xlu1 %v1300_v26, %s2209_s20  ;;  %v1443_v22 = vsel %vm4_vm0, %v2121_v17, %v2120_v16  ;;  %v1476_v26 = vsel %vm4_vm0, %v2130_v21, %v2129_v20  ;;  %v2142_v37 = vld [vmem:[%s4126_s0 + $0x184] ss:$8 sm:$0xf0]  }
  0xb4   :  { %v2138_v40 = vld [vmem:[%s4126_s0 + $0x84] ss:$8 sm:$0xf]   ;;  %v2156_v0 = vld [vmem:[%s4126_s0 + $0x287] ss:$8 sm:$0xf]  }
  0xb5   :  { %v465_v31 = vpop.permute.xlu0 %464   ;;  %v531_v35 = vpop.permute.xlu1 %530   ;;  %v2139_v41 = vld [vmem:[%s4126_s0 + $0x84] ss:$8 sm:$0xf0]   ;;  %v2157_v1 = vld [vmem:[%s4126_s0 + $0x287] ss:$8 sm:$0xf0]  }
  0xb6   :  { %1856 = vst.msk [vmem:[%s4127_s1 + $0xf8] sm:$0xff] %vm159_vm4, %v465_v31   ;;  %v2147_v44 = vld [vmem:[%s4126_s0 + $0x384] ss:$8 sm:$0xf]  }
  0xb7   :  { %1857 = vst.msk [vmem:[%s4127_s1 + $0xd8] sm:$0xff] %vm162_vm5, %v465_v31   ;;  %1290 = vrot.lane.b32.xlu0 %v1289_v30, %s2209_s20  ;;  %1323 = vrot.lane.b32.xlu1 %v1322_v34, %s2209_s20  ;;  %v1465_v30 = vsel %vm4_vm0, %v2127_v25, %v2126_v24  ;;  %v1498_v34 = vsel %vm4_vm0, %v2136_v29, %v2135_v28  ;;  %v2148_v45 = vld [vmem:[%s4126_s0 + $0x384] ss:$8 sm:$0xf0]  }
  0xb8   :  { %1874 = vst.msk [vmem:[%s4127_s1 + $0xa0] sm:$0xff] %vm510_vm6, %v531_v35   ;;  %v2144_v48 = vld [vmem:[%s4126_s0 + $0x284] ss:$8 sm:$0xf]  }
  0xb9   :  { %1875 = vst.msk [vmem:[%s4127_s1 + $0x80] sm:$0xff] %vm513_vm7, %v531_v35   ;;  %v509_v39 = vpop.permute.xlu0 %508   ;;  %v575_v43 = vpop.permute.xlu1 %574   ;;  %v2145_v49 = vld [vmem:[%s4126_s0 + $0x284] ss:$8 sm:$0xf0]  }
  0xba   :  { %1868 = vst.msk [vmem:[%s4127_s1 + $0x40] sm:$0xff] %vm510_vm6, %v509_v39   ;;  %1886 = vst.msk [vmem:[%s4127_s1 + $0x160] sm:$0xff] %vm510_vm6, %v575_v43   ;;  %v2165_v4 = vld [vmem:[%s4126_s0 + $0x147] ss:$8 sm:$0xf]  }
  0xbb   :  { %1869 = vst.msk [vmem:[%s4127_s1 + $0x20] sm:$0xff] %vm513_vm7, %v509_v39   ;;  %1312 = vrot.lane.b32.xlu0 %v1311_v38, %s2209_s20  ;;  %1887 = vst.msk [vmem:[%s4127_s1 + $0x140] sm:$0xff] %vm513_vm7, %v575_v43   ;;  %1345 = vrot.lane.b32.xlu1 %v1344_v42, %s2209_s20  ;;  %v1487_v38 = vsel %vm4_vm0, %v2133_v33, %v2132_v32  ;;  %v1520_v42 = vsel %vm4_vm0, %v2142_v37, %v2141_v36 }
  0xbc   :  { %v2166_v5 = vld [vmem:[%s4126_s0 + $0x147] ss:$8 sm:$0xf0]  }
  0xbd   :  { %v553_v47 = vpop.permute.xlu0 %552   ;;  %v619_v51 = vpop.permute.xlu1 %618   ;;  %v2162_v8 = vld [vmem:[%s4126_s0 + $0x47] ss:$8 sm:$0xf]  }
  0xbe   :  { %1880 = vst.msk [vmem:[%s4127_s1 + $0x100] sm:$0xff] %vm510_vm6, %v553_v47   ;;  %1898 = vst.msk [vmem:[%s4127_s1 + $0x88] sm:$0xff] %vm510_vm6, %v619_v51   ;;  %v2163_v9 = vld [vmem:[%s4126_s0 + $0x47] ss:$8 sm:$0xf0]  }
  0xbf   :  { %1881 = vst.msk [vmem:[%s4127_s1 + $0xe0] sm:$0xff] %vm513_vm7, %v553_v47   ;;  %1334 = vrot.lane.b32.xlu0 %v1333_v46, %s2209_s20  ;;  %1899 = vst.msk [vmem:[%s4127_s1 + $0x68] sm:$0xff] %vm513_vm7, %v619_v51   ;;  %1367 = vrot.lane.b32.xlu1 %v1366_v50, %s2209_s20  ;;  %v1509_v46 = vsel %vm4_vm0, %v2139_v41, %v2138_v40  ;;  %v1542_v50 = vsel %vm4_vm0, %v2148_v45, %v2147_v44 }
  0xc0   :  { %v2171_v12 = vld [vmem:[%s4126_s0 + $0x347] ss:$8 sm:$0xf]  }
  0xc1   :  { %v597_v55 = vpop.permute.xlu0 %596   ;;  %v663_v59 = vpop.permute.xlu1 %662   ;;  %v2172_v13 = vld [vmem:[%s4126_s0 + $0x347] ss:$8 sm:$0xf0]  }
  0xc2   :  { %1892 = vst.msk [vmem:[%s4127_s1 + $0x28] sm:$0xff] %vm510_vm6, %v597_v55   ;;  %1910 = vst.msk [vmem:[%s4127_s1 + $0x148] sm:$0xff] %vm510_vm6, %v663_v59   ;;  %v2168_v16 = vld [vmem:[%s4126_s0 + $0x247] ss:$8 sm:$0xf]  }
  0xc3   :  { %1893 = vst.msk [vmem:[%s4127_s1 + $0x8] sm:$0xff] %vm513_vm7, %v597_v55   ;;  %1356 = vrot.lane.b32.xlu0 %v1355_v54, %s2209_s20  ;;  %1911 = vst.msk [vmem:[%s4127_s1 + $0x128] sm:$0xff] %vm513_vm7, %v663_v59   ;;  %1389 = vrot.lane.b32.xlu1 %v1388_v58, %s2210_s8  ;;  %v1531_v54 = vsel %vm4_vm0, %v2145_v49, %v2144_v48  ;;  %v1564_v58 = vsel %vm4_vm0, %v2154_v53, %v2153_v52 }
  0xc4   :  { %v2169_v17 = vld [vmem:[%s4126_s0 + $0x247] ss:$8 sm:$0xf0]  }
  0xc5   :  { %v641_v63 = vpop.permute.xlu0 %640   ;;  %v707_v3 = vpop.permute.xlu1 %706   ;;  %v2177_v20 = vld [vmem:[%s4126_s0 + $0x107] ss:$8 sm:$0xf]  }
  0xc6   :  { %1904 = vst.msk [vmem:[%s4127_s1 + $0xe8] sm:$0xff] %vm510_vm6, %v641_v63   ;;  %1922 = vst.msk [vmem:[%s4127_s1 + $0x70] sm:$0xff] %vm510_vm6, %v707_v3   ;;  %v2178_v21 = vld [vmem:[%s4126_s0 + $0x107] ss:$8 sm:$0xf0]  }
  0xc7   :  { %1905 = vst.msk [vmem:[%s4127_s1 + $0xc8] sm:$0xff] %vm513_vm7, %v641_v63   ;;  %1378 = vrot.lane.b32.xlu0 %v1377_v62, %s2210_s8  ;;  %1923 = vst.msk [vmem:[%s4127_s1 + $0xb0] sm:$0xff] %vm513_vm7, %v707_v3   ;;  %1411 = vrot.lane.b32.xlu1 %v1410_v2, %s2210_s8  ;;  %v1553_v62 = vsel %vm4_vm0, %v2151_v57, %v2150_v56  ;;  %v1586_v2 = vsel %vm4_vm0, %v2160_v61, %v2159_v60 }
  0xc8   :  { %v2174_v24 = vld [vmem:[%s4126_s0 + $0x7] ss:$8 sm:$0xf]  }
  0xc9   :  { %v685_v7 = vpop.permute.xlu0 %684   ;;  %v751_v11 = vpop.permute.xlu1 %750   ;;  %v2175_v25 = vld [vmem:[%s4126_s0 + $0x7] ss:$8 sm:$0xf0]  }
  0xca   :  { %1916 = vst.msk [vmem:[%s4127_s1 + $0x10] sm:$0xff] %vm510_vm6, %v685_v7   ;;  %1934 = vst.msk [vmem:[%s4127_s1 + $0x130] sm:$0xff] %vm510_vm6, %v751_v11   ;;  %v2183_v28 = vld [vmem:[%s4126_s0 + $0x307] ss:$8 sm:$0xf]  }
  0xcb   :  { %1917 = vst.msk [vmem:[%s4127_s1 + $0x50] sm:$0xff] %vm513_vm7, %v685_v7   ;;  %1400 = vrot.lane.b32.xlu0 %v1399_v6, %s2210_s8  ;;  %1935 = vst.msk [vmem:[%s4127_s1 + $0x170] sm:$0xff] %vm513_vm7, %v751_v11   ;;  %1433 = vrot.lane.b32.xlu1 %v1432_v10, %s2210_s8  ;;  %v1575_v6 = vsel %vm4_vm0, %v2157_v1, %v2156_v0  ;;  %v1608_v10 = vsel %vm4_vm0, %v2166_v5, %v2165_v4 }
  0xcc   :  { %v2184_v29 = vld [vmem:[%s4126_s0 + $0x307] ss:$8 sm:$0xf0]  }
  0xcd   :  { %v729_v15 = vpop.permute.xlu0 %728   ;;  %v795_v19 = vpop.permute.xlu1 %794   ;;  %v2180_v32 = vld [vmem:[%s4126_s0 + $0x207] ss:$8 sm:$0xf]  }
  0xce   :  { %1928 = vst.msk [vmem:[%s4127_s1 + $0xd0] sm:$0xff] %vm510_vm6, %v729_v15   ;;  %1946 = vst.msk [vmem:[%s4127_s1 + $0xb8] sm:$0xff] %vm510_vm6, %v795_v19   ;;  %v2181_v33 = vld [vmem:[%s4126_s0 + $0x207] ss:$8 sm:$0xf0]  }
  0xcf   :  { %1929 = vst.msk [vmem:[%s4127_s1 + $0x110] sm:$0xff] %vm513_vm7, %v729_v15   ;;  %1422 = vrot.lane.b32.xlu0 %v1421_v14, %s2210_s8  ;;  %1947 = vst.msk [vmem:[%s4127_s1 + $0x98] sm:$0xff] %vm513_vm7, %v795_v19   ;;  %1455 = vrot.lane.b32.xlu1 %v1454_v18, %s2210_s8  ;;  %v1597_v14 = vsel %vm4_vm0, %v2163_v9, %v2162_v8  ;;  %v1630_v18 = vsel %vm4_vm0, %v2172_v13, %v2171_v12 }
  0xd0   :  { %v2189_v36 = vld [vmem:[%s4126_s0 + $0x1c7] ss:$8 sm:$0xf]  }
  0xd1   :  { %v773_v23 = vpop.permute.xlu0 %772   ;;  %v839_v27 = vpop.permute.xlu1 %838   ;;  %v2190_v37 = vld [vmem:[%s4126_s0 + $0x1c7] ss:$8 sm:$0xf0]  }
  0xd2   :  { %1940 = vst.msk [vmem:[%s4127_s1 + $0x58] sm:$0xff] %vm510_vm6, %v773_v23   ;;  %1958 = vst.msk [vmem:[%s4127_s1 + $0x178] sm:$0xff] %vm510_vm6, %v839_v27   ;;  %v2186_v40 = vld [vmem:[%s4126_s0 + $0xc7] ss:$8 sm:$0xf]  }
  0xd3   :  { %1941 = vst.msk [vmem:[%s4127_s1 + $0x38] sm:$0xff] %vm513_vm7, %v773_v23   ;;  %1444 = vrot.lane.b32.xlu0 %v1443_v22, %s2210_s8  ;;  %1959 = vst.msk [vmem:[%s4127_s1 + $0x158] sm:$0xff] %vm513_vm7, %v839_v27   ;;  %1477 = vrot.lane.b32.xlu1 %v1476_v26, %s2210_s8  ;;  %v1619_v22 = vsel %vm4_vm0, %v2169_v17, %v2168_v16  ;;  %v1652_v26 = vsel %vm4_vm0, %v2178_v21, %v2177_v20 }
  0xd4   :  { %v2187_v41 = vld [vmem:[%s4126_s0 + $0xc7] ss:$8 sm:$0xf0]  }
  0xd5   :  { %v817_v31 = vpop.permute.xlu0 %816   ;;  %v863_v35 = vpop.permute.xlu1 %862   ;;  %v2195_v44 = vld [vmem:[%s4126_s0 + $0x3c7] ss:$8 sm:$0xf]  }
  0xd6   :  { %1952 = vst.msk [vmem:[%s4127_s1 + $0x118] sm:$0xff] %vm510_vm6, %v817_v31   ;;  %v2196_v45 = vld [vmem:[%s4126_s0 + $0x3c7] ss:$8 sm:$0xf0]  }
  0xd7   :  { %1953 = vst.msk [vmem:[%s4127_s1 + $0xf8] sm:$0xff] %vm513_vm7, %v817_v31   ;;  %1466 = vrot.lane.b32.xlu0 %v1465_v30, %s2210_s8  ;;  %1499 = vrot.lane.b32.xlu1 %v1498_v34, %s2210_s8  ;;  %v1641_v30 = vsel %vm4_vm0, %v2175_v25, %v2174_v24  ;;  %v1674_v34 = vsel %vm4_vm0, %v2184_v29, %v2183_v28  ;;  %v2192_v48 = vld [vmem:[%s4126_s0 + $0x2c7] ss:$8 sm:$0xf]  }
  0xd8   :  { %1964 = vst.msk [vmem:[%s4127_s1 + $0x60] sm:$0xff] %vm854_vm8, %v863_v35   ;;  %v2193_v49 = vld [vmem:[%s4126_s0 + $0x2c7] ss:$8 sm:$0xf0]  }
  0xd9   :  { %v853_v39 = vpop.permute.xlu0 %852   ;;  %v885_v43 = vpop.permute.xlu1 %884   ;;  %v1707_v52 = vsel %vm4_vm0, %v2193_v49, %v2192_v48 }
  0xda   :  { %855 = vst.msk [vmem:[%s4127_s1] sm:$0xff] %vm854_vm8, %v853_v39   ;;  %1970 = vst.msk [vmem:[%s4127_s1 + $0x120] sm:$0xff] %vm854_vm8, %v885_v43  }
  0xdb   :  { %1488 = vrot.lane.b32.xlu0 %v1487_v38, %s2210_s8  ;;  %1521 = vrot.lane.b32.xlu1 %v1520_v42, %s2210_s8  ;;  %v1663_v38 = vsel %vm4_vm0, %v2181_v33, %v2180_v32  ;;  %v1696_v42 = vsel %vm4_vm0, %v2190_v37, %v2189_v36 }
  0xdd   :  { %v874_v47 = vpop.permute.xlu0 %873   ;;  %v907_v51 = vpop.permute.xlu1 %906  }
  0xde   :  { %1967 = vst.msk [vmem:[%s4127_s1 + $0xc0] sm:$0xff] %vm854_vm8, %v874_v47   ;;  %1976 = vst.msk [vmem:[%s4127_s1 + $0xa8] sm:$0xff] %vm854_vm8, %v907_v51  }
  0xdf   :  { %1510 = vrot.lane.b32.xlu0 %v1509_v46, %s2210_s8  ;;  %1543 = vrot.lane.b32.xlu1 %v1542_v50, %s2210_s8  ;;  %v1685_v46 = vsel %vm4_vm0, %v2187_v41, %v2186_v40  ;;  %v1718_v50 = vsel %vm4_vm0, %v2196_v45, %v2195_v44 }
  0xe1   :  { %v896_v55 = vpop.permute.xlu0 %895   ;;  %v929_v59 = vpop.permute.xlu1 %928  }
  0xe2   :  { %1973 = vst.msk [vmem:[%s4127_s1 + $0x48] sm:$0xff] %vm854_vm8, %v896_v55   ;;  %1982 = vst.msk [vmem:[%s4127_s1 + $0x168] sm:$0xff] %vm854_vm8, %v929_v59  }
  0xe3   :  { %1532 = vrot.lane.b32.xlu0 %v1531_v54, %s2210_s8  ;;  %1565 = vrot.lane.b32.xlu1 %v1564_v58, %s2211_s11 }
  0xe5   :  { %v918_v63 = vpop.permute.xlu0 %917   ;;  %v951_v3 = vpop.permute.xlu1 %950  }
  0xe6   :  { %1979 = vst.msk [vmem:[%s4127_s1 + $0x108] sm:$0xff] %vm854_vm8, %v918_v63   ;;  %1988 = vst.msk [vmem:[%s4127_s1 + $0x90] sm:$0xff] %vm854_vm8, %v951_v3  }
  0xe7   :  { %1554 = vrot.lane.b32.xlu0 %v1553_v62, %s2211_s11  ;;  %1587 = vrot.lane.b32.xlu1 %v1586_v2, %s2211_s11 }
  0xe9   :  { %v940_v7 = vpop.permute.xlu0 %939   ;;  %v973_v11 = vpop.permute.xlu1 %972  }
  0xea   :  { %1985 = vst.msk [vmem:[%s4127_s1 + $0x30] sm:$0xff] %vm854_vm8, %v940_v7   ;;  %1994 = vst.msk [vmem:[%s4127_s1 + $0x150] sm:$0xff] %vm854_vm8, %v973_v11  }
  0xeb   :  { %1576 = vrot.lane.b32.xlu0 %v1575_v6, %s2211_s11  ;;  %1609 = vrot.lane.b32.xlu1 %v1608_v10, %s2211_s11 }
  0xed   :  { %v962_v15 = vpop.permute.xlu0 %961   ;;  %v995_v19 = vpop.permute.xlu1 %994  }
  0xee   :  { %1991 = vst.msk [vmem:[%s4127_s1 + $0xf0] sm:$0xff] %vm854_vm8, %v962_v15   ;;  %2000 = vst.msk [vmem:[%s4127_s1 + $0x78] sm:$0xff] %vm854_vm8, %v995_v19  }
  0xef   :  { %1598 = vrot.lane.b32.xlu0 %v1597_v14, %s2211_s11  ;;  %1631 = vrot.lane.b32.xlu1 %v1630_v18, %s2211_s11 }
  0xf1   :  { %v984_v23 = vpop.permute.xlu0 %983   ;;  %v1017_v27 = vpop.permute.xlu1 %1016  }
  0xf2   :  { %1997 = vst.msk [vmem:[%s4127_s1 + $0x18] sm:$0xff] %vm854_vm8, %v984_v23   ;;  %2006 = vst.msk [vmem:[%s4127_s1 + $0x138] sm:$0xff] %vm854_vm8, %v1017_v27  }
  0xf3   :  { %1620 = vrot.lane.b32.xlu0 %v1619_v22, %s2211_s11  ;;  %1653 = vrot.lane.b32.xlu1 %v1652_v26, %s2211_s11 }
  0xf5   :  { %v1006_v31 = vpop.permute.xlu0 %1005   ;;  %v1039_v35 = vpop.permute.xlu1 %1038  }
  0xf6   :  { %2003 = vst.msk [vmem:[%s4127_s1 + $0xd8] sm:$0xff] %vm854_vm8, %v1006_v31  }
  0xf7   :  { %1642 = vrot.lane.b32.xlu0 %v1641_v30, %s2211_s11  ;;  %2012 = vst.msk [vmem:[%s4127_s1 + $0x80] sm:$0xff] %vm1029_vm9, %v1039_v35   ;;  %1675 = vrot.lane.b32.xlu1 %v1674_v34, %s2211_s11 }
  0xf9   :  { %v1028_v39 = vpop.permute.xlu0 %1027   ;;  %v1061_v43 = vpop.permute.xlu1 %1060  }
  0xfa   :  { %2009 = vst.msk [vmem:[%s4127_s1 + $0x20] sm:$0xff] %vm1029_vm9, %v1028_v39   ;;  %2018 = vst.msk [vmem:[%s4127_s1 + $0x140] sm:$0xff] %vm1029_vm9, %v1061_v43  }
  0xfb   :  { %1664 = vrot.lane.b32.xlu0 %v1663_v38, %s2211_s11  ;;  %1697 = vrot.lane.b32.xlu1 %v1696_v42, %s2211_s11 }
  0xfd   :  { %v1050_v47 = vpop.permute.xlu0 %1049   ;;  %v1083_v51 = vpop.permute.xlu1 %1082  }
  0xfe   :  { %2015 = vst.msk [vmem:[%s4127_s1 + $0xe0] sm:$0xff] %vm1029_vm9, %v1050_v47   ;;  %2024 = vst.msk [vmem:[%s4127_s1 + $0x68] sm:$0xff] %vm1029_vm9, %v1083_v51  }
  0xff   :  { %1686 = vrot.lane.b32.xlu0 %v1685_v46, %s2211_s11  ;;  %1719 = vrot.lane.b32.xlu1 %v1718_v50, %s2211_s11 }
 0x101   :  { %v1072_v53 = vpop.permute.xlu0 %1071   ;;  %v1105_v54 = vpop.permute.xlu1 %1104  }
 0x102   :  { %2021 = vst.msk [vmem:[%s4127_s1 + $0x8] sm:$0xff] %vm1029_vm9, %v1072_v53   ;;  %2030 = vst.msk [vmem:[%s4127_s1 + $0x128] sm:$0xff] %vm1029_vm9, %v1105_v54  }
 0x103   :  { %1708 = vrot.lane.b32.xlu0 %v1707_v52, %s2211_s11 }
 0x105   :  { %v1094_v55 = vpop.permute.xlu0 %1093   ;;  %v1127_v56 = vpop.permute.xlu1 %1126  }
 0x106   :  { %2027 = vst.msk [vmem:[%s4127_s1 + $0xc8] sm:$0xff] %vm1029_vm9, %v1094_v55   ;;  %2036 = vst.msk [vmem:[%s4127_s1 + $0xb0] sm:$0xff] %vm1029_vm9, %v1127_v56  }
 0x109   :  { %v1116_v57 = vpop.permute.xlu0 %1115   ;;  %v1149_v58 = vpop.permute.xlu1 %1148  }
 0x10a   :  { %2033 = vst.msk [vmem:[%s4127_s1 + $0x50] sm:$0xff] %vm1029_vm9, %v1116_v57   ;;  %2042 = vst.msk [vmem:[%s4127_s1 + $0x170] sm:$0xff] %vm1029_vm9, %v1149_v58  }
 0x10d   :  { %v1138_v59 = vpop.permute.xlu0 %1137   ;;  %v1171_v60 = vpop.permute.xlu1 %1170  }
 0x10e   :  { %2039 = vst.msk [vmem:[%s4127_s1 + $0x110] sm:$0xff] %vm1029_vm9, %v1138_v59   ;;  %2048 = vst.msk [vmem:[%s4127_s1 + $0x98] sm:$0xff] %vm1029_vm9, %v1171_v60  }
 0x111   :  { %v1160_v61 = vpop.permute.xlu0 %1159   ;;  %v1193_v62 = vpop.permute.xlu1 %1192  }
 0x112   :  { %2045 = vst.msk [vmem:[%s4127_s1 + $0x38] sm:$0xff] %vm1029_vm9, %v1160_v61   ;;  %2054 = vst.msk [vmem:[%s4127_s1 + $0x158] sm:$0xff] %vm1029_vm9, %v1193_v62  }
 0x115   :  { %v1182_v63 = vpop.permute.xlu0 %1181   ;;  %v1214_v0 = vpop.permute.xlu1 %1213  }
 0x116   :  { %2051 = vst.msk [vmem:[%s4127_s1 + $0xf8] sm:$0xff] %vm1029_vm9, %v1182_v63  }
 0x117   :  { %2059 = vst.msk [vmem:[%s4127_s1 + $0x60] sm:$0xff] %vm1205_vm10, %v1214_v0  }
 0x119   :  { %v1204_v1 = vpop.permute.xlu0 %1203   ;;  %v1236_v2 = vpop.permute.xlu1 %1235  }
 0x11a   :  { %1206 = vst.msk [vmem:[%s4127_s1] sm:$0xff] %vm1205_vm10, %v1204_v1   ;;  %2065 = vst.msk [vmem:[%s4127_s1 + $0x120] sm:$0xff] %vm1205_vm10, %v1236_v2  }
 0x11d   :  { %v1225_v3 = vpop.permute.xlu0 %1224   ;;  %v1258_v4 = vpop.permute.xlu1 %1257  }
 0x11e   :  { %2062 = vst.msk [vmem:[%s4127_s1 + $0xc0] sm:$0xff] %vm1205_vm10, %v1225_v3   ;;  %2071 = vst.msk [vmem:[%s4127_s1 + $0xa8] sm:$0xff] %vm1205_vm10, %v1258_v4  }
 0x121   :  { %v1247_v5 = vpop.permute.xlu0 %1246   ;;  %v1280_v6 = vpop.permute.xlu1 %1279  }
 0x122   :  { %2068 = vst.msk [vmem:[%s4127_s1 + $0x48] sm:$0xff] %vm1205_vm10, %v1247_v5   ;;  %2077 = vst.msk [vmem:[%s4127_s1 + $0x168] sm:$0xff] %vm1205_vm10, %v1280_v6  }
 0x125   :  { %v1269_v7 = vpop.permute.xlu0 %1268   ;;  %v1302_v8 = vpop.permute.xlu1 %1301  }
 0x126   :  { %2074 = vst.msk [vmem:[%s4127_s1 + $0x108] sm:$0xff] %vm1205_vm10, %v1269_v7   ;;  %2083 = vst.msk [vmem:[%s4127_s1 + $0x90] sm:$0xff] %vm1205_vm10, %v1302_v8  }
 0x129   :  { %v1291_v9 = vpop.permute.xlu0 %1290   ;;  %v1324_v10 = vpop.permute.xlu1 %1323  }
 0x12a   :  { %2080 = vst.msk [vmem:[%s4127_s1 + $0x30] sm:$0xff] %vm1205_vm10, %v1291_v9   ;;  %2089 = vst.msk [vmem:[%s4127_s1 + $0x150] sm:$0xff] %vm1205_vm10, %v1324_v10  }
 0x12d   :  { %v1313_v11 = vpop.permute.xlu0 %1312   ;;  %v1346_v12 = vpop.permute.xlu1 %1345  }
 0x12e   :  { %2086 = vst.msk [vmem:[%s4127_s1 + $0xf0] sm:$0xff] %vm1205_vm10, %v1313_v11   ;;  %2095 = vst.msk [vmem:[%s4127_s1 + $0x78] sm:$0xff] %vm1205_vm10, %v1346_v12  }
 0x131   :  { %v1335_v13 = vpop.permute.xlu0 %1334   ;;  %v1368_v14 = vpop.permute.xlu1 %1367  }
 0x132   :  { %2092 = vst.msk [vmem:[%s4127_s1 + $0x18] sm:$0xff] %vm1205_vm10, %v1335_v13   ;;  %2101 = vst.msk [vmem:[%s4127_s1 + $0x138] sm:$0xff] %vm1205_vm10, %v1368_v14  }
 0x135   :  { %v1357_v15 = vpop.permute.xlu0 %1356   ;;  %v1390_v16 = vpop.permute.xlu1 %1389  }
 0x136   :  { %2098 = vst.msk [vmem:[%s4127_s1 + $0xd8] sm:$0xff] %vm1205_vm10, %v1357_v15  }
 0x137   :  { %2107 = vst.msk [vmem:[%s4127_s1 + $0x80] sm:$0xff] %vm1380_vm11, %v1390_v16  }
 0x139   :  { %v1379_v17 = vpop.permute.xlu0 %1378   ;;  %v1412_v18 = vpop.permute.xlu1 %1411  }
 0x13a   :  { %2104 = vst.msk [vmem:[%s4127_s1 + $0x20] sm:$0xff] %vm1380_vm11, %v1379_v17   ;;  %2113 = vst.msk [vmem:[%s4127_s1 + $0x140] sm:$0xff] %vm1380_vm11, %v1412_v18  }
 0x13d   :  { %v1401_v19 = vpop.permute.xlu0 %1400   ;;  %v1434_v20 = vpop.permute.xlu1 %1433  }
 0x13e   :  { %2110 = vst.msk [vmem:[%s4127_s1 + $0xe0] sm:$0xff] %vm1380_vm11, %v1401_v19   ;;  %2119 = vst.msk [vmem:[%s4127_s1 + $0x68] sm:$0xff] %vm1380_vm11, %v1434_v20  }
 0x141   :  { %v1423_v21 = vpop.permute.xlu0 %1422   ;;  %v1456_v22 = vpop.permute.xlu1 %1455  }
 0x142   :  { %2116 = vst.msk [vmem:[%s4127_s1 + $0x8] sm:$0xff] %vm1380_vm11, %v1423_v21   ;;  %2125 = vst.msk [vmem:[%s4127_s1 + $0x128] sm:$0xff] %vm1380_vm11, %v1456_v22  }
 0x145   :  { %v1445_v23 = vpop.permute.xlu0 %1444   ;;  %v1478_v24 = vpop.permute.xlu1 %1477  }
 0x146   :  { %2122 = vst.msk [vmem:[%s4127_s1 + $0xc8] sm:$0xff] %vm1380_vm11, %v1445_v23   ;;  %2131 = vst.msk [vmem:[%s4127_s1 + $0xb0] sm:$0xff] %vm1380_vm11, %v1478_v24  }
 0x149   :  { %v1467_v25 = vpop.permute.xlu0 %1466   ;;  %v1500_v26 = vpop.permute.xlu1 %1499  }
 0x14a   :  { %2128 = vst.msk [vmem:[%s4127_s1 + $0x50] sm:$0xff] %vm1380_vm11, %v1467_v25   ;;  %2137 = vst.msk [vmem:[%s4127_s1 + $0x170] sm:$0xff] %vm1380_vm11, %v1500_v26  }
 0x14d   :  { %v1489_v27 = vpop.permute.xlu0 %1488   ;;  %v1522_v28 = vpop.permute.xlu1 %1521  }
 0x14e   :  { %2134 = vst.msk [vmem:[%s4127_s1 + $0x110] sm:$0xff] %vm1380_vm11, %v1489_v27   ;;  %2143 = vst.msk [vmem:[%s4127_s1 + $0x98] sm:$0xff] %vm1380_vm11, %v1522_v28  }
 0x151   :  { %v1511_v29 = vpop.permute.xlu0 %1510   ;;  %v1544_v30 = vpop.permute.xlu1 %1543  }
 0x152   :  { %2140 = vst.msk [vmem:[%s4127_s1 + $0x38] sm:$0xff] %vm1380_vm11, %v1511_v29   ;;  %2149 = vst.msk [vmem:[%s4127_s1 + $0x158] sm:$0xff] %vm1380_vm11, %v1544_v30  }
 0x155   :  { %v1533_v31 = vpop.permute.xlu0 %1532   ;;  %v1566_v32 = vpop.permute.xlu1 %1565  }
 0x156   :  { %2146 = vst.msk [vmem:[%s4127_s1 + $0xf8] sm:$0xff] %vm1380_vm11, %v1533_v31  }
 0x157   :  { %2155 = vst.msk [vmem:[%s4127_s1 + $0xa0] sm:$0xff] %vm1556_vm12, %v1566_v32  }
 0x159   :  { %v1555_v33 = vpop.permute.xlu0 %1554   ;;  %v1588_v34 = vpop.permute.xlu1 %1587  }
 0x15a   :  { %2152 = vst.msk [vmem:[%s4127_s1 + $0x40] sm:$0xff] %vm1556_vm12, %v1555_v33   ;;  %2161 = vst.msk [vmem:[%s4127_s1 + $0x160] sm:$0xff] %vm1556_vm12, %v1588_v34  }
 0x15d   :  { %v1577_v35 = vpop.permute.xlu0 %1576   ;;  %v1610_v36 = vpop.permute.xlu1 %1609  }
 0x15e   :  { %2158 = vst.msk [vmem:[%s4127_s1 + $0x100] sm:$0xff] %vm1556_vm12, %v1577_v35   ;;  %2167 = vst.msk [vmem:[%s4127_s1 + $0x88] sm:$0xff] %vm1556_vm12, %v1610_v36  }
 0x161   :  { %v1599_v37 = vpop.permute.xlu0 %1598   ;;  %v1632_v38 = vpop.permute.xlu1 %1631  }
 0x162   :  { %2164 = vst.msk [vmem:[%s4127_s1 + $0x28] sm:$0xff] %vm1556_vm12, %v1599_v37   ;;  %2173 = vst.msk [vmem:[%s4127_s1 + $0x148] sm:$0xff] %vm1556_vm12, %v1632_v38  }
 0x165   :  { %v1621_v39 = vpop.permute.xlu0 %1620   ;;  %v1654_v40 = vpop.permute.xlu1 %1653  }
 0x166   :  { %2170 = vst.msk [vmem:[%s4127_s1 + $0xe8] sm:$0xff] %vm1556_vm12, %v1621_v39   ;;  %2179 = vst.msk [vmem:[%s4127_s1 + $0x70] sm:$0xff] %vm1556_vm12, %v1654_v40  }
 0x169   :  { %v1643_v41 = vpop.permute.xlu0 %1642   ;;  %v1676_v42 = vpop.permute.xlu1 %1675  }
 0x16a   :  { %2176 = vst.msk [vmem:[%s4127_s1 + $0x10] sm:$0xff] %vm1556_vm12, %v1643_v41   ;;  %2185 = vst.msk [vmem:[%s4127_s1 + $0x130] sm:$0xff] %vm1556_vm12, %v1676_v42  }
 0x16d   :  { %v1665_v43 = vpop.permute.xlu0 %1664   ;;  %v1698_v44 = vpop.permute.xlu1 %1697  }
 0x16e   :  { %2182 = vst.msk [vmem:[%s4127_s1 + $0xd0] sm:$0xff] %vm1556_vm12, %v1665_v43   ;;  %2191 = vst.msk [vmem:[%s4127_s1 + $0xb8] sm:$0xff] %vm1556_vm12, %v1698_v44  }
 0x171   :  { %v1687_v45 = vpop.permute.xlu0 %1686   ;;  %v1720_v46 = vpop.permute.xlu1 %1719  }
 0x172   :  { %2188 = vst.msk [vmem:[%s4127_s1 + $0x58] sm:$0xff] %vm1556_vm12, %v1687_v45   ;;  %2197 = vst.msk [vmem:[%s4127_s1 + $0x178] sm:$0xff] %vm1556_vm12, %v1720_v46  }
 0x175   :  { %v1709_v47 = vpop.permute.xlu0 %1708  }
 0x176   :  { %2194 = vst.msk [vmem:[%s4127_s1 + $0x118] sm:$0xff] %vm1556_vm12, %v1709_v47  }

// kernel: cnn_candle_forward.1
= control target key start
LH: loop header
LB: loop body
LE: loop exit
PB: predicated region body
PF: predicated region fallthrough
CT: control target
= control target key end

     0   :  { %v5526_v1 = vmov 0.0   ;;  %s3817_s15 = smov 127   ;;  %s3818_s18 = smov 126   ;;  %vm53_vm0 = vcmask 1039360   ;;  %vm66_vm1 = vcmask 1043456   ;;  %vm56_vm2 = vcmask 31744   ;;  %s5515_s0 = inlined_call_operand.vmem [shape: f32[4,320], index: 0, kind: input, shape index: {}]   ;;  %s5516_s1 = inlined_call_operand.vmem [shape: f32[3,24,4], index: 1, kind: input, shape index: {}]   ;;  %s5517_s2 = inlined_call_operand.vmem [shape: f32[3,40,24], index: 2, kind: input, shape index: {}]   ;;  %s5518_s3 = inlined_call_operand.vmem [shape: f32[3,16,40], index: 3, kind: input, shape index: {}]   ;;  %s5519_s9 = inlined_call_operand.vmem [shape: f32[305,8], index: 9, kind: input, shape index: {}]   ;;  %s5520_s5 = inlined_call_operand.vmem [shape: f32[16,16,305], index: 5, kind: input, shape index: {}]   ;;  %s5521_s4 = inlined_call_operand.vmem [shape: f32[16,8,305], index: 4, kind: input, shape index: {}]   ;;  %s5522_s6 = inlined_call_operand.vmem [shape: f32[16,1], index: 6, kind: input, shape index: {}]   ;;  %s5523_s8 = inlined_call_operand.vmem [shape: f32[8,1], index: 8, kind: input, shape index: {}]   ;;  %s5524_s7 = inlined_call_operand.vmem [shape: f32[8,16], index: 7, kind: input, shape index: {}]   ;;  %s5525_s10 = inlined_call_operand.vmem [shape: f32[8,8], index: 10, kind: output, shape index: {}]  }
   0x1   :  { %v35_v0 = vld [vmem:[%s5515_s0] sm:$0xff]  ;;  %137 = vmatprep.mubr.f32.mxu0 %v5526_v1  ;;  %143 = vmatprep.mubr.f32.mxu1 %v5526_v1  ;;  %v36_v3 = vld [vmem:[%s5515_s0 + $0x8] sm:$0xf]  ;;  %v3441_v9 = vld [vmem:[%s5516_s1 + $0x18] sm:$0xff]  ;;  %vm424_vm3 = vcmask 1031168   ;;  %vm3819_vm4 = vmmov 0  }
   0x2   :  { %47 = vrot.lane.b32.xlu1 %v35_v0, %s3817_s15  ;;  %v46_v2 = vcombine.high %v35_v0, %v35_v0  ;;  %v3442_v10 = vld [vmem:[%s5516_s1 + $0x20] sm:$0xff]  ;;  %v3443_v13 = vld [vmem:[%s5516_s1 + $0x28] sm:$0xff]  ;;  %v39_v19 = vld [vmem:[%s5516_s1 + $0x10] sm:$0xff]  ;;  %vm676_vm5 = vcmask 195584   ;;  %vm1101_vm6 = vcmask 1014784   ;;  %vm1422_vm7 = vcmask 326656  }
   0x3   :  { %v37_v14 = vld [vmem:[%s5516_s1] sm:$0xff]  ;;  %v38_v18 = vld [vmem:[%s5516_s1 + $0x8] sm:$0xff]  ;;  %v3462_v20 = vld [vmem:[%s5516_s1 + $0x30] sm:$0xff]  ;;  %s3821_s27 = smov 120   ;;  %vm1772_vm8 = vcmask 982016   ;;  %vm3181_vm9 = vcmask 1040384  }
   0x4   :  { %49 = vrot.lane.b32.xlu0 %v46_v2, %s3817_s15  ;;  %v3463_v21 = vld [vmem:[%s5516_s1 + $0x38] sm:$0xff]  ;;  %v3464_v22 = vld [vmem:[%s5516_s1 + $0x40] sm:$0xff]  ;;  %s3820_s1 = smov 124   ;;  %vm2124_vm10 = vcmask 400384   ;;  %vm3124_vm11 = vcmask 1041409   ;;  %vm3126_vm12 = vcmask 1042434  }
   0x5   :  { %vm3128_vm13 = vcmask 1043459   ;;  %vm3130_vm14 = vcmask 1044484   ;;  %vm3132_vm15 = vcmask 1045509  }
   0x6   :  { %420 = vrot.lane.b32.xlu1 %v46_v2, %s3818_s18 }
   0x8   :  { %51 = vrot.lane.b32.xlu0 %v36_v3, %s3817_s15 }
   0xa   :  { %418 = vrot.lane.b32.xlu1 %v35_v0, %s3818_s18 }
   0xc   :  { %422 = vrot.lane.b32.xlu0 %v36_v3, %s3818_s18 }
  0x74   :  { %v48_v4 = vpop.permute.xlu1 %47 }
  0x76   :  { %v50_v5 = vpop.permute.xlu0 %49 }
  0x77   :  { %v54_v11 = vsel %vm53_vm0, %v48_v4, %v50_v5 }
  0x78   :  { %v421_v6 = vpop.permute.xlu1 %420 }
  0x7a   :  { %v52_v7 = vpop.permute.xlu0 %51 }
  0x7b   :  { %v55_v8 = vsel %vm53_vm0, %v50_v5, %v52_v7 }
  0x7c   :  { %3444 = vmatprep.subr.msk.mxu0 %vm66_vm1, %v55_v8  ;;  %3800 = vmatprep.subr.msk.mxu1 %vm66_vm1, %v55_v8  ;;  %v419_v15 = vpop.permute.xlu1 %418 }
  0x7d   :  { %3445 = vmatpush1.msk.msra.mxu0 %vm66_vm1, %v54_v11  ;;  %3801 = vmatpush1.msk.msra.mxu1 %vm66_vm1, %v54_v11  ;;  %v425_v17 = vsel %vm424_vm3, %v419_v15, %v421_v6 }
  0x7e   :  { %3446 = vmatmul.mubr.msk.f32.vlgmr.msra.gmra.mxu0 %vm56_vm2, %v3441_v9  ;;  %3447 = vmatmul.mubr.msk.f32.vlgmr.msra.gmra.mxu1 %vm56_vm2, %v3442_v10  ;;  %v423_v12 = vpop.permute.xlu0 %422 }
  0x7f   :  { %3641 = vmatprep.subr.mxu1 %v5526_v1  ;;  %3453 = vmatprep.subr.msk.mxu0 %vm66_vm1, %v46_v2  ;;  %v426_v16 = vsel %vm424_vm3, %v421_v6, %v423_v12 }
  0x80   :  { %3642 = vmatpush3.msk.msra.mxu1 %vm66_vm1, %v52_v7  ;;  %149 = vmatprep.mubr.f32.mxu1 %v5526_v1 }
  0x81   :  { %3454 = vmatpush1.msk.msra.mxu0 %vm66_vm1, %v35_v0  ;;  %315 = vmatprep.mubr.f32.mxu0 %v5526_v1 }
  0x82   :  { %3448 = vmatmul.mubr.msk.f32.gmra.mxu1 %vm56_vm2, %v3443_v13  ;;  %3455 = vmatmul.mubr.msk.f32.vlgmr.msra.gmra.mxu0 %vm56_vm2, %v37_v14 }
  0x83   :  { %3643 = vmatprep.mubr.msk.f32.mxu1 %vm3819_vm4, %v5526_v1  ;;  %321 = vmatprep.mubr.f32.mxu0 %v5526_v1 }
  0x84   :  { %3465 = vmatprep.subr.msk.mxu0 %vm66_vm1, %v426_v16  ;;  %3652 = vmatprep.subr.mxu1 %v5526_v1 }
  0x85   :  { %3466 = vmatpush1.msk.msra.mxu0 %vm66_vm1, %v425_v17 }
  0x86   :  { %3644 = vmatmul.mubr.msk.f32.vlgmr.msra.gmra.mxu1 %vm56_vm2, %v3441_v9  ;;  %3456 = vmatmul.mubr.msk.f32.gmra.mxu0 %vm56_vm2, %v38_v18 }
  0x87   :  { %3646 = vmatprep.mubr.msk.f32.mxu1 %vm3819_vm4, %v5526_v1  ;;  %327 = vmatprep.mubr.f32.mxu0 %v5526_v1 }
  0x88   :  { %3653 = vmatpush3.msk.msra.mxu1 %vm66_vm1, %v36_v3 }
  0x89   :  { %3663 = vmatprep.subr.mxu1 %v5526_v1 }
  0x8a   :  { %3647 = vmatmul.mubr.msk.f32.gmra.mxu1 %vm56_vm2, %v3442_v10  ;;  %3457 = vmatmul.mubr.msk.f32.gmra.mxu0 %vm56_vm2, %v39_v19 }
  0x8b   :  { %3649 = vmatprep.mubr.msk.f32.mxu1 %vm3819_vm4, %v5526_v1  ;;  %506 = vmatprep.mubr.f32.mxu0 %v5526_v1 }
  0x8e   :  { %3650 = vmatmul.mubr.msk.f32.gmra.mxu1 %vm56_vm2, %v3443_v13  ;;  %3467 = vmatmul.mubr.msk.f32.vlgmr.msra.gmra.mxu0 %vm56_vm2, %v3462_v20 }
  0x8f   :  { %3654 = vmatprep.mubr.msk.f32.mxu1 %vm3819_vm4, %v5526_v1  ;;  %512 = vmatprep.mubr.f32.mxu0 %v5526_v1 }
  0x92   :  { %3655 = vmatmul.mubr.msk.f32.vlgmr.msra.gmra.mxu1 %vm56_vm2, %v37_v14  ;;  %3468 = vmatmul.mubr.msk.f32.gmra.mxu0 %vm56_vm2, %v3463_v21 }
  0x93   :  { %3664 = vmatpush3.msk.msra.mxu1 %vm66_vm1, %v423_v12  ;;  %3657 = vmatprep.mubr.msk.f32.mxu1 %vm3819_vm4, %v5526_v1  ;;  %vm3136_vm1 = vcmask 1047559  }
  0x94   :  { %518 = vmatprep.mubr.f32.mxu0 %v5526_v1  ;;  %3674 = vmatprep.subr.mxu1 %v5526_v1 }
  0x96   :  { %3658 = vmatmul.mubr.msk.f32.gmra.mxu1 %vm56_vm2, %v38_v18  ;;  %3469 = vmatmul.mubr.msk.f32.gmra.mxu0 %vm56_vm2, %v3464_v22 }
  0x97   :  { %3660 = vmatprep.mubr.msk.f32.mxu1 %vm3819_vm4, %v5526_v1  ;;  %756 = vmatprep.mubr.f32.mxu0 %v5526_v1 }
  0x9a   :  { %3661 = vmatmul.mubr.msk.f32.gmra.mxu1 %vm56_vm2, %v39_v19 }
  0x9b   :  { %3665 = vmatprep.mubr.msk.f32.mxu1 %vm3819_vm4, %v5526_v1 }
  0x9e   :  { %3666 = vmatmul.mubr.msk.f32.vlgmr.msra.gmra.mxu1 %vm56_vm2, %v3462_v20 }
  0x9f   :  { %3668 = vmatprep.mubr.msk.f32.mxu1 %vm3819_vm4, %v5526_v1 }
  0xa2   :  { %3669 = vmatmul.mubr.msk.f32.gmra.mxu1 %vm56_vm2, %v3463_v21 }
  0xa3   :  { %3671 = vmatprep.mubr.msk.f32.mxu1 %vm3819_vm4, %v5526_v1 }
  0xa6   :  { %3672 = vmatmul.mubr.msk.f32.gmra.mxu1 %vm56_vm2, %v3464_v22  ;;  %vm3342_vm2 = vcmask 130048  }
  0xa7   :  { %3680 = vmatprep.mubr.msk.f32.mxu1 %vm3819_vm4, %v5526_v1 }
 0x13e   :  { %v139_v23 = vpop.f32.mrf.mxu0  ;;  %v145_v24 = vpop.f32.mrf.mxu1 }
 0x140   :  { %v141_v25 = vpop.f32.mrf.mxu0  ;;  %v147_v26 = vpop.f32.mrf.mxu1 }
 0x142   :  { %v151_v27 = vpop.f32.mrf.mxu1  ;;  %v317_v28 = vpop.f32.mrf.mxu0 }
 0x143   :  { %v318_v9 = vadd.f32 %v317_v28, %v139_v23 }
 0x144   :  { %v153_v29 = vpop.f32.mrf.mxu1  ;;  %v319_v30 = vpop.f32.mrf.mxu0 }
 0x145   :  { %v320_v41 = vadd.f32 %v319_v30, %v141_v25 }
 0x146   :  { %v222_v31 = vpop.f32.mrf.mxu1  ;;  %v323_v32 = vpop.f32.mrf.mxu0 }
 0x147   :  { %v324_v44 = vadd.f32 %v323_v32, %v145_v24 }
 0x148   :  { %v3645_v33 = vpop.f32.mrf.mxu1  ;;  %v325_v34 = vpop.f32.mrf.mxu0 }
 0x149   :  { %v326_v48 = vadd.f32 %v325_v34, %v147_v26  ;;  %v3474_v34 = vld [vmem:[%s5517_s2 + $0x28] sm:$0xff] }
 0x14a   :  { %v227_v35 = vpop.f32.mrf.mxu1  ;;  %v329_v36 = vpop.f32.mrf.mxu0 }
 0x14b   :  { %v330_v53 = vadd.f32 %v329_v36, %v151_v27 }
 0x14c   :  { %v3648_v37 = vpop.f32.mrf.mxu1  ;;  %v331_v38 = vpop.f32.mrf.mxu0 }
 0x14d   :  { %v332_v58 = vadd.f32 %v331_v38, %v153_v29 }
 0x14e   :  { %v232_v39 = vpop.f32.mrf.mxu1  ;;  %v508_v40 = vpop.f32.mrf.mxu0 }
 0x14f   :  { %v605_v12 = vadd.f32 %v508_v40, %v318_v9 }
 0x150   :  { %v3651_v42 = vpop.f32.mrf.mxu1  ;;  %v510_v43 = vpop.f32.mrf.mxu0 }
 0x151   :  { %v606_v45 = vadd.f32 %v510_v43, %v320_v41  ;;  %v4008_v19 = vmax.f32 %v605_v12, 0.0  ;;  %v3475_v42 = vld [vmem:[%s5517_s2 + $0x30] sm:$0xff] }
 0x152   :  { %v400_v46 = vpop.f32.mrf.mxu1  ;;  %v514_v47 = vpop.f32.mrf.mxu0 }
 0x153   :  { %v3984_v49 = vmax.f32 %v606_v45, 0.0  ;;  %v608_v50 = vadd.f32 %v514_v47, %v324_v44  ;;  %v401_v16 = vadd.f32 %v400_v46, %v222_v31  ;;  %v3476_v44 = vld [vmem:[%s5517_s2 + $0x38] sm:$0xff]  ;;  %v3477_v47 = vld [vmem:[%s5517_s2 + $0x40] sm:$0xff] }
 0x154   :  { %v3656_v51 = vpop.f32.mrf.mxu1  ;;  %v516_v52 = vpop.f32.mrf.mxu0 }
 0x155   :  { %v3986_v54 = vmax.f32 %v608_v50, 0.0  ;;  %v609_v55 = vadd.f32 %v516_v52, %v326_v48  ;;  %645 = vrot.lane.b32.xlu0 %v3984_v49, %s3818_s18  ;;  %v623_v50 = vld [vmem:[%s5517_s2] sm:$0xff] }
 0x156   :  { %v405_v56 = vpop.f32.mrf.mxu1  ;;  %v520_v57 = vpop.f32.mrf.mxu0 }
 0x157   :  { %v611_v59 = vadd.f32 %v520_v57, %v330_v53  ;;  %649 = vrot.lane.b32.xlu1 %v3986_v54, %s3818_s18  ;;  %v3992_v62 = vmax.f32 %v609_v55, 0.0  ;;  %v406_v7 = vadd.f32 %v405_v56, %v227_v35  ;;  %v624_v53 = vld [vmem:[%s5517_s2 + $0x8] sm:$0xff] }
 0x158   :  { %v3659_v60 = vpop.f32.mrf.mxu1  ;;  %v522_v61 = vpop.f32.mrf.mxu0 }
 0x159   :  { %v3994_v63 = vmax.f32 %v611_v59, 0.0  ;;  %v612_v0 = vadd.f32 %v522_v61, %v332_v58  ;;  %v625_v59 = vld [vmem:[%s5517_s2 + $0x10] sm:$0xff]  ;;  %v626_v61 = vld [vmem:[%s5517_s2 + $0x18] sm:$0xff] }
 0x15a   :  { %v410_v2 = vpop.f32.mrf.mxu1 }
 0x15b   :  { %651 = vrot.lane.b32.xlu1 %v3992_v62, %s3818_s18  ;;  %655 = vrot.lane.b32.xlu0 %v3994_v63, %s3818_s18  ;;  %v4000_v4 = vmax.f32 %v612_v0, 0.0  ;;  %v411_v13 = vadd.f32 %v410_v2, %v232_v39  ;;  %v3500_v0 = vld [vmem:[%s5517_s2 + $0x58] sm:$0xff]  ;;  %v3501_v2 = vld [vmem:[%s5517_s2 + $0x60] sm:$0xff] }
 0x15c   :  { %v3662_v3 = vpop.f32.mrf.mxu1 }
 0x15d   :  { %v3502_v3 = vld [vmem:[%s5517_s2 + $0x68] sm:$0xff] }
 0x15e   :  { %v591_v5 = vpop.f32.mrf.mxu1 }
 0x15f   :  { %657 = vrot.lane.b32.xlu0 %v4000_v4, %s3818_s18  ;;  %v607_v20 = vadd.f32 %v591_v5, %v401_v16 }
 0x160   :  { %v3667_v6 = vpop.f32.mrf.mxu1 }
 0x161   :  { %v616_v22 = vmax.f32 %v607_v20, 0.0 }
 0x162   :  { %v596_v8 = vpop.f32.mrf.mxu1 }
 0x163   :  { %v610_v10 = vadd.f32 %v596_v8, %v406_v7 }
 0x164   :  { %v3670_v11 = vpop.f32.mrf.mxu1 }
 0x165   :  { %v4004_v14 = vmax.f32 %v610_v10, 0.0 }
 0x166   :  { %v601_v15 = vpop.f32.mrf.mxu1 }
 0x167   :  { %v613_v17 = vadd.f32 %v601_v15, %v411_v13  ;;  %653 = vrot.lane.b32.xlu0 %v4004_v14, %s3818_s18 }
 0x168   :  { %v3673_v18 = vpop.f32.mrf.mxu1 }
 0x169   :  { %v622_v21 = vmax.f32 %v613_v17, 0.0 }
 0x16b   :  { %659 = vrot.lane.b32.xlu1 %v622_v21, %s3818_s18  ;;  %643 = vrot.lane.b32.xlu0 %v4008_v19, %s3818_s18 }
 0x16f   :  { %647 = vrot.lane.b32.xlu1 %v616_v22, %s3818_s18  ;;  %1091 = vrot.lane.b32.xlu0 %v3992_v62, %s3820_s1 }
 0x173   :  { %1097 = vrot.lane.b32.xlu1 %v4000_v4, %s3820_s1  ;;  %1089 = vrot.lane.b32.xlu0 %v3986_v54, %s3820_s1 }
 0x177   :  { %1095 = vrot.lane.b32.xlu1 %v3994_v63, %s3820_s1  ;;  %1099 = vrot.lane.b32.xlu0 %v622_v21, %s3820_s1 }
 0x17b   :  { %1093 = vrot.lane.b32.xlu1 %v4004_v14, %s3820_s1  ;;  %1087 = vrot.lane.b32.xlu0 %v616_v22, %s3820_s1 }
 0x17f   :  { %1085 = vrot.lane.b32.xlu1 %v3984_v49, %s3820_s1 }
 0x183   :  { %1083 = vrot.lane.b32.xlu1 %v4008_v19, %s3820_s1 }
 0x1c7   :  { %v646_v23 = vpop.permute.xlu0 %645 }
 0x1c9   :  { %v650_v25 = vpop.permute.xlu1 %649 }
 0x1cd   :  { %v656_v24 = vpop.permute.xlu0 %655  ;;  %v652_v27 = vpop.permute.xlu1 %651 }
 0x1ce   :  { %v663_v35 = vsel %vm424_vm3, %v650_v25, %v652_v27 }
 0x1d1   :  { %v658_v26 = vpop.permute.xlu0 %657 }
 0x1d2   :  { %v665_v32 = vsel %vm424_vm3, %v656_v24, %v658_v26 }
 0x1d9   :  { %v654_v28 = vpop.permute.xlu0 %653 }
 0x1da   :  { %v664_v33 = vsel %vm424_vm3, %v652_v27, %v654_v28 }
 0x1dd   :  { %v660_v29 = vpop.permute.xlu1 %659  ;;  %v644_v30 = vpop.permute.xlu0 %643 }
 0x1de   :  { %3675 = vmatpush3.msra.mxu1 %v660_v29  ;;  %v666_v31 = vsel %vm424_vm3, %v658_v26, %v660_v29  ;;  %v661_v39 = vsel %vm424_vm3, %v644_v30, %v646_v23 }
 0x1df   :  { %718 = vmatprep.subr.mxu0 %v666_v31  ;;  %3676 = vmatprep.subr.mxu1 %v5526_v1 }
 0x1e0   :  { %719 = vmatpush1.msra.mxu0 %v665_v32  ;;  %3677 = vmatpush3.msra.mxu1 %v654_v28 }
 0x1e1   :  { %v648_v36 = vpop.permute.xlu1 %647  ;;  %720 = vmatprep.subr.mxu0 %v664_v33  ;;  %3678 = vmatprep.subr.mxu1 %v5526_v1  ;;  %v4039_v37 = vpop.permute.xlu0 %1091 }
 0x1e2   :  { %721 = vmatpush1.msra.mxu0 %v663_v35  ;;  %3679 = vmatpush3.msra.mxu1 %v648_v36  ;;  %v662_v38 = vsel %vm424_vm3, %v646_v23, %v648_v36  ;;  %vm3416_vm3 = vcmask 64512  }
 0x1e3   :  { %722 = vmatprep.subr.mxu0 %v662_v38  ;;  %3681 = vmatmul.mubr.msk.f32.vlgmr.msra.gmra.mxu1 %vm676_vm5, %v3474_v34 }
 0x1e4   :  { %3695 = vmatprep.subr.mxu1 %v5526_v1  ;;  %723 = vmatpush1.msra.mxu0 %v661_v39 }
 0x1e5   :  { %3696 = vmatpush3.msra.mxu1 %v622_v21  ;;  %v1098_v40 = vpop.permute.xlu1 %1097  ;;  %3479 = vmatmul.mubr.msk.f32.vlgmr.msra.gmra.mxu0 %vm676_vm5, %v3474_v34  ;;  %v1090_v41 = vpop.permute.xlu0 %1089 }
 0x1e6   :  { %918 = vmatprep.subr.mxu0 %v4000_v4  ;;  %3697 = vmatprep.subr.mxu1 %v5526_v1  ;;  %v1104_v55 = vsel %vm1101_vm6, %v1090_v41, %v4039_v37  ;;  %v3503_v4 = vld [vmem:[%s5517_s2 + $0x70] sm:$0xff] }
 0x1e7   :  { %3683 = vmatprep.mubr.msk.f32.mxu1 %vm3819_vm4, %v5526_v1  ;;  %919 = vmatpush1.msra.mxu0 %v3994_v63  ;;  %v3499_v63 = vld [vmem:[%s5517_s2 + $0x50] sm:$0xff] }
 0x1e8   :  { %3698 = vmatpush3.msra.mxu1 %v4004_v14  ;;  %920 = vmatprep.subr.mxu0 %v3992_v62  ;;  %v627_v62 = vld [vmem:[%s5517_s2 + $0x20] sm:$0xff] }
 0x1e9   :  { %3684 = vmatmul.mubr.msk.f32.gmra.mxu1 %vm676_vm5, %v3475_v42  ;;  %3699 = vmatprep.subr.mxu1 %v5526_v1  ;;  %v1100_v43 = vpop.permute.xlu0 %1099  ;;  %v1096_v45 = vpop.permute.xlu1 %1095 }
 0x1ea   :  { %762 = vmatprep.mubr.f32.mxu0 %v5526_v1  ;;  %921 = vmatpush1.msra.mxu0 %v3986_v54  ;;  %v1107_v46 = vsel %vm1101_vm6, %v1098_v40, %v1100_v43  ;;  %v1106_v52 = vsel %vm1101_vm6, %v1096_v45, %v1098_v40 }
 0x1eb   :  { %3700 = vmatpush3.msra.mxu1 %v616_v22  ;;  %3480 = vmatmul.mubr.msk.f32.gmra.mxu0 %vm676_vm5, %v3475_v42 }
 0x1ec   :  { %922 = vmatprep.subr.mxu0 %v3984_v49  ;;  %3686 = vmatprep.mubr.msk.f32.mxu1 %vm3819_vm4, %v5526_v1  ;;  %v3478_v49 = vld [vmem:[%s5517_s2 + $0x48] sm:$0xff] }
 0x1ed   :  { %923 = vmatpush1.msra.mxu0 %v4008_v19  ;;  %3687 = vmatmul.mubr.msk.f32.gmra.mxu1 %vm676_vm5, %v3476_v44  ;;  %v1094_v48 = vpop.permute.xlu1 %1093  ;;  %v1088_v57 = vpop.permute.xlu0 %1087 }
 0x1ee   :  { %1158 = vmatprep.subr.mxu0 %v1107_v46  ;;  %768 = vmatprep.mubr.f32.mxu0 %v5526_v1  ;;  %v1105_v54 = vsel %vm1101_vm6, %v4039_v37, %v1094_v48 }
 0x1ef   :  { %3481 = vmatmul.mubr.msk.f32.gmra.mxu0 %vm676_vm5, %v3476_v44  ;;  %3689 = vmatprep.mubr.msk.f32.mxu1 %vm3819_vm4, %v5526_v1 }
 0x1f0   :  { %774 = vmatprep.mubr.f32.mxu0 %v5526_v1  ;;  %3716 = vmatprep.subr.mxu1 %v5526_v1 }
 0x1f1   :  { %3690 = vmatmul.mubr.msk.f32.gmra.mxu1 %vm676_vm5, %v3477_v47  ;;  %v1086_v51 = vpop.permute.xlu1 %1085 }
 0x1f2   :  { %3692 = vmatprep.mubr.msk.f32.mxu1 %vm3819_vm4, %v5526_v1  ;;  %v1103_v58 = vsel %vm1101_vm6, %v1086_v51, %v1088_v57 }
 0x1f3   :  { %3482 = vmatmul.mubr.msk.f32.gmra.mxu0 %vm676_vm5, %v3477_v47 }
 0x1f4   :  { %780 = vmatprep.mubr.f32.mxu0 %v5526_v1 }
 0x1f5   :  { %3693 = vmatmul.mubr.msk.f32.gmra.mxu1 %vm676_vm5, %v3478_v49  ;;  %v1084_v56 = vpop.permute.xlu1 %1083 }
 0x1f6   :  { %3701 = vmatprep.mubr.msk.f32.mxu1 %vm3819_vm4, %v5526_v1  ;;  %v1102_v60 = vsel %vm1101_vm6, %v1084_v56, %v1086_v51 }
 0x1f7   :  { %3483 = vmatmul.mubr.msk.f32.gmra.mxu0 %vm676_vm5, %v3478_v49 }
 0x1f8   :  { %956 = vmatprep.mubr.f32.mxu0 %v5526_v1 }
 0x1f9   :  { %3702 = vmatmul.mubr.msk.f32.vlgmr.msra.gmra.mxu1 %vm676_vm5, %v623_v50 }
 0x1fa   :  { %3717 = vmatpush3.msra.mxu1 %v1100_v43  ;;  %3704 = vmatprep.mubr.msk.f32.mxu1 %vm3819_vm4, %v5526_v1 }
 0x1fb   :  { %3718 = vmatprep.subr.mxu1 %v5526_v1  ;;  %3489 = vmatmul.mubr.msk.f32.vlgmr.msra.gmra.mxu0 %vm676_vm5, %v623_v50 }
 0x1fc   :  { %1159 = vmatpush1.msra.mxu0 %v1106_v52  ;;  %3719 = vmatpush3.msra.mxu1 %v1094_v48 }
 0x1fd   :  { %1160 = vmatprep.subr.mxu0 %v1105_v54  ;;  %3720 = vmatprep.subr.mxu1 %v5526_v1 }
 0x1fe   :  { %3705 = vmatmul.mubr.msk.f32.gmra.mxu1 %vm676_vm5, %v624_v53  ;;  %1161 = vmatpush1.msra.mxu0 %v1104_v55 }
 0x1ff   :  { %3721 = vmatpush3.msra.mxu1 %v1088_v57  ;;  %962 = vmatprep.mubr.f32.mxu0 %v5526_v1 }
 0x200   :  { %1162 = vmatprep.subr.mxu0 %v1103_v58  ;;  %3490 = vmatmul.mubr.msk.f32.gmra.mxu0 %vm676_vm5, %v624_v53 }
 0x201   :  { %1163 = vmatpush1.msra.mxu0 %v1102_v60  ;;  %3707 = vmatprep.mubr.msk.f32.mxu1 %vm3819_vm4, %v5526_v1 }
 0x202   :  { %3708 = vmatmul.mubr.msk.f32.gmra.mxu1 %vm676_vm5, %v625_v59  ;;  %968 = vmatprep.mubr.f32.mxu0 %v5526_v1 }
 0x203   :  { %3710 = vmatprep.mubr.msk.f32.mxu1 %vm3819_vm4, %v5526_v1 }
 0x204   :  { %3491 = vmatmul.mubr.msk.f32.gmra.mxu0 %vm676_vm5, %v625_v59 }
 0x205   :  { %974 = vmatprep.mubr.f32.mxu0 %v5526_v1 }
 0x206   :  { %3711 = vmatmul.mubr.msk.f32.gmra.mxu1 %vm676_vm5, %v626_v61 }
 0x207   :  { %3713 = vmatprep.mubr.msk.f32.mxu1 %vm3819_vm4, %v5526_v1 }
 0x208   :  { %3492 = vmatmul.mubr.msk.f32.gmra.mxu0 %vm676_vm5, %v626_v61 }
 0x209   :  { %980 = vmatprep.mubr.f32.mxu0 %v5526_v1 }
 0x20a   :  { %3714 = vmatmul.mubr.msk.f32.gmra.mxu1 %vm676_vm5, %v627_v62 }
 0x20b   :  { %3722 = vmatprep.mubr.msk.f32.mxu1 %vm3819_vm4, %v5526_v1 }
 0x20c   :  { %3493 = vmatmul.mubr.msk.f32.gmra.mxu0 %vm676_vm5, %v627_v62 }
 0x20d   :  { %1196 = vmatprep.mubr.f32.mxu0 %v5526_v1 }
 0x20e   :  { %3723 = vmatmul.mubr.msk.f32.vlgmr.msra.gmra.mxu1 %vm676_vm5, %v3499_v63 }
 0x20f   :  { %3725 = vmatprep.mubr.msk.f32.mxu1 %vm3819_vm4, %v5526_v1 }
 0x210   :  { %3504 = vmatmul.mubr.msk.f32.vlgmr.msra.gmra.mxu0 %vm676_vm5, %v3499_v63 }
 0x211   :  { %1202 = vmatprep.mubr.f32.mxu0 %v5526_v1 }
 0x212   :  { %3726 = vmatmul.mubr.msk.f32.gmra.mxu1 %vm676_vm5, %v3500_v0 }
 0x213   :  { %3728 = vmatprep.mubr.msk.f32.mxu1 %vm3819_vm4, %v5526_v1 }
 0x214   :  { %3505 = vmatmul.mubr.msk.f32.gmra.mxu0 %vm676_vm5, %v3500_v0 }
 0x215   :  { %1208 = vmatprep.mubr.f32.mxu0 %v5526_v1 }
 0x216   :  { %3729 = vmatmul.mubr.msk.f32.gmra.mxu1 %vm676_vm5, %v3501_v2 }
 0x217   :  { %3731 = vmatprep.mubr.msk.f32.mxu1 %vm3819_vm4, %v5526_v1 }
 0x218   :  { %3506 = vmatmul.mubr.msk.f32.gmra.mxu0 %vm676_vm5, %v3501_v2 }
 0x219   :  { %1214 = vmatprep.mubr.f32.mxu0 %v5526_v1 }
 0x21a   :  { %3732 = vmatmul.mubr.msk.f32.gmra.mxu1 %vm676_vm5, %v3502_v3 }
 0x21b   :  { %3734 = vmatprep.mubr.msk.f32.mxu1 %vm3819_vm4, %v5526_v1 }
 0x21c   :  { %3507 = vmatmul.mubr.msk.f32.gmra.mxu0 %vm676_vm5, %v3502_v3 }
 0x21d   :  { %1220 = vmatprep.mubr.f32.mxu0 %v5526_v1 }
 0x21e   :  { %3735 = vmatmul.mubr.msk.f32.gmra.mxu1 %vm676_vm5, %v3503_v4 }
 0x220   :  { %3508 = vmatmul.mubr.msk.f32.gmra.mxu0 %vm676_vm5, %v3503_v4 }
 0x221   :  { %1493 = vmatprep.mubr.f32.mxu0 %v5526_v1 }
 0x2a3   :  { %v853_v5 = vpop.f32.mrf.mxu1 }
 0x2a5   :  { %v758_v6 = vpop.f32.mrf.mxu0  ;;  %v3682_v7 = vpop.f32.mrf.mxu1 }
 0x2a7   :  { %v760_v8 = vpop.f32.mrf.mxu0 }
 0x2a9   :  { %v858_v9 = vpop.f32.mrf.mxu1 }
 0x2ab   :  { %v764_v10 = vpop.f32.mrf.mxu0  ;;  %v3685_v11 = vpop.f32.mrf.mxu1 }
 0x2ad   :  { %v766_v12 = vpop.f32.mrf.mxu0  ;;  %v863_v13 = vpop.f32.mrf.mxu1 }
 0x2af   :  { %v770_v14 = vpop.f32.mrf.mxu0  ;;  %v3688_v15 = vpop.f32.mrf.mxu1 }
 0x2b1   :  { %v4179_v16 = vpop.f32.mrf.mxu0  ;;  %v4181_v17 = vpop.f32.mrf.mxu1 }
 0x2b3   :  { %v4183_v18 = vpop.f32.mrf.mxu0  ;;  %v3691_v19 = vpop.f32.mrf.mxu1 }
 0x2b5   :  { %v4185_v20 = vpop.f32.mrf.mxu0  ;;  %v4187_v21 = vpop.f32.mrf.mxu1 }
 0x2b7   :  { %v4189_v22 = vpop.f32.mrf.mxu0  ;;  %v3694_v23 = vpop.f32.mrf.mxu1 }
 0x2b9   :  { %v4191_v24 = vpop.f32.mrf.mxu0  ;;  %v1053_v25 = vpop.f32.mrf.mxu1 }
 0x2ba   :  { %v1054_v44 = vadd.f32 %v1053_v25, %v853_v5 }
 0x2bb   :  { %v958_v26 = vpop.f32.mrf.mxu0  ;;  %v3703_v27 = vpop.f32.mrf.mxu1 }
 0x2bc   :  { %v959_v47 = vadd.f32 %v958_v26, %v758_v6 }
 0x2bd   :  { %v960_v28 = vpop.f32.mrf.mxu0 }
 0x2be   :  { %v1058_v29 = vpop.f32.mrf.mxu1  ;;  %v961_v61 = vadd.f32 %v960_v28, %v760_v8 }
 0x2bf   :  { %v1059_v51 = vadd.f32 %v1058_v29, %v858_v9 }
 0x2c0   :  { %v964_v30 = vpop.f32.mrf.mxu0  ;;  %v3706_v31 = vpop.f32.mrf.mxu1 }
 0x2c1   :  { %v965_v56 = vadd.f32 %v964_v30, %v764_v10 }
 0x2c2   :  { %v966_v32 = vpop.f32.mrf.mxu0  ;;  %v1063_v33 = vpop.f32.mrf.mxu1 }
 0x2c3   :  { %v1064_v62 = vadd.f32 %v1063_v33, %v863_v13  ;;  %v967_v10 = vadd.f32 %v966_v32, %v766_v12 }
 0x2c4   :  { %v970_v34 = vpop.f32.mrf.mxu0  ;;  %v3709_v35 = vpop.f32.mrf.mxu1 }
 0x2c5   :  { %v971_v11 = vadd.f32 %v970_v34, %v770_v14 }
 0x2c6   :  { %v972_v36 = vpop.f32.mrf.mxu0  ;;  %v1068_v37 = vpop.f32.mrf.mxu1 }
 0x2c7   :  { %v1069_v28 = vadd.f32 %v1068_v37, %v4181_v17  ;;  %v973_v35 = vadd.f32 %v972_v36, %v4179_v16 }
 0x2c8   :  { %v976_v38 = vpop.f32.mrf.mxu0  ;;  %v3712_v39 = vpop.f32.mrf.mxu1 }
 0x2c9   :  { %v977_v12 = vadd.f32 %v976_v38, %v4183_v18 }
 0x2ca   :  { %v4193_v40 = vpop.f32.mrf.mxu0  ;;  %v1073_v41 = vpop.f32.mrf.mxu1 }
 0x2cb   :  { %v1074_v17 = vadd.f32 %v1073_v41, %v4187_v21  ;;  %v4250_v21 = vld [vmem:[%s5518_s3 + $0x10] sm:$0xff] }
 0x2cc   :  { %v4195_v42 = vpop.f32.mrf.mxu0  ;;  %v3715_v43 = vpop.f32.mrf.mxu1  ;;  %3747 = vmatprep.mubr.msk.f32.mxu1 %vm1422_vm7, %v4250_v21 }
 0x2cd   :  { %v983_v16 = vadd.f32 %v4195_v42, %v4189_v22 }
 0x2ce   :  { %v4197_v45 = vpop.f32.mrf.mxu0  ;;  %v1293_v46 = vpop.f32.mrf.mxu1 }
 0x2cf   :  { %v1319_v48 = vadd.f32 %v1293_v46, %v1054_v44  ;;  %v979_v44 = vadd.f32 %v4193_v40, %v4185_v20  ;;  %v985_v40 = vadd.f32 %v4197_v45, %v4191_v24 }
 0x2d0   :  { %v1198_v49 = vpop.f32.mrf.mxu0  ;;  %v3724_v50 = vpop.f32.mrf.mxu1 }
 0x2d1   :  { %v4199_v52 = vmax.f32 %v1319_v48, 0.0  ;;  %v1317_v53 = vadd.f32 %v1198_v49, %v959_v47 }
 0x2d2   :  { %v1200_v54 = vpop.f32.mrf.mxu0  ;;  %v1298_v55 = vpop.f32.mrf.mxu1 }
 0x2d3   :  { %v4201_v57 = vmax.f32 %v1317_v53, 0.0  ;;  %v1322_v58 = vadd.f32 %v1298_v55, %v1059_v51  ;;  %1371 = vrot.lane.b32.xlu1 %v4199_v52, %s3820_s1  ;;  %v1318_v3 = vadd.f32 %v1200_v54, %v961_v61 }
 0x2d4   :  { %v1204_v59 = vpop.f32.mrf.mxu0  ;;  %v3727_v60 = vpop.f32.mrf.mxu1 }
 0x2d5   :  { %v1320_v63 = vadd.f32 %v1204_v59, %v965_v56  ;;  %1367 = vrot.lane.b32.xlu0 %v4201_v57, %s3820_s1  ;;  %v4207_v4 = vmax.f32 %v1322_v58, 0.0  ;;  %v4215_v15 = vmax.f32 %v1318_v3, 0.0 }
 0x2d6   :  { %v1206_v0 = vpop.f32.mrf.mxu0  ;;  %v1303_v2 = vpop.f32.mrf.mxu1 }
 0x2d7   :  { %v4209_v5 = vmax.f32 %v1320_v63, 0.0  ;;  %v1325_v6 = vadd.f32 %v1303_v2, %v1064_v62  ;;  %v1321_v19 = vadd.f32 %v1206_v0, %v967_v10 }
 0x2d8   :  { %v1210_v7 = vpop.f32.mrf.mxu0  ;;  %v3730_v9 = vpop.f32.mrf.mxu1 }
 0x2d9   :  { %1377 = vrot.lane.b32.xlu0 %v4207_v4, %s3820_s1  ;;  %1373 = vrot.lane.b32.xlu1 %v4209_v5, %s3820_s1  ;;  %v4217_v23 = vmax.f32 %v1325_v6, 0.0  ;;  %v1323_v25 = vadd.f32 %v1210_v7, %v971_v11  ;;  %v4225_v29 = vmax.f32 %v1321_v19, 0.0  ;;  %v3515_v7 = vld [vmem:[%s5518_s3 + $0x18] sm:$0xff] }
 0x2da   :  { %v1212_v8 = vpop.f32.mrf.mxu0  ;;  %v1308_v13 = vpop.f32.mrf.mxu1 }
 0x2db   :  { %v4227_v30 = vmax.f32 %v1323_v25, 0.0  ;;  %v1328_v31 = vadd.f32 %v1308_v13, %v1069_v28  ;;  %v1324_v18 = vadd.f32 %v1212_v8, %v973_v35 }
 0x2dc   :  { %v1216_v26 = vpop.f32.mrf.mxu0  ;;  %v3733_v27 = vpop.f32.mrf.mxu1 }
 0x2dd   :  { %1369 = vrot.lane.b32.xlu0 %v4215_v15, %s3820_s1  ;;  %1383 = vrot.lane.b32.xlu1 %v4217_v23, %s3820_s1  ;;  %v1326_v32 = vadd.f32 %v1216_v26, %v977_v12  ;;  %v4235_v37 = vmax.f32 %v1328_v31, 0.0  ;;  %v4252_v36 = vmax.f32 %v1324_v18, 0.0  ;;  %v1347_v31 = vld [vmem:[%s5518_s3] sm:$0xff] }
 0x2de   :  { %v1313_v14 = vpop.f32.mrf.mxu1  ;;  %v1218_v33 = vpop.f32.mrf.mxu0 }
 0x2df   :  { %v4237_v38 = vmax.f32 %v1326_v32, 0.0  ;;  %v1331_v39 = vadd.f32 %v1313_v14, %v1074_v17  ;;  %v1327_v41 = vadd.f32 %v1218_v33, %v979_v44 }
 0x2e0   :  { %v3736_v34 = vpop.f32.mrf.mxu1  ;;  %v1222_v43 = vpop.f32.mrf.mxu0 }
 0x2e1   :  { %1375 = vrot.lane.b32.xlu1 %v4225_v29, %s3820_s1  ;;  %1379 = vrot.lane.b32.xlu0 %v4227_v30, %s3820_s1  ;;  %v4254_v46 = vmax.f32 %v1331_v39, 0.0  ;;  %v1329_v20 = vadd.f32 %v1222_v43, %v983_v16  ;;  %v4264_v42 = vmax.f32 %v1327_v41, 0.0 }
 0x2e2   :  { %v1224_v22 = vpop.f32.mrf.mxu0 }
 0x2e3   :  { %v4266_v47 = vmax.f32 %v1329_v20, 0.0  ;;  %v1330_v48 = vadd.f32 %v1224_v22, %v985_v40 }
 0x2e5   :  { %1389 = vrot.lane.b32.xlu0 %v4235_v37, %s3820_s1  ;;  %1385 = vrot.lane.b32.xlu1 %v4237_v38, %s3820_s1  ;;  %v4272_v49 = vmax.f32 %v1330_v48, 0.0 }
 0x2e9   :  { %1381 = vrot.lane.b32.xlu0 %v4252_v36, %s3820_s1  ;;  %1395 = vrot.lane.b32.xlu1 %v4254_v46, %s3820_s1 }
 0x2ed   :  { %1387 = vrot.lane.b32.xlu1 %v4264_v42, %s3820_s1  ;;  %1391 = vrot.lane.b32.xlu0 %v4266_v47, %s3820_s1 }
 0x2f1   :  { %1766 = vrot.lane.b32.xlu1 %v4266_v47, %s3821_s27  ;;  %1393 = vrot.lane.b32.xlu0 %v4272_v49, %s3820_s1 }
 0x2f5   :  { %1764 = vrot.lane.b32.xlu1 %v4235_v37, %s3821_s27  ;;  %1770 = vrot.lane.b32.xlu0 %v4254_v46, %s3821_s27 }
 0x2f9   :  { %1756 = vrot.lane.b32.xlu1 %v4252_v36, %s3821_s27  ;;  %1762 = vrot.lane.b32.xlu0 %v4264_v42, %s3821_s27 }
 0x2fd   :  { %1754 = vrot.lane.b32.xlu1 %v4227_v30, %s3821_s27  ;;  %1760 = vrot.lane.b32.xlu0 %v4237_v38, %s3821_s27 }
 0x301   :  { %1768 = vrot.lane.b32.xlu1 %v4272_v49, %s3821_s27  ;;  %1758 = vrot.lane.b32.xlu0 %v4217_v23, %s3821_s27 }
 0x305   :  { %1752 = vrot.lane.b32.xlu1 %v4207_v4, %s3821_s27  ;;  %1750 = vrot.lane.b32.xlu0 %v4225_v29, %s3821_s27 }
 0x309   :  { %1744 = vrot.lane.b32.xlu1 %v4215_v15, %s3821_s27  ;;  %1748 = vrot.lane.b32.xlu0 %v4209_v5, %s3821_s27 }
 0x30d   :  { %1742 = vrot.lane.b32.xlu1 %v4201_v57, %s3821_s27  ;;  %1746 = vrot.lane.b32.xlu0 %v4199_v52, %s3821_s27 }
 0x311   :  { %1970 = vrot.lane.b32.xlu0 %v4215_v15, %s3817_s15 }
 0x345   :  { %v1372_v24 = vpop.permute.xlu1 %1371 }
 0x347   :  { %v1368_v45 = vpop.permute.xlu0 %1367 }
 0x34b   :  { %v1378_v50 = vpop.permute.xlu0 %1377  ;;  %v1374_v51 = vpop.permute.xlu1 %1373 }
 0x34f   :  { %v1370_v53 = vpop.permute.xlu0 %1369  ;;  %v1384_v54 = vpop.permute.xlu1 %1383 }
 0x350   :  { %v1398_v12 = vsel %vm1101_vm6, %v1370_v53, %v1372_v24  ;;  %v1397_v14 = vsel %vm1101_vm6, %v1368_v45, %v1370_v53 }
 0x353   :  { %v1376_v55 = vpop.permute.xlu1 %1375  ;;  %v1380_v56 = vpop.permute.xlu0 %1379 }
 0x354   :  { %v1400_v25 = vsel %vm1101_vm6, %v1376_v55, %v1378_v50  ;;  %v1399_v26 = vsel %vm1101_vm6, %v1374_v51, %v1376_v55 }
 0x357   :  { %v1390_v58 = vpop.permute.xlu0 %1389  ;;  %v1386_v59 = vpop.permute.xlu1 %1385 }
 0x35b   :  { %v1382_v60 = vpop.permute.xlu0 %1381  ;;  %v1396_v61 = vpop.permute.xlu1 %1395 }
 0x35c   :  { %3737 = vmatprep.subr.mxu1 %v1396_v61  ;;  %v1402_v13 = vsel %vm1101_vm6, %v1382_v60, %v1384_v54  ;;  %v1401_v19 = vsel %vm1101_vm6, %v1380_v56, %v1382_v60  ;;  %v3056_v56 = vld [vmem:[%s5519_s9 + $0xf8] sm:$0xff] }
 0x35d   :  { %3738 = vmatpush3.msra.mxu1 %v1396_v61 }
 0x35e   :  { %3739 = vmatprep.subr.mxu1 %v1390_v58 }
 0x35f   :  { %3740 = vmatpush3.msra.mxu1 %v1390_v58  ;;  %v1388_v62 = vpop.permute.xlu1 %1387  ;;  %v1392_v63 = vpop.permute.xlu0 %1391 }
 0x360   :  { %3741 = vmatprep.subr.mxu1 %v1384_v54  ;;  %v1404_v9 = vsel %vm1101_vm6, %v1388_v62, %v1390_v58  ;;  %v1403_v10 = vsel %vm1101_vm6, %v1386_v59, %v1388_v62  ;;  %v3040_v58 = vld [vmem:[%s5519_s9 + $0x78] sm:$0xff] }
 0x361   :  { %3742 = vmatpush3.msra.mxu1 %v1384_v54 }
 0x362   :  { %3743 = vmatprep.subr.mxu1 %v1378_v50 }
 0x363   :  { %3744 = vmatpush3.msra.mxu1 %v1378_v50  ;;  %v4293_v0 = vpop.permute.xlu1 %1766  ;;  %v1394_v2 = vpop.permute.xlu0 %1393 }
 0x364   :  { %v1405_v3 = vsel %vm1101_vm6, %v1392_v63, %v1394_v2  ;;  %3745 = vmatprep.subr.mxu1 %v1372_v24  ;;  %v1406_v6 = vsel %vm1101_vm6, %v1394_v2, %v1396_v61 }
 0x365   :  { %1451 = vmatprep.subr.mxu0 %v1406_v6  ;;  %3746 = vmatpush3.msra.mxu1 %v1372_v24  ;;  %v3039_v6 = vld [vmem:[%s5519_s9 + $0x70] sm:$0xff] }
 0x366   :  { %1452 = vmatpush1.msra.mxu0 %v1405_v3  ;;  %3750 = vmatprep.subr.mxu1 %v4254_v46 }
 0x367   :  { %3748 = vmatmul.mubr.msk.f32.vlgmr.msra.gmra.mxu1 %vm1422_vm7, %v3515_v7  ;;  %v4304_v11 = vpop.permute.xlu1 %1764  ;;  %1453 = vmatprep.subr.mxu0 %v1404_v9  ;;  %v1771_v8 = vpop.permute.xlu0 %1770 }
 0x368   :  { %3751 = vmatpush3.msra.mxu1 %v4254_v46  ;;  %1454 = vmatpush1.msra.mxu0 %v1403_v10  ;;  %v3525_v46 = vld [vmem:[%s5518_s3 + $0x28] sm:$0xff] }
 0x369   :  { %3752 = vmatprep.subr.mxu1 %v4235_v37  ;;  %1455 = vmatprep.subr.mxu0 %v1402_v13 }
 0x36a   :  { %3753 = vmatpush3.msra.mxu1 %v4235_v37  ;;  %1456 = vmatpush1.msra.mxu0 %v1401_v19  ;;  %v3038_v19 = vld [vmem:[%s5519_s9 + $0x68] sm:$0xff] }
 0x36b   :  { %3754 = vmatprep.subr.mxu1 %v4217_v23  ;;  %v4314_v27 = vpop.permute.xlu1 %1756  ;;  %1457 = vmatprep.subr.mxu0 %v1400_v25  ;;  %v1763_v28 = vpop.permute.xlu0 %1762 }
 0x36c   :  { %3755 = vmatpush3.msra.mxu1 %v4217_v23  ;;  %1458 = vmatpush1.msra.mxu0 %v1399_v26 }
 0x36d   :  { %3756 = vmatprep.subr.mxu1 %v4207_v4  ;;  %1459 = vmatprep.subr.mxu0 %v1398_v12 }
 0x36e   :  { %3757 = vmatpush3.msra.mxu1 %v4207_v4  ;;  %1460 = vmatpush1.msra.mxu0 %v1397_v14  ;;  %v1348_v4 = vld [vmem:[%s5518_s3 + $0x8] sm:$0xff]  ;;  %v3037_v14 = vld [vmem:[%s5519_s9 + $0x60] sm:$0xff] }
 0x36f   :  { %3758 = vmatprep.subr.mxu1 %v4199_v52  ;;  %v1755_v32 = vpop.permute.xlu1 %1754  ;;  %1609 = vmatprep.subr.mxu0 %v4272_v49  ;;  %v1761_v23 = vpop.permute.xlu0 %1760 }
 0x370   :  { %3759 = vmatpush3.msra.mxu1 %v4199_v52  ;;  %3516 = vmatmul.mubr.msk.f32.vlgmr.msra.gmra.mxu0 %vm1422_vm7, %v4250_v21  ;;  %v1779_v39 = vsel %vm1772_vm8, %v1761_v23, %v1763_v28  ;;  %v1777_v21 = vsel %vm1772_vm8, %v1755_v32, %v4314_v27 }
 0x371   :  { %1610 = vmatpush1.msra.mxu0 %v4266_v47  ;;  %3760 = vmatprep.mubr.msk.f32.mxu1 %vm1422_vm7, %v1347_v31 }
 0x372   :  { %3763 = vmatprep.subr.mxu1 %v1771_v8  ;;  %1611 = vmatprep.subr.mxu0 %v4264_v42 }
 0x373   :  { %3761 = vmatmul.mubr.msk.f32.vlgmr.msra.gmra.mxu1 %vm1422_vm7, %v1348_v4  ;;  %1612 = vmatpush1.msra.mxu0 %v4237_v38  ;;  %v1769_v33 = vpop.permute.xlu1 %1768  ;;  %v1759_v34 = vpop.permute.xlu0 %1758  ;;  %v1780_v38 = vsel %vm1772_vm8, %v1763_v28, %v4304_v11  ;;  %v3053_v28 = vld [vmem:[%s5519_s9 + $0xe0] sm:$0xff] }
 0x374   :  { %3764 = vmatpush3.msra.mxu1 %v1771_v8  ;;  %1613 = vmatprep.subr.mxu0 %v4252_v36  ;;  %v1778_v43 = vsel %vm1772_vm8, %v4314_v27, %v1759_v34 }
 0x375   :  { %3765 = vmatprep.subr.mxu1 %v4304_v11  ;;  %1499 = vmatprep.mubr.f32.mxu0 %v5526_v1 }
 0x376   :  { %3766 = vmatpush3.msra.mxu1 %v4304_v11  ;;  %1614 = vmatpush1.msra.mxu0 %v4227_v30  ;;  %v1782_v30 = vsel %vm1772_vm8, %v1769_v33, %v1771_v8  ;;  %v3054_v8 = vld [vmem:[%s5519_s9 + $0xe8] sm:$0xff] }
 0x377   :  { %3767 = vmatprep.subr.mxu1 %v1759_v34  ;;  %3517 = vmatmul.mubr.msk.f32.gmra.mxu0 %vm1422_vm7, %v3515_v7  ;;  %v1753_v35 = vpop.permute.xlu1 %1752  ;;  %v1751_v17 = vpop.permute.xlu0 %1750 }
 0x378   :  { %1615 = vmatprep.subr.mxu0 %v4225_v29  ;;  %3768 = vmatpush3.msra.mxu1 %v1759_v34  ;;  %v3524_v29 = vld [vmem:[%s5518_s3 + $0x20] sm:$0xff]  ;;  %v1776_v36 = vsel %vm1772_vm8, %v1751_v17, %v1753_v35  ;;  %v3051_v34 = vld [vmem:[%s5519_s9 + $0xd0] sm:$0xff] }
 0x379   :  { %1616 = vmatpush1.msra.mxu0 %v4209_v5  ;;  %1651 = vmatprep.mubr.f32.mxu0 %v5526_v1  ;;  %v1781_v5 = vsel %vm1772_vm8, %v4293_v0, %v1769_v33  ;;  %v3055_v0 = vld [vmem:[%s5519_s9 + $0xf0] sm:$0xff]  ;;  %v3036_v33 = vld [vmem:[%s5519_s9 + $0x58] sm:$0xff] }
 0x37a   :  { %1617 = vmatprep.subr.mxu0 %v4215_v15  ;;  %3769 = vmatprep.subr.mxu1 %v1753_v35 }
 0x37b   :  { %1618 = vmatpush1.msra.mxu0 %v4201_v57  ;;  %3770 = vmatpush3.msra.mxu1 %v1753_v35  ;;  %v1745_v18 = vpop.permute.xlu1 %1744  ;;  %v1749_v37 = vpop.permute.xlu0 %1748 }
 0x37c   :  { %3520 = vmatmul.mubr.msk.f32.vlgmr.msra.gmra.mxu0 %vm1422_vm7, %v1347_v31  ;;  %1826 = vmatprep.subr.mxu0 %v1782_v30  ;;  %v1775_v20 = vsel %vm1772_vm8, %v1749_v37, %v1751_v17  ;;  %v3035_v17 = vld [vmem:[%s5519_s9 + $0x50] sm:$0xff]  ;;  %v3050_v37 = vld [vmem:[%s5519_s9 + $0xc8] sm:$0xff] }
 0x37d   :  { %1827 = vmatpush1.msra.mxu0 %v1781_v5  ;;  %1657 = vmatprep.mubr.f32.mxu0 %v5526_v1  ;;  %v3063_v5 = vld [vmem:[%s5519_s9 + $0x130] sm:$0x1] }
 0x37e   :  { %1828 = vmatprep.subr.mxu0 %v1780_v38  ;;  %3773 = vmatprep.mubr.msk.f32.mxu1 %vm1422_vm7, %v3524_v29 }
 0x37f   :  { %1829 = vmatpush1.msra.mxu0 %v1779_v39  ;;  %v1743_v44 = vpop.permute.xlu1 %1742  ;;  %v1747_v16 = vpop.permute.xlu0 %1746  ;;  %v3049_v39 = vld [vmem:[%s5519_s9 + $0xc0] sm:$0xff] }
 0x380   :  { %3521 = vmatmul.mubr.msk.f32.gmra.mxu0 %vm1422_vm7, %v1348_v4  ;;  %1830 = vmatprep.subr.mxu0 %v1778_v43  ;;  %v1774_v41 = vsel %vm1772_vm8, %v1745_v18, %v1747_v16  ;;  %v1773_v22 = vsel %vm1772_vm8, %v1743_v44, %v1745_v18  ;;  %v3052_v4 = vld [vmem:[%s5519_s9 + $0xd8] sm:$0xff]  ;;  %v3033_v43 = vld [vmem:[%s5519_s9 + $0x40] sm:$0xff] }
 0x381   :  { %1831 = vmatpush1.msra.mxu0 %v1777_v21  ;;  %3771 = vmatprep.subr.mxu1 %v1747_v16  ;;  %v3062_v21 = vld [vmem:[%s5519_s9 + $0x128] sm:$0xff] }
 0x382   :  { %1832 = vmatprep.subr.mxu0 %v1776_v36  ;;  %3772 = vmatpush3.msra.mxu1 %v1747_v16  ;;  %v3048_v16 = vld [vmem:[%s5519_s9 + $0xb8] sm:$0xff] }
 0x383   :  { %1833 = vmatpush1.msra.mxu0 %v1775_v20  ;;  %1868 = vmatprep.mubr.f32.mxu0 %v5526_v1  ;;  %v3032_v36 = vld [vmem:[%s5519_s9 + $0x38] sm:$0xff]  ;;  %v3046_v20 = vld [vmem:[%s5519_s9 + $0xa8] sm:$0xff] }
 0x384   :  { %1834 = vmatprep.subr.mxu0 %v1774_v41  ;;  %3774 = vmatmul.mubr.msk.f32.vlgmr.msra.gmra.mxu1 %vm1422_vm7, %v3525_v46  ;;  %v3047_v41 = vld [vmem:[%s5519_s9 + $0xb0] sm:$0xff] }
 0x385   :  { %1835 = vmatpush1.msra.mxu0 %v1773_v22  ;;  %3776 = vmatprep.subr.msk.mxu1 %vm3181_vm9, %v3063_v5  ;;  %v3061_v22 = vld [vmem:[%s5519_s9 + $0x120] sm:$0xff] }
 0x386   :  { %3526 = vmatmul.mubr.msk.f32.vlgmr.msra.gmra.mxu0 %vm1422_vm7, %v3524_v29  ;;  %3591 = vmatprep.subr.mxu0 %v3056_v56  ;;  %v3034_v29 = vld [vmem:[%s5519_s9 + $0x48] sm:$0xff] }
 0x387   :  { %1874 = vmatprep.mubr.f32.mxu0 %v5526_v1  ;;  %3592 = vmatpush3.msra.mxu0 %v3040_v58  ;;  %v3026_v56 = vld [vmem:[%s5519_s9 + $0x8] sm:$0xff]  ;;  %v3041_v58 = vld [vmem:[%s5519_s9 + $0x80] sm:$0xff] }
 0x388   :  { %3593 = vmatprep.subr.mxu0 %v3055_v0  ;;  %3777 = vmatpush3.msk.msra.mxu1 %vm3181_vm9, %v3063_v5  ;;  %v2418_v5 = vld [vmem:[%s5520_s5 + $0x8] sm:$0xff] }
 0x389   :  { %3594 = vmatpush3.msra.mxu0 %v3039_v6  ;;  %3778 = vmatprep.subr.mxu1 %v3062_v21  ;;  %v2446_v6 = vld [vmem:[%s5520_s5 + $0xe8] sm:$0xff] }
 0x38a   :  { %3527 = vmatmul.mubr.msk.f32.gmra.mxu0 %vm1422_vm7, %v3525_v46  ;;  %3595 = vmatprep.subr.mxu0 %v3054_v8  ;;  %v3031_v46 = vld [vmem:[%s5519_s9 + $0x30] sm:$0xff]  ;;  %v2452_v8 = vld [vmem:[%s5520_s5 + $0x118] sm:$0xff] }
 0x38b   :  { %3596 = vmatpush3.msra.mxu0 %v3038_v19  ;;  %3779 = vmatpush3.msra.mxu1 %v3062_v21  ;;  %v2464_v19 = vld [vmem:[%s5520_s5 + $0x178] sm:$0xff] }
 0x38c   :  { %3597 = vmatprep.subr.mxu0 %v3053_v28  ;;  %3780 = vmatprep.subr.mxu1 %v3061_v22 }
 0x38d   :  { %3598 = vmatpush3.msra.mxu0 %v3037_v14  ;;  %3781 = vmatpush3.msra.mxu1 %v3061_v22 }
 0x38e   :  { %3599 = vmatprep.subr.mxu0 %v3052_v4  ;;  %v2425_v4 = vld [vmem:[%s5520_s5 + $0x40] sm:$0xff] }
 0x38f   :  { %3600 = vmatpush3.msra.mxu0 %v3036_v33  ;;  %v2431_v33 = vld [vmem:[%s5520_s5 + $0x70] sm:$0xff] }
 0x390   :  { %3601 = vmatprep.subr.mxu0 %v3051_v34 }
 0x391   :  { %3602 = vmatpush3.msra.mxu0 %v3035_v17 }
 0x392   :  { %3603 = vmatprep.subr.mxu0 %v3050_v37 }
 0x393   :  { %3604 = vmatpush3.msra.mxu0 %v3034_v29 }
 0x394   :  { %3605 = vmatprep.subr.mxu0 %v3049_v39  ;;  %v2437_v39 = vld [vmem:[%s5520_s5 + $0xa0] sm:$0xff] }
 0x395   :  { %3606 = vmatpush3.msra.mxu0 %v3033_v43  ;;  %v2443_v43 = vld [vmem:[%s5520_s5 + $0xd0] sm:$0xff] }
 0x396   :  { %3607 = vmatprep.subr.mxu0 %v3048_v16  ;;  %v2449_v16 = vld [vmem:[%s5520_s5 + $0x100] sm:$0xff] }
 0x397   :  { %3608 = vmatpush3.msra.mxu0 %v3032_v36 }
 0x398   :  { %3609 = vmatprep.subr.mxu0 %v3047_v41  ;;  %v2455_v41 = vld [vmem:[%s5520_s5 + $0x130] sm:$0xff] }
 0x399   :  { %3610 = vmatpush3.msra.mxu0 %v3031_v46  ;;  %v2461_v46 = vld [vmem:[%s5520_s5 + $0x160] sm:$0xff] }
 0x39a   :  { %3611 = vmatprep.subr.mxu0 %v3046_v20 }
 0x427   :  { %v3749_v47 = vpop.f32.mrf.mxu1 }
 0x429   :  { %v1572_v24 = vpop.f32.mrf.mxu1 }
 0x430   :  { %v1495_v40 = vpop.f32.mrf.mxu0 }
 0x432   :  { %v1497_v42 = vpop.f32.mrf.mxu0 }
 0x433   :  { %v3762_v50 = vpop.f32.mrf.mxu1 }
 0x434   :  { %v1736_v55 = vadd.f32 %v3762_v50, %v3749_v47  ;;  %v3060_v47 = vld [vmem:[%s5519_s9 + $0x118] sm:$0xff]  ;;  %v3043_v50 = vld [vmem:[%s5519_s9 + $0x90] sm:$0xff] }
 0x435   :  { %v1730_v54 = vpop.f32.mrf.mxu1  ;;  %3782 = vmatprep.subr.mxu1 %v3060_v47 }
 0x436   :  { %v1731_v61 = vadd.f32 %v1730_v54, %v1572_v24  ;;  %v3059_v24 = vld [vmem:[%s5519_s9 + $0x110] sm:$0xff]  ;;  %3783 = vmatpush3.msra.mxu1 %v3060_v47  ;;  %v3042_v54 = vld [vmem:[%s5519_s9 + $0x88] sm:$0xff] }
 0x437   :  { %v1501_v48 = vpop.f32.mrf.mxu0  ;;  %3784 = vmatprep.subr.mxu1 %v3059_v24 }
 0x438   :  { %3785 = vmatpush3.msra.mxu1 %v3059_v24  ;;  %v2430_v24 = vld [vmem:[%s5520_s5 + $0x68] sm:$0xff] }
 0x439   :  { %v1503_v49 = vpop.f32.mrf.mxu0 }
 0x43c   :  { %v1653_v45 = vpop.f32.mrf.mxu0 }
 0x43d   :  { %v1654_v62 = vadd.f32 %v1653_v45, %v1495_v40  ;;  %v3030_v40 = vld [vmem:[%s5519_s9 + $0x28] sm:$0xff]  ;;  %v3028_v45 = vld [vmem:[%s5519_s9 + $0x18] sm:$0xff] }
 0x43e   :  { %v1655_v51 = vpop.f32.mrf.mxu0  ;;  %3612 = vmatpush3.msra.mxu0 %v3030_v40 }
 0x43f   :  { %v1656_v7 = vadd.f32 %v1655_v51, %v1497_v42  ;;  %v3045_v42 = vld [vmem:[%s5519_s9 + $0xa0] sm:$0xff]  ;;  %v3058_v51 = vld [vmem:[%s5519_s9 + $0x108] sm:$0xff] }
 0x440   :  { %v1659_v53 = vpop.f32.mrf.mxu0  ;;  %3613 = vmatprep.subr.mxu0 %v3045_v42  ;;  %3786 = vmatprep.subr.mxu1 %v3058_v51 }
 0x441   :  { %v1660_v25 = vadd.f32 %v1659_v53, %v1501_v48  ;;  %v3029_v48 = vld [vmem:[%s5519_s9 + $0x20] sm:$0xff]  ;;  %v3027_v53 = vld [vmem:[%s5519_s9 + $0x10] sm:$0xff]  ;;  %3787 = vmatpush3.msra.mxu1 %v3058_v51 }
 0x442   :  { %v1661_v59 = vpop.f32.mrf.mxu0  ;;  %3614 = vmatpush3.msra.mxu0 %v3029_v48 }
 0x443   :  { %v1662_v31 = vadd.f32 %v1661_v59, %v1503_v49  ;;  %v3044_v49 = vld [vmem:[%s5519_s9 + $0x98] sm:$0xff]  ;;  %v3025_v59 = vld [vmem:[%s5519_s9] sm:$0xff] }
 0x444   :  { %v3775_v60 = vpop.f32.mrf.mxu1  ;;  %3615 = vmatprep.subr.mxu0 %v3044_v49  ;;  %v2424_v49 = vld [vmem:[%s5520_s5 + $0x38] sm:$0xff] }
 0x445   :  { %v4383_v63 = vadd.f32 %v3775_v60, %v1736_v55  ;;  %3616 = vmatpush3.msra.mxu0 %v3028_v45  ;;  %v3057_v55 = vld [vmem:[%s5519_s9 + $0x100] sm:$0xff]  ;;  %v4537_v60 = vpop.permute.xlu0 %1970  ;;  %v2436_v45 = vld [vmem:[%s5520_s5 + $0x98] sm:$0xff] }
 0x446   :  { %v1870_v2 = vpop.f32.mrf.mxu0  ;;  %v1947_v3 = vpop.f32.mrf.mxu1  ;;  %3617 = vmatprep.subr.mxu0 %v3043_v50  ;;  %3788 = vmatprep.subr.mxu1 %v3057_v55 }
 0x447   :  { %v1967_v9 = vmax.f32 %v4383_v63, 0.0  ;;  %v4392_v10 = vadd.f32 %v1870_v2, %v1654_v62  ;;  %v4394_v11 = vadd.f32 %v1947_v3, %v1731_v61  ;;  %3618 = vmatpush3.msra.mxu0 %v3027_v53  ;;  %3789 = vmatpush3.msra.mxu1 %v3057_v55  ;;  %v2422_v61 = vld [vmem:[%s5520_s5 + $0x28] sm:$0xff]  ;;  %v2428_v62 = vld [vmem:[%s5520_s5 + $0x58] sm:$0xff] }
 0x448   :  { %v1872_v13 = vpop.f32.mrf.mxu0  ;;  %3619 = vmatprep.subr.mxu0 %v3042_v54  ;;  %3793 = vmatprep.subr.mxu1 %v5526_v1  ;;  %v2434_v2 = vld [vmem:[%s5520_s5 + $0x88] sm:$0xff]  ;;  %v2440_v3 = vld [vmem:[%s5520_s5 + $0xb8] sm:$0xff] }
 0x449   :  { %v1962_v26 = vmax.f32 %v4392_v10, 0.0  ;;  %v4403_v27 = vadd.f32 %v1872_v13, %v1656_v7  ;;  %1998 = vrot.lane.b32.xlu1 %v1967_v9, %s3817_s15  ;;  %v1964_v32 = vmax.f32 %v4394_v11, 0.0  ;;  %3620 = vmatpush3.msra.mxu0 %v3026_v56  ;;  %v2458_v13 = vld [vmem:[%s5520_s5 + $0x148] sm:$0xff] }
 0x44a   :  { %v1876_v12 = vpop.f32.mrf.mxu0  ;;  %3621 = vmatprep.subr.mxu0 %v3041_v58  ;;  %v2442_v56 = vld [vmem:[%s5520_s5 + $0xc8] sm:$0xff]  ;;  %v2448_v58 = vld [vmem:[%s5520_s5 + $0xf8] sm:$0xff] }
 0x44b   :  { %v4415_v23 = vadd.f32 %v1876_v12, %v1660_v25  ;;  %1988 = vrot.lane.b32.xlu0 %v1962_v26, %s3817_s15  ;;  %v1963_v30 = vmax.f32 %v4403_v27, 0.0  ;;  %3622 = vmatpush3.msra.mxu0 %v3025_v59  ;;  %v2460_v27 = vld [vmem:[%s5520_s5 + $0x158] sm:$0xff] }
 0x44c   :  { %v1878_v35 = vpop.f32.mrf.mxu0 }
 0x44d   :  { %v4433_v18 = vadd.f32 %v1878_v35, %v1662_v31  ;;  %1992 = vrot.lane.b32.xlu1 %v1964_v32, %s3817_s15  ;;  %v1965_v38 = vmax.f32 %v4415_v23, 0.0  ;;  %v2419_v31 = vld [vmem:[%s5520_s5 + $0x10] sm:$0xff] }
 0x44f   :  { %1990 = vrot.lane.b32.xlu0 %v1963_v30, %s3817_s15  ;;  %v1966_v44 = vmax.f32 %v4433_v18, 0.0 }
 0x451   :  { %1994 = vrot.lane.b32.xlu1 %v1965_v38, %s3817_s15 }
 0x453   :  { %1996 = vrot.lane.b32.xlu0 %v1966_v44, %s3817_s15 }
 0x455   :  { %1972 = vrot.lane.b32.xlu1 %v4199_v52, %s3817_s15 }
 0x457   :  { %1968 = vrot.lane.b32.xlu0 %v4201_v57, %s3817_s15 }
 0x4bb   :  { %v4545_v0 = vpop.permute.xlu1 %1998 }
 0x4bc   :  { %v4559_v7 = vmax.f32 %v1967_v9, %v4545_v0 }
 0x4bd   :  { %v1989_v25 = vpop.permute.xlu0 %1988 }
 0x4be   :  { %5539 = vst [vmem:[#allocation2_spill] sm:$0xff] %v4559_v7  ;;  %v2518_v28 = vmul.f32 %v2422_v61, %v4559_v7  ;;  %v2524_v63 = vmul.f32 %v2428_v62, %v4559_v7  ;;  %v2530_v9 = vmul.f32 %v2434_v2, %v4559_v7  ;;  %v2536_v12 = vmul.f32 %v2440_v3, %v4559_v7 }
 0x4bf   :  { %v1993_v14 = vpop.permute.xlu1 %1992  ;;  %v2542_v34 = vmul.f32 %v2446_v6, %v4559_v7  ;;  %v2548_v35 = vmul.f32 %v2452_v8, %v4559_v7  ;;  %v2554_v17 = vmul.f32 %v2458_v13, %v4559_v7  ;;  %v4587_v37 = vmul.f32 %v2464_v19, %v4559_v7  ;;  %v2421_v6 = vld [vmem:[%s5520_s5 + $0x20] sm:$0xff] }
 0x4c0   :  { %v4591_v29 = vmax.f32 %v1964_v32, %v1993_v14  ;;  %v4606_v11 = vsel %vm2124_vm10, %v2518_v28, 0.0  ;;  %v4609_v32 = vsel %vm2124_vm10, %v2524_v63, 0.0  ;;  %v4612_v21 = vsel %vm2124_vm10, %v2530_v9, 0.0  ;;  %v2427_v9 = vld [vmem:[%s5520_s5 + $0x50] sm:$0xff] }
 0x4c1   :  { %5540 = vst [vmem:[#allocation3_spill] sm:$0xff] %v4587_v37  ;;  %v1991_v36 = vpop.permute.xlu0 %1990  ;;  %v4621_v20 = vsel %vm2124_vm10, %v2536_v12, 0.0  ;;  %v4624_v22 = vsel %vm2124_vm10, %v2542_v34, 0.0  ;;  %v4627_v40 = vsel %vm2124_vm10, %v2548_v35, 0.0  ;;  %v4630_v42 = vsel %vm2124_vm10, %v2554_v17, 0.0  ;;  %v2433_v12 = vld [vmem:[%s5520_s5 + $0x80] sm:$0xff] }
 0x4c2   :  { %5541 = vst [vmem:[#allocation4_spill] sm:$0xff] %v4591_v29  ;;  %5542 = vst [vmem:[#allocation5_spill] sm:$0xff] %v4630_v42  ;;  %v2000_v47 = vsel %vm53_vm0, %v1989_v25, %v1991_v36  ;;  %v2001_v48 = vsel %vm53_vm0, %v1991_v36, %v1993_v14  ;;  %v2515_v50 = vmul.f32 %v2419_v31, %v4591_v29  ;;  %v2439_v14 = vld [vmem:[%s5520_s5 + $0xb0] sm:$0xff]  ;;  %v2017_v35 = vld [vmem:[%s5521_s4 + $0x8] sm:$0xff] }
 0x4c3   :  { %v2521_v51 = vmul.f32 %v2425_v4, %v4591_v29  ;;  %v4647_v53 = vmax.f32 %v1962_v26, %v2000_v47  ;;  %v4651_v54 = vmax.f32 %v1963_v30, %v2001_v48  ;;  %v1995_v55 = vpop.permute.xlu1 %1994  ;;  %v4660_v59 = vmul.f32 %v2431_v33, %v4591_v29  ;;  %v2454_v26 = vld [vmem:[%s5520_s5 + $0x128] sm:$0xff]  ;;  %v2445_v17 = vld [vmem:[%s5520_s5 + $0xe0] sm:$0xff] }
 0x4c4   :  { %v4663_v10 = vmul.f32 %v2437_v39, %v4591_v29  ;;  %v4672_v30 = vmul.f32 %v2443_v43, %v4591_v29  ;;  %v4675_v61 = vmul.f32 %v2449_v16, %v4591_v29  ;;  %v4678_v62 = vmul.f32 %v2455_v41, %v4591_v29  ;;  %v2020_v39 = vld [vmem:[%s5521_s4 + $0x20] sm:$0xff]  ;;  %v2023_v43 = vld [vmem:[%s5521_s4 + $0x38] sm:$0xff]  ;;  %v2026_v16 = vld [vmem:[%s5521_s4 + $0x50] sm:$0xff] }
 0x4c5   :  { %5543 = vst [vmem:[#allocation6_spill] sm:$0xff] %v4647_v53  ;;  %5544 = vst [vmem:[#allocation7_spill] sm:$0xff] %v4651_v54  ;;  %v4681_v2 = vmul.f32 %v2461_v46, %v4591_v29  ;;  %v1997_v3 = vpop.permute.xlu0 %1996  ;;  %v4687_v8 = vmul.f32 %v2418_v5, %v4651_v54  ;;  %v4690_v13 = vmul.f32 %v2424_v49, %v4651_v54  ;;  %v2451_v5 = vld [vmem:[%s5520_s5 + $0x110] sm:$0xff]  ;;  %v4754_v36 = vsel %vm2124_vm10, %v2515_v50, 0.0  ;;  %v2029_v47 = vld [vmem:[%s5521_s4 + $0x68] sm:$0xff] }
 0x4c6   :  { %v4693_v19 = vmul.f32 %v2430_v24, %v4651_v54  ;;  %v4696_v25 = vmul.f32 %v2436_v45, %v4651_v54  ;;  %v2002_v28 = vsel %vm53_vm0, %v1995_v55, %v1997_v3  ;;  %v2003_v63 = vsel %vm53_vm0, %v1997_v3, %v4545_v0  ;;  %v2032_v48 = vld [vmem:[%s5521_s4 + $0x80] sm:$0xff]  ;;  %v2035_v49 = vld [vmem:[%s5521_s4 + $0x98] sm:$0xff] }
 0x4c7   :  { %5545 = vst [vmem:[#allocation8_spill] sm:$0xff] %v4681_v2  ;;  %v4711_v31 = vmul.f32 %v2442_v56, %v4651_v54  ;;  %v4714_v4 = vmul.f32 %v2448_v58, %v4651_v54  ;;  %v4718_v0 = vmax.f32 %v1965_v38, %v2002_v28  ;;  %v4722_v33 = vmax.f32 %v1966_v44, %v2003_v63  ;;  %v1973_v34 = vpop.permute.xlu1 %1972 }
 0x4c8   :  { %v4734_v23 = vmul.f32 %v2454_v26, %v4651_v54  ;;  %v4737_v18 = vmul.f32 %v2460_v27, %v4651_v54  ;;  %v1975_v38 = vsel %vm53_vm0, %v4537_v60, %v1973_v34  ;;  %v4742_v44 = vmax.f32 %v4199_v52, %v1973_v34 }
 0x4c9   :  { %5546 = vst [vmem:[#allocation9_spill] sm:$0xff] %v4718_v0  ;;  %v4757_v41 = vsel %vm2124_vm10, %v2521_v51, 0.0  ;;  %v4760_v52 = vmax.f32 %v4215_v15, %v1975_v38  ;;  %v1969_v46 = vpop.permute.xlu0 %1968  ;;  %v4772_v24 = vmul.f32 %v2421_v6, %v4722_v33  ;;  %v4775_v45 = vmul.f32 %v2427_v9, %v4722_v33  ;;  %v2038_v51 = vld [vmem:[%s5521_s4 + $0xb0] sm:$0xff] }
 0x4ca   :  { %v4778_v15 = vmul.f32 %v2433_v12, %v4722_v33  ;;  %v1974_v50 = vsel %vm53_vm0, %v1969_v46, %v4537_v60  ;;  %v4786_v55 = vmul.f32 %v2439_v14, %v4722_v33  ;;  %v4789_v56 = vmul.f32 %v2445_v17, %v4722_v33 }
 0x4cb   :  { %5547 = vst [vmem:[#allocation10_spill] sm:$0xff] %v4760_v52  ;;  %v4792_v58 = vmul.f32 %v2451_v5, %v4722_v33  ;;  %v4795_v26 = vmax.f32 %v4201_v57, %v1974_v50  ;;  %v2065_v27 = vmul.f32 %v2017_v35, %v4760_v52  ;;  %v2068_v60 = vmul.f32 %v2020_v39, %v4760_v52 }
 0x4cc   :  { %v2071_v3 = vmul.f32 %v2023_v43, %v4760_v52  ;;  %v2074_v6 = vmul.f32 %v2026_v16, %v4760_v52  ;;  %v2077_v28 = vmul.f32 %v2029_v47, %v4760_v52  ;;  %v2080_v63 = vmul.f32 %v2032_v48, %v4760_v52 }
 0x4cd   :  { %5548 = vst [vmem:[#allocation11_spill] sm:$0xff] %v4795_v26  ;;  %v2083_v9 = vmul.f32 %v2035_v49, %v4760_v52  ;;  %v2086_v12 = vmul.f32 %v2038_v51, %v4760_v52  ;;  %v2118_v14 = vrot.slane %v2065_v27, 4  ;;  %v2138_v34 = vrot.slane %v2068_v60, 4 }
 0x4ce   :  { %v2157_v57 = vrot.slane %v2071_v3, 4  ;;  %v2176_v17 = vrot.slane %v2074_v6, 4  ;;  %v2195_v5 = vrot.slane %v2077_v28, 4  ;;  %v2214_v35 = vrot.slane %v2080_v63, 4 }
 0x4cf   :  { %v2233_v38 = vrot.slane %v2083_v9, 4  ;;  %v2119_v39 = vadd.f32 %v2118_v14, %v2065_v27  ;;  %v2139_v46 = vadd.f32 %v2138_v34, %v2068_v60  ;;  %v2252_v50 = vrot.slane %v2086_v12, 4 }
 0x4d0   :  { %v2158_v43 = vadd.f32 %v2157_v57, %v2071_v3  ;;  %v2177_v16 = vadd.f32 %v2176_v17, %v2074_v6  ;;  %v2196_v1 = vadd.f32 %v2195_v5, %v2077_v28  ;;  %v2215_v47 = vadd.f32 %v2214_v35, %v2080_v63  ;;  %v2457_v5 = vld [vmem:[%s5520_s5 + $0x140] sm:$0xff] }
 0x4d1   :  { %v2234_v54 = vadd.f32 %v2233_v38, %v2083_v9  ;;  %v2120_v48 = vrot.slane %v2119_v39, 2  ;;  %v2140_v7 = vrot.slane %v2139_v46, 2  ;;  %v2253_v29 = vadd.f32 %v2252_v50, %v2086_v12 }
 0x4d2   :  { %v2159_v49 = vrot.slane %v2158_v43, 2  ;;  %v2178_v51 = vrot.slane %v2177_v16, 2  ;;  %v2197_v52 = vrot.slane %v2196_v1, 2  ;;  %v2216_v0 = vrot.slane %v2215_v47, 2 }
 0x4d3   :  { %v2235_v53 = vrot.slane %v2234_v54, 2  ;;  %v2121_v26 = vadd.f32 %v2120_v48, %v2119_v39  ;;  %v2141_v37 = vadd.f32 %v2140_v7, %v2139_v46  ;;  %v2254_v2 = vrot.slane %v2253_v29, 2  ;;  %v2463_v7 = vld [vmem:[%s5520_s5 + $0x170] sm:$0xff] }
 0x4d4   :  { %v2160_v42 = vadd.f32 %v2159_v49, %v2158_v43  ;;  %v2179_v27 = vadd.f32 %v2178_v51, %v2177_v16  ;;  %v2198_v60 = vadd.f32 %v2197_v52, %v2196_v1  ;;  %v2217_v3 = vadd.f32 %v2216_v0, %v2215_v47 }
 0x4d5   :  { %v2236_v14 = vadd.f32 %v2235_v53, %v2234_v54  ;;  %v2122_v6 = vrot.slane %v2121_v26, 1  ;;  %v2142_v28 = vrot.slane %v2141_v37, 1  ;;  %v2255_v9 = vadd.f32 %v2254_v2, %v2253_v29 }
 0x4d6   :  { %v2161_v63 = vrot.slane %v2160_v42, 1  ;;  %v2180_v34 = vrot.slane %v2179_v27, 1  ;;  %v2199_v57 = vrot.slane %v2198_v60, 1  ;;  %v2218_v17 = vrot.slane %v2217_v3, 1 }
 0x4d7   :  { %v2237_v12 = vrot.slane %v2236_v14, 1  ;;  %v4811_v35 = vadd.f32 %v2122_v6, %v2121_v26  ;;  %v4813_v1 = vadd.f32 %v2142_v28, %v2141_v37  ;;  %v2256_v54 = vrot.slane %v2255_v9, 1 }
 0x4d8   :  { %v4815_v53 = vadd.f32 %v2161_v63, %v2160_v42  ;;  %v4817_v29 = vadd.f32 %v2180_v34, %v2179_v27  ;;  %v4819_v2 = vadd.f32 %v2199_v57, %v2198_v60  ;;  %v4821_v0 = vadd.f32 %v2218_v17, %v2217_v3 }
 0x4d9   :  { %v4823_v52 = vadd.f32 %v2237_v12, %v2236_v14  ;;  %v4825_v38 = vadd.f32 %v2256_v54, %v2255_v9  ;;  %v2553_v39 = vmul.f32 %v2457_v5, %v4722_v33  ;;  %v2559_v26 = vmul.f32 %v2463_v7, %v4722_v33 }
 0x4da   :  { %v2616_v37 = vadd.f32 %v4772_v24, %v4687_v8  ;;  %v2639_v42 = vadd.f32 %v4775_v45, %v4690_v13  ;;  %v2662_v46 = vadd.f32 %v4778_v15, %v4693_v19  ;;  %v2685_v43 = vadd.f32 %v4786_v55, %v4696_v25 }
 0x4db   :  { %v2708_v50 = vadd.f32 %v4789_v56, %v4711_v31  ;;  %v2731_v47 = vadd.f32 %v4792_v58, %v4714_v4  ;;  %v2754_v48 = vadd.f32 %v2553_v39, %v4734_v23  ;;  %v2777_v8 = vadd.f32 %v2559_v26, %v4737_v18 }
 0x4dc   :  { %v2617_v16 = vrot.slane %v2616_v37, 4  ;;  %v2640_v24 = vrot.slane %v2639_v42, 4  ;;  %v2663_v49 = vrot.slane %v2662_v46, 4  ;;  %v2686_v13 = vrot.slane %v2685_v43, 4 }
 0x4dd   :  { %v2709_v45 = vrot.slane %v2708_v50, 4  ;;  %v2732_v19 = vrot.slane %v2731_v47, 4  ;;  %v2755_v15 = vrot.slane %v2754_v48, 4  ;;  %v2778_v27 = vrot.slane %v2777_v8, 4 }
 0x4de   :  { %v2618_v51 = vadd.f32 %v2617_v16, %v2616_v37  ;;  %v2641_v25 = vadd.f32 %v2640_v24, %v2639_v42  ;;  %v2664_v55 = vadd.f32 %v2663_v49, %v2662_v46  ;;  %v2687_v60 = vadd.f32 %v2686_v13, %v2685_v43 }
 0x4df   :  { %v2710_v31 = vadd.f32 %v2709_v45, %v2708_v50  ;;  %v2733_v3 = vadd.f32 %v2732_v19, %v2731_v47  ;;  %v2756_v14 = vadd.f32 %v2755_v15, %v2754_v48  ;;  %v2779_v4 = vadd.f32 %v2778_v27, %v2777_v8  ;;  %v2018_v45 = vld [vmem:[%s5521_s4 + $0x10] sm:$0xff] }
 0x4e0   :  { %v2619_v56 = vrot.slane %v2618_v51, 2  ;;  %v2642_v23 = vrot.slane %v2641_v25, 2  ;;  %v2665_v58 = vrot.slane %v2664_v55, 2  ;;  %v2688_v18 = vrot.slane %v2687_v60, 2 }
 0x4e1   :  { %v2711_v6 = vrot.slane %v2710_v31, 2  ;;  %v2734_v63 = vrot.slane %v2733_v3, 2  ;;  %v2757_v9 = vrot.slane %v2756_v14, 2  ;;  %v2780_v34 = vrot.slane %v2779_v4, 2 }
 0x4e2   :  { %v2620_v28 = vadd.f32 %v2619_v56, %v2618_v51  ;;  %v2643_v57 = vadd.f32 %v2642_v23, %v2641_v25  ;;  %v2666_v17 = vadd.f32 %v2665_v58, %v2664_v55  ;;  %v2689_v12 = vadd.f32 %v2688_v18, %v2687_v60  ;;  %v2021_v25 = vld [vmem:[%s5521_s4 + $0x28] sm:$0xff]  ;;  %v2024_v55 = vld [vmem:[%s5521_s4 + $0x40] sm:$0xff]  ;;  %v2027_v60 = vld [vmem:[%s5521_s4 + $0x58] sm:$0xff] }
 0x4e3   :  { %v2712_v5 = vadd.f32 %v2711_v6, %v2710_v31  ;;  %v2735_v54 = vadd.f32 %v2734_v63, %v2733_v3  ;;  %v2758_v39 = vadd.f32 %v2757_v9, %v2756_v14  ;;  %v2781_v26 = vadd.f32 %v2780_v34, %v2779_v4  ;;  %v2030_v14 = vld [vmem:[%s5521_s4 + $0x70] sm:$0xff]  ;;  %v2033_v4 = vld [vmem:[%s5521_s4 + $0x88] sm:$0xff]  ;;  %v2036_v23 = vld [vmem:[%s5521_s4 + $0xa0] sm:$0xff] }
 0x4e4   :  { %v2621_v7 = vrot.slane %v2620_v28, 1  ;;  %v2644_v37 = vrot.slane %v2643_v57, 1  ;;  %v2667_v42 = vrot.slane %v2666_v17, 1  ;;  %v2690_v46 = vrot.slane %v2689_v12, 1 }
 0x4e5   :  { %v2713_v43 = vrot.slane %v2712_v5, 1  ;;  %vm3134_vm0 = vcmask 1046534   ;;  %v2736_v16 = vrot.slane %v2735_v54, 1  ;;  %v2759_v47 = vrot.slane %v2758_v39, 1 }
 0x4e6   :  { %v2622_v50 = vadd.f32 %v2621_v7, %v2620_v28  ;;  %v2782_v48 = vrot.slane %v2781_v26, 1  ;;  %v2645_v8 = vadd.f32 %v2644_v37, %v2643_v57  ;;  %v2668_v24 = vadd.f32 %v2667_v42, %v2666_v17 }
 0x4e7   :  { %v2691_v49 = vadd.f32 %v2690_v46, %v2689_v12  ;;  %v2714_v13 = vadd.f32 %v2713_v43, %v2712_v5  ;;  %v2737_v51 = vadd.f32 %v2736_v16, %v2735_v54  ;;  %v2760_v19 = vadd.f32 %v2759_v47, %v2758_v39 }
 0x4e8   :  { %v2783_v15 = vadd.f32 %v2782_v48, %v2781_v26  ;;  %v2978_v27 = vadd.f32 %v2622_v50, %v4811_v35  ;;  %v2981_v31 = vadd.f32 %v2645_v8, %v4813_v1  ;;  %v2984_v56 = vadd.f32 %v2668_v24, %v4815_v53 }
 0x4e9   :  { %v2987_v3 = vadd.f32 %v2691_v49, %v4817_v29  ;;  %v2990_v35 = vadd.f32 %v2714_v13, %v4819_v2  ;;  %v2993_v1 = vadd.f32 %v2737_v51, %v4821_v0  ;;  %v2996_v53 = vadd.f32 %v2760_v19, %v4823_v52  ;;  %v2039_v2 = vld [vmem:[%s5521_s4 + $0xb8] sm:$0xff] }
 0x4ea   :  { %v2999_v29 = vadd.f32 %v2783_v15, %v4825_v38  ;;  %v2066_v58 = vmul.f32 %v2018_v45, %v4742_v44  ;;  %v3138_v18 = vsel %vm3124_vm11, %v2981_v31, %v2978_v27  ;;  %v2069_v6 = vmul.f32 %v2021_v25, %v4742_v44 }
 0x4eb   :  { %v2072_v28 = vmul.f32 %v2024_v55, %v4742_v44  ;;  %v2075_v63 = vmul.f32 %v2027_v60, %v4742_v44  ;;  %v3139_v0 = vsel %vm3126_vm12, %v2984_v56, %v3138_v18  ;;  %v2078_v52 = vmul.f32 %v2030_v14, %v4742_v44 }
 0x4ec   :  { %v2081_v38 = vmul.f32 %v2033_v4, %v4742_v44  ;;  %v2084_v9 = vmul.f32 %v2036_v23, %v4742_v44  ;;  %v3140_v34 = vsel %vm3128_vm13, %v2987_v3, %v3139_v0  ;;  %v2087_v57 = vmul.f32 %v2039_v2, %v4742_v44 }
 0x4ed   :  { %v2125_v17 = vsel %vm2124_vm10, %v2066_v58, 0.0  ;;  %v2144_v12 = vsel %vm2124_vm10, %v2069_v6, 0.0  ;;  %v3141_v5 = vsel %vm3130_vm14, %v2990_v35, %v3140_v34  ;;  %v2163_v39 = vsel %vm2124_vm10, %v2072_v28, 0.0 }
 0x4ee   :  { %v2126_v7 = vrot.slane %v2125_v17, 4  ;;  %v2145_v54 = vrot.slane %v2144_v12, 4  ;;  %v3142_v26 = vsel %vm3132_vm15, %v2993_v1, %v3141_v5  ;;  %v2164_v37 = vrot.slane %v2163_v39, 4 }
 0x4ef   :  { %v2182_v42 = vsel %vm2124_vm10, %v2075_v63, 0.0  ;;  %v2201_v46 = vsel %vm2124_vm10, %v2078_v52, 0.0  ;;  %v3143_v43 = vsel %vm3134_vm0, %v2996_v53, %v3142_v26  ;;  %v2220_v49 = vsel %vm2124_vm10, %v2081_v38, 0.0 }
 0x4f0   :  { %v2127_v50 = vadd.f32 %v2126_v7, %v2125_v17  ;;  %v2146_v16 = vadd.f32 %v2145_v54, %v2144_v12  ;;  %v2183_v47 = vrot.slane %v2182_v42, 4  ;;  %v3144_v48 = vsel %vm3136_vm1, %v2999_v29, %v3143_v43 }
 0x4f1   :  { %v2165_v8 = vadd.f32 %v2164_v37, %v2163_v39  ;;  %v2202_v24 = vrot.slane %v2201_v46, 4  ;;  %3249 = vmatprep.mubr.f32.mxu0 %v3144_v48  ;;  %v2221_v19 = vrot.slane %v2220_v49, 4  ;;  %v2239_v25 = vsel %vm2124_vm10, %v2084_v9, 0.0 }
 0x4f2   :  { %v2128_v13 = vrot.slane %v2127_v50, 2  ;;  %v2147_v45 = vrot.slane %v2146_v16, 2  ;;  %v2184_v51 = vadd.f32 %v2183_v47, %v2182_v42  ;;  %v2258_v55 = vsel %vm2124_vm10, %v2087_v57, 0.0 }
 0x4f3   :  { %v2166_v15 = vrot.slane %v2165_v8, 2  ;;  %v2203_v27 = vadd.f32 %v2202_v24, %v2201_v46  ;;  %v2222_v3 = vadd.f32 %v2221_v19, %v2220_v49  ;;  %v2240_v4 = vrot.slane %v2239_v25, 4 }
 0x4f4   :  { %v2129_v60 = vadd.f32 %v2128_v13, %v2127_v50  ;;  %v2148_v31 = vadd.f32 %v2147_v45, %v2146_v16  ;;  %v2185_v56 = vrot.slane %v2184_v51, 2  ;;  %v2259_v23 = vrot.slane %v2258_v55, 4 }
 0x4f5   :  { %v2167_v35 = vadd.f32 %v2166_v15, %v2165_v8  ;;  %v2204_v14 = vrot.slane %v2203_v27, 2  ;;  %v2223_v2 = vrot.slane %v2222_v3, 2  ;;  %v2241_v6 = vadd.f32 %v2240_v4, %v2239_v25 }
 0x4f6   :  { %v2130_v1 = vrot.slane %v2129_v60, 1  ;;  %v2149_v53 = vrot.slane %v2148_v31, 1  ;;  %v2186_v29 = vadd.f32 %v2185_v56, %v2184_v51  ;;  %v2260_v28 = vadd.f32 %v2259_v23, %v2258_v55 }
 0x4f7   :  { %v2168_v58 = vrot.slane %v2167_v35, 1  ;;  %v2205_v18 = vadd.f32 %v2204_v14, %v2203_v27  ;;  %v2224_v38 = vadd.f32 %v2223_v2, %v2222_v3  ;;  %v2242_v57 = vrot.slane %v2241_v6, 2  ;;  %v5551_v14 = vld [vmem:[#allocation3_spill] sm:$0xff] }
 0x4f8   :  { %v4898_v63 = vadd.f32 %v2130_v1, %v2129_v60  ;;  %v4900_v0 = vadd.f32 %v2149_v53, %v2148_v31  ;;  %v2187_v52 = vrot.slane %v2186_v29, 1  ;;  %v2261_v17 = vrot.slane %v2260_v28, 2 }
 0x4f9   :  { %v4902_v9 = vadd.f32 %v2168_v58, %v2167_v35  ;;  %v2206_v34 = vrot.slane %v2205_v18, 1  ;;  %v2225_v5 = vrot.slane %v2224_v38, 1  ;;  %v2625_v7 = vadd.f32 %v4606_v11, %v4754_v36 }
 0x4fa   :  { %v4904_v12 = vadd.f32 %v2187_v52, %v2186_v29  ;;  %v2648_v54 = vadd.f32 %v4609_v32, %v4757_v41  ;;  %v2243_v26 = vadd.f32 %v2242_v57, %v2241_v6  ;;  %v2262_v37 = vadd.f32 %v2261_v17, %v2260_v28 }
 0x4fb   :  { %v4910_v39 = vadd.f32 %v2206_v34, %v2205_v18  ;;  %v2669_v42 = vsel %vm2124_vm10, %v4660_v59, 0.0  ;;  %v4914_v46 = vadd.f32 %v2225_v5, %v2224_v38  ;;  %v2626_v43 = vrot.slane %v2625_v7, 4  ;;  %v2016_v5 = vld [vmem:[%s5521_s4] sm:$0xff] }
 0x4fc   :  { %v2649_v50 = vrot.slane %v2648_v54, 4  ;;  %v2671_v16 = vadd.f32 %v4612_v21, %v2669_v42  ;;  %v2244_v47 = vrot.slane %v2243_v26, 1  ;;  %v2263_v48 = vrot.slane %v2262_v37, 1 }
 0x4fd   :  { %v2692_v11 = vsel %vm2124_vm10, %v4663_v10, 0.0  ;;  %v2715_v32 = vsel %vm2124_vm10, %v4672_v30, 0.0  ;;  %v2627_v36 = vadd.f32 %v2626_v43, %v2625_v7  ;;  %v2738_v21 = vsel %vm2124_vm10, %v4675_v61, 0.0  ;;  %v5550_v61 = vld [vmem:[#allocation5_spill] sm:$0xff] }
 0x4fe   :  { %v2650_v41 = vadd.f32 %v2649_v50, %v2648_v54  ;;  %v2672_v8 = vrot.slane %v2671_v16, 4  ;;  %v2694_v24 = vadd.f32 %v4621_v20, %v2692_v11  ;;  %v4922_v59 = vadd.f32 %v2244_v47, %v2243_v26  ;;  %v5549_v20 = vld [vmem:[#allocation8_spill] sm:$0xff]  ;;  %v2019_v47 = vld [vmem:[%s5521_s4 + $0x18] sm:$0xff] }
 0x4ff   :  { %v4924_v49 = vadd.f32 %v2263_v48, %v2262_v37  ;;  %v2717_v13 = vadd.f32 %v4624_v22, %v2715_v32  ;;  %v2628_v45 = vrot.slane %v2627_v36, 2  ;;  %v2740_v30 = vadd.f32 %v4627_v40, %v2738_v21  ;;  %v2022_v48 = vld [vmem:[%s5521_s4 + $0x30] sm:$0xff]  ;;  %v2025_v21 = vld [vmem:[%s5521_s4 + $0x48] sm:$0xff] }
 0x500   :  { %v2651_v51 = vrot.slane %v2650_v41, 2  ;;  %v2673_v10 = vadd.f32 %v2672_v8, %v2671_v16  ;;  %v2695_v19 = vrot.slane %v2694_v24, 4  ;;  %v2761_v27 = vsel %vm2124_vm10, %v4678_v62, 0.0 }
 0x501   :  { %v2718_v15 = vrot.slane %v2717_v13, 4  ;;  %v2784_v25 = vsel %vm2124_vm10, %v5549_v20, 0.0  ;;  %v2629_v55 = vadd.f32 %v2628_v45, %v2627_v36  ;;  %v2741_v3 = vrot.slane %v2740_v30, 4  ;;  %v2028_v45 = vld [vmem:[%s5521_s4 + $0x60] sm:$0xff] }
 0x502   :  { %v2652_v60 = vadd.f32 %v2651_v51, %v2650_v41  ;;  %v2674_v31 = vrot.slane %v2673_v10, 2  ;;  %v2696_v22 = vadd.f32 %v2695_v19, %v2694_v24  ;;  %v2763_v35 = vadd.f32 %v5550_v61, %v2761_v27 }
 0x503   :  { %v2719_v56 = vadd.f32 %v2718_v15, %v2717_v13  ;;  %v2785_v4 = vsel %vm2124_vm10, %v5551_v14, 0.0  ;;  %v2630_v23 = vrot.slane %v2629_v55, 1  ;;  %v2742_v62 = vadd.f32 %v2741_v3, %v2740_v30 }
 0x504   :  { %v2653_v1 = vrot.slane %v2652_v60, 1  ;;  %v2675_v40 = vadd.f32 %v2674_v31, %v2673_v10  ;;  %v2697_v53 = vrot.slane %v2696_v22, 2  ;;  %v2764_v2 = vrot.slane %v2763_v35, 4 }
 0x505   :  { %v2720_v29 = vrot.slane %v2719_v56, 2  ;;  %v2786_v58 = vadd.f32 %v2785_v4, %v2784_v25  ;;  %v2631_v18 = vadd.f32 %v2630_v23, %v2629_v55  ;;  %v2743_v34 = vrot.slane %v2742_v62, 2  ;;  %v2034_v55 = vld [vmem:[%s5521_s4 + $0x90] sm:$0xff] }
 0x506   :  { %v2654_v6 = vadd.f32 %v2653_v1, %v2652_v60  ;;  %v2676_v28 = vrot.slane %v2675_v40, 1  ;;  %v2698_v52 = vadd.f32 %v2697_v53, %v2696_v22  ;;  %v2765_v57 = vadd.f32 %v2764_v2, %v2763_v35  ;;  %v2037_v60 = vld [vmem:[%s5521_s4 + $0xa8] sm:$0xff] }
 0x507   :  { %v2721_v38 = vadd.f32 %v2720_v29, %v2719_v56  ;;  %v2787_v17 = vrot.slane %v2786_v58, 4  ;;  %v2979_v26 = vadd.f32 %v2631_v18, %v4898_v63  ;;  %v2744_v43 = vadd.f32 %v2743_v34, %v2742_v62  ;;  %v5552_v63 = vld [vmem:[#allocation11_spill] sm:$0xff] }
 0x508   :  { %v2677_v7 = vadd.f32 %v2676_v28, %v2675_v40  ;;  %v2699_v54 = vrot.slane %v2698_v52, 1  ;;  %v2982_v37 = vadd.f32 %v2654_v6, %v4900_v0  ;;  %v2766_v50 = vrot.slane %v2765_v57, 2 }
 0x509   :  { %v2722_v42 = vrot.slane %v2721_v38, 1  ;;  %v2788_v16 = vadd.f32 %v2787_v17, %v2786_v58  ;;  %v2064_v41 = vmul.f32 %v2016_v5, %v5552_v63  ;;  %v2745_v8 = vrot.slane %v2744_v43, 1 }
 0x50a   :  { %v2700_v11 = vadd.f32 %v2699_v54, %v2698_v52  ;;  %v2985_v32 = vadd.f32 %v2677_v7, %v4902_v9  ;;  %v3145_v36 = vsel %vm3124_vm11, %v2982_v37, %v2979_v26  ;;  %v2767_v24 = vadd.f32 %v2766_v50, %v2765_v57  ;;  %v2031_v9 = vld [vmem:[%s5521_s4 + $0x78] sm:$0xff] }
 0x50b   :  { %v2723_v0 = vadd.f32 %v2722_v42, %v2721_v38  ;;  %v2789_v13 = vrot.slane %v2788_v16, 2  ;;  %v2067_v19 = vmul.f32 %v2019_v47, %v5552_v63  ;;  %v2070_v15 = vmul.f32 %v2022_v48, %v5552_v63 }
 0x50c   :  { %v2988_v51 = vadd.f32 %v2700_v11, %v4904_v12  ;;  %v3146_v10 = vsel %vm3126_vm12, %v2985_v32, %v3145_v36  ;;  %v2746_v30 = vadd.f32 %v2745_v8, %v2744_v43  ;;  %v2768_v27 = vrot.slane %v2767_v24, 1 }
 0x50d   :  { %v2790_v20 = vadd.f32 %v2789_v13, %v2788_v16  ;;  %v2991_v25 = vadd.f32 %v2723_v0, %v4910_v39  ;;  %v2073_v31 = vmul.f32 %v2025_v21, %v5552_v63  ;;  %v2076_v22 = vmul.f32 %v2028_v45, %v5552_v63  ;;  %v2417_v21 = vld [vmem:[%s5520_s5] sm:$0xff]  ;;  %v2420_v45 = vld [vmem:[%s5520_s5 + $0x18] sm:$0xff] }
 0x50e   :  { %v3147_v12 = vsel %vm3128_vm13, %v2988_v51, %v3146_v10  ;;  %v2079_v56 = vmul.f32 %v2031_v9, %v5552_v63  ;;  %v2769_v3 = vadd.f32 %v2768_v27, %v2767_v24  ;;  %v2994_v39 = vadd.f32 %v2746_v30, %v4914_v46  ;;  %v2429_v30 = vld [vmem:[%s5520_s5 + $0x60] sm:$0xff] }
 0x50f   :  { %v2791_v61 = vrot.slane %v2790_v20, 1  ;;  %v3148_v35 = vsel %vm3130_vm14, %v2991_v25, %v3147_v12  ;;  %v2082_v14 = vmul.f32 %v2034_v55, %v5552_v63  ;;  %v2085_v4 = vmul.f32 %v2037_v60, %v5552_v63  ;;  %v2426_v60 = vld [vmem:[%s5520_s5 + $0x48] sm:$0xff]  ;;  %v2432_v12 = vld [vmem:[%s5520_s5 + $0x78] sm:$0xff] }
 0x510   :  { %v2112_v23 = vrot.slane %v2064_v41, 4  ;;  %v2132_v1 = vrot.slane %v2067_v19, 4  ;;  %v2997_v53 = vadd.f32 %v2769_v3, %v4922_v59  ;;  %v3149_v29 = vsel %vm3132_vm15, %v2994_v39, %v3148_v35  ;;  %v2438_v3 = vld [vmem:[%s5520_s5 + $0xa8] sm:$0xff]  ;;  %v2447_v39 = vld [vmem:[%s5520_s5 + $0xf0] sm:$0xff]  ;;  %v5553_v35 = vld [vmem:[#allocation6_spill] sm:$0xff] }
 0x511   :  { %v2792_v40 = vadd.f32 %v2791_v61, %v2790_v20  ;;  %v2151_v62 = vrot.slane %v2070_v15, 4  ;;  %v2170_v18 = vrot.slane %v2073_v31, 4  ;;  %v2189_v6 = vrot.slane %v2076_v22, 4  ;;  %v2441_v61 = vld [vmem:[%s5520_s5 + $0xc0] sm:$0xff] }
 0x512   :  { %v2113_v2 = vadd.f32 %v2112_v23, %v2064_v41  ;;  %v2133_v58 = vadd.f32 %v2132_v1, %v2067_v19  ;;  %v3150_v28 = vsel %vm3134_vm0, %v2997_v53, %v3149_v29  ;;  %v2208_v38 = vrot.slane %v2079_v56, 4  ;;  %v2444_v29 = vld [vmem:[%s5520_s5 + $0xd8] sm:$0xff] }
 0x513   :  { %v3000_v46 = vadd.f32 %v2792_v40, %v4924_v49  ;;  %v2152_v52 = vadd.f32 %v2151_v62, %v2070_v15  ;;  %v2171_v17 = vadd.f32 %v2170_v18, %v2073_v31  ;;  %v2190_v5 = vadd.f32 %v2189_v6, %v2076_v22  ;;  %v2423_v15 = vld [vmem:[%s5520_s5 + $0x30] sm:$0xff]  ;;  %v2450_v62 = vld [vmem:[%s5520_s5 + $0x108] sm:$0xff]  ;;  %v2456_v18 = vld [vmem:[%s5520_s5 + $0x138] sm:$0xff] }
 0x514   :  { %v2114_v34 = vrot.slane %v2113_v2, 2  ;;  %v2134_v57 = vrot.slane %v2133_v58, 2  ;;  %v2209_v54 = vadd.f32 %v2208_v38, %v2079_v56  ;;  %v2227_v26 = vrot.slane %v2082_v14, 4  ;;  %v2435_v31 = vld [vmem:[%s5520_s5 + $0x90] sm:$0xff] }
 0x515   :  { %v3151_v7 = vsel %vm3136_vm1, %v3000_v46, %v3150_v28  ;;  %v2153_v59 = vrot.slane %v2152_v52, 2  ;;  %v2172_v43 = vrot.slane %v2171_v17, 2  ;;  %v2191_v50 = vrot.slane %v2190_v5, 2  ;;  %v2459_v6 = vld [vmem:[%s5520_s5 + $0x150] sm:$0xff]  ;;  %v2462_v46 = vld [vmem:[%s5520_s5 + $0x168] sm:$0xff] }
 0x516   :  { %3790 = vmatprep.mubr.msk.f32.mxu1 %vm2124_vm10, %v3151_v7  ;;  %v2115_v37 = vadd.f32 %v2114_v34, %v2113_v2  ;;  %v2135_v42 = vadd.f32 %v2134_v57, %v2133_v58  ;;  %v2210_v16 = vrot.slane %v2209_v54, 2  ;;  %v2228_v47 = vadd.f32 %v2227_v26, %v2082_v14  ;;  %v2453_v2 = vld [vmem:[%s5520_s5 + $0x120] sm:$0xff] }
 0x517   :  { %v2154_v49 = vadd.f32 %v2153_v59, %v2152_v52  ;;  %v2246_v48 = vrot.slane %v2085_v4, 4  ;;  %v2173_v36 = vadd.f32 %v2172_v43, %v2171_v17  ;;  %v2192_v41 = vadd.f32 %v2191_v50, %v2190_v5 }
 0x518   :  { %v2116_v11 = vrot.slane %v2115_v37, 1  ;;  %v2136_v32 = vrot.slane %v2135_v42, 1  ;;  %v2211_v8 = vadd.f32 %v2210_v16, %v2209_v54  ;;  %v2229_v24 = vrot.slane %v2228_v47, 2 }
 0x519   :  { %v2155_v0 = vrot.slane %v2154_v49, 1  ;;  %v2247_v13 = vadd.f32 %v2246_v48, %v2085_v4  ;;  %v2174_v10 = vrot.slane %v2173_v36, 1  ;;  %v2193_v19 = vrot.slane %v2192_v41, 1  ;;  %v5554_v4 = vld [vmem:[#allocation9_spill] sm:$0xff] }
 0x51a   :  { %v4991_v9 = vadd.f32 %v2116_v11, %v2115_v37  ;;  %v4993_v51 = vadd.f32 %v2136_v32, %v2135_v42  ;;  %v2212_v20 = vrot.slane %v2211_v8, 1  ;;  %v2230_v25 = vadd.f32 %v2229_v24, %v2228_v47 }
 0x51b   :  { %v5001_v27 = vadd.f32 %v2155_v0, %v2154_v49  ;;  %v2248_v55 = vrot.slane %v2247_v13, 2  ;;  %v5012_v22 = vadd.f32 %v2174_v10, %v2173_v36  ;;  %v5014_v56 = vadd.f32 %v2193_v19, %v2192_v41 }
 0x51c   :  { %v2513_v14 = vmul.f32 %v2417_v21, %v5553_v35  ;;  %v2516_v23 = vmul.f32 %v2420_v45, %v5554_v4  ;;  %v5027_v1 = vadd.f32 %v2212_v20, %v2211_v8  ;;  %v2231_v40 = vrot.slane %v2230_v25, 1 }
 0x51d   :  { %v2249_v53 = vadd.f32 %v2248_v55, %v2247_v13  ;;  %v2519_v58 = vmul.f32 %v2423_v15, %v5553_v35  ;;  %v2522_v28 = vmul.f32 %v2426_v60, %v5554_v4  ;;  %v2525_v52 = vmul.f32 %v2429_v30, %v5553_v35 }
 0x51e   :  { %v2528_v38 = vmul.f32 %v2432_v12, %v5554_v4  ;;  %v2531_v34 = vmul.f32 %v2435_v31, %v5553_v35  ;;  %v5052_v57 = vadd.f32 %v2231_v40, %v2230_v25  ;;  %v2534_v5 = vmul.f32 %v2438_v3, %v5554_v4 }
 0x51f   :  { %v2250_v17 = vrot.slane %v2249_v53, 1  ;;  %v2537_v7 = vmul.f32 %v2441_v61, %v5553_v35  ;;  %v2540_v59 = vmul.f32 %v2444_v29, %v5554_v4  ;;  %v2543_v54 = vmul.f32 %v2447_v39, %v5553_v35 }
 0x520   :  { %v2546_v26 = vmul.f32 %v2450_v62, %v5554_v4  ;;  %v2549_v37 = vmul.f32 %v2453_v2, %v5553_v35  ;;  %v2552_v43 = vmul.f32 %v2456_v18, %v5554_v4  ;;  %v2555_v50 = vmul.f32 %v2459_v6, %v5553_v35 }
 0x521   :  { %v5060_v42 = vadd.f32 %v2250_v17, %v2249_v53  ;;  %v2558_v49 = vmul.f32 %v2462_v46, %v5554_v4  ;;  %v2609_v16 = vadd.f32 %v2516_v23, %v2513_v14  ;;  %v2632_v47 = vadd.f32 %v2522_v28, %v2519_v58 }
 0x522   :  { %v2655_v48 = vadd.f32 %v2528_v38, %v2525_v52  ;;  %v2678_v11 = vadd.f32 %v2534_v5, %v2531_v34  ;;  %v2701_v32 = vadd.f32 %v2540_v59, %v2537_v7  ;;  %v2724_v36 = vadd.f32 %v2546_v26, %v2543_v54 }
 0x523   :  { %v2747_v41 = vadd.f32 %v2552_v43, %v2549_v37  ;;  %v2770_v0 = vadd.f32 %v2558_v49, %v2555_v50  ;;  %v2610_v8 = vrot.slane %v2609_v16, 4  ;;  %v2633_v24 = vrot.slane %v2632_v47, 4 }
 0x524   :  { %v2656_v13 = vrot.slane %v2655_v48, 4  ;;  %v2679_v21 = vrot.slane %v2678_v11, 4  ;;  %v2702_v45 = vrot.slane %v2701_v32, 4  ;;  %v2725_v10 = vrot.slane %v2724_v36, 4 }
 0x525   :  { %v2748_v19 = vrot.slane %v2747_v41, 4  ;;  %v2771_v15 = vrot.slane %v2770_v0, 4  ;;  %v2611_v30 = vadd.f32 %v2610_v8, %v2609_v16  ;;  %v2634_v20 = vadd.f32 %v2633_v24, %v2632_v47 }
 0x526   :  { %v2657_v25 = vadd.f32 %v2656_v13, %v2655_v48  ;;  %v2680_v55 = vadd.f32 %v2679_v21, %v2678_v11  ;;  %v2703_v60 = vadd.f32 %v2702_v45, %v2701_v32  ;;  %v2726_v12 = vadd.f32 %v2725_v10, %v2724_v36  ;;  %v2042_v36 = vld [vmem:[%s5521_s4 + $0xd0] sm:$0xff]  ;;  %v2051_v45 = vld [vmem:[%s5521_s4 + $0x118] sm:$0xff] }
 0x527   :  { %v2749_v31 = vadd.f32 %v2748_v19, %v2747_v41  ;;  %v2772_v3 = vadd.f32 %v2771_v15, %v2770_v0  ;;  %v2612_v61 = vrot.slane %v2611_v30, 2  ;;  %v2635_v39 = vrot.slane %v2634_v20, 2  ;;  %v2045_v41 = vld [vmem:[%s5521_s4 + $0xe8] sm:$0xff]  ;;  %v2048_v0 = vld [vmem:[%s5521_s4 + $0x100] sm:$0xff]  ;;  %v2054_v10 = vld [vmem:[%s5521_s4 + $0x130] sm:$0xff] }
 0x528   :  { %v2658_v14 = vrot.slane %v2657_v25, 2  ;;  %v2681_v23 = vrot.slane %v2680_v55, 2  ;;  %v2704_v40 = vrot.slane %v2703_v60, 2  ;;  %v2727_v53 = vrot.slane %v2726_v12, 2  ;;  %v2057_v19 = vld [vmem:[%s5521_s4 + $0x148] sm:$0xff]  ;;  %v2060_v15 = vld [vmem:[%s5521_s4 + $0x160] sm:$0xff] }
 0x529   :  { %v2750_v29 = vrot.slane %v2749_v31, 2  ;;  %v2773_v62 = vrot.slane %v2772_v3, 2  ;;  %v2613_v2 = vadd.f32 %v2612_v61, %v2611_v30  ;;  %v2636_v58 = vadd.f32 %v2635_v39, %v2634_v20  ;;  %v2063_v30 = vld [vmem:[%s5521_s4 + $0x178] sm:$0xff] }
 0x52a   :  { %v2659_v18 = vadd.f32 %v2658_v14, %v2657_v25  ;;  %v2682_v6 = vadd.f32 %v2681_v23, %v2680_v55  ;;  %v2705_v46 = vadd.f32 %v2704_v40, %v2703_v60  ;;  %v2728_v28 = vadd.f32 %v2727_v53, %v2726_v12 }
 0x52b   :  { %v2751_v52 = vadd.f32 %v2750_v29, %v2749_v31  ;;  %v2774_v38 = vadd.f32 %v2773_v62, %v2772_v3  ;;  %v2614_v34 = vrot.slane %v2613_v2, 1  ;;  %v2637_v17 = vrot.slane %v2636_v58, 1 }
 0x52c   :  { %v2660_v5 = vrot.slane %v2659_v18, 1  ;;  %v2683_v7 = vrot.slane %v2682_v6, 1  ;;  %v2706_v59 = vrot.slane %v2705_v46, 1  ;;  %v2729_v54 = vrot.slane %v2728_v28, 1 }
 0x52d   :  { %v2752_v26 = vrot.slane %v2751_v52, 1  ;;  %v2775_v37 = vrot.slane %v2774_v38, 1  ;;  %v2615_v43 = vadd.f32 %v2614_v34, %v2613_v2  ;;  %v2638_v50 = vadd.f32 %v2637_v17, %v2636_v58 }
 0x52e   :  { %v2661_v49 = vadd.f32 %v2660_v5, %v2659_v18  ;;  %v2684_v16 = vadd.f32 %v2683_v7, %v2682_v6  ;;  %v2707_v47 = vadd.f32 %v2706_v59, %v2705_v46  ;;  %v2730_v48 = vadd.f32 %v2729_v54, %v2728_v28 }
 0x52f   :  { %v2753_v11 = vadd.f32 %v2752_v26, %v2751_v52  ;;  %v2776_v32 = vadd.f32 %v2775_v37, %v2774_v38  ;;  %v2977_v8 = vadd.f32 %v2615_v43, %v4991_v9  ;;  %v2980_v24 = vadd.f32 %v2638_v50, %v4993_v51 }
 0x530   :  { %v2983_v13 = vadd.f32 %v2661_v49, %v5001_v27  ;;  %v2986_v21 = vadd.f32 %v2684_v16, %v5012_v22  ;;  %v2989_v9 = vadd.f32 %v2707_v47, %v5014_v56  ;;  %v2992_v51 = vadd.f32 %v2730_v48, %v5027_v1 }
 0x531   :  { %v2995_v27 = vadd.f32 %v2753_v11, %v5052_v57  ;;  %v2998_v22 = vadd.f32 %v2776_v32, %v5060_v42  ;;  %v3125_v20 = vsel %vm3124_vm11, %v2980_v24, %v2977_v8  ;;  %v2090_v25 = vmul.f32 %v2042_v36, %v4742_v44 }
 0x532   :  { %v2093_v56 = vmul.f32 %v2045_v41, %v4742_v44  ;;  %v2096_v1 = vmul.f32 %v2048_v0, %v4742_v44  ;;  %v3127_v57 = vsel %vm3126_vm12, %v2983_v13, %v3125_v20  ;;  %v2099_v42 = vmul.f32 %v2051_v45, %v4742_v44 }
 0x533   :  { %v2102_v55 = vmul.f32 %v2054_v10, %v4742_v44  ;;  %v2105_v60 = vmul.f32 %v2057_v19, %v4742_v44  ;;  %v3129_v12 = vsel %vm3128_vm13, %v2986_v21, %v3127_v57  ;;  %v2108_v31 = vmul.f32 %v2060_v15, %v4742_v44  ;;  %v2467_v10 = vld [vmem:[%s5520_s5 + $0x190] sm:$0xff]  ;;  %v2473_v15 = vld [vmem:[%s5520_s5 + $0x1c0] sm:$0xff] }
 0x534   :  { %v2111_v3 = vmul.f32 %v2063_v30, %v4742_v44  ;;  %v2277_v61 = vsel %vm2124_vm10, %v2090_v25, 0.0  ;;  %v3131_v39 = vsel %vm3130_vm14, %v2989_v9, %v3129_v12  ;;  %v2296_v23 = vsel %vm2124_vm10, %v2093_v56, 0.0  ;;  %v2479_v57 = vld [vmem:[%s5520_s5 + $0x1f0] sm:$0xff]  ;;  %v2482_v12 = vld [vmem:[%s5520_s5 + $0x208] sm:$0xff] }
 0x535   :  { %v2278_v14 = vrot.slane %v2277_v61, 4  ;;  %v2315_v40 = vsel %vm2124_vm10, %v2096_v1, 0.0  ;;  %v3133_v53 = vsel %vm3132_vm15, %v2992_v51, %v3131_v39  ;;  %v2297_v29 = vrot.slane %v2296_v23, 4  ;;  %v2476_v1 = vld [vmem:[%s5520_s5 + $0x1d8] sm:$0xff] }
 0x536   :  { %v2316_v62 = vrot.slane %v2315_v40, 4  ;;  %v2334_v2 = vsel %vm2124_vm10, %v2099_v42, 0.0  ;;  %v3135_v58 = vsel %vm3134_vm0, %v2995_v27, %v3133_v53  ;;  %v2353_v44 = vsel %vm2124_vm10, %v2102_v55, 0.0  ;;  %v2494_v53 = vld [vmem:[%s5520_s5 + $0x268] sm:$0xff] }
 0x537   :  { %v2279_v18 = vadd.f32 %v2278_v14, %v2277_v61  ;;  %v2335_v6 = vrot.slane %v2334_v2, 4  ;;  %v3137_v46 = vsel %vm3136_vm1, %v2998_v22, %v3135_v58  ;;  %v2298_v28 = vadd.f32 %v2297_v29, %v2296_v23  ;;  %v2470_v22 = vld [vmem:[%s5520_s5 + $0x1a8] sm:$0xff]  ;;  %v5555_v61 = vld [vmem:[#allocation4_spill] sm:$0xff]  ;;  %v2500_v29 = vld [vmem:[%s5520_s5 + $0x298] sm:$0xff] }
 0x538   :  { %v2317_v52 = vadd.f32 %v2316_v62, %v2315_v40  ;;  %v2354_v38 = vrot.slane %v2353_v44, 4  ;;  %3250 = vmatmul.mubr.f32.vlgmr.msra.gmra.mxu0 %v3137_v46  ;;  %v2372_v5 = vsel %vm2124_vm10, %v2105_v60, 0.0  ;;  %v2391_v7 = vsel %vm2124_vm10, %v2108_v31, 0.0  ;;  %v2485_v31 = vld [vmem:[%s5520_s5 + $0x220] sm:$0xff]  ;;  %v2491_v40 = vld [vmem:[%s5520_s5 + $0x250] sm:$0xff] }
 0x539   :  { %v2280_v34 = vrot.slane %v2279_v18, 2  ;;  %v2336_v17 = vadd.f32 %v2335_v6, %v2334_v2  ;;  %v2299_v59 = vrot.slane %v2298_v28, 2  ;;  %v2373_v37 = vrot.slane %v2372_v5, 4  ;;  %v5556_v62 = vld [vmem:[#allocation2_spill] sm:$0xff]  ;;  %v2503_v46 = vld [vmem:[%s5520_s5 + $0x2b0] sm:$0xff] }
 0x53a   :  { %v2318_v54 = vrot.slane %v2317_v52, 2  ;;  %v2355_v26 = vadd.f32 %v2354_v38, %v2353_v44  ;;  %v2392_v49 = vrot.slane %v2391_v7, 4  ;;  %v2410_v16 = vsel %vm2124_vm10, %v2111_v3, 0.0  ;;  %v2488_v3 = vld [vmem:[%s5520_s5 + $0x238] sm:$0xff]  ;;  %v2497_v44 = vld [vmem:[%s5520_s5 + $0x280] sm:$0xff] }
 0x53b   :  { %v2281_v43 = vadd.f32 %v2280_v34, %v2279_v18  ;;  %v2337_v50 = vrot.slane %v2336_v17, 2  ;;  %v2300_v47 = vadd.f32 %v2299_v59, %v2298_v28  ;;  %v2374_v32 = vadd.f32 %v2373_v37, %v2372_v5  ;;  %v2506_v28 = vld [vmem:[%s5520_s5 + $0x2c8] sm:$0xff]  ;;  %v2512_v5 = vld [vmem:[%s5520_s5 + $0x2f8] sm:$0xff] }
 0x53c   :  { %v2319_v48 = vadd.f32 %v2318_v54, %v2317_v52  ;;  %v2356_v11 = vrot.slane %v2355_v26, 2  ;;  %v2393_v0 = vadd.f32 %v2392_v49, %v2391_v7  ;;  %v2411_v8 = vrot.slane %v2410_v16, 4 }
 0x53d   :  { %v2282_v36 = vrot.slane %v2281_v43, 1  ;;  %v2338_v41 = vadd.f32 %v2337_v50, %v2336_v17  ;;  %v2301_v24 = vrot.slane %v2300_v47, 1  ;;  %v2375_v45 = vrot.slane %v2374_v32, 2  ;;  %v2509_v17 = vld [vmem:[%s5520_s5 + $0x2e0] sm:$0xff] }
 0x53e   :  { %v2320_v13 = vrot.slane %v2319_v48, 1  ;;  %v2357_v21 = vadd.f32 %v2356_v11, %v2355_v26  ;;  %v2394_v51 = vrot.slane %v2393_v0, 2  ;;  %v2412_v27 = vadd.f32 %v2411_v8, %v2410_v16 }
 0x53f   :  { %v5123_v19 = vadd.f32 %v2282_v36, %v2281_v43  ;;  %v2339_v9 = vrot.slane %v2338_v41, 1  ;;  %v5131_v30 = vadd.f32 %v2301_v24, %v2300_v47  ;;  %v2376_v56 = vadd.f32 %v2375_v45, %v2374_v32 }
 0x540   :  { %v5133_v20 = vadd.f32 %v2320_v13, %v2319_v48  ;;  %v2358_v25 = vrot.slane %v2357_v21, 1  ;;  %v2395_v55 = vadd.f32 %v2394_v51, %v2393_v0  ;;  %v2413_v60 = vrot.slane %v2412_v27, 2 }
 0x541   :  { %v5141_v42 = vadd.f32 %v2339_v9, %v2338_v41  ;;  %v2563_v39 = vmul.f32 %v2467_v10, %v5555_v61  ;;  %v2377_v23 = vrot.slane %v2376_v56, 1  ;;  %v2566_v2 = vmul.f32 %v2470_v22, %v5556_v62 }
 0x542   :  { %v5153_v14 = vadd.f32 %v2358_v25, %v2357_v21  ;;  %v2569_v58 = vmul.f32 %v2473_v15, %v5555_v61  ;;  %v2396_v18 = vrot.slane %v2395_v55, 1  ;;  %v2414_v6 = vadd.f32 %v2413_v60, %v2412_v27 }
 0x543   :  { %v2572_v52 = vmul.f32 %v2476_v1, %v5556_v62  ;;  %v2575_v38 = vmul.f32 %v2479_v57, %v5555_v61  ;;  %v5177_v34 = vadd.f32 %v2377_v23, %v2376_v56  ;;  %v2578_v7 = vmul.f32 %v2482_v12, %v5556_v62 }
 0x544   :  { %v2581_v59 = vmul.f32 %v2485_v31, %v5555_v61  ;;  %v2584_v54 = vmul.f32 %v2488_v3, %v5556_v62  ;;  %v5188_v26 = vadd.f32 %v2396_v18, %v2395_v55  ;;  %v2415_v37 = vrot.slane %v2414_v6, 1 }
 0x545   :  { %v2587_v43 = vmul.f32 %v2491_v40, %v5555_v61  ;;  %v2590_v50 = vmul.f32 %v2494_v53, %v5556_v62  ;;  %v2593_v49 = vmul.f32 %v2497_v44, %v5555_v61  ;;  %v2596_v16 = vmul.f32 %v2500_v29, %v5556_v62 }
 0x546   :  { %v2599_v47 = vmul.f32 %v2503_v46, %v5555_v61  ;;  %v2602_v48 = vmul.f32 %v2506_v28, %v5556_v62  ;;  %v5196_v11 = vadd.f32 %v2415_v37, %v2414_v6  ;;  %v2605_v32 = vmul.f32 %v2509_v17, %v5555_v61 }
 0x547   :  { %v2608_v36 = vmul.f32 %v2512_v5, %v5556_v62  ;;  %v2807_v41 = vsel %vm2124_vm10, %v2563_v39, 0.0  ;;  %v2808_v0 = vsel %vm2124_vm10, %v2566_v2, 0.0  ;;  %v2830_v8 = vsel %vm2124_vm10, %v2569_v58, 0.0 }
 0x548   :  { %v2831_v24 = vsel %vm2124_vm10, %v2572_v52, 0.0  ;;  %v2853_v13 = vsel %vm2124_vm10, %v2575_v38, 0.0  ;;  %v2809_v21 = vadd.f32 %v2808_v0, %v2807_v41  ;;  %v2854_v10 = vsel %vm2124_vm10, %v2578_v7, 0.0 }
 0x549   :  { %v2832_v45 = vadd.f32 %v2831_v24, %v2830_v8  ;;  %v2876_v9 = vsel %vm2124_vm10, %v2581_v59, 0.0  ;;  %v2855_v51 = vadd.f32 %v2854_v10, %v2853_v13  ;;  %v2877_v27 = vsel %vm2124_vm10, %v2584_v54, 0.0 }
 0x54a   :  { %v2899_v22 = vsel %vm2124_vm10, %v2587_v43, 0.0  ;;  %v2900_v15 = vsel %vm2124_vm10, %v2590_v50, 0.0  ;;  %v2810_v25 = vrot.slane %v2809_v21, 4  ;;  %v2878_v1 = vadd.f32 %v2877_v27, %v2876_v9 }
 0x54b   :  { %v2833_v56 = vrot.slane %v2832_v45, 4  ;;  %v2901_v57 = vadd.f32 %v2900_v15, %v2899_v22  ;;  %v2856_v55 = vrot.slane %v2855_v51, 4  ;;  %v2922_v60 = vsel %vm2124_vm10, %v2593_v49, 0.0 }
 0x54c   :  { %v2923_v12 = vsel %vm2124_vm10, %v2596_v16, 0.0  ;;  %v2945_v31 = vsel %vm2124_vm10, %v2599_v47, 0.0  ;;  %v2811_v3 = vadd.f32 %v2810_v25, %v2809_v21  ;;  %v2879_v39 = vrot.slane %v2878_v1, 4 }
 0x54d   :  { %v2834_v61 = vadd.f32 %v2833_v56, %v2832_v45  ;;  %v2902_v23 = vrot.slane %v2901_v57, 4  ;;  %v2857_v40 = vadd.f32 %v2856_v55, %v2855_v51  ;;  %v2924_v53 = vadd.f32 %v2923_v12, %v2922_v60  ;;  %v2041_v51 = vld [vmem:[%s5521_s4 + $0xc8] sm:$0xff]  ;;  %v2044_v60 = vld [vmem:[%s5521_s4 + $0xe0] sm:$0xff]  ;;  %v2047_v12 = vld [vmem:[%s5521_s4 + $0xf8] sm:$0xff] }
 0x54e   :  { %v2946_v29 = vsel %vm2124_vm10, %v2602_v48, 0.0  ;;  %v2968_v62 = vsel %vm2124_vm10, %v2605_v32, 0.0  ;;  %v2812_v2 = vrot.slane %v2811_v3, 2  ;;  %v2880_v18 = vadd.f32 %v2879_v39, %v2878_v1 }
 0x54f   :  { %v2835_v58 = vrot.slane %v2834_v61, 2  ;;  %v2903_v6 = vadd.f32 %v2902_v23, %v2901_v57  ;;  %v2858_v44 = vrot.slane %v2857_v40, 2  ;;  %v2925_v46 = vrot.slane %v2924_v53, 4 }
 0x550   :  { %v2947_v28 = vadd.f32 %v2946_v29, %v2945_v31  ;;  %v2969_v52 = vsel %vm2124_vm10, %v2608_v36, 0.0  ;;  %v2813_v38 = vadd.f32 %v2812_v2, %v2811_v3  ;;  %v2881_v5 = vrot.slane %v2880_v18, 2  ;;  %v2050_v31 = vld [vmem:[%s5521_s4 + $0x110] sm:$0xff] }
 0x551   :  { %v2836_v17 = vadd.f32 %v2835_v58, %v2834_v61  ;;  %v2904_v7 = vrot.slane %v2903_v6, 2  ;;  %v2859_v59 = vadd.f32 %v2858_v44, %v2857_v40  ;;  %v2926_v54 = vadd.f32 %v2925_v46, %v2924_v53  ;;  %v5557_v61 = vld [vmem:[#allocation10_spill] sm:$0xff] }
 0x552   :  { %v2948_v37 = vrot.slane %v2947_v28, 4  ;;  %v2970_v43 = vadd.f32 %v2969_v52, %v2968_v62  ;;  %v2814_v50 = vrot.slane %v2813_v38, 1  ;;  %v2882_v16 = vadd.f32 %v2881_v5, %v2880_v18  ;;  %v2056_v62 = vld [vmem:[%s5521_s4 + $0x140] sm:$0xff] }
 0x553   :  { %v2837_v49 = vrot.slane %v2836_v17, 1  ;;  %v2905_v47 = vadd.f32 %v2904_v7, %v2903_v6  ;;  %v2860_v48 = vrot.slane %v2859_v59, 1  ;;  %v2927_v32 = vrot.slane %v2926_v54, 2 }
 0x554   :  { %v2949_v41 = vadd.f32 %v2948_v37, %v2947_v28  ;;  %v2971_v0 = vrot.slane %v2970_v43, 4  ;;  %v2815_v8 = vadd.f32 %v2814_v50, %v2813_v38  ;;  %v2883_v13 = vrot.slane %v2882_v16, 1 }
 0x555   :  { %v2838_v24 = vadd.f32 %v2837_v49, %v2836_v17  ;;  %v2906_v36 = vrot.slane %v2905_v47, 1  ;;  %v2861_v21 = vadd.f32 %v2860_v48, %v2859_v59  ;;  %v2928_v45 = vadd.f32 %v2927_v32, %v2926_v54 }
 0x556   :  { %v2950_v10 = vrot.slane %v2949_v41, 2  ;;  %v2972_v9 = vadd.f32 %v2971_v0, %v2970_v43  ;;  %v2884_v27 = vadd.f32 %v2883_v13, %v2882_v16  ;;  %v3003_v15 = vadd.f32 %v2815_v8, %v5123_v19 }
 0x557   :  { %v2907_v22 = vadd.f32 %v2906_v36, %v2905_v47  ;;  %v3006_v25 = vadd.f32 %v2838_v24, %v5131_v30  ;;  %v2929_v56 = vrot.slane %v2928_v45, 1  ;;  %v3009_v55 = vadd.f32 %v2861_v21, %v5133_v20  ;;  %v2053_v20 = vld [vmem:[%s5521_s4 + $0x128] sm:$0xff] }
 0x558   :  { %v2951_v1 = vadd.f32 %v2950_v10, %v2949_v41  ;;  %v2973_v57 = vrot.slane %v2972_v9, 2  ;;  %v3012_v19 = vadd.f32 %v2884_v27, %v5141_v42  ;;  %v2089_v39 = vmul.f32 %v2041_v51, %v5557_v61  ;;  %v2059_v42 = vld [vmem:[%s5521_s4 + $0x158] sm:$0xff] }
 0x559   :  { %v3015_v30 = vadd.f32 %v2907_v22, %v5153_v14  ;;  %v3166_v3 = vsel %vm3124_vm11, %v3006_v25, %v3003_v15  ;;  %v2930_v23 = vadd.f32 %v2929_v56, %v2928_v45  ;;  %v2062_v14 = vld [vmem:[%s5521_s4 + $0x170] sm:$0xff]  ;;  %v2092_v58 = vmul.f32 %v2044_v60, %v5557_v61 }
 0x55a   :  { %v2952_v40 = vrot.slane %v2951_v1, 1  ;;  %v2974_v53 = vadd.f32 %v2973_v57, %v2972_v9  ;;  %v3167_v29 = vsel %vm3126_vm12, %v3009_v55, %v3166_v3  ;;  %v2095_v18 = vmul.f32 %v2047_v12, %v5557_v61 }
 0x55b   :  { %v3168_v2 = vsel %vm3128_vm13, %v3012_v19, %v3167_v29  ;;  %v2098_v6 = vmul.f32 %v2050_v31, %v5557_v61  ;;  %v3018_v28 = vadd.f32 %v2930_v23, %v5177_v34  ;;  %v2101_v38 = vmul.f32 %v2053_v20, %v5557_v61  ;;  %v2466_v23 = vld [vmem:[%s5520_s5 + $0x188] sm:$0xff] }
 0x55c   :  { %v2953_v44 = vadd.f32 %v2952_v40, %v2951_v1  ;;  %v2975_v46 = vrot.slane %v2974_v53, 1  ;;  %v3169_v52 = vsel %vm3130_vm14, %v3015_v30, %v3168_v2  ;;  %v2104_v17 = vmul.f32 %v2056_v62, %v5557_v61  ;;  %v2472_v40 = vld [vmem:[%s5520_s5 + $0x1b8] sm:$0xff]  ;;  %v2475_v2 = vld [vmem:[%s5520_s5 + $0x1d0] sm:$0xff] }
 0x55d   :  { %v2107_v5 = vmul.f32 %v2059_v42, %v5557_v61  ;;  %v2110_v7 = vmul.f32 %v2062_v14, %v5557_v61  ;;  %v3170_v37 = vsel %vm3132_vm15, %v3018_v28, %v3169_v52  ;;  %v2271_v43 = vrot.slane %v2089_v39, 4  ;;  %v2469_v14 = vld [vmem:[%s5520_s5 + $0x1a0] sm:$0xff]  ;;  %v2484_v52 = vld [vmem:[%s5520_s5 + $0x218] sm:$0xff] }
 0x55e   :  { %v2976_v59 = vadd.f32 %v2975_v46, %v2974_v53  ;;  %v3021_v54 = vadd.f32 %v2953_v44, %v5188_v26  ;;  %v2290_v50 = vrot.slane %v2092_v58, 4  ;;  %v2309_v49 = vrot.slane %v2095_v18, 4  ;;  %v2481_v28 = vld [vmem:[%s5520_s5 + $0x200] sm:$0xff] }
 0x55f   :  { %v2328_v16 = vrot.slane %v2098_v6, 4  ;;  %v2347_v34 = vrot.slane %v2101_v38, 4  ;;  %v2272_v32 = vadd.f32 %v2271_v43, %v2089_v39  ;;  %v2366_v41 = vrot.slane %v2104_v17, 4  ;;  %v5559_v43 = vld [vmem:[#allocation7_spill] sm:$0xff] }
 0x560   :  { %v3024_v47 = vadd.f32 %v2976_v59, %v5196_v11  ;;  %v3171_v48 = vsel %vm3134_vm0, %v3021_v54, %v3170_v37  ;;  %v2291_v0 = vadd.f32 %v2290_v50, %v2092_v58  ;;  %v2310_v8 = vadd.f32 %v2309_v49, %v2095_v18  ;;  %v2478_v58 = vld [vmem:[%s5520_s5 + $0x1e8] sm:$0xff]  ;;  %v2493_v54 = vld [vmem:[%s5520_s5 + $0x260] sm:$0xff]  ;;  %v2496_v37 = vld [vmem:[%s5520_s5 + $0x278] sm:$0xff] }
 0x561   :  { %v2329_v24 = vadd.f32 %v2328_v16, %v2098_v6  ;;  %v2348_v13 = vadd.f32 %v2347_v34, %v2101_v38  ;;  %v2273_v26 = vrot.slane %v2272_v32, 2  ;;  %v2367_v21 = vadd.f32 %v2366_v41, %v2104_v17  ;;  %v2487_v38 = vld [vmem:[%s5520_s5 + $0x230] sm:$0xff]  ;;  %v2490_v59 = vld [vmem:[%s5520_s5 + $0x248] sm:$0xff]  ;;  %v2505_v34 = vld [vmem:[%s5520_s5 + $0x2c0] sm:$0xff] }
 0x562   :  { %v3172_v36 = vsel %vm3136_vm1, %v3024_v47, %v3171_v48  ;;  %v2385_v45 = vrot.slane %v2107_v5, 4  ;;  %v2292_v10 = vrot.slane %v2291_v0, 2  ;;  %v2311_v9 = vrot.slane %v2310_v8, 2  ;;  %v2499_v49 = vld [vmem:[%s5520_s5 + $0x290] sm:$0xff]  ;;  %v2502_v16 = vld [vmem:[%s5520_s5 + $0x2a8] sm:$0xff] }
 0x563   :  { %3791 = vmatmul.mubr.msk.f32.vlgmr.msra.gmra.mxu1 %vm2124_vm10, %v3172_v36  ;;  %v2330_v51 = vrot.slane %v2329_v24, 2  ;;  %v2349_v27 = vrot.slane %v2348_v13, 2  ;;  %v2274_v11 = vadd.f32 %v2273_v26, %v2272_v32  ;;  %v2368_v22 = vrot.slane %v2367_v21, 2 }
 0x564   :  { %v2386_v15 = vadd.f32 %v2385_v45, %v2107_v5  ;;  %v2404_v25 = vrot.slane %v2110_v7, 4  ;;  %v5558_v56 = vmov 0.0   ;;  %v2293_v1 = vadd.f32 %v2292_v10, %v2291_v0 }
 0x565   :  { %3797 = vmatprep.mubr.msk.f32.mxu1 %vm3819_vm4, %v5558_v56  ;;  %v2312_v57 = vadd.f32 %v2311_v9, %v2310_v8  ;;  %v2331_v55 = vadd.f32 %v2330_v51, %v2329_v24  ;;  %v2350_v60 = vadd.f32 %v2349_v27, %v2348_v13  ;;  %v2275_v12 = vrot.slane %v2274_v11, 1  ;;  %v2508_v24 = vld [vmem:[%s5520_s5 + $0x2d8] sm:$0xff]  ;;  %v2511_v13 = vld [vmem:[%s5520_s5 + $0x2f0] sm:$0xff] }
 0x566   :  { %v2369_v31 = vadd.f32 %v2368_v22, %v2367_v21  ;;  %v2387_v19 = vrot.slane %v2386_v15, 2  ;;  %v2405_v30 = vadd.f32 %v2404_v25, %v2110_v7  ;;  %v2294_v3 = vrot.slane %v2293_v1, 1 }
 0x567   :  { %v2313_v20 = vrot.slane %v2312_v57, 1  ;;  %v2332_v61 = vrot.slane %v2331_v55, 1  ;;  %v2351_v39 = vrot.slane %v2350_v60, 1  ;;  %v5272_v53 = vadd.f32 %v2275_v12, %v2274_v11 }
 0x568   :  { %v2370_v29 = vrot.slane %v2369_v31, 1  ;;  %v2388_v62 = vadd.f32 %v2387_v19, %v2386_v15  ;;  %v2406_v42 = vrot.slane %v2405_v30, 2  ;;  %v5283_v18 = vadd.f32 %v2294_v3, %v2293_v1 }
 0x569   :  { %v5285_v6 = vadd.f32 %v2313_v20, %v2312_v57  ;;  %v5287_v44 = vadd.f32 %v2332_v61, %v2331_v55  ;;  %v5289_v46 = vadd.f32 %v2351_v39, %v2350_v60  ;;  %v2562_v50 = vmul.f32 %v2466_v23, %v5559_v43 }
 0x56a   :  { %v5300_v17 = vadd.f32 %v2370_v29, %v2369_v31  ;;  %v2389_v5 = vrot.slane %v2388_v62, 1  ;;  %v2407_v7 = vadd.f32 %v2406_v42, %v2405_v30  ;;  %v2565_v47 = vmul.f32 %v2469_v14, %v4722_v33 }
 0x56b   :  { %v2568_v48 = vmul.f32 %v2472_v40, %v5559_v43  ;;  %v2571_v32 = vmul.f32 %v2475_v2, %v4722_v33  ;;  %v2574_v41 = vmul.f32 %v2478_v58, %v5559_v43  ;;  %v2577_v36 = vmul.f32 %v2481_v28, %v4722_v33 }
 0x56c   :  { %v5325_v0 = vadd.f32 %v2389_v5, %v2388_v62  ;;  %v2408_v8 = vrot.slane %v2407_v7, 1  ;;  %v2580_v26 = vmul.f32 %v2484_v52, %v5559_v43  ;;  %v2583_v21 = vmul.f32 %v2487_v38, %v4722_v33 }
 0x56d   :  { %v2586_v45 = vmul.f32 %v2490_v59, %v5559_v43  ;;  %v2589_v10 = vmul.f32 %v2493_v54, %v4722_v33  ;;  %v2592_v9 = vmul.f32 %v2496_v37, %v5559_v43  ;;  %v2595_v27 = vmul.f32 %v2499_v49, %v4722_v33 }
 0x56e   :  { %v5339_v51 = vadd.f32 %v2408_v8, %v2407_v7  ;;  %v2598_v11 = vmul.f32 %v2502_v16, %v5559_v43  ;;  %v2601_v22 = vmul.f32 %v2505_v34, %v4722_v33  ;;  %v2604_v15 = vmul.f32 %v2508_v24, %v5559_v43 }
 0x56f   :  { %v2607_v25 = vmul.f32 %v2511_v13, %v4722_v33  ;;  %v2800_v1 = vadd.f32 %v2565_v47, %v2562_v50  ;;  %v2823_v57 = vadd.f32 %v2571_v32, %v2568_v48  ;;  %v2846_v55 = vadd.f32 %v2577_v36, %v2574_v41 }
 0x570   :  { %v2869_v60 = vadd.f32 %v2583_v21, %v2580_v26  ;;  %v2892_v12 = vadd.f32 %v2589_v10, %v2586_v45  ;;  %v2915_v31 = vadd.f32 %v2595_v27, %v2592_v9  ;;  %v2938_v3 = vadd.f32 %v2601_v22, %v2598_v11 }
 0x571   :  { %v2801_v19 = vrot.slane %v2800_v1, 4  ;;  %v2824_v30 = vrot.slane %v2823_v57, 4  ;;  %v2961_v20 = vadd.f32 %v2607_v25, %v2604_v15  ;;  %v2847_v61 = vrot.slane %v2846_v55, 4 }
 0x572   :  { %v2870_v39 = vrot.slane %v2869_v60, 4  ;;  %v2893_v23 = vrot.slane %v2892_v12, 4  ;;  %v2916_v40 = vrot.slane %v2915_v31, 4  ;;  %v2939_v42 = vrot.slane %v2938_v3, 4 }
 0x573   :  { %v2802_v29 = vadd.f32 %v2801_v19, %v2800_v1  ;;  %v2825_v62 = vadd.f32 %v2824_v30, %v2823_v57  ;;  %v2962_v14 = vrot.slane %v2961_v20, 4  ;;  %v2848_v2 = vadd.f32 %v2847_v61, %v2846_v55  ;;  %v2040_v55 = vld [vmem:[%s5521_s4 + $0xc0] sm:$0xff]  ;;  %v2043_v30 = vld [vmem:[%s5521_s4 + $0xd8] sm:$0xff] }
 0x574   :  { %v2871_v33 = vadd.f32 %v2870_v39, %v2869_v60  ;;  %v2894_v58 = vadd.f32 %v2893_v23, %v2892_v12  ;;  %v2917_v28 = vadd.f32 %v2916_v40, %v2915_v31  ;;  %v2940_v5 = vadd.f32 %v2939_v42, %v2938_v3  ;;  %v2046_v3 = vld [vmem:[%s5521_s4 + $0xf0] sm:$0xff]  ;;  %v2052_v23 = vld [vmem:[%s5521_s4 + $0x120] sm:$0xff]  ;;  %v2055_v40 = vld [vmem:[%s5521_s4 + $0x138] sm:$0xff] }
 0x575   :  { %v2803_v52 = vrot.slane %v2802_v29, 2  ;;  %v2826_v38 = vrot.slane %v2825_v62, 2  ;;  %v2963_v7 = vadd.f32 %v2962_v14, %v2961_v20  ;;  %v2849_v59 = vrot.slane %v2848_v2, 2  ;;  %v2049_v20 = vld [vmem:[%s5521_s4 + $0x108] sm:$0xff] }
 0x576   :  { %v2872_v54 = vrot.slane %v2871_v33, 2  ;;  %v2895_v37 = vrot.slane %v2894_v58, 2  ;;  %v2918_v43 = vrot.slane %v2917_v28, 2  ;;  %v2941_v16 = vrot.slane %v2940_v5, 2 }
 0x577   :  { %v2804_v50 = vadd.f32 %v2803_v52, %v2802_v29  ;;  %v2827_v49 = vadd.f32 %v2826_v38, %v2825_v62  ;;  %v2964_v34 = vrot.slane %v2963_v7, 2  ;;  %v2850_v47 = vadd.f32 %v2849_v59, %v2848_v2  ;;  %v2058_v29 = vld [vmem:[%s5521_s4 + $0x150] sm:$0xff] }
 0x578   :  { %v2873_v48 = vadd.f32 %v2872_v54, %v2871_v33  ;;  %v2896_v32 = vadd.f32 %v2895_v37, %v2894_v58  ;;  %v2919_v41 = vadd.f32 %v2918_v43, %v2917_v28  ;;  %v2942_v13 = vadd.f32 %v2941_v16, %v2940_v5 }
 0x579   :  { %v2805_v8 = vrot.slane %v2804_v50, 1  ;;  %v2828_v24 = vrot.slane %v2827_v49, 1  ;;  %v2965_v36 = vadd.f32 %v2964_v34, %v2963_v7  ;;  %v2851_v26 = vrot.slane %v2850_v47, 1 }
 0x57a   :  { %v2874_v21 = vrot.slane %v2873_v48, 1  ;;  %v2897_v45 = vrot.slane %v2896_v32, 1  ;;  %v2920_v10 = vrot.slane %v2919_v41, 1  ;;  %v2943_v11 = vrot.slane %v2942_v13, 1 }
 0x57b   :  { %v2806_v9 = vadd.f32 %v2805_v8, %v2804_v50  ;;  %v2829_v27 = vadd.f32 %v2828_v24, %v2827_v49  ;;  %v2966_v22 = vrot.slane %v2965_v36, 1  ;;  %v2852_v15 = vadd.f32 %v2851_v26, %v2850_v47 }
 0x57c   :  { %v2875_v25 = vadd.f32 %v2874_v21, %v2873_v48  ;;  %v2898_v1 = vadd.f32 %v2897_v45, %v2896_v32  ;;  %v2921_v57 = vadd.f32 %v2920_v10, %v2919_v41  ;;  %v2944_v60 = vadd.f32 %v2943_v11, %v2942_v13 }
 0x57d   :  { %v2967_v12 = vadd.f32 %v2966_v22, %v2965_v36  ;;  %v3002_v31 = vadd.f32 %v2806_v9, %v5272_v53  ;;  %v3005_v19 = vadd.f32 %v2829_v27, %v5283_v18  ;;  %v3008_v61 = vadd.f32 %v2852_v15, %v5285_v6 }
 0x57e   :  { %v3011_v39 = vadd.f32 %v2875_v25, %v5287_v44  ;;  %v3014_v53 = vadd.f32 %v2898_v1, %v5289_v46  ;;  %v3017_v18 = vadd.f32 %v2921_v57, %v5300_v17  ;;  %v3020_v6 = vadd.f32 %v2944_v60, %v5325_v0  ;;  %v2061_v17 = vld [vmem:[%s5521_s4 + $0x168] sm:$0xff] }
 0x57f   :  { %v3023_v44 = vadd.f32 %v2967_v12, %v5339_v51  ;;  %v3159_v46 = vsel %vm3124_vm11, %v3005_v19, %v3002_v31  ;;  %v2088_v62 = vmul.f32 %v2040_v55, %v5552_v63  ;;  %v2091_v14 = vmul.f32 %v2043_v30, %v5552_v63 }
 0x580   :  { %v3160_v42 = vsel %vm3126_vm12, %v3008_v61, %v3159_v46  ;;  %v2094_v2 = vmul.f32 %v2046_v3, %v5552_v63  ;;  %v2097_v33 = vmul.f32 %v2049_v20, %v5552_v63  ;;  %v2100_v51 = vmul.f32 %v2052_v23, %v5552_v63  ;;  %v2465_v3 = vld [vmem:[%s5520_s5 + $0x180] sm:$0xff]  ;;  %v2471_v20 = vld [vmem:[%s5520_s5 + $0x1b0] sm:$0xff] }
 0x581   :  { %v3161_v0 = vsel %vm3128_vm13, %v3011_v39, %v3160_v42  ;;  %v2103_v58 = vmul.f32 %v2055_v40, %v5552_v63  ;;  %v2106_v28 = vmul.f32 %v2058_v29, %v5552_v63  ;;  %v2109_v38 = vmul.f32 %v2061_v17, %v5552_v63  ;;  %v2477_v61 = vld [vmem:[%s5520_s5 + $0x1e0] sm:$0xff]  ;;  %v2468_v39 = vld [vmem:[%s5520_s5 + $0x198] sm:$0xff] }
 0x582   :  { %v3162_v52 = vsel %vm3130_vm14, %v3014_v53, %v3161_v0  ;;  %v2265_v5 = vrot.slane %v2088_v62, 4  ;;  %v2284_v7 = vrot.slane %v2091_v14, 4  ;;  %v2303_v54 = vrot.slane %v2094_v2, 4  ;;  %v2474_v53 = vld [vmem:[%s5520_s5 + $0x1c8] sm:$0xff]  ;;  %v2489_v46 = vld [vmem:[%s5520_s5 + $0x240] sm:$0xff] }
 0x583   :  { %v3163_v59 = vsel %vm3132_vm15, %v3017_v18, %v3162_v52  ;;  %v2322_v37 = vrot.slane %v2097_v33, 4  ;;  %v2341_v43 = vrot.slane %v2100_v51, 4  ;;  %v2360_v34 = vrot.slane %v2103_v58, 4  ;;  %v2483_v18 = vld [vmem:[%s5520_s5 + $0x210] sm:$0xff]  ;;  %v2501_v0 = vld [vmem:[%s5520_s5 + $0x2a0] sm:$0xff] }
 0x584   :  { %v3164_v50 = vsel %vm3134_vm0, %v3020_v6, %v3163_v59  ;;  %v2266_v49 = vadd.f32 %v2265_v5, %v2088_v62  ;;  %v2285_v16 = vadd.f32 %v2284_v7, %v2091_v14  ;;  %v2304_v48 = vadd.f32 %v2303_v54, %v2094_v2  ;;  %v2480_v6 = vld [vmem:[%s5520_s5 + $0x1f8] sm:$0xff]  ;;  %v2507_v52 = vld [vmem:[%s5520_s5 + $0x2d0] sm:$0xff]  ;;  %v2510_v59 = vld [vmem:[%s5520_s5 + $0x2e8] sm:$0xff] }
 0x585   :  { %v3165_v47 = vsel %vm3136_vm1, %v3023_v44, %v3164_v50  ;;  %v2323_v32 = vadd.f32 %v2322_v37, %v2097_v33  ;;  %v2342_v41 = vadd.f32 %v2341_v43, %v2100_v51  ;;  %v2361_v24 = vadd.f32 %v2360_v34, %v2103_v58  ;;  %v2486_v44 = vld [vmem:[%s5520_s5 + $0x228] sm:$0xff]  ;;  %v2492_v2 = vld [vmem:[%s5520_s5 + $0x258] sm:$0xff]  ;;  %v2495_v33 = vld [vmem:[%s5520_s5 + $0x270] sm:$0xff] }
 0x586   :  { %3254 = vmatprep.mubr.f32.mxu0 %v3165_v47  ;;  %v2267_v8 = vrot.slane %v2266_v49, 2  ;;  %v2286_v63 = vrot.slane %v2285_v16, 2  ;;  %v2379_v13 = vrot.slane %v2106_v28, 4  ;;  %v2305_v36 = vrot.slane %v2304_v48, 2  ;;  %v2498_v58 = vld [vmem:[%s5520_s5 + $0x288] sm:$0xff] }
 0x587   :  { %v2324_v26 = vrot.slane %v2323_v32, 2  ;;  %v2343_v21 = vrot.slane %v2342_v41, 2  ;;  %v2398_v45 = vrot.slane %v2109_v38, 4  ;;  %v2362_v27 = vrot.slane %v2361_v24, 2 }
 0x588   :  { %v2268_v10 = vadd.f32 %v2267_v8, %v2266_v49  ;;  %v2287_v9 = vadd.f32 %v2286_v63, %v2285_v16  ;;  %v2380_v11 = vadd.f32 %v2379_v13, %v2106_v28  ;;  %v2306_v22 = vadd.f32 %v2305_v36, %v2304_v48  ;;  %v2504_v28 = vld [vmem:[%s5520_s5 + $0x2b8] sm:$0xff] }
 0x589   :  { %v2325_v15 = vadd.f32 %v2324_v26, %v2323_v32  ;;  %v5393_v25 = vadd.f32 %v2343_v21, %v2342_v41  ;;  %v2399_v1 = vadd.f32 %v2398_v45, %v2109_v38  ;;  %v5395_v60 = vadd.f32 %v2362_v27, %v2361_v24 }
 0x58a   :  { %v2269_v57 = vrot.slane %v2268_v10, 1  ;;  %v2288_v55 = vrot.slane %v2287_v9, 1  ;;  %v2381_v12 = vrot.slane %v2380_v11, 2  ;;  %v2307_v31 = vrot.slane %v2306_v22, 1 }
 0x58b   :  { %v2326_v19 = vrot.slane %v2325_v15, 1  ;;  %v2400_v30 = vrot.slane %v2399_v1, 2  ;;  %v2345_v29 = vrot.slane %v5393_v25, 1  ;;  %v2364_v42 = vrot.slane %v5395_v60, 1 }
 0x58c   :  { %v5415_v23 = vadd.f32 %v2269_v57, %v2268_v10  ;;  %v5417_v40 = vadd.f32 %v2288_v55, %v2287_v9  ;;  %v5429_v17 = vadd.f32 %v2307_v31, %v2306_v22  ;;  %v5434_v14 = vadd.f32 %v2381_v12, %v2380_v11 }
 0x58d   :  { %v5431_v62 = vadd.f32 %v2326_v19, %v2325_v15  ;;  %v5445_v51 = vadd.f32 %v2400_v30, %v2399_v1  ;;  %v2561_v38 = vmul.f32 %v2465_v3, %v5553_v35  ;;  %v2564_v5 = vmul.f32 %v2468_v39, %v5554_v4 }
 0x58e   :  { %v2570_v7 = vmul.f32 %v2474_v53, %v5554_v4  ;;  %v2567_v54 = vmul.f32 %v2471_v20, %v5553_v35  ;;  %v2573_v37 = vmul.f32 %v2477_v61, %v5553_v35  ;;  %v2576_v43 = vmul.f32 %v2480_v6, %v5554_v4 }
 0x58f   :  { %v2582_v50 = vmul.f32 %v2486_v44, %v5554_v4  ;;  %v2579_v49 = vmul.f32 %v2483_v18, %v5553_v35  ;;  %v2585_v16 = vmul.f32 %v2489_v46, %v5553_v35  ;;  %v2588_v34 = vmul.f32 %v2492_v2, %v5554_v4 }
 0x590   :  { %v2591_v47 = vmul.f32 %v2495_v33, %v5553_v35  ;;  %v2594_v48 = vmul.f32 %v2498_v58, %v5554_v4  ;;  %v2597_v32 = vmul.f32 %v2501_v0, %v5553_v35  ;;  %v2600_v41 = vmul.f32 %v2504_v28, %v5554_v4 }
 0x591   :  { %v2603_v8 = vmul.f32 %v2507_v52, %v5553_v35  ;;  %v2606_v63 = vmul.f32 %v2510_v59, %v5554_v4  ;;  %v2793_v24 = vadd.f32 %v2564_v5, %v2561_v38  ;;  %v2816_v13 = vadd.f32 %v2570_v7, %v2567_v54 }
 0x592   :  { %v2839_v36 = vadd.f32 %v2576_v43, %v2573_v37  ;;  %v2862_v26 = vadd.f32 %v2582_v50, %v2579_v49  ;;  %v2885_v21 = vadd.f32 %v2588_v34, %v2585_v16  ;;  %v2908_v45 = vadd.f32 %v2594_v48, %v2591_v47 }
 0x593   :  { %v2931_v10 = vadd.f32 %v2600_v41, %v2597_v32  ;;  %v2794_v9 = vrot.slane %v2793_v24, 4  ;;  %v2817_v27 = vrot.slane %v2816_v13, 4  ;;  %v2954_v22 = vadd.f32 %v2606_v63, %v2603_v8 }
 0x594   :  { %v2840_v11 = vrot.slane %v2839_v36, 4  ;;  %v2863_v15 = vrot.slane %v2862_v26, 4  ;;  %v2886_v1 = vrot.slane %v2885_v21, 4  ;;  %v2909_v57 = vrot.slane %v2908_v45, 4 }
 0x595   :  { %v2932_v55 = vrot.slane %v2931_v10, 4  ;;  %v2795_v12 = vadd.f32 %v2794_v9, %v2793_v24  ;;  %v2818_v31 = vadd.f32 %v2817_v27, %v2816_v13  ;;  %v2955_v19 = vrot.slane %v2954_v22, 4 }
 0x596   :  { %v2841_v35 = vadd.f32 %v2840_v11, %v2839_v36  ;;  %v2864_v4 = vadd.f32 %v2863_v15, %v2862_v26  ;;  %v2887_v30 = vadd.f32 %v2886_v1, %v2885_v21  ;;  %v2910_v3 = vadd.f32 %v2909_v57, %v2908_v45 }
 0x597   :  { %v2933_v20 = vadd.f32 %v2932_v55, %v2931_v10  ;;  %v2796_v61 = vrot.slane %v2795_v12, 2  ;;  %v2819_v39 = vrot.slane %v2818_v31, 2  ;;  %v2956_v18 = vadd.f32 %v2955_v19, %v2954_v22 }
 0x598   :  { %v2842_v53 = vrot.slane %v2841_v35, 2  ;;  %v2865_v6 = vrot.slane %v2864_v4, 2  ;;  %v2888_v44 = vrot.slane %v2887_v30, 2  ;;  %v2911_v46 = vrot.slane %v2910_v3, 2 }
 0x599   :  { %v2934_v2 = vrot.slane %v2933_v20, 2  ;;  %v2797_v33 = vadd.f32 %v2796_v61, %v2795_v12  ;;  %v2820_v0 = vadd.f32 %v2819_v39, %v2818_v31  ;;  %v2957_v28 = vrot.slane %v2956_v18, 2 }
 0x59a   :  { %v2843_v58 = vadd.f32 %v2842_v53, %v2841_v35  ;;  %v2866_v52 = vadd.f32 %v2865_v6, %v2864_v4  ;;  %v2889_v38 = vadd.f32 %v2888_v44, %v2887_v30  ;;  %v2912_v5 = vadd.f32 %v2911_v46, %v2910_v3 }
 0x59b   :  { %v2935_v7 = vadd.f32 %v2934_v2, %v2933_v20  ;;  %v2798_v59 = vrot.slane %v2797_v33, 1  ;;  %v2821_v54 = vrot.slane %v2820_v0, 1  ;;  %v2958_v43 = vadd.f32 %v2957_v28, %v2956_v18 }
 0x59c   :  { %v2844_v37 = vrot.slane %v2843_v58, 1  ;;  %v2383_v50 = vrot.slane %v5434_v14, 1  ;;  %v2402_v49 = vrot.slane %v5445_v51, 1  ;;  %v2867_v16 = vrot.slane %v2866_v52, 1 }
 0x59d   :  { %v2890_v34 = vrot.slane %v2889_v38, 1  ;;  %v2799_v47 = vadd.f32 %v2798_v59, %v2797_v33  ;;  %v2822_v48 = vadd.f32 %v2821_v54, %v2820_v0  ;;  %v2913_v41 = vrot.slane %v2912_v5, 1  ;;  %v3335_v0 = vld [vmem:[%s5524_s7] sm:$0xff] }
 0x59e   :  { %v2845_v32 = vadd.f32 %v2844_v37, %v2843_v58  ;;  %v2346_v8 = vadd.f32 %v2345_v29, %v5393_v25  ;;  %v2365_v63 = vadd.f32 %v2364_v42, %v5395_v60  ;;  %v2936_v24 = vrot.slane %v2935_v7, 1  ;;  %v3064_v25 = vld [vmem:[%s5522_s6] sm:$0xff]  ;;  %v3065_v60 = vld [vmem:[%s5522_s6 + $0x8] sm:$0xff] }
 0x59f   :  { %v2959_v13 = vrot.slane %v2958_v43, 1  ;;  %v2868_v36 = vadd.f32 %v2867_v16, %v2866_v52  ;;  %v3001_v26 = vadd.f32 %v2799_v47, %v5415_v23  ;;  %v3004_v21 = vadd.f32 %v2822_v48, %v5417_v40 }
 0x5a0   :  { %v3007_v45 = vadd.f32 %v2845_v32, %v5429_v17  ;;  %v2384_v10 = vadd.f32 %v2383_v50, %v5434_v14  ;;  %v2403_v9 = vadd.f32 %v2402_v49, %v5445_v51  ;;  %v2891_v27 = vadd.f32 %v2890_v34, %v2889_v38 }
 0x5a1   :  { %v2914_v29 = vadd.f32 %v2913_v41, %v2912_v5  ;;  %v3010_v23 = vadd.f32 %v2868_v36, %v5431_v62  ;;  %v3152_v40 = vsel %vm3124_vm11, %v3004_v21, %v3001_v26  ;;  %v2937_v42 = vadd.f32 %v2936_v24, %v2935_v7  ;;  %v3336_v62 = vld [vmem:[%s5523_s8] sm:$0xff] }
 0x5a2   :  { %v3013_v17 = vadd.f32 %v2891_v27, %v2346_v8  ;;  %v3153_v14 = vsel %vm3126_vm12, %v3007_v45, %v3152_v40  ;;  %v3822_v11 = vmov 0   ;;  %v2960_v51 = vadd.f32 %v2959_v13, %v2958_v43 }
 0x5a3   :  { %3810 = vset.pattern.permute.xlu0 %v3822_v11  ;;  %3809 = vset.pattern.permute.xlu1 %v3822_v11  ;;  %v3016_v22 = vadd.f32 %v2914_v29, %v2365_v63  ;;  %v3154_v15 = vsel %vm3128_vm13, %v3010_v23, %v3153_v14  ;;  %v3019_v1 = vadd.f32 %v2937_v42, %v2384_v10 }
 0x5a4   :  { %3068 = vperm.xlu0 %3810, %v3064_v25   ;;  %3073 = vperm.xlu1 %3809, %v3065_v60   ;;  %v3155_v57 = vsel %vm3130_vm14, %v3013_v17, %v3154_v15  ;;  %v3022_v55 = vadd.f32 %v2960_v51, %v2403_v9 }
 0x5a5   :  { %v3156_v12 = vsel %vm3132_vm15, %v3016_v22, %v3155_v57 }
 0x5a6   :  { %v3157_v31 = vsel %vm3134_vm0, %v3019_v1, %v3156_v12 }
 0x5a7   :  { %v3158_v35 = vsel %vm3136_vm1, %v3022_v55, %v3157_v31 }
 0x5a8   :  { %3339 = vperm.xlu1 %3809, %v3336_v62   ;;  %3255 = vmatmul.mubr.f32.gmra.mxu0 %v3158_v35 }
 0x5f8   :  { %v3623_v19 = vpop.f32.mrf.mxu0 }
 0x5fa   :  { %v3624_v4 = vpop.f32.mrf.mxu0 }
 0x5fb   :  { %v3625_v3 = vadd.f32 %v3624_v4, %v3623_v19 }
 0x61f   :  { %v3069_v20 = vpop.permute.xlu0 %3068  ;;  %v3074_v18 = vpop.permute.xlu1 %3073 }
 0x620   :  { %v3252_v6 = vadd.f32 %v3625_v3, %v3069_v20 }
 0x623   :  { %v3792_v53 = vpop.f32.mrf.mxu1  ;;  %v3340_v58 = vpop.permute.xlu1 %3339 }
 0x625   :  { %v3326_v2 = vpop.f32.mrf.mxu1 }
 0x626   :  { %v3327_v33 = vadd.f32 %v3326_v2, %v3252_v6 }
 0x668   :  { %v3626_v30 = vpop.f32.mrf.mxu0 }
 0x66a   :  { %v3627_v61 = vpop.f32.mrf.mxu0 }
 0x66b   :  { %v3628_v39 = vadd.f32 %v3627_v61, %v3626_v30 }
 0x66d   :  { %v3257_v44 = vadd.f32 %v3628_v39, %v3074_v18 }
 0x66f   :  { %v3332_v46 = vadd.f32 %v3792_v53, %v3257_v44 }
 0x671   :  { %3794 = vmatpush3.msra.mxu1 %v3332_v46 }
 0x672   :  { %3795 = vmatprep.subr.mxu1 %v5558_v56 }
 0x673   :  { %3796 = vmatpush3.msra.mxu1 %v3327_v33 }
 0x674   :  { %3798 = vmatmul.mubr.msk.f32.vlgmr.msra.gmra.mxu1 %vm3342_vm2, %v3335_v0 }
 0x734   :  { %v3412_v28 = vpop.f32.mrf.mxu1 }
 0x735   :  { %v3413_v52 = vadd.f32 %v3412_v28, %v3340_v58 }
 0x736   :  { %v3799_v38 = vpop.f32.mrf.mxu1 }
 0x737   :  { %v3417_v5 = vsel %vm3416_vm3, %v3413_v52, -inf }
 0x738   :  { %v3418_v7 = vrot.slane %v3417_v5, 4 }
 0x73a   :  { %v3419_v59 = vmax.f32 %v3417_v5, %v3418_v7 }
 0x73c   :  { %v3420_v54 = vrot.slane %v3419_v59, 2 }
 0x73e   :  { %v3421_v37 = vmax.f32 %v3419_v59, %v3420_v54 }
 0x740   :  { %v3422_v43 = vrot.slane %v3421_v37, 1 }
 0x742   :  { %v3423_v50 = vmax.f32 %v3421_v37, %v3422_v43 }
 0x744   :  { %v3424_v49 = vsub.f32 %v3413_v52, %v3423_v50 }
 0x746   :  { %v3425_v16 = vmul.f32 1.442695, %v3424_v49 }
 0x748   :  { %3812 = vpow2.f32 %v3425_v16 }
 0x755   :  { %v3813_v34 = vpop.eup %3812 }
 0x756   :  { %v3427_v56 = vsel %vm3416_vm3, %v3813_v34, 0.0 }
 0x757   :  { %v3428_v47 = vrot.slane %v3427_v56, 4 }
 0x759   :  { %v3429_v48 = vadd.f32 %v3428_v47, %v3427_v56 }
 0x75b   :  { %v3430_v32 = vrot.slane %v3429_v48, 2 }
 0x75d   :  { %v3431_v41 = vadd.f32 %v3430_v32, %v3429_v48 }
 0x75f   :  { %v3432_v8 = vrot.slane %v3431_v41, 1 }
 0x761   :  { %v3433_v63 = vadd.f32 %v3432_v8, %v3431_v41 }
 0x763   :  { %3814 = vrcp.f32 %v3433_v63 }
 0x770   :  { %v3815_v24 = vpop.eup %3814 }
 0x771   :  { %v3435_v13 = vmul.f32 %v3815_v24, %v3813_v34 }
 0x773   :  { %3436 = vst.msk [vmem:[%s5525_s10] sm:$0xff] %vm3416_vm3, %v3435_v13 }

</bundles_post_ra>
